<compile_context>
chip_gen: v7x
topology: tpu7x:2x2x1
jax: 0.10.0
libtpu: 0.0.40
codegen_flags: <defaults>
</compile_context>

<pallas_src>
import functools

import jax
import jax.numpy as jnp
from jax.experimental import pallas as pl
from jax.experimental.pallas import tpu as pltpu

_VMEM_LIMIT = 64 * 1024 * 1024  # cap; tiles below are sized well under 32 MiB


def _round_up(a, b):
    return (a + b - 1) // b * b


# ----------------------------------------------------------------------------
# Tiled GEMM kernel (the two nn.Linear layers): (M,K)@(K,N)+b, optional ReLU
# ----------------------------------------------------------------------------
def _matmul_kernel(x_ref, w_ref, b_ref, o_ref, acc_ref, *, act):
    @pl.when(pl.program_id(2) == 0)
    def _():
        acc_ref[...] = jnp.zeros_like(acc_ref)

    acc_ref[...] += jnp.dot(x_ref[...], w_ref[...],
                            preferred_element_type=jnp.float32)

    @pl.when(pl.program_id(2) == pl.num_programs(2) - 1)
    def _():
        y = acc_ref[...] + b_ref[...]
        if act == "relu":
            y = jnp.maximum(y, 0.0)
        o_ref[...] = y.astype(o_ref.dtype)


def matmul_bias_act(x, w, b, act="none", out_dtype=jnp.float32):
    """x:(M,K) @ w:(K,N) + b, bf16 MXU inputs, f32 accumulation + epilogue."""
    M, K = x.shape
    K2, N = w.shape
    assert K == K2
    tm = min(512, _round_up(M, 8))
    tk = min(512, _round_up(K, 128))
    tn = min(256, _round_up(N, 128))
    Mp, Kp, Np = _round_up(M, tm), _round_up(K, tk), _round_up(N, tn)
    xp = jnp.pad(x.astype(jnp.bfloat16), ((0, Mp - M), (0, Kp - K)))
    wp = jnp.pad(w.astype(jnp.bfloat16), ((0, Kp - K), (0, Np - N)))
    bp = jnp.pad(b.astype(jnp.float32).reshape(1, N), ((0, 0), (0, Np - N)))
    out = pl.pallas_call(
        functools.partial(_matmul_kernel, act=act),
        out_shape=jax.ShapeDtypeStruct((Mp, Np), out_dtype),
        grid_spec=pltpu.PrefetchScalarGridSpec(
            num_scalar_prefetch=0,
            grid=(Mp // tm, Np // tn, Kp // tk),
            in_specs=[pl.BlockSpec((tm, tk), lambda i, j, k: (i, k)),
                      pl.BlockSpec((tk, tn), lambda i, j, k: (k, j)),
                      pl.BlockSpec((1, tn), lambda i, j, k: (0, j))],
            out_specs=pl.BlockSpec((tm, tn), lambda i, j, k: (i, j)),
            scratch_shapes=[pltpu.VMEM((tm, tn), jnp.float32)]),
        compiler_params=pltpu.CompilerParams(
            dimension_semantics=("parallel", "parallel", "arbitrary"),
            vmem_limit_bytes=_VMEM_LIMIT),
        cost_estimate=pl.CostEstimate(
            flops=2 * Mp * Kp * Np, transcendentals=0,
            bytes_accessed=2 * (Mp * Kp + Kp * Np) + 4 * Mp * Np),
    )(xp, wp, bp)
    return out[:M, :N]


# ----------------------------------------------------------------------------
# Framed stride-1 conv kernel: taps formed inside the kernel (no K-fold im2col)
# ----------------------------------------------------------------------------
def _conv_frames(x, K, pad_l, pad_r, tl):
    """(N, L, C) -> (N*nF, tl+K-1, C) overlapping frames (halo duplication only)."""
    N, L, C = x.shape
    nF = -(-L // tl)
    Lp = nF * tl
    TF = tl + K - 1
    xp = jnp.pad(x, ((0, 0), (pad_l, pad_r + Lp - L), (0, 0)))
    idx = jnp.arange(nF)[:, None] * tl + jnp.arange(TF)[None, :]
    frames = xp[:, idx, :].reshape(N * nF, TF, C)
    return frames, nF, Lp


def _conv_kernel(f_ref, w_ref, b_ref, o_ref, *, K, tl, act):
    f = f_ref[0]                                   # (tl+K-1, Cin) bf16
    cout = w_ref.shape[2]
    acc = jnp.zeros((tl, cout), jnp.float32)
    for t in range(K):                             # K shifted slices, MXU-accumulated
        acc += jnp.dot(f[t:t + tl, :], w_ref[t],
                       preferred_element_type=jnp.float32)
    y = acc + b_ref[...]
    if act == "relu":
        y = jnp.maximum(y, 0.0)
    elif act == "sigmoid":
        # exp lowers to the EUP; exact divide keeps the result in [0, 1]
        y = 1.0 / (1.0 + jnp.exp(-y))
    o_ref[0] = y.astype(o_ref.dtype)


def conv1d_taps(x, taps, bias, pad_l, pad_r, act="none",
                out_dtype=jnp.bfloat16, tl_max=512):
    """Stride-1 conv: y[n,l] = sum_t x_pad[n,l+t] @ taps[t] + bias (Lout == L)."""
    N, L, Cin = x.shape
    K, _, Cout = taps.shape
    assert pad_l + pad_r == K - 1
    tl = min(tl_max, _round_up(L, 8))
    frames, nF, Lp = _conv_frames(x.astype(jnp.bfloat16), K, pad_l, pad_r, tl)
    TF = tl + K - 1
    out = pl.pallas_call(
        functools.partial(_conv_kernel, K=K, tl=tl, act=act),
        out_shape=jax.ShapeDtypeStruct((N * nF, tl, Cout), out_dtype),
        grid_spec=pltpu.PrefetchScalarGridSpec(
            num_scalar_prefetch=0,
            grid=(N * nF,),
            in_specs=[pl.BlockSpec((1, TF, Cin), lambda i: (i, 0, 0)),
                      pl.BlockSpec((K, Cin, Cout), lambda i: (0, 0, 0)),
                      pl.BlockSpec((1, Cout), lambda i: (0, 0))],
            out_specs=pl.BlockSpec((1, tl, Cout), lambda i: (i, 0, 0))),
        compiler_params=pltpu.CompilerParams(
            dimension_semantics=("parallel",),     # megacore shards frames on v7x
            vmem_limit_bytes=_VMEM_LIMIT),
        cost_estimate=pl.CostEstimate(
            flops=2 * N * Lp * K * Cin * Cout, transcendentals=0,
            bytes_accessed=2 * N * nF * TF * Cin + 2 * N * Lp * Cout),
    )(frames, taps.astype(jnp.bfloat16),
      bias.reshape(1, Cout).astype(jnp.float32))
    return out.reshape(N, Lp, Cout)[:, :L, :]


# ----------------------------------------------------------------------------
# Encoder conv + ReLU fused with per-channel sum / sumsq for the following BN
# ----------------------------------------------------------------------------
def _conv_stats_kernel(f_ref, w_ref, b_ref, o_ref, sum_ref, sq_ref, *, K, tl, L, nF):
    i = pl.program_id(0)
    f = f_ref[0]
    cout = w_ref.shape[2]
    acc = jnp.zeros((tl, cout), jnp.float32)
    for t in range(K):
        acc += jnp.dot(f[t:t + tl, :], w_ref[t],
                       preferred_element_type=jnp.float32)
    y = jnp.maximum(acc + b_ref[...], 0.0)         # conv + bias + ReLU
    o_ref[0] = y.astype(o_ref.dtype)

    # mask tokens that only exist because L was padded up to whole tiles
    pos = (i % nF) * tl + jax.lax.broadcasted_iota(jnp.int32, (tl, 1), 0)
    ym = jnp.where(pos < L, y, 0.0)

    @pl.when(i == 0)
    def _():
        sum_ref[...] = jnp.zeros_like(sum_ref)
        sq_ref[...] = jnp.zeros_like(sq_ref)

    sum_ref[...] += jnp.sum(ym, axis=0, keepdims=True)
    sq_ref[...] += jnp.sum(ym * ym, axis=0, keepdims=True)


def conv1d_relu_stats(x, taps, bias, tl_max=512):
    """'same' conv + ReLU, fused with BN statistics accumulation."""
    N, L, Cin = x.shape
    K, _, Cout = taps.shape
    pad_l, pad_r = K // 2, (K - 1) // 2
    tl = min(tl_max, _round_up(L, 8))
    frames, nF, Lp = _conv_frames(x.astype(jnp.bfloat16), K, pad_l, pad_r, tl)
    TF = tl + K - 1
    y, s, q = pl.pallas_call(
        functools.partial(_conv_stats_kernel, K=K, tl=tl, L=L, nF=nF),
        out_shape=(jax.ShapeDtypeStruct((N * nF, tl, Cout), jnp.bfloat16),
                   jax.ShapeDtypeStruct((1, Cout), jnp.float32),
                   jax.ShapeDtypeStruct((1, Cout), jnp.float32)),
        grid_spec=pltpu.PrefetchScalarGridSpec(
            num_scalar_prefetch=0,
            grid=(N * nF,),
            in_specs=[pl.BlockSpec((1, TF, Cin), lambda i: (i, 0, 0)),
                      pl.BlockSpec((K, Cin, Cout), lambda i: (0, 0, 0)),
                      pl.BlockSpec((1, Cout), lambda i: (0, 0))],
            out_specs=[pl.BlockSpec((1, tl, Cout), lambda i: (i, 0, 0)),
                       pl.BlockSpec((1, Cout), lambda i: (0, 0)),
                       pl.BlockSpec((1, Cout), lambda i: (0, 0))]),
        compiler_params=pltpu.CompilerParams(
            dimension_semantics=("arbitrary",),    # stats accumulate across grid
            vmem_limit_bytes=_VMEM_LIMIT),
        cost_estimate=pl.CostEstimate(
            flops=2 * N * Lp * K * Cin * Cout, transcendentals=0,
            bytes_accessed=2 * N * nF * TF * Cin + 2 * N * Lp * Cout),
    )(frames, taps.astype(jnp.bfloat16),
      bias.reshape(1, Cout).astype(jnp.float32))
    return y.reshape(N, Lp, Cout)[:, :L, :], s, q


def _bn_scale_shift(s, q, count, gamma, beta, eps=1e-5):
    # TODO(synk): E[x^2]-E[x]^2 can lose precision for very large means; a centered
    # second pass would be more robust but costs an extra read of the activation.
    mean = s / count
    var = jnp.maximum(q / count - mean * mean, 0.0)
    inv = jax.lax.rsqrt(var + eps)
    scale = gamma.reshape(1, -1) * inv
    shift = beta.reshape(1, -1) - mean * scale
    return scale.astype(jnp.float32), shift.astype(jnp.float32)


# ----------------------------------------------------------------------------
# BN affine application (optionally fused with MaxPool1d(2,2))
# ----------------------------------------------------------------------------
def _bn_apply_kernel(x_ref, s_ref, t_ref, o_ref):
    o_ref[...] = (x_ref[...].astype(jnp.float32) * s_ref[...]
                  + t_ref[...]).astype(o_ref.dtype)


def bn_apply(x, scale, shift, tm_max=1024):
    N, L, C = x.shape
    M = N * L
    tm = min(tm_max, _round_up(M, 8))
    Mp = _round_up(M, tm)
    x2 = jnp.pad(x.reshape(M, C), ((0, Mp - M), (0, 0)))
    out = pl.pallas_call(
        _bn_apply_kernel,
        out_shape=jax.ShapeDtypeStruct((Mp, C), jnp.bfloat16),
        grid_spec=pltpu.PrefetchScalarGridSpec(
            num_scalar_prefetch=0,
            grid=(Mp // tm,),
            in_specs=[pl.BlockSpec((tm, C), lambda i: (i, 0)),
                      pl.BlockSpec((1, C), lambda i: (0, 0)),
                      pl.BlockSpec((1, C), lambda i: (0, 0))],
            out_specs=pl.BlockSpec((tm, C), lambda i: (i, 0))),
        compiler_params=pltpu.CompilerParams(
            dimension_semantics=("parallel",),
            vmem_limit_bytes=_VMEM_LIMIT),
    )(x2, scale, shift)
    return out[:M].reshape(N, L, C)


def _bn_maxpool_kernel(x_ref, s_ref, t_ref, o_ref):
    x = x_ref[...].astype(jnp.float32)             # (tm, 2, C)
    y = x * s_ref[...] + t_ref[...]
    o_ref[...] = jnp.maximum(y[:, 0, :], y[:, 1, :]).astype(o_ref.dtype)


def bn_apply_maxpool(x, scale, shift, tm_max=1024):
    """BN affine + MaxPool1d(2,2); input is a contiguous reshape (no strided copies)."""
    N, L, C = x.shape
    L2 = L // 2
    M = N * L2
    tm = min(tm_max, _round_up(M, 8))
    Mp = _round_up(M, tm)
    x2 = jnp.pad(x.reshape(M, 2, C), ((0, Mp - M), (0, 0), (0, 0)))
    out = pl.pallas_call(
        _bn_maxpool_kernel,
        out_shape=jax.ShapeDtypeStruct((Mp, C), jnp.bfloat16),
        grid_spec=pltpu.PrefetchScalarGridSpec(
            num_scalar_prefetch=0,
            grid=(Mp // tm,),
            in_specs=[pl.BlockSpec((tm, 2, C), lambda i: (i, 0, 0)),
                      pl.BlockSpec((1, 1, C), lambda i: (0, 0, 0)),
                      pl.BlockSpec((1, 1, C), lambda i: (0, 0, 0))],
            out_specs=pl.BlockSpec((tm, C), lambda i: (i, 0))),
        compiler_params=pltpu.CompilerParams(
            dimension_semantics=("parallel",),
            vmem_limit_bytes=_VMEM_LIMIT),
    )(x2, scale.reshape(1, 1, C), shift.reshape(1, 1, C))
    return out[:M].reshape(N, L2, C)


# ----------------------------------------------------------------------------
# Parameter init (deterministic, synthetic, PyTorch layouts) + one-time prep
# ----------------------------------------------------------------------------
def _uniform(key, shape, fan_in):
    bound = 1.0 / (float(fan_in) ** 0.5)
    return jax.random.uniform(key, shape, jnp.float32, -bound, bound)


def init_params(key, audio_len, n_mels, n_layer, channels, latent_dim):
    keys = iter(jax.random.split(key, 128))
    p = {}
    ch = list(channels)

    p["enc_in_w"] = _uniform(next(keys), (ch[0], n_mels, 7), n_mels * 7)
    p["enc_in_b"] = _uniform(next(keys), (ch[0],), n_mels * 7)
    p["enc_in_g"] = jnp.ones((ch[0],), jnp.float32)
    p["enc_in_beta"] = jnp.zeros((ch[0],), jnp.float32)
    enc_down = []
    in_ch = ch[0]
    for i in range(n_layer):
        w = _uniform(next(keys), (ch[i], in_ch, 3), in_ch * 3)
        b = _uniform(next(keys), (ch[i],), in_ch * 3)
        enc_down.append((w, b, jnp.ones((ch[i],), jnp.float32),
                         jnp.zeros((ch[i],), jnp.float32)))
        in_ch = ch[i]
    p["enc_down"] = enc_down
    feat = ch[-1] * (audio_len // 2 ** n_layer)
    p["enc_fc_w"] = _uniform(next(keys), (latent_dim, feat), feat)
    p["enc_fc_b"] = _uniform(next(keys), (latent_dim,), feat)

    rch = list(channels)[::-1]
    L0 = audio_len // 2 ** n_layer
    p["dec_fc_w"] = _uniform(next(keys), (L0 * rch[0], latent_dim), latent_dim)
    p["dec_fc_b"] = _uniform(next(keys), (L0 * rch[0],), latent_dim)
    dec_up = []
    in_ch = rch[0]
    for i in range(n_layer):
        cw = _uniform(next(keys), (rch[i], in_ch, 3), in_ch * 3)
        cb = _uniform(next(keys), (rch[i],), in_ch * 3)
        tw = _uniform(next(keys), (rch[i], rch[i], 3), rch[i] * 3)  # (Cin, Cout, K)
        tb = _uniform(next(keys), (rch[i],), rch[i] * 3)
        dec_up.append((cw, cb, tw, tb))
        in_ch = rch[i]
    p["dec_up"] = dec_up
    p["out_conv_w"] = _uniform(next(keys), (n_mels, rch[-1], 1), rch[-1])
    p["out_conv_b"] = _uniform(next(keys), (n_mels,), rch[-1])
    return p


def prepare_params(p):
    """One-time layout / dtype conversion (transposes & bf16 casts happen once)."""
    f32, bf16 = jnp.float32, jnp.bfloat16

    def conv_taps(w):  # PyTorch Conv1d (Cout, Cin, K) -> (K, Cin, Cout)
        return jnp.transpose(w, (2, 1, 0)).astype(bf16)

    prep = {
        "enc_in": dict(taps=conv_taps(p["enc_in_w"]), bias=p["enc_in_b"].astype(f32),
                       gamma=p["enc_in_g"].astype(f32), beta=p["enc_in_beta"].astype(f32)),
        "enc_down": [dict(taps=conv_taps(w), bias=b.astype(f32),
                          gamma=g.astype(f32), beta=be.astype(f32))
                     for (w, b, g, be) in p["enc_down"]],
        "enc_fc_w": p["enc_fc_w"].T.astype(bf16),
        "enc_fc_b": p["enc_fc_b"].astype(f32),
        "dec_fc_w": p["dec_fc_w"].T.astype(bf16),
        "dec_fc_b": p["dec_fc_b"].astype(f32),
        "dec_up": [],
        "out_conv": dict(taps=conv_taps(p["out_conv_w"]),
                         bias=p["out_conv_b"].astype(f32)),
    }
    for (cw, cb, tw, tb) in p["dec_up"]:
        # ConvTranspose1d weight (Cin, Cout, K=3), phase-decomposed:
        #   even outputs: x @ W[:,:,1]; odd outputs: x @ W[:,:,2] + x_next @ W[:,:,0]
        prep["dec_up"].append(dict(
            conv_taps=conv_taps(cw), conv_b=cb.astype(f32),
            t_even=tw[:, :, 1][None].astype(bf16),                       # (1, Cin, Cout)
            t_odd=jnp.stack([tw[:, :, 2], tw[:, :, 0]], 0).astype(bf16),  # (2, Cin, Cout)
            t_bias=tb.astype(f32)))
    return prep


# ----------------------------------------------------------------------------
# AudioAE1D forward
# ----------------------------------------------------------------------------
def audio_ae1d_forward(x_ncl, prep, *, audio_len, n_layer, channels):
    rch = list(channels)[::-1]
    N = x_ncl.shape[0]

    # ---------------- encoder ----------------
    x = jnp.transpose(x_ncl, (0, 2, 1)).astype(jnp.bfloat16)   # NCL -> NLC
    blk = prep["enc_in"]                                        # Conv(k=7) + ReLU + BN
    y, s, q = conv1d_relu_stats(x, blk["taps"], blk["bias"])
    scale, shift = _bn_scale_shift(s, q, N * audio_len, blk["gamma"], blk["beta"])
    x = bn_apply(y, scale, shift)

    L = audio_len
    for blk in prep["enc_down"]:                                # Conv(k=3)+ReLU+BN+MaxPool
        y, s, q = conv1d_relu_stats(x, blk["taps"], blk["bias"])
        scale, shift = _bn_scale_shift(s, q, N * L, blk["gamma"], blk["beta"])
        x = bn_apply_maxpool(y, scale, shift)
        L //= 2

    flat = jnp.transpose(x, (0, 2, 1)).reshape(N, -1)           # torch.flatten(x, 1) on NCL
    z = matmul_bias_act(flat, prep["enc_fc_w"], prep["enc_fc_b"], act="relu")

    # ---------------- decoder ----------------
    h = matmul_bias_act(z, prep["dec_fc_w"], prep["dec_fc_b"], act="relu")
    L0 = audio_len // 2 ** n_layer
    x = h.reshape(N, rch[0], L0)                                # x.view(-1, channel, L0)
    x = jnp.transpose(x, (0, 2, 1)).astype(jnp.bfloat16)        # NCL -> NLC

    L = L0
    for blk in prep["dec_up"]:
        x = conv1d_taps(x, blk["conv_taps"], blk["conv_b"], 1, 1, act="relu")
        # ConvTranspose1d(k=3, s=2, p=1, op=1) via even/odd phase sub-convolutions
        y_even = conv1d_taps(x, blk["t_even"], blk["t_bias"], 0, 0)
        y_odd = conv1d_taps(x, blk["t_odd"], blk["t_bias"], 0, 1)
        x = jnp.stack([y_even, y_odd], axis=2).reshape(N, 2 * L, y_even.shape[-1])
        L *= 2

    blk = prep["out_conv"]
    x = conv1d_taps(x, blk["taps"], blk["bias"], 0, 0, act="sigmoid",
                    out_dtype=jnp.float32)
    return jnp.transpose(x, (0, 2, 1))                          # NLC -> NCL


if __name__ == "__main__":
    audio_len, n_mels, n_layer = 16, 4, 2
    channels, latent_dim = [8, 16], 32
    batch = 2

    key = jax.random.PRNGKey(0)
    pkey, xkey = jax.random.split(key)
    params = init_params(pkey, audio_len, n_mels, n_layer, channels, latent_dim)
    prep = prepare_params(params)
    x = jax.random.normal(xkey, (batch, n_mels, audio_len), jnp.float32)

    fwd = jax.jit(functools.partial(audio_ae1d_forward, audio_len=audio_len,
                                    n_layer=n_layer, channels=tuple(channels)))
    out = jax.block_until_ready(fwd(x, prep))

    assert out.shape == (batch, n_mels, audio_len), out.shape
    assert bool(jnp.all(jnp.isfinite(out)))
    assert bool(jnp.all((out >= 0.0) & (out <= 1.0)))   # sigmoid output
    print("KERNEL_OK")
</pallas_src>

<mosaic_0001>
module attributes {stable_mosaic.version = 11 : i64} {
  func.func @_bn_apply_kernel(%arg0: i32, %arg1: memref<32x8xbf16, #tpu.memory_space<vmem>>, %arg2: memref<1x8xf32, #tpu.memory_space<vmem>>, %arg3: memref<1x8xf32, #tpu.memory_space<vmem>>, %arg4: memref<32x8xbf16, #tpu.memory_space<vmem>>) attributes {dimension_semantics = [#tpu.dimension_semantics<parallel>], iteration_bounds = array<i64: 1>, scalar_prefetch = 0 : i64, scratch_operands = 0 : i64, tpu.core_type = #tpu.core_type<tc>, window_params = [{transform_indices = @transform_0, window_bounds = array<i64: 32, 8>}, {pipeline_mode = #tpu.pipeline_mode<synchronous>, transform_indices = @transform_1, window_bounds = array<i64: 1, 8>}, {pipeline_mode = #tpu.pipeline_mode<synchronous>, transform_indices = @transform_2, window_bounds = array<i64: 1, 8>}, {transform_indices = @transform_3, window_bounds = array<i64: 32, 8>}]} {
    %c0 = arith.constant 0 : index
    %c0_0 = arith.constant 0 : index
    %0 = vector.load %arg1[%c0, %c0_0] : memref<32x8xbf16, #tpu.memory_space<vmem>>, vector<32x8xbf16>
    %1 = arith.extf %0 : vector<32x8xbf16> to vector<32x8xf32>
    %c0_1 = arith.constant 0 : index
    %c0_2 = arith.constant 0 : index
    %2 = vector.load %arg2[%c0_1, %c0_2] : memref<1x8xf32, #tpu.memory_space<vmem>>, vector<1x8xf32>
    %3 = vector.broadcast %2 : vector<1x8xf32> to vector<32x8xf32>
    %4 = arith.mulf %1, %3 : vector<32x8xf32>
    %c0_3 = arith.constant 0 : index
    %c0_4 = arith.constant 0 : index
    %5 = vector.load %arg3[%c0_3, %c0_4] : memref<1x8xf32, #tpu.memory_space<vmem>>, vector<1x8xf32>
    %6 = vector.broadcast %5 : vector<1x8xf32> to vector<32x8xf32>
    %7 = arith.addf %4, %6 : vector<32x8xf32>
    %8 = arith.truncf %7 : vector<32x8xf32> to vector<32x8xbf16>
    %c0_5 = arith.constant 0 : index
    %c0_6 = arith.constant 0 : index
    %9 = vector.load %arg4[%c0_5, %c0_6] : memref<32x8xbf16, #tpu.memory_space<vmem>>, vector<32x8xbf16>
    tpu.vector_store %arg4[%c0_5, %c0_6], %8 {strides = array<i32>} : memref<32x8xbf16, #tpu.memory_space<vmem>>, vector<32x8xbf16>,
    return
  }
  func.func @transform_0(%arg0: i32) -> (i32, i32) {
    %c0_i32 = arith.constant 0 : i32
    %c0_i32_0 = arith.constant 0 : i32
    return %arg0, %c0_i32 : i32, i32
  }
  func.func @transform_1(%arg0: i32) -> (i32, i32) {
    %c0_i32 = arith.constant 0 : i32
    %c0_i32_0 = arith.constant 0 : i32
    %c0_i32_1 = arith.constant 0 : i32
    return %c0_i32, %c0_i32_0 : i32, i32
  }
  func.func @transform_2(%arg0: i32) -> (i32, i32) {
    %c0_i32 = arith.constant 0 : i32
    %c0_i32_0 = arith.constant 0 : i32
    %c0_i32_1 = arith.constant 0 : i32
    return %c0_i32, %c0_i32_0 : i32, i32
  }
  func.func @transform_3(%arg0: i32) -> (i32, i32) {
    %c0_i32 = arith.constant 0 : i32
    %c0_i32_0 = arith.constant 0 : i32
    return %arg0, %c0_i32 : i32, i32
  }
}

module attributes {stable_mosaic.version = 11 : i64} {
  func.func @_conv_stats_kernel(%arg0: i32, %arg1: memref<1x22x4xbf16, #tpu.memory_space<vmem>>, %arg2: memref<7x4x8xbf16, #tpu.memory_space<vmem>>, %arg3: memref<1x8xf32, #tpu.memory_space<vmem>>, %arg4: memref<1x16x8xbf16, #tpu.memory_space<vmem>>, %arg5: memref<1x8xf32, #tpu.memory_space<vmem>>, %arg6: memref<1x8xf32, #tpu.memory_space<vmem>>) attributes {dimension_semantics = [#tpu.dimension_semantics<arbitrary>], iteration_bounds = array<i64: 2>, scalar_prefetch = 0 : i64, scratch_operands = 0 : i64, tpu.core_type = #tpu.core_type<tc>, window_params = [{transform_indices = @transform_0, window_bounds = array<i64: 1, 22, 4>}, {pipeline_mode = #tpu.pipeline_mode<synchronous>, transform_indices = @transform_1, window_bounds = array<i64: 7, 4, 8>}, {pipeline_mode = #tpu.pipeline_mode<synchronous>, transform_indices = @transform_2, window_bounds = array<i64: 1, 8>}, {transform_indices = @transform_3, window_bounds = array<i64: 1, 16, 8>}, {pipeline_mode = #tpu.pipeline_mode<synchronous>, transform_indices = @transform_4, window_bounds = array<i64: 1, 8>}, {pipeline_mode = #tpu.pipeline_mode<synchronous>, transform_indices = @transform_5, window_bounds = array<i64: 1, 8>}]} {
    %c0 = arith.constant 0 : index
    %c0_0 = arith.constant 0 : index
    %c0_1 = arith.constant 0 : index
    %0 = vector.load %arg1[%c0, %c0_0, %c0_1] : memref<1x22x4xbf16, #tpu.memory_space<vmem>>, vector<1x22x4xbf16>
    %1 = vector.shape_cast %0 : vector<1x22x4xbf16> to vector<22x4xbf16>
    %cst = arith.constant 0.000000e+00 : f32
    %2 = vector.broadcast %cst : f32 to vector<16x8xf32>
    %3 = vector.extract_strided_slice %1 {offsets = [0, 0], sizes = [16, 4], strides = [1, 1]} : vector<22x4xbf16> to vector<16x4xbf16>
    %c0_2 = arith.constant 0 : index
    %c0_3 = arith.constant 0 : index
    %c0_4 = arith.constant 0 : index
    %4 = vector.load %arg2[%c0_2, %c0_3, %c0_4] : memref<7x4x8xbf16, #tpu.memory_space<vmem>>, vector<1x4x8xbf16>
    %5 = vector.shape_cast %4 : vector<1x4x8xbf16> to vector<4x8xbf16>
    %cst_5 = arith.constant dense<0.000000e+00> : vector<16x8xf32>
    %6 = tpu.matmul %3, %5, %cst_5 {dimension_numbers = #tpu.dot_dimension_numbers<[1], [0], [0], [1], [0, 0, 1, 1], [], []>} : vector<16x4xbf16>, vector<4x8xbf16>, vector<16x8xf32> -> vector<16x8xf32>
    %7 = arith.addf %2, %6 : vector<16x8xf32>
    %8 = vector.extract_strided_slice %1 {offsets = [1, 0], sizes = [16, 4], strides = [1, 1]} : vector<22x4xbf16> to vector<16x4xbf16>
    %c1 = arith.constant 1 : index
    %c0_6 = arith.constant 0 : index
    %c0_7 = arith.constant 0 : index
    %9 = vector.load %arg2[%c1, %c0_6, %c0_7] : memref<7x4x8xbf16, #tpu.memory_space<vmem>>, vector<1x4x8xbf16>
    %10 = vector.shape_cast %9 : vector<1x4x8xbf16> to vector<4x8xbf16>
    %cst_8 = arith.constant dense<0.000000e+00> : vector<16x8xf32>
    %11 = tpu.matmul %8, %10, %cst_8 {dimension_numbers = #tpu.dot_dimension_numbers<[1], [0], [0], [1], [0, 0, 1, 1], [], []>} : vector<16x4xbf16>, vector<4x8xbf16>, vector<16x8xf32> -> vector<16x8xf32>
    %12 = arith.addf %7, %11 : vector<16x8xf32>
    %13 = vector.extract_strided_slice %1 {offsets = [2, 0], sizes = [16, 4], strides = [1, 1]} : vector<22x4xbf16> to vector<16x4xbf16>
    %c2 = arith.constant 2 : index
    %c0_9 = arith.constant 0 : index
    %c0_10 = arith.constant 0 : index
    %14 = vector.load %arg2[%c2, %c0_9, %c0_10] : memref<7x4x8xbf16, #tpu.memory_space<vmem>>, vector<1x4x8xbf16>
    %15 = vector.shape_cast %14 : vector<1x4x8xbf16> to vector<4x8xbf16>
    %cst_11 = arith.constant dense<0.000000e+00> : vector<16x8xf32>
    %16 = tpu.matmul %13, %15, %cst_11 {dimension_numbers = #tpu.dot_dimension_numbers<[1], [0], [0], [1], [0, 0, 1, 1], [], []>} : vector<16x4xbf16>, vector<4x8xbf16>, vector<16x8xf32> -> vector<16x8xf32>
    %17 = arith.addf %12, %16 : vector<16x8xf32>
    %18 = vector.extract_strided_slice %1 {offsets = [3, 0], sizes = [16, 4], strides = [1, 1]} : vector<22x4xbf16> to vector<16x4xbf16>
    %c3 = arith.constant 3 : index
    %c0_12 = arith.constant 0 : index
    %c0_13 = arith.constant 0 : index
    %19 = vector.load %arg2[%c3, %c0_12, %c0_13] : memref<7x4x8xbf16, #tpu.memory_space<vmem>>, vector<1x4x8xbf16>
    %20 = vector.shape_cast %19 : vector<1x4x8xbf16> to vector<4x8xbf16>
    %cst_14 = arith.constant dense<0.000000e+00> : vector<16x8xf32>
    %21 = tpu.matmul %18, %20, %cst_14 {dimension_numbers = #tpu.dot_dimension_numbers<[1], [0], [0], [1], [0, 0, 1, 1], [], []>} : vector<16x4xbf16>, vector<4x8xbf16>, vector<16x8xf32> -> vector<16x8xf32>
    %22 = arith.addf %17, %21 : vector<16x8xf32>
    %23 = vector.extract_strided_slice %1 {offsets = [4, 0], sizes = [16, 4], strides = [1, 1]} : vector<22x4xbf16> to vector<16x4xbf16>
    %c4 = arith.constant 4 : index
    %c0_15 = arith.constant 0 : index
    %c0_16 = arith.constant 0 : index
    %24 = vector.load %arg2[%c4, %c0_15, %c0_16] : memref<7x4x8xbf16, #tpu.memory_space<vmem>>, vector<1x4x8xbf16>
    %25 = vector.shape_cast %24 : vector<1x4x8xbf16> to vector<4x8xbf16>
    %cst_17 = arith.constant dense<0.000000e+00> : vector<16x8xf32>
    %26 = tpu.matmul %23, %25, %cst_17 {dimension_numbers = #tpu.dot_dimension_numbers<[1], [0], [0], [1], [0, 0, 1, 1], [], []>} : vector<16x4xbf16>, vector<4x8xbf16>, vector<16x8xf32> -> vector<16x8xf32>
    %27 = arith.addf %22, %26 : vector<16x8xf32>
    %28 = vector.extract_strided_slice %1 {offsets = [5, 0], sizes = [16, 4], strides = [1, 1]} : vector<22x4xbf16> to vector<16x4xbf16>
    %c5 = arith.constant 5 : index
    %c0_18 = arith.constant 0 : index
    %c0_19 = arith.constant 0 : index
    %29 = vector.load %arg2[%c5, %c0_18, %c0_19] : memref<7x4x8xbf16, #tpu.memory_space<vmem>>, vector<1x4x8xbf16>
    %30 = vector.shape_cast %29 : vector<1x4x8xbf16> to vector<4x8xbf16>
    %cst_20 = arith.constant dense<0.000000e+00> : vector<16x8xf32>
    %31 = tpu.matmul %28, %30, %cst_20 {dimension_numbers = #tpu.dot_dimension_numbers<[1], [0], [0], [1], [0, 0, 1, 1], [], []>} : vector<16x4xbf16>, vector<4x8xbf16>, vector<16x8xf32> -> vector<16x8xf32>
    %32 = arith.addf %27, %31 : vector<16x8xf32>
    %33 = vector.extract_strided_slice %1 {offsets = [6, 0], sizes = [16, 4], strides = [1, 1]} : vector<22x4xbf16> to vector<16x4xbf16>
    %c6 = arith.constant 6 : index
    %c0_21 = arith.constant 0 : index
    %c0_22 = arith.constant 0 : index
    %34 = vector.load %arg2[%c6, %c0_21, %c0_22] : memref<7x4x8xbf16, #tpu.memory_space<vmem>>, vector<1x4x8xbf16>
    %35 = vector.shape_cast %34 : vector<1x4x8xbf16> to vector<4x8xbf16>
    %cst_23 = arith.constant dense<0.000000e+00> : vector<16x8xf32>
    %36 = tpu.matmul %33, %35, %cst_23 {dimension_numbers = #tpu.dot_dimension_numbers<[1], [0], [0], [1], [0, 0, 1, 1], [], []>} : vector<16x4xbf16>, vector<4x8xbf16>, vector<16x8xf32> -> vector<16x8xf32>
    %37 = arith.addf %32, %36 : vector<16x8xf32>
    %c0_24 = arith.constant 0 : index
    %c0_25 = arith.constant 0 : index
    %38 = vector.load %arg3[%c0_24, %c0_25] : memref<1x8xf32, #tpu.memory_space<vmem>>, vector<1x8xf32>
    %39 = vector.broadcast %38 : vector<1x8xf32> to vector<16x8xf32>
    %40 = arith.addf %37, %39 : vector<16x8xf32>
    %cst_26 = arith.constant 0.000000e+00 : f32
    %41 = vector.broadcast %cst_26 : f32 to vector<16x8xf32>
    %42 = arith.maximumf %40, %41 : vector<16x8xf32>
    %43 = arith.truncf %42 : vector<16x8xf32> to vector<16x8xbf16>
    %c0_27 = arith.constant 0 : index
    %c0_28 = arith.constant 0 : index
    %c0_29 = arith.constant 0 : index
    %44 = vector.load %arg4[%c0_27, %c0_28, %c0_29] : memref<1x16x8xbf16, #tpu.memory_space<vmem>>, vector<1x16x8xbf16>
    %45 = vector.shape_cast %44 : vector<1x16x8xbf16> to vector<16x8xbf16>
    %46 = vector.shape_cast %43 : vector<16x8xbf16> to vector<1x16x8xbf16>
    tpu.vector_store %arg4[%c0_27, %c0_28, %c0_29], %46 {strides = array<i32>} : memref<1x16x8xbf16, #tpu.memory_space<vmem>>, vector<1x16x8xbf16>,
    %c1_i32 = arith.constant 1 : i32
    %c0_i32 = arith.constant 0 : i32
    %47 = arith.cmpi eq, %c1_i32, %c0_i32 : i32
    %c1_i32_30 = arith.constant 1 : i32
    %48 = arith.select %47, %c1_i32_30, %c1_i32 : i32
    %49 = arith.remsi %arg0, %48 : i32
    %c0_i32_31 = arith.constant 0 : i32
    %50 = arith.cmpi ne, %49, %c0_i32_31 : i32
    %c0_i32_32 = arith.constant 0 : i32
    %51 = arith.cmpi slt, %49, %c0_i32_32 : i32
    %c0_i32_33 = arith.constant 0 : i32
    %52 = arith.cmpi slt, %48, %c0_i32_33 : i32
    %53 = arith.xori %51, %52 : i1
    %54 = arith.andi %53, %50 : i1
    %55 = arith.addi %49, %48 : i32
    %56 = arith.select %54, %55, %49 : i32
    %c16_i32 = arith.constant 16 : i32
    %57 = arith.muli %56, %c16_i32 : i32
    %58 = tpu.iota {dimensions = array<i32: 0>} : vector<16x1xi32>
    %59 = vector.broadcast %57 : i32 to vector<16x1xi32>
    %60 = arith.addi %59, %58 : vector<16x1xi32>
    %c16_i32_34 = arith.constant 16 : i32
    %61 = vector.broadcast %c16_i32_34 : i32 to vector<16x1xi32>
    %62 = arith.cmpi slt, %60, %61 : vector<16x1xi32>
    %cst_35 = arith.constant 0.000000e+00 : f32
    %63 = vector.shape_cast %62 : vector<16x1xi1> to vector<16x1xi1>
    %64 = vector.broadcast %63 : vector<16x1xi1> to vector<16x8xi1>
    %65 = vector.broadcast %cst_35 : f32 to vector<16x8xf32>
    %66 = arith.select %64, %42, %65 : vector<16x8xi1>, vector<16x8xf32>
    %c0_i32_36 = arith.constant 0 : i32
    %67 = arith.cmpi eq, %arg0, %c0_i32_36 : i32
    %68 = arith.extui %67 : i1 to i32
    %c0_i32_37 = arith.constant 0 : i32
    %69 = arith.cmpi ne, %68, %c0_i32_37 : i32
    scf.if %69 {
      %cst_48 = arith.constant 0.000000e+00 : f32
      %81 = vector.broadcast %cst_48 : f32 to vector<1x8xf32>
      %c0_49 = arith.constant 0 : index
      %c0_50 = arith.constant 0 : index
      %82 = vector.load %arg5[%c0_49, %c0_50] : memref<1x8xf32, #tpu.memory_space<vmem>>, vector<1x8xf32>
      tpu.vector_store %arg5[%c0_49, %c0_50], %81 {strides = array<i32>} : memref<1x8xf32, #tpu.memory_space<vmem>>, vector<1x8xf32>,
      %cst_51 = arith.constant 0.000000e+00 : f32
      %83 = vector.broadcast %cst_51 : f32 to vector<1x8xf32>
      %c0_52 = arith.constant 0 : index
      %c0_53 = arith.constant 0 : index
      %84 = vector.load %arg6[%c0_52, %c0_53] : memref<1x8xf32, #tpu.memory_space<vmem>>, vector<1x8xf32>
      tpu.vector_store %arg6[%c0_52, %c0_53], %83 {strides = array<i32>} : memref<1x8xf32, #tpu.memory_space<vmem>>, vector<1x8xf32>,
    } else {
    }
    %c0_38 = arith.constant 0 : index
    %c0_39 = arith.constant 0 : index
    %70 = vector.load %arg5[%c0_38, %c0_39] : memref<1x8xf32, #tpu.memory_space<vmem>>, vector<1x8xf32>
    %cst_40 = arith.constant dense<0.000000e+00> : vector<8xf32>
    %71 = vector.multi_reduction <add>, %66, %cst_40 [0] : vector<16x8xf32> to vector<8xf32>
    %72 = vector.shape_cast %71 : vector<8xf32> to vector<1x8xf32>
    %73 = arith.addf %70, %72 : vector<1x8xf32>
    %c0_41 = arith.constant 0 : index
    %c0_42 = arith.constant 0 : index
    %74 = vector.load %arg5[%c0_41, %c0_42] : memref<1x8xf32, #tpu.memory_space<vmem>>, vector<1x8xf32>
    tpu.vector_store %arg5[%c0_41, %c0_42], %73 {strides = array<i32>} : memref<1x8xf32, #tpu.memory_space<vmem>>, vector<1x8xf32>,
    %c0_43 = arith.constant 0 : index
    %c0_44 = arith.constant 0 : index
    %75 = vector.load %arg6[%c0_43, %c0_44] : memref<1x8xf32, #tpu.memory_space<vmem>>, vector<1x8xf32>
    %76 = arith.mulf %66, %66 : vector<16x8xf32>
    %cst_45 = arith.constant dense<0.000000e+00> : vector<8xf32>
    %77 = vector.multi_reduction <add>, %76, %cst_45 [0] : vector<16x8xf32> to vector<8xf32>
    %78 = vector.shape_cast %77 : vector<8xf32> to vector<1x8xf32>
    %79 = arith.addf %75, %78 : vector<1x8xf32>
    %c0_46 = arith.constant 0 : index
    %c0_47 = arith.constant 0 : index
    %80 = vector.load %arg6[%c0_46, %c0_47] : memref<1x8xf32, #tpu.memory_space<vmem>>, vector<1x8xf32>
    tpu.vector_store %arg6[%c0_46, %c0_47], %79 {strides = array<i32>} : memref<1x8xf32, #tpu.memory_space<vmem>>, vector<1x8xf32>,
    return
  }
  func.func @transform_0(%arg0: i32) -> (i32, i32, i32) {
    %c0_i32 = arith.constant 0 : i32
    %c0_i32_0 = arith.constant 0 : i32
    %c0_i32_1 = arith.constant 0 : i32
    return %arg0, %c0_i32, %c0_i32_0 : i32, i32, i32
  }
  func.func @transform_1(%arg0: i32) -> (i32, i32, i32) {
    %c0_i32 = arith.constant 0 : i32
    %c0_i32_0 = arith.constant 0 : i32
    %c0_i32_1 = arith.constant 0 : i32
    %c0_i32_2 = arith.constant 0 : i32
    return %c0_i32, %c0_i32_0, %c0_i32_1 : i32, i32, i32
  }
  func.func @transform_2(%arg0: i32) -> (i32, i32) {
    %c0_i32 = arith.constant 0 : i32
    %c0_i32_0 = arith.constant 0 : i32
    %c0_i32_1 = arith.constant 0 : i32
    return %c0_i32, %c0_i32_0 : i32, i32
  }
  func.func @transform_3(%arg0: i32) -> (i32, i32, i32) {
    %c0_i32 = arith.constant 0 : i32
    %c0_i32_0 = arith.constant 0 : i32
    %c0_i32_1 = arith.constant 0 : i32
    return %arg0, %c0_i32, %c0_i32_0 : i32, i32, i32
  }
  func.func @transform_4(%arg0: i32) -> (i32, i32) {
    %c0_i32 = arith.constant 0 : i32
    %c0_i32_0 = arith.constant 0 : i32
    %c0_i32_1 = arith.constant 0 : i32
    return %c0_i32, %c0_i32_0 : i32, i32
  }
  func.func @transform_5(%arg0: i32) -> (i32, i32) {
    %c0_i32 = arith.constant 0 : i32
    %c0_i32_0 = arith.constant 0 : i32
    %c0_i32_1 = arith.constant 0 : i32
    return %c0_i32, %c0_i32_0 : i32, i32
  }
}

module attributes {stable_mosaic.version = 11 : i64} {
  func.func @_conv_stats_kernel(%arg0: i32, %arg1: memref<1x18x8xbf16, #tpu.memory_space<vmem>>, %arg2: memref<3x8x8xbf16, #tpu.memory_space<vmem>>, %arg3: memref<1x8xf32, #tpu.memory_space<vmem>>, %arg4: memref<1x16x8xbf16, #tpu.memory_space<vmem>>, %arg5: memref<1x8xf32, #tpu.memory_space<vmem>>, %arg6: memref<1x8xf32, #tpu.memory_space<vmem>>) attributes {dimension_semantics = [#tpu.dimension_semantics<arbitrary>], iteration_bounds = array<i64: 2>, scalar_prefetch = 0 : i64, scratch_operands = 0 : i64, tpu.core_type = #tpu.core_type<tc>, window_params = [{transform_indices = @transform_0, window_bounds = array<i64: 1, 18, 8>}, {pipeline_mode = #tpu.pipeline_mode<synchronous>, transform_indices = @transform_1, window_bounds = array<i64: 3, 8, 8>}, {pipeline_mode = #tpu.pipeline_mode<synchronous>, transform_indices = @transform_2, window_bounds = array<i64: 1, 8>}, {transform_indices = @transform_3, window_bounds = array<i64: 1, 16, 8>}, {pipeline_mode = #tpu.pipeline_mode<synchronous>, transform_indices = @transform_4, window_bounds = array<i64: 1, 8>}, {pipeline_mode = #tpu.pipeline_mode<synchronous>, transform_indices = @transform_5, window_bounds = array<i64: 1, 8>}]} {
    %c0 = arith.constant 0 : index
    %c0_0 = arith.constant 0 : index
    %c0_1 = arith.constant 0 : index
    %0 = vector.load %arg1[%c0, %c0_0, %c0_1] : memref<1x18x8xbf16, #tpu.memory_space<vmem>>, vector<1x18x8xbf16>
    %1 = vector.shape_cast %0 : vector<1x18x8xbf16> to vector<18x8xbf16>
    %cst = arith.constant 0.000000e+00 : f32
    %2 = vector.broadcast %cst : f32 to vector<16x8xf32>
    %3 = vector.extract_strided_slice %1 {offsets = [0, 0], sizes = [16, 8], strides = [1, 1]} : vector<18x8xbf16> to vector<16x8xbf16>
    %c0_2 = arith.constant 0 : index
    %c0_3 = arith.constant 0 : index
    %c0_4 = arith.constant 0 : index
    %4 = vector.load %arg2[%c0_2, %c0_3, %c0_4] : memref<3x8x8xbf16, #tpu.memory_space<vmem>>, vector<1x8x8xbf16>
    %5 = vector.shape_cast %4 : vector<1x8x8xbf16> to vector<8x8xbf16>
    %cst_5 = arith.constant dense<0.000000e+00> : vector<16x8xf32>
    %6 = tpu.matmul %3, %5, %cst_5 {dimension_numbers = #tpu.dot_dimension_numbers<[1], [0], [0], [1], [0, 0, 1, 1], [], []>} : vector<16x8xbf16>, vector<8x8xbf16>, vector<16x8xf32> -> vector<16x8xf32>
    %7 = arith.addf %2, %6 : vector<16x8xf32>
    %8 = vector.extract_strided_slice %1 {offsets = [1, 0], sizes = [16, 8], strides = [1, 1]} : vector<18x8xbf16> to vector<16x8xbf16>
    %c1 = arith.constant 1 : index
    %c0_6 = arith.constant 0 : index
    %c0_7 = arith.constant 0 : index
    %9 = vector.load %arg2[%c1, %c0_6, %c0_7] : memref<3x8x8xbf16, #tpu.memory_space<vmem>>, vector<1x8x8xbf16>
    %10 = vector.shape_cast %9 : vector<1x8x8xbf16> to vector<8x8xbf16>
    %cst_8 = arith.constant dense<0.000000e+00> : vector<16x8xf32>
    %11 = tpu.matmul %8, %10, %cst_8 {dimension_numbers = #tpu.dot_dimension_numbers<[1], [0], [0], [1], [0, 0, 1, 1], [], []>} : vector<16x8xbf16>, vector<8x8xbf16>, vector<16x8xf32> -> vector<16x8xf32>
    %12 = arith.addf %7, %11 : vector<16x8xf32>
    %13 = vector.extract_strided_slice %1 {offsets = [2, 0], sizes = [16, 8], strides = [1, 1]} : vector<18x8xbf16> to vector<16x8xbf16>
    %c2 = arith.constant 2 : index
    %c0_9 = arith.constant 0 : index
    %c0_10 = arith.constant 0 : index
    %14 = vector.load %arg2[%c2, %c0_9, %c0_10] : memref<3x8x8xbf16, #tpu.memory_space<vmem>>, vector<1x8x8xbf16>
    %15 = vector.shape_cast %14 : vector<1x8x8xbf16> to vector<8x8xbf16>
    %cst_11 = arith.constant dense<0.000000e+00> : vector<16x8xf32>
    %16 = tpu.matmul %13, %15, %cst_11 {dimension_numbers = #tpu.dot_dimension_numbers<[1], [0], [0], [1], [0, 0, 1, 1], [], []>} : vector<16x8xbf16>, vector<8x8xbf16>, vector<16x8xf32> -> vector<16x8xf32>
    %17 = arith.addf %12, %16 : vector<16x8xf32>
    %c0_12 = arith.constant 0 : index
    %c0_13 = arith.constant 0 : index
    %18 = vector.load %arg3[%c0_12, %c0_13] : memref<1x8xf32, #tpu.memory_space<vmem>>, vector<1x8xf32>
    %19 = vector.broadcast %18 : vector<1x8xf32> to vector<16x8xf32>
    %20 = arith.addf %17, %19 : vector<16x8xf32>
    %cst_14 = arith.constant 0.000000e+00 : f32
    %21 = vector.broadcast %cst_14 : f32 to vector<16x8xf32>
    %22 = arith.maximumf %20, %21 : vector<16x8xf32>
    %23 = arith.truncf %22 : vector<16x8xf32> to vector<16x8xbf16>
    %c0_15 = arith.constant 0 : index
    %c0_16 = arith.constant 0 : index
    %c0_17 = arith.constant 0 : index
    %24 = vector.load %arg4[%c0_15, %c0_16, %c0_17] : memref<1x16x8xbf16, #tpu.memory_space<vmem>>, vector<1x16x8xbf16>
    %25 = vector.shape_cast %24 : vector<1x16x8xbf16> to vector<16x8xbf16>
    %26 = vector.shape_cast %23 : vector<16x8xbf16> to vector<1x16x8xbf16>
    tpu.vector_store %arg4[%c0_15, %c0_16, %c0_17], %26 {strides = array<i32>} : memref<1x16x8xbf16, #tpu.memory_space<vmem>>, vector<1x16x8xbf16>,
    %c1_i32 = arith.constant 1 : i32
    %c0_i32 = arith.constant 0 : i32
    %27 = arith.cmpi eq, %c1_i32, %c0_i32 : i32
    %c1_i32_18 = arith.constant 1 : i32
    %28 = arith.select %27, %c1_i32_18, %c1_i32 : i32
    %29 = arith.remsi %arg0, %28 : i32
    %c0_i32_19 = arith.constant 0 : i32
    %30 = arith.cmpi ne, %29, %c0_i32_19 : i32
    %c0_i32_20 = arith.constant 0 : i32
    %31 = arith.cmpi slt, %29, %c0_i32_20 : i32
    %c0_i32_21 = arith.constant 0 : i32
    %32 = arith.cmpi slt, %28, %c0_i32_21 : i32
    %33 = arith.xori %31, %32 : i1
    %34 = arith.andi %33, %30 : i1
    %35 = arith.addi %29, %28 : i32
    %36 = arith.select %34, %35, %29 : i32
    %c16_i32 = arith.constant 16 : i32
    %37 = arith.muli %36, %c16_i32 : i32
    %38 = tpu.iota {dimensions = array<i32: 0>} : vector<16x1xi32>
    %39 = vector.broadcast %37 : i32 to vector<16x1xi32>
    %40 = arith.addi %39, %38 : vector<16x1xi32>
    %c16_i32_22 = arith.constant 16 : i32
    %41 = vector.broadcast %c16_i32_22 : i32 to vector<16x1xi32>
    %42 = arith.cmpi slt, %40, %41 : vector<16x1xi32>
    %cst_23 = arith.constant 0.000000e+00 : f32
    %43 = vector.shape_cast %42 : vector<16x1xi1> to vector<16x1xi1>
    %44 = vector.broadcast %43 : vector<16x1xi1> to vector<16x8xi1>
    %45 = vector.broadcast %cst_23 : f32 to vector<16x8xf32>
    %46 = arith.select %44, %22, %45 : vector<16x8xi1>, vector<16x8xf32>
    %c0_i32_24 = arith.constant 0 : i32
    %47 = arith.cmpi eq, %arg0, %c0_i32_24 : i32
    %48 = arith.extui %47 : i1 to i32
    %c0_i32_25 = arith.constant 0 : i32
    %49 = arith.cmpi ne, %48, %c0_i32_25 : i32
    scf.if %49 {
      %cst_36 = arith.constant 0.000000e+00 : f32
      %61 = vector.broadcast %cst_36 : f32 to vector<1x8xf32>
      %c0_37 = arith.constant 0 : index
      %c0_38 = arith.constant 0 : index
      %62 = vector.load %arg5[%c0_37, %c0_38] : memref<1x8xf32, #tpu.memory_space<vmem>>, vector<1x8xf32>
      tpu.vector_store %arg5[%c0_37, %c0_38], %61 {strides = array<i32>} : memref<1x8xf32, #tpu.memory_space<vmem>>, vector<1x8xf32>,
      %cst_39 = arith.constant 0.000000e+00 : f32
      %63 = vector.broadcast %cst_39 : f32 to vector<1x8xf32>
      %c0_40 = arith.constant 0 : index
      %c0_41 = arith.constant 0 : index
      %64 = vector.load %arg6[%c0_40, %c0_41] : memref<1x8xf32, #tpu.memory_space<vmem>>, vector<1x8xf32>
      tpu.vector_store %arg6[%c0_40, %c0_41], %63 {strides = array<i32>} : memref<1x8xf32, #tpu.memory_space<vmem>>, vector<1x8xf32>,
    } else {
    }
    %c0_26 = arith.constant 0 : index
    %c0_27 = arith.constant 0 : index
    %50 = vector.load %arg5[%c0_26, %c0_27] : memref<1x8xf32, #tpu.memory_space<vmem>>, vector<1x8xf32>
    %cst_28 = arith.constant dense<0.000000e+00> : vector<8xf32>
    %51 = vector.multi_reduction <add>, %46, %cst_28 [0] : vector<16x8xf32> to vector<8xf32>
    %52 = vector.shape_cast %51 : vector<8xf32> to vector<1x8xf32>
    %53 = arith.addf %50, %52 : vector<1x8xf32>
    %c0_29 = arith.constant 0 : index
    %c0_30 = arith.constant 0 : index
    %54 = vector.load %arg5[%c0_29, %c0_30] : memref<1x8xf32, #tpu.memory_space<vmem>>, vector<1x8xf32>
    tpu.vector_store %arg5[%c0_29, %c0_30], %53 {strides = array<i32>} : memref<1x8xf32, #tpu.memory_space<vmem>>, vector<1x8xf32>,
    %c0_31 = arith.constant 0 : index
    %c0_32 = arith.constant 0 : index
    %55 = vector.load %arg6[%c0_31, %c0_32] : memref<1x8xf32, #tpu.memory_space<vmem>>, vector<1x8xf32>
    %56 = arith.mulf %46, %46 : vector<16x8xf32>
    %cst_33 = arith.constant dense<0.000000e+00> : vector<8xf32>
    %57 = vector.multi_reduction <add>, %56, %cst_33 [0] : vector<16x8xf32> to vector<8xf32>
    %58 = vector.shape_cast %57 : vector<8xf32> to vector<1x8xf32>
    %59 = arith.addf %55, %58 : vector<1x8xf32>
    %c0_34 = arith.constant 0 : index
    %c0_35 = arith.constant 0 : index
    %60 = vector.load %arg6[%c0_34, %c0_35] : memref<1x8xf32, #tpu.memory_space<vmem>>, vector<1x8xf32>
    tpu.vector_store %arg6[%c0_34, %c0_35], %59 {strides = array<i32>} : memref<1x8xf32, #tpu.memory_space<vmem>>, vector<1x8xf32>,
    return
  }
  func.func @transform_0(%arg0: i32) -> (i32, i32, i32) {
    %c0_i32 = arith.constant 0 : i32
    %c0_i32_0 = arith.constant 0 : i32
    %c0_i32_1 = arith.constant 0 : i32
    return %arg0, %c0_i32, %c0_i32_0 : i32, i32, i32
  }
  func.func @transform_1(%arg0: i32) -> (i32, i32, i32) {
    %c0_i32 = arith.constant 0 : i32
    %c0_i32_0 = arith.constant 0 : i32
    %c0_i32_1 = arith.constant 0 : i32
    %c0_i32_2 = arith.constant 0 : i32
    return %c0_i32, %c0_i32_0, %c0_i32_1 : i32, i32, i32
  }
  func.func @transform_2(%arg0: i32) -> (i32, i32) {
    %c0_i32 = arith.constant 0 : i32
    %c0_i32_0 = arith.constant 0 : i32
    %c0_i32_1 = arith.constant 0 : i32
    return %c0_i32, %c0_i32_0 : i32, i32
  }
  func.func @transform_3(%arg0: i32) -> (i32, i32, i32) {
    %c0_i32 = arith.constant 0 : i32
    %c0_i32_0 = arith.constant 0 : i32
    %c0_i32_1 = arith.constant 0 : i32
    return %arg0, %c0_i32, %c0_i32_0 : i32, i32, i32
  }
  func.func @transform_4(%arg0: i32) -> (i32, i32) {
    %c0_i32 = arith.constant 0 : i32
    %c0_i32_0 = arith.constant 0 : i32
    %c0_i32_1 = arith.constant 0 : i32
    return %c0_i32, %c0_i32_0 : i32, i32
  }
  func.func @transform_5(%arg0: i32) -> (i32, i32) {
    %c0_i32 = arith.constant 0 : i32
    %c0_i32_0 = arith.constant 0 : i32
    %c0_i32_1 = arith.constant 0 : i32
    return %c0_i32, %c0_i32_0 : i32, i32
  }
}

module attributes {stable_mosaic.version = 11 : i64} {
  func.func @_bn_maxpool_kernel(%arg0: i32, %arg1: memref<16x2x8xbf16, #tpu.memory_space<vmem>>, %arg2: memref<1x1x8xf32, #tpu.memory_space<vmem>>, %arg3: memref<1x1x8xf32, #tpu.memory_space<vmem>>, %arg4: memref<16x8xbf16, #tpu.memory_space<vmem>>) attributes {dimension_semantics = [#tpu.dimension_semantics<parallel>], iteration_bounds = array<i64: 1>, scalar_prefetch = 0 : i64, scratch_operands = 0 : i64, tpu.core_type = #tpu.core_type<tc>, window_params = [{transform_indices = @transform_0, window_bounds = array<i64: 16, 2, 8>}, {pipeline_mode = #tpu.pipeline_mode<synchronous>, transform_indices = @transform_1, window_bounds = array<i64: 1, 1, 8>}, {pipeline_mode = #tpu.pipeline_mode<synchronous>, transform_indices = @transform_2, window_bounds = array<i64: 1, 1, 8>}, {transform_indices = @transform_3, window_bounds = array<i64: 16, 8>}]} {
    %c0 = arith.constant 0 : index
    %c0_0 = arith.constant 0 : index
    %c0_1 = arith.constant 0 : index
    %0 = vector.load %arg1[%c0, %c0_0, %c0_1] : memref<16x2x8xbf16, #tpu.memory_space<vmem>>, vector<16x2x8xbf16>
    %1 = arith.extf %0 : vector<16x2x8xbf16> to vector<16x2x8xf32>
    %c0_2 = arith.constant 0 : index
    %c0_3 = arith.constant 0 : index
    %c0_4 = arith.constant 0 : index
    %2 = vector.load %arg2[%c0_2, %c0_3, %c0_4] : memref<1x1x8xf32, #tpu.memory_space<vmem>>, vector<1x1x8xf32>
    %3 = vector.broadcast %2 : vector<1x1x8xf32> to vector<16x2x8xf32>
    %4 = arith.mulf %1, %3 : vector<16x2x8xf32>
    %c0_5 = arith.constant 0 : index
    %c0_6 = arith.constant 0 : index
    %c0_7 = arith.constant 0 : index
    %5 = vector.load %arg3[%c0_5, %c0_6, %c0_7] : memref<1x1x8xf32, #tpu.memory_space<vmem>>, vector<1x1x8xf32>
    %6 = vector.broadcast %5 : vector<1x1x8xf32> to vector<16x2x8xf32>
    %7 = arith.addf %4, %6 : vector<16x2x8xf32>
    %8 = vector.extract_strided_slice %7 {offsets = [0, 0, 0], sizes = [16, 1, 8], strides = [1, 1, 1]} : vector<16x2x8xf32> to vector<16x1x8xf32>
    %9 = vector.shape_cast %8 : vector<16x1x8xf32> to vector<16x8xf32>
    %10 = vector.extract_strided_slice %7 {offsets = [0, 1, 0], sizes = [16, 1, 8], strides = [1, 1, 1]} : vector<16x2x8xf32> to vector<16x1x8xf32>
    %11 = vector.shape_cast %10 : vector<16x1x8xf32> to vector<16x8xf32>
    %12 = arith.maximumf %9, %11 : vector<16x8xf32>
    %13 = arith.truncf %12 : vector<16x8xf32> to vector<16x8xbf16>
    %c0_8 = arith.constant 0 : index
    %c0_9 = arith.constant 0 : index
    %14 = vector.load %arg4[%c0_8, %c0_9] : memref<16x8xbf16, #tpu.memory_space<vmem>>, vector<16x8xbf16>
    tpu.vector_store %arg4[%c0_8, %c0_9], %13 {strides = array<i32>} : memref<16x8xbf16, #tpu.memory_space<vmem>>, vector<16x8xbf16>,
    return
  }
  func.func @transform_0(%arg0: i32) -> (i32, i32, i32) {
    %c0_i32 = arith.constant 0 : i32
    %c0_i32_0 = arith.constant 0 : i32
    %c0_i32_1 = arith.constant 0 : i32
    return %arg0, %c0_i32, %c0_i32_0 : i32, i32, i32
  }
  func.func @transform_1(%arg0: i32) -> (i32, i32, i32) {
    %c0_i32 = arith.constant 0 : i32
    %c0_i32_0 = arith.constant 0 : i32
    %c0_i32_1 = arith.constant 0 : i32
    %c0_i32_2 = arith.constant 0 : i32
    return %c0_i32, %c0_i32_0, %c0_i32_1 : i32, i32, i32
  }
  func.func @transform_2(%arg0: i32) -> (i32, i32, i32) {
    %c0_i32 = arith.constant 0 : i32
    %c0_i32_0 = arith.constant 0 : i32
    %c0_i32_1 = arith.constant 0 : i32
    %c0_i32_2 = arith.constant 0 : i32
    return %c0_i32, %c0_i32_0, %c0_i32_1 : i32, i32, i32
  }
  func.func @transform_3(%arg0: i32) -> (i32, i32) {
    %c0_i32 = arith.constant 0 : i32
    %c0_i32_0 = arith.constant 0 : i32
    return %arg0, %c0_i32 : i32, i32
  }
}

module attributes {stable_mosaic.version = 11 : i64} {
  func.func @_conv_stats_kernel(%arg0: i32, %arg1: memref<1x10x8xbf16, #tpu.memory_space<vmem>>, %arg2: memref<3x8x16xbf16, #tpu.memory_space<vmem>>, %arg3: memref<1x16xf32, #tpu.memory_space<vmem>>, %arg4: memref<1x8x16xbf16, #tpu.memory_space<vmem>>, %arg5: memref<1x16xf32, #tpu.memory_space<vmem>>, %arg6: memref<1x16xf32, #tpu.memory_space<vmem>>) attributes {dimension_semantics = [#tpu.dimension_semantics<arbitrary>], iteration_bounds = array<i64: 2>, scalar_prefetch = 0 : i64, scratch_operands = 0 : i64, tpu.core_type = #tpu.core_type<tc>, window_params = [{transform_indices = @transform_0, window_bounds = array<i64: 1, 10, 8>}, {pipeline_mode = #tpu.pipeline_mode<synchronous>, transform_indices = @transform_1, window_bounds = array<i64: 3, 8, 16>}, {pipeline_mode = #tpu.pipeline_mode<synchronous>, transform_indices = @transform_2, window_bounds = array<i64: 1, 16>}, {transform_indices = @transform_3, window_bounds = array<i64: 1, 8, 16>}, {pipeline_mode = #tpu.pipeline_mode<synchronous>, transform_indices = @transform_4, window_bounds = array<i64: 1, 16>}, {pipeline_mode = #tpu.pipeline_mode<synchronous>, transform_indices = @transform_5, window_bounds = array<i64: 1, 16>}]} {
    %c0 = arith.constant 0 : index
    %c0_0 = arith.constant 0 : index
    %c0_1 = arith.constant 0 : index
    %0 = vector.load %arg1[%c0, %c0_0, %c0_1] : memref<1x10x8xbf16, #tpu.memory_space<vmem>>, vector<1x10x8xbf16>
    %1 = vector.shape_cast %0 : vector<1x10x8xbf16> to vector<10x8xbf16>
    %cst = arith.constant 0.000000e+00 : f32
    %2 = vector.broadcast %cst : f32 to vector<8x16xf32>
    %3 = vector.extract_strided_slice %1 {offsets = [0, 0], sizes = [8, 8], strides = [1, 1]} : vector<10x8xbf16> to vector<8x8xbf16>
    %c0_2 = arith.constant 0 : index
    %c0_3 = arith.constant 0 : index
    %c0_4 = arith.constant 0 : index
    %4 = vector.load %arg2[%c0_2, %c0_3, %c0_4] : memref<3x8x16xbf16, #tpu.memory_space<vmem>>, vector<1x8x16xbf16>
    %5 = vector.shape_cast %4 : vector<1x8x16xbf16> to vector<8x16xbf16>
    %cst_5 = arith.constant dense<0.000000e+00> : vector<8x16xf32>
    %6 = tpu.matmul %3, %5, %cst_5 {dimension_numbers = #tpu.dot_dimension_numbers<[1], [0], [0], [1], [0, 0, 1, 1], [], []>} : vector<8x8xbf16>, vector<8x16xbf16>, vector<8x16xf32> -> vector<8x16xf32>
    %7 = arith.addf %2, %6 : vector<8x16xf32>
    %8 = vector.extract_strided_slice %1 {offsets = [1, 0], sizes = [8, 8], strides = [1, 1]} : vector<10x8xbf16> to vector<8x8xbf16>
    %c1 = arith.constant 1 : index
    %c0_6 = arith.constant 0 : index
    %c0_7 = arith.constant 0 : index
    %9 = vector.load %arg2[%c1, %c0_6, %c0_7] : memref<3x8x16xbf16, #tpu.memory_space<vmem>>, vector<1x8x16xbf16>
    %10 = vector.shape_cast %9 : vector<1x8x16xbf16> to vector<8x16xbf16>
    %cst_8 = arith.constant dense<0.000000e+00> : vector<8x16xf32>
    %11 = tpu.matmul %8, %10, %cst_8 {dimension_numbers = #tpu.dot_dimension_numbers<[1], [0], [0], [1], [0, 0, 1, 1], [], []>} : vector<8x8xbf16>, vector<8x16xbf16>, vector<8x16xf32> -> vector<8x16xf32>
    %12 = arith.addf %7, %11 : vector<8x16xf32>
    %13 = vector.extract_strided_slice %1 {offsets = [2, 0], sizes = [8, 8], strides = [1, 1]} : vector<10x8xbf16> to vector<8x8xbf16>
    %c2 = arith.constant 2 : index
    %c0_9 = arith.constant 0 : index
    %c0_10 = arith.constant 0 : index
    %14 = vector.load %arg2[%c2, %c0_9, %c0_10] : memref<3x8x16xbf16, #tpu.memory_space<vmem>>, vector<1x8x16xbf16>
    %15 = vector.shape_cast %14 : vector<1x8x16xbf16> to vector<8x16xbf16>
    %cst_11 = arith.constant dense<0.000000e+00> : vector<8x16xf32>
    %16 = tpu.matmul %13, %15, %cst_11 {dimension_numbers = #tpu.dot_dimension_numbers<[1], [0], [0], [1], [0, 0, 1, 1], [], []>} : vector<8x8xbf16>, vector<8x16xbf16>, vector<8x16xf32> -> vector<8x16xf32>
    %17 = arith.addf %12, %16 : vector<8x16xf32>
    %c0_12 = arith.constant 0 : index
    %c0_13 = arith.constant 0 : index
    %18 = vector.load %arg3[%c0_12, %c0_13] : memref<1x16xf32, #tpu.memory_space<vmem>>, vector<1x16xf32>
    %19 = vector.broadcast %18 : vector<1x16xf32> to vector<8x16xf32>
    %20 = arith.addf %17, %19 : vector<8x16xf32>
    %cst_14 = arith.constant 0.000000e+00 : f32
    %21 = vector.broadcast %cst_14 : f32 to vector<8x16xf32>
    %22 = arith.maximumf %20, %21 : vector<8x16xf32>
    %23 = arith.truncf %22 : vector<8x16xf32> to vector<8x16xbf16>
    %c0_15 = arith.constant 0 : index
    %c0_16 = arith.constant 0 : index
    %c0_17 = arith.constant 0 : index
    %24 = vector.load %arg4[%c0_15, %c0_16, %c0_17] : memref<1x8x16xbf16, #tpu.memory_space<vmem>>, vector<1x8x16xbf16>
    %25 = vector.shape_cast %24 : vector<1x8x16xbf16> to vector<8x16xbf16>
    %26 = vector.shape_cast %23 : vector<8x16xbf16> to vector<1x8x16xbf16>
    tpu.vector_store %arg4[%c0_15, %c0_16, %c0_17], %26 {strides = array<i32>} : memref<1x8x16xbf16, #tpu.memory_space<vmem>>, vector<1x8x16xbf16>,
    %c1_i32 = arith.constant 1 : i32
    %c0_i32 = arith.constant 0 : i32
    %27 = arith.cmpi eq, %c1_i32, %c0_i32 : i32
    %c1_i32_18 = arith.constant 1 : i32
    %28 = arith.select %27, %c1_i32_18, %c1_i32 : i32
    %29 = arith.remsi %arg0, %28 : i32
    %c0_i32_19 = arith.constant 0 : i32
    %30 = arith.cmpi ne, %29, %c0_i32_19 : i32
    %c0_i32_20 = arith.constant 0 : i32
    %31 = arith.cmpi slt, %29, %c0_i32_20 : i32
    %c0_i32_21 = arith.constant 0 : i32
    %32 = arith.cmpi slt, %28, %c0_i32_21 : i32
    %33 = arith.xori %31, %32 : i1
    %34 = arith.andi %33, %30 : i1
    %35 = arith.addi %29, %28 : i32
    %36 = arith.select %34, %35, %29 : i32
    %c8_i32 = arith.constant 8 : i32
    %37 = arith.muli %36, %c8_i32 : i32
    %38 = tpu.iota {dimensions = array<i32: 0>} : vector<8x1xi32>
    %39 = vector.broadcast %37 : i32 to vector<8x1xi32>
    %40 = arith.addi %39, %38 : vector<8x1xi32>
    %c8_i32_22 = arith.constant 8 : i32
    %41 = vector.broadcast %c8_i32_22 : i32 to vector<8x1xi32>
    %42 = arith.cmpi slt, %40, %41 : vector<8x1xi32>
    %cst_23 = arith.constant 0.000000e+00 : f32
    %43 = vector.shape_cast %42 : vector<8x1xi1> to vector<8x1xi1>
    %44 = vector.broadcast %43 : vector<8x1xi1> to vector<8x16xi1>
    %45 = vector.broadcast %cst_23 : f32 to vector<8x16xf32>
    %46 = arith.select %44, %22, %45 : vector<8x16xi1>, vector<8x16xf32>
    %c0_i32_24 = arith.constant 0 : i32
    %47 = arith.cmpi eq, %arg0, %c0_i32_24 : i32
    %48 = arith.extui %47 : i1 to i32
    %c0_i32_25 = arith.constant 0 : i32
    %49 = arith.cmpi ne, %48, %c0_i32_25 : i32
    scf.if %49 {
      %cst_36 = arith.constant 0.000000e+00 : f32
      %61 = vector.broadcast %cst_36 : f32 to vector<1x16xf32>
      %c0_37 = arith.constant 0 : index
      %c0_38 = arith.constant 0 : index
      %62 = vector.load %arg5[%c0_37, %c0_38] : memref<1x16xf32, #tpu.memory_space<vmem>>, vector<1x16xf32>
      tpu.vector_store %arg5[%c0_37, %c0_38], %61 {strides = array<i32>} : memref<1x16xf32, #tpu.memory_space<vmem>>, vector<1x16xf32>,
      %cst_39 = arith.constant 0.000000e+00 : f32
      %63 = vector.broadcast %cst_39 : f32 to vector<1x16xf32>
      %c0_40 = arith.constant 0 : index
      %c0_41 = arith.constant 0 : index
      %64 = vector.load %arg6[%c0_40, %c0_41] : memref<1x16xf32, #tpu.memory_space<vmem>>, vector<1x16xf32>
      tpu.vector_store %arg6[%c0_40, %c0_41], %63 {strides = array<i32>} : memref<1x16xf32, #tpu.memory_space<vmem>>, vector<1x16xf32>,
    } else {
    }
    %c0_26 = arith.constant 0 : index
    %c0_27 = arith.constant 0 : index
    %50 = vector.load %arg5[%c0_26, %c0_27] : memref<1x16xf32, #tpu.memory_space<vmem>>, vector<1x16xf32>
    %cst_28 = arith.constant dense<0.000000e+00> : vector<16xf32>
    %51 = vector.multi_reduction <add>, %46, %cst_28 [0] : vector<8x16xf32> to vector<16xf32>
    %52 = vector.shape_cast %51 : vector<16xf32> to vector<1x16xf32>
    %53 = arith.addf %50, %52 : vector<1x16xf32>
    %c0_29 = arith.constant 0 : index
    %c0_30 = arith.constant 0 : index
    %54 = vector.load %arg5[%c0_29, %c0_30] : memref<1x16xf32, #tpu.memory_space<vmem>>, vector<1x16xf32>
    tpu.vector_store %arg5[%c0_29, %c0_30], %53 {strides = array<i32>} : memref<1x16xf32, #tpu.memory_space<vmem>>, vector<1x16xf32>,
    %c0_31 = arith.constant 0 : index
    %c0_32 = arith.constant 0 : index
    %55 = vector.load %arg6[%c0_31, %c0_32] : memref<1x16xf32, #tpu.memory_space<vmem>>, vector<1x16xf32>
    %56 = arith.mulf %46, %46 : vector<8x16xf32>
    %cst_33 = arith.constant dense<0.000000e+00> : vector<16xf32>
    %57 = vector.multi_reduction <add>, %56, %cst_33 [0] : vector<8x16xf32> to vector<16xf32>
    %58 = vector.shape_cast %57 : vector<16xf32> to vector<1x16xf32>
    %59 = arith.addf %55, %58 : vector<1x16xf32>
    %c0_34 = arith.constant 0 : index
    %c0_35 = arith.constant 0 : index
    %60 = vector.load %arg6[%c0_34, %c0_35] : memref<1x16xf32, #tpu.memory_space<vmem>>, vector<1x16xf32>
    tpu.vector_store %arg6[%c0_34, %c0_35], %59 {strides = array<i32>} : memref<1x16xf32, #tpu.memory_space<vmem>>, vector<1x16xf32>,
    return
  }
  func.func @transform_0(%arg0: i32) -> (i32, i32, i32) {
    %c0_i32 = arith.constant 0 : i32
    %c0_i32_0 = arith.constant 0 : i32
    %c0_i32_1 = arith.constant 0 : i32
    return %arg0, %c0_i32, %c0_i32_0 : i32, i32, i32
  }
  func.func @transform_1(%arg0: i32) -> (i32, i32, i32) {
    %c0_i32 = arith.constant 0 : i32
    %c0_i32_0 = arith.constant 0 : i32
    %c0_i32_1 = arith.constant 0 : i32
    %c0_i32_2 = arith.constant 0 : i32
    return %c0_i32, %c0_i32_0, %c0_i32_1 : i32, i32, i32
  }
  func.func @transform_2(%arg0: i32) -> (i32, i32) {
    %c0_i32 = arith.constant 0 : i32
    %c0_i32_0 = arith.constant 0 : i32
    %c0_i32_1 = arith.constant 0 : i32
    return %c0_i32, %c0_i32_0 : i32, i32
  }
  func.func @transform_3(%arg0: i32) -> (i32, i32, i32) {
    %c0_i32 = arith.constant 0 : i32
    %c0_i32_0 = arith.constant 0 : i32
    %c0_i32_1 = arith.constant 0 : i32
    return %arg0, %c0_i32, %c0_i32_0 : i32, i32, i32
  }
  func.func @transform_4(%arg0: i32) -> (i32, i32) {
    %c0_i32 = arith.constant 0 : i32
    %c0_i32_0 = arith.constant 0 : i32
    %c0_i32_1 = arith.constant 0 : i32
    return %c0_i32, %c0_i32_0 : i32, i32
  }
  func.func @transform_5(%arg0: i32) -> (i32, i32) {
    %c0_i32 = arith.constant 0 : i32
    %c0_i32_0 = arith.constant 0 : i32
    %c0_i32_1 = arith.constant 0 : i32
    return %c0_i32, %c0_i32_0 : i32, i32
  }
}

module attributes {stable_mosaic.version = 11 : i64} {
  func.func @_bn_maxpool_kernel(%arg0: i32, %arg1: memref<8x2x16xbf16, #tpu.memory_space<vmem>>, %arg2: memref<1x1x16xf32, #tpu.memory_space<vmem>>, %arg3: memref<1x1x16xf32, #tpu.memory_space<vmem>>, %arg4: memref<8x16xbf16, #tpu.memory_space<vmem>>) attributes {dimension_semantics = [#tpu.dimension_semantics<parallel>], iteration_bounds = array<i64: 1>, scalar_prefetch = 0 : i64, scratch_operands = 0 : i64, tpu.core_type = #tpu.core_type<tc>, window_params = [{transform_indices = @transform_0, window_bounds = array<i64: 8, 2, 16>}, {pipeline_mode = #tpu.pipeline_mode<synchronous>, transform_indices = @transform_1, window_bounds = array<i64: 1, 1, 16>}, {pipeline_mode = #tpu.pipeline_mode<synchronous>, transform_indices = @transform_2, window_bounds = array<i64: 1, 1, 16>}, {transform_indices = @transform_3, window_bounds = array<i64: 8, 16>}]} {
    %c0 = arith.constant 0 : index
    %c0_0 = arith.constant 0 : index
    %c0_1 = arith.constant 0 : index
    %0 = vector.load %arg1[%c0, %c0_0, %c0_1] : memref<8x2x16xbf16, #tpu.memory_space<vmem>>, vector<8x2x16xbf16>
    %1 = arith.extf %0 : vector<8x2x16xbf16> to vector<8x2x16xf32>
    %c0_2 = arith.constant 0 : index
    %c0_3 = arith.constant 0 : index
    %c0_4 = arith.constant 0 : index
    %2 = vector.load %arg2[%c0_2, %c0_3, %c0_4] : memref<1x1x16xf32, #tpu.memory_space<vmem>>, vector<1x1x16xf32>
    %3 = vector.broadcast %2 : vector<1x1x16xf32> to vector<8x2x16xf32>
    %4 = arith.mulf %1, %3 : vector<8x2x16xf32>
    %c0_5 = arith.constant 0 : index
    %c0_6 = arith.constant 0 : index
    %c0_7 = arith.constant 0 : index
    %5 = vector.load %arg3[%c0_5, %c0_6, %c0_7] : memref<1x1x16xf32, #tpu.memory_space<vmem>>, vector<1x1x16xf32>
    %6 = vector.broadcast %5 : vector<1x1x16xf32> to vector<8x2x16xf32>
    %7 = arith.addf %4, %6 : vector<8x2x16xf32>
    %8 = vector.extract_strided_slice %7 {offsets = [0, 0, 0], sizes = [8, 1, 16], strides = [1, 1, 1]} : vector<8x2x16xf32> to vector<8x1x16xf32>
    %9 = vector.shape_cast %8 : vector<8x1x16xf32> to vector<8x16xf32>
    %10 = vector.extract_strided_slice %7 {offsets = [0, 1, 0], sizes = [8, 1, 16], strides = [1, 1, 1]} : vector<8x2x16xf32> to vector<8x1x16xf32>
    %11 = vector.shape_cast %10 : vector<8x1x16xf32> to vector<8x16xf32>
    %12 = arith.maximumf %9, %11 : vector<8x16xf32>
    %13 = arith.truncf %12 : vector<8x16xf32> to vector<8x16xbf16>
    %c0_8 = arith.constant 0 : index
    %c0_9 = arith.constant 0 : index
    %14 = vector.load %arg4[%c0_8, %c0_9] : memref<8x16xbf16, #tpu.memory_space<vmem>>, vector<8x16xbf16>
    tpu.vector_store %arg4[%c0_8, %c0_9], %13 {strides = array<i32>} : memref<8x16xbf16, #tpu.memory_space<vmem>>, vector<8x16xbf16>,
    return
  }
  func.func @transform_0(%arg0: i32) -> (i32, i32, i32) {
    %c0_i32 = arith.constant 0 : i32
    %c0_i32_0 = arith.constant 0 : i32
    %c0_i32_1 = arith.constant 0 : i32
    return %arg0, %c0_i32, %c0_i32_0 : i32, i32, i32
  }
  func.func @transform_1(%arg0: i32) -> (i32, i32, i32) {
    %c0_i32 = arith.constant 0 : i32
    %c0_i32_0 = arith.constant 0 : i32
    %c0_i32_1 = arith.constant 0 : i32
    %c0_i32_2 = arith.constant 0 : i32
    return %c0_i32, %c0_i32_0, %c0_i32_1 : i32, i32, i32
  }
  func.func @transform_2(%arg0: i32) -> (i32, i32, i32) {
    %c0_i32 = arith.constant 0 : i32
    %c0_i32_0 = arith.constant 0 : i32
    %c0_i32_1 = arith.constant 0 : i32
    %c0_i32_2 = arith.constant 0 : i32
    return %c0_i32, %c0_i32_0, %c0_i32_1 : i32, i32, i32
  }
  func.func @transform_3(%arg0: i32) -> (i32, i32) {
    %c0_i32 = arith.constant 0 : i32
    %c0_i32_0 = arith.constant 0 : i32
    return %arg0, %c0_i32 : i32, i32
  }
}

module attributes {stable_mosaic.version = 11 : i64} {
  func.func @_matmul_kernel(%arg0: i32, %arg1: i32, %arg2: i32, %arg3: memref<8x128xbf16, #tpu.memory_space<vmem>>, %arg4: memref<128x128xbf16, #tpu.memory_space<vmem>>, %arg5: memref<1x128xf32, #tpu.memory_space<vmem>>, %arg6: memref<8x128xf32, #tpu.memory_space<vmem>>, %arg7: memref<8x128xf32, #tpu.memory_space<vmem>>) attributes {dimension_semantics = [#tpu.dimension_semantics<parallel>, #tpu.dimension_semantics<parallel>, #tpu.dimension_semantics<arbitrary>], iteration_bounds = array<i64: 1, 1, 1>, scalar_prefetch = 0 : i64, scratch_operands = 1 : i64, tpu.core_type = #tpu.core_type<tc>, window_params = [{transform_indices = @transform_0, window_bounds = array<i64: 8, 128>}, {transform_indices = @transform_1, window_bounds = array<i64: 128, 128>}, {transform_indices = @transform_2, window_bounds = array<i64: 1, 128>}, {transform_indices = @transform_3, window_bounds = array<i64: 8, 128>}]} {
    %c0_i32 = arith.constant 0 : i32
    %0 = arith.cmpi eq, %arg2, %c0_i32 : i32
    %1 = arith.extui %0 : i1 to i32
    %c0_i32_0 = arith.constant 0 : i32
    %2 = arith.cmpi ne, %1, %c0_i32_0 : i32
    scf.if %2 {
      %cst_10 = arith.constant 0.000000e+00 : f32
      %12 = vector.broadcast %cst_10 : f32 to vector<8x128xf32>
      %c0_11 = arith.constant 0 : index
      %c0_12 = arith.constant 0 : index
      %13 = vector.load %arg7[%c0_11, %c0_12] : memref<8x128xf32, #tpu.memory_space<vmem>>, vector<8x128xf32>
      tpu.vector_store %arg7[%c0_11, %c0_12], %12 {strides = array<i32>} : memref<8x128xf32, #tpu.memory_space<vmem>>, vector<8x128xf32>,
    } else {
    }
    %c0 = arith.constant 0 : index
    %c0_1 = arith.constant 0 : index
    %3 = vector.load %arg7[%c0, %c0_1] : memref<8x128xf32, #tpu.memory_space<vmem>>, vector<8x128xf32>
    %c0_2 = arith.constant 0 : index
    %c0_3 = arith.constant 0 : index
    %4 = vector.load %arg3[%c0_2, %c0_3] : memref<8x128xbf16, #tpu.memory_space<vmem>>, vector<8x128xbf16>
    %c0_4 = arith.constant 0 : index
    %c0_5 = arith.constant 0 : index
    %5 = vector.load %arg4[%c0_4, %c0_5] : memref<128x128xbf16, #tpu.memory_space<vmem>>, vector<128x128xbf16>
    %cst = arith.constant dense<0.000000e+00> : vector<8x128xf32>
    %6 = tpu.matmul %4, %5, %cst {dimension_numbers = #tpu.dot_dimension_numbers<[1], [0], [0], [1], [0, 0, 1, 1], [], []>} : vector<8x128xbf16>, vector<128x128xbf16>, vector<8x128xf32> -> vector<8x128xf32>
    %7 = arith.addf %3, %6 : vector<8x128xf32>
    %c0_6 = arith.constant 0 : index
    %c0_7 = arith.constant 0 : index
    %8 = vector.load %arg7[%c0_6, %c0_7] : memref<8x128xf32, #tpu.memory_space<vmem>>, vector<8x128xf32>
    tpu.vector_store %arg7[%c0_6, %c0_7], %7 {strides = array<i32>} : memref<8x128xf32, #tpu.memory_space<vmem>>, vector<8x128xf32>,
    %c0_i32_8 = arith.constant 0 : i32
    %9 = arith.cmpi eq, %arg2, %c0_i32_8 : i32
    %10 = arith.extui %9 : i1 to i32
    %c0_i32_9 = arith.constant 0 : i32
    %11 = arith.cmpi ne, %10, %c0_i32_9 : i32
    scf.if %11 {
      %c0_10 = arith.constant 0 : index
      %c0_11 = arith.constant 0 : index
      %12 = vector.load %arg7[%c0_10, %c0_11] : memref<8x128xf32, #tpu.memory_space<vmem>>, vector<8x128xf32>
      %c0_12 = arith.constant 0 : index
      %c0_13 = arith.constant 0 : index
      %13 = vector.load %arg5[%c0_12, %c0_13] : memref<1x128xf32, #tpu.memory_space<vmem>>, vector<1x128xf32>
      %14 = vector.broadcast %13 : vector<1x128xf32> to vector<8x128xf32>
      %15 = arith.addf %12, %14 : vector<8x128xf32>
      %cst_14 = arith.constant 0.000000e+00 : f32
      %16 = vector.broadcast %cst_14 : f32 to vector<8x128xf32>
      %17 = arith.maximumf %15, %16 : vector<8x128xf32>
      %c0_15 = arith.constant 0 : index
      %c0_16 = arith.constant 0 : index
      %18 = vector.load %arg6[%c0_15, %c0_16] : memref<8x128xf32, #tpu.memory_space<vmem>>, vector<8x128xf32>
      tpu.vector_store %arg6[%c0_15, %c0_16], %17 {strides = array<i32>} : memref<8x128xf32, #tpu.memory_space<vmem>>, vector<8x128xf32>,
    } else {
    }
    return
  }
  func.func @transform_0(%arg0: i32, %arg1: i32, %arg2: i32) -> (i32, i32) {
    %c0_i32 = arith.constant 0 : i32
    return %arg0, %arg2 : i32, i32
  }
  func.func @transform_1(%arg0: i32, %arg1: i32, %arg2: i32) -> (i32, i32) {
    %c0_i32 = arith.constant 0 : i32
    return %arg2, %arg1 : i32, i32
  }
  func.func @transform_2(%arg0: i32, %arg1: i32, %arg2: i32) -> (i32, i32) {
    %c0_i32 = arith.constant 0 : i32
    %c0_i32_0 = arith.constant 0 : i32
    return %c0_i32, %arg1 : i32, i32
  }
  func.func @transform_3(%arg0: i32, %arg1: i32, %arg2: i32) -> (i32, i32) {
    %c0_i32 = arith.constant 0 : i32
    return %arg0, %arg1 : i32, i32
  }
}

module attributes {stable_mosaic.version = 11 : i64} {
  func.func @_conv_kernel(%arg0: i32, %arg1: memref<1x10x16xbf16, #tpu.memory_space<vmem>>, %arg2: memref<3x16x16xbf16, #tpu.memory_space<vmem>>, %arg3: memref<1x16xf32, #tpu.memory_space<vmem>>, %arg4: memref<1x8x16xbf16, #tpu.memory_space<vmem>>) attributes {dimension_semantics = [#tpu.dimension_semantics<parallel>], iteration_bounds = array<i64: 2>, scalar_prefetch = 0 : i64, scratch_operands = 0 : i64, tpu.core_type = #tpu.core_type<tc>, window_params = [{transform_indices = @transform_0, window_bounds = array<i64: 1, 10, 16>}, {pipeline_mode = #tpu.pipeline_mode<synchronous>, transform_indices = @transform_1, window_bounds = array<i64: 3, 16, 16>}, {pipeline_mode = #tpu.pipeline_mode<synchronous>, transform_indices = @transform_2, window_bounds = array<i64: 1, 16>}, {transform_indices = @transform_3, window_bounds = array<i64: 1, 8, 16>}]} {
    %c0 = arith.constant 0 : index
    %c0_0 = arith.constant 0 : index
    %c0_1 = arith.constant 0 : index
    %0 = vector.load %arg1[%c0, %c0_0, %c0_1] : memref<1x10x16xbf16, #tpu.memory_space<vmem>>, vector<1x10x16xbf16>
    %1 = vector.shape_cast %0 : vector<1x10x16xbf16> to vector<10x16xbf16>
    %cst = arith.constant 0.000000e+00 : f32
    %2 = vector.broadcast %cst : f32 to vector<8x16xf32>
    %3 = vector.extract_strided_slice %1 {offsets = [0, 0], sizes = [8, 16], strides = [1, 1]} : vector<10x16xbf16> to vector<8x16xbf16>
    %c0_2 = arith.constant 0 : index
    %c0_3 = arith.constant 0 : index
    %c0_4 = arith.constant 0 : index
    %4 = vector.load %arg2[%c0_2, %c0_3, %c0_4] : memref<3x16x16xbf16, #tpu.memory_space<vmem>>, vector<1x16x16xbf16>
    %5 = vector.shape_cast %4 : vector<1x16x16xbf16> to vector<16x16xbf16>
    %cst_5 = arith.constant dense<0.000000e+00> : vector<8x16xf32>
    %6 = tpu.matmul %3, %5, %cst_5 {dimension_numbers = #tpu.dot_dimension_numbers<[1], [0], [0], [1], [0, 0, 1, 1], [], []>} : vector<8x16xbf16>, vector<16x16xbf16>, vector<8x16xf32> -> vector<8x16xf32>
    %7 = arith.addf %2, %6 : vector<8x16xf32>
    %8 = vector.extract_strided_slice %1 {offsets = [1, 0], sizes = [8, 16], strides = [1, 1]} : vector<10x16xbf16> to vector<8x16xbf16>
    %c1 = arith.constant 1 : index
    %c0_6 = arith.constant 0 : index
    %c0_7 = arith.constant 0 : index
    %9 = vector.load %arg2[%c1, %c0_6, %c0_7] : memref<3x16x16xbf16, #tpu.memory_space<vmem>>, vector<1x16x16xbf16>
    %10 = vector.shape_cast %9 : vector<1x16x16xbf16> to vector<16x16xbf16>
    %cst_8 = arith.constant dense<0.000000e+00> : vector<8x16xf32>
    %11 = tpu.matmul %8, %10, %cst_8 {dimension_numbers = #tpu.dot_dimension_numbers<[1], [0], [0], [1], [0, 0, 1, 1], [], []>} : vector<8x16xbf16>, vector<16x16xbf16>, vector<8x16xf32> -> vector<8x16xf32>
    %12 = arith.addf %7, %11 : vector<8x16xf32>
    %13 = vector.extract_strided_slice %1 {offsets = [2, 0], sizes = [8, 16], strides = [1, 1]} : vector<10x16xbf16> to vector<8x16xbf16>
    %c2 = arith.constant 2 : index
    %c0_9 = arith.constant 0 : index
    %c0_10 = arith.constant 0 : index
    %14 = vector.load %arg2[%c2, %c0_9, %c0_10] : memref<3x16x16xbf16, #tpu.memory_space<vmem>>, vector<1x16x16xbf16>
    %15 = vector.shape_cast %14 : vector<1x16x16xbf16> to vector<16x16xbf16>
    %cst_11 = arith.constant dense<0.000000e+00> : vector<8x16xf32>
    %16 = tpu.matmul %13, %15, %cst_11 {dimension_numbers = #tpu.dot_dimension_numbers<[1], [0], [0], [1], [0, 0, 1, 1], [], []>} : vector<8x16xbf16>, vector<16x16xbf16>, vector<8x16xf32> -> vector<8x16xf32>
    %17 = arith.addf %12, %16 : vector<8x16xf32>
    %c0_12 = arith.constant 0 : index
    %c0_13 = arith.constant 0 : index
    %18 = vector.load %arg3[%c0_12, %c0_13] : memref<1x16xf32, #tpu.memory_space<vmem>>, vector<1x16xf32>
    %19 = vector.broadcast %18 : vector<1x16xf32> to vector<8x16xf32>
    %20 = arith.addf %17, %19 : vector<8x16xf32>
    %cst_14 = arith.constant 0.000000e+00 : f32
    %21 = vector.broadcast %cst_14 : f32 to vector<8x16xf32>
    %22 = arith.maximumf %20, %21 : vector<8x16xf32>
    %23 = arith.truncf %22 : vector<8x16xf32> to vector<8x16xbf16>
    %c0_15 = arith.constant 0 : index
    %c0_16 = arith.constant 0 : index
    %c0_17 = arith.constant 0 : index
    %24 = vector.load %arg4[%c0_15, %c0_16, %c0_17] : memref<1x8x16xbf16, #tpu.memory_space<vmem>>, vector<1x8x16xbf16>
    %25 = vector.shape_cast %24 : vector<1x8x16xbf16> to vector<8x16xbf16>
    %26 = vector.shape_cast %23 : vector<8x16xbf16> to vector<1x8x16xbf16>
    tpu.vector_store %arg4[%c0_15, %c0_16, %c0_17], %26 {strides = array<i32>} : memref<1x8x16xbf16, #tpu.memory_space<vmem>>, vector<1x8x16xbf16>,
    return
  }
  func.func @transform_0(%arg0: i32) -> (i32, i32, i32) {
    %c0_i32 = arith.constant 0 : i32
    %c0_i32_0 = arith.constant 0 : i32
    %c0_i32_1 = arith.constant 0 : i32
    return %arg0, %c0_i32, %c0_i32_0 : i32, i32, i32
  }
  func.func @transform_1(%arg0: i32) -> (i32, i32, i32) {
    %c0_i32 = arith.constant 0 : i32
    %c0_i32_0 = arith.constant 0 : i32
    %c0_i32_1 = arith.constant 0 : i32
    %c0_i32_2 = arith.constant 0 : i32
    return %c0_i32, %c0_i32_0, %c0_i32_1 : i32, i32, i32
  }
  func.func @transform_2(%arg0: i32) -> (i32, i32) {
    %c0_i32 = arith.constant 0 : i32
    %c0_i32_0 = arith.constant 0 : i32
    %c0_i32_1 = arith.constant 0 : i32
    return %c0_i32, %c0_i32_0 : i32, i32
  }
  func.func @transform_3(%arg0: i32) -> (i32, i32, i32) {
    %c0_i32 = arith.constant 0 : i32
    %c0_i32_0 = arith.constant 0 : i32
    %c0_i32_1 = arith.constant 0 : i32
    return %arg0, %c0_i32, %c0_i32_0 : i32, i32, i32
  }
}

module attributes {stable_mosaic.version = 11 : i64} {
  func.func @_conv_kernel(%arg0: i32, %arg1: memref<1x9x16xbf16, #tpu.memory_space<vmem>>, %arg2: memref<2x16x16xbf16, #tpu.memory_space<vmem>>, %arg3: memref<1x16xf32, #tpu.memory_space<vmem>>, %arg4: memref<1x8x16xbf16, #tpu.memory_space<vmem>>) attributes {dimension_semantics = [#tpu.dimension_semantics<parallel>], iteration_bounds = array<i64: 2>, scalar_prefetch = 0 : i64, scratch_operands = 0 : i64, tpu.core_type = #tpu.core_type<tc>, window_params = [{transform_indices = @transform_0, window_bounds = array<i64: 1, 9, 16>}, {pipeline_mode = #tpu.pipeline_mode<synchronous>, transform_indices = @transform_1, window_bounds = array<i64: 2, 16, 16>}, {pipeline_mode = #tpu.pipeline_mode<synchronous>, transform_indices = @transform_2, window_bounds = array<i64: 1, 16>}, {transform_indices = @transform_3, window_bounds = array<i64: 1, 8, 16>}]} {
    %c0 = arith.constant 0 : index
    %c0_0 = arith.constant 0 : index
    %c0_1 = arith.constant 0 : index
    %0 = vector.load %arg1[%c0, %c0_0, %c0_1] : memref<1x9x16xbf16, #tpu.memory_space<vmem>>, vector<1x9x16xbf16>
    %1 = vector.shape_cast %0 : vector<1x9x16xbf16> to vector<9x16xbf16>
    %cst = arith.constant 0.000000e+00 : f32
    %2 = vector.broadcast %cst : f32 to vector<8x16xf32>
    %3 = vector.extract_strided_slice %1 {offsets = [0, 0], sizes = [8, 16], strides = [1, 1]} : vector<9x16xbf16> to vector<8x16xbf16>
    %c0_2 = arith.constant 0 : index
    %c0_3 = arith.constant 0 : index
    %c0_4 = arith.constant 0 : index
    %4 = vector.load %arg2[%c0_2, %c0_3, %c0_4] : memref<2x16x16xbf16, #tpu.memory_space<vmem>>, vector<1x16x16xbf16>
    %5 = vector.shape_cast %4 : vector<1x16x16xbf16> to vector<16x16xbf16>
    %cst_5 = arith.constant dense<0.000000e+00> : vector<8x16xf32>
    %6 = tpu.matmul %3, %5, %cst_5 {dimension_numbers = #tpu.dot_dimension_numbers<[1], [0], [0], [1], [0, 0, 1, 1], [], []>} : vector<8x16xbf16>, vector<16x16xbf16>, vector<8x16xf32> -> vector<8x16xf32>
    %7 = arith.addf %2, %6 : vector<8x16xf32>
    %8 = vector.extract_strided_slice %1 {offsets = [1, 0], sizes = [8, 16], strides = [1, 1]} : vector<9x16xbf16> to vector<8x16xbf16>
    %c1 = arith.constant 1 : index
    %c0_6 = arith.constant 0 : index
    %c0_7 = arith.constant 0 : index
    %9 = vector.load %arg2[%c1, %c0_6, %c0_7] : memref<2x16x16xbf16, #tpu.memory_space<vmem>>, vector<1x16x16xbf16>
    %10 = vector.shape_cast %9 : vector<1x16x16xbf16> to vector<16x16xbf16>
    %cst_8 = arith.constant dense<0.000000e+00> : vector<8x16xf32>
    %11 = tpu.matmul %8, %10, %cst_8 {dimension_numbers = #tpu.dot_dimension_numbers<[1], [0], [0], [1], [0, 0, 1, 1], [], []>} : vector<8x16xbf16>, vector<16x16xbf16>, vector<8x16xf32> -> vector<8x16xf32>
    %12 = arith.addf %7, %11 : vector<8x16xf32>
    %c0_9 = arith.constant 0 : index
    %c0_10 = arith.constant 0 : index
    %13 = vector.load %arg3[%c0_9, %c0_10] : memref<1x16xf32, #tpu.memory_space<vmem>>, vector<1x16xf32>
    %14 = vector.broadcast %13 : vector<1x16xf32> to vector<8x16xf32>
    %15 = arith.addf %12, %14 : vector<8x16xf32>
    %16 = arith.truncf %15 : vector<8x16xf32> to vector<8x16xbf16>
    %c0_11 = arith.constant 0 : index
    %c0_12 = arith.constant 0 : index
    %c0_13 = arith.constant 0 : index
    %17 = vector.load %arg4[%c0_11, %c0_12, %c0_13] : memref<1x8x16xbf16, #tpu.memory_space<vmem>>, vector<1x8x16xbf16>
    %18 = vector.shape_cast %17 : vector<1x8x16xbf16> to vector<8x16xbf16>
    %19 = vector.shape_cast %16 : vector<8x16xbf16> to vector<1x8x16xbf16>
    tpu.vector_store %arg4[%c0_11, %c0_12, %c0_13], %19 {strides = array<i32>} : memref<1x8x16xbf16, #tpu.memory_space<vmem>>, vector<1x8x16xbf16>,
    return
  }
  func.func @transform_0(%arg0: i32) -> (i32, i32, i32) {
    %c0_i32 = arith.constant 0 : i32
    %c0_i32_0 = arith.constant 0 : i32
    %c0_i32_1 = arith.constant 0 : i32
    return %arg0, %c0_i32, %c0_i32_0 : i32, i32, i32
  }
  func.func @transform_1(%arg0: i32) -> (i32, i32, i32) {
    %c0_i32 = arith.constant 0 : i32
    %c0_i32_0 = arith.constant 0 : i32
    %c0_i32_1 = arith.constant 0 : i32
    %c0_i32_2 = arith.constant 0 : i32
    return %c0_i32, %c0_i32_0, %c0_i32_1 : i32, i32, i32
  }
  func.func @transform_2(%arg0: i32) -> (i32, i32) {
    %c0_i32 = arith.constant 0 : i32
    %c0_i32_0 = arith.constant 0 : i32
    %c0_i32_1 = arith.constant 0 : i32
    return %c0_i32, %c0_i32_0 : i32, i32
  }
  func.func @transform_3(%arg0: i32) -> (i32, i32, i32) {
    %c0_i32 = arith.constant 0 : i32
    %c0_i32_0 = arith.constant 0 : i32
    %c0_i32_1 = arith.constant 0 : i32
    return %arg0, %c0_i32, %c0_i32_0 : i32, i32, i32
  }
}

module attributes {stable_mosaic.version = 11 : i64} {
  func.func @_conv_kernel(%arg0: i32, %arg1: memref<1x8x16xbf16, #tpu.memory_space<vmem>>, %arg2: memref<1x16x16xbf16, #tpu.memory_space<vmem>>, %arg3: memref<1x16xf32, #tpu.memory_space<vmem>>, %arg4: memref<1x8x16xbf16, #tpu.memory_space<vmem>>) attributes {dimension_semantics = [#tpu.dimension_semantics<parallel>], iteration_bounds = array<i64: 2>, scalar_prefetch = 0 : i64, scratch_operands = 0 : i64, tpu.core_type = #tpu.core_type<tc>, window_params = [{transform_indices = @transform_0, window_bounds = array<i64: 1, 8, 16>}, {pipeline_mode = #tpu.pipeline_mode<synchronous>, transform_indices = @transform_1, window_bounds = array<i64: 1, 16, 16>}, {pipeline_mode = #tpu.pipeline_mode<synchronous>, transform_indices = @transform_2, window_bounds = array<i64: 1, 16>}, {transform_indices = @transform_3, window_bounds = array<i64: 1, 8, 16>}]} {
    %c0 = arith.constant 0 : index
    %c0_0 = arith.constant 0 : index
    %c0_1 = arith.constant 0 : index
    %0 = vector.load %arg1[%c0, %c0_0, %c0_1] : memref<1x8x16xbf16, #tpu.memory_space<vmem>>, vector<1x8x16xbf16>
    %1 = vector.shape_cast %0 : vector<1x8x16xbf16> to vector<8x16xbf16>
    %cst = arith.constant 0.000000e+00 : f32
    %2 = vector.broadcast %cst : f32 to vector<8x16xf32>
    %c0_2 = arith.constant 0 : index
    %c0_3 = arith.constant 0 : index
    %c0_4 = arith.constant 0 : index
    %3 = vector.load %arg2[%c0_2, %c0_3, %c0_4] : memref<1x16x16xbf16, #tpu.memory_space<vmem>>, vector<1x16x16xbf16>
    %4 = vector.shape_cast %3 : vector<1x16x16xbf16> to vector<16x16xbf16>
    %cst_5 = arith.constant dense<0.000000e+00> : vector<8x16xf32>
    %5 = tpu.matmul %1, %4, %cst_5 {dimension_numbers = #tpu.dot_dimension_numbers<[1], [0], [0], [1], [0, 0, 1, 1], [], []>} : vector<8x16xbf16>, vector<16x16xbf16>, vector<8x16xf32> -> vector<8x16xf32>
    %6 = arith.addf %2, %5 : vector<8x16xf32>
    %c0_6 = arith.constant 0 : index
    %c0_7 = arith.constant 0 : index
    %7 = vector.load %arg3[%c0_6, %c0_7] : memref<1x16xf32, #tpu.memory_space<vmem>>, vector<1x16xf32>
    %8 = vector.broadcast %7 : vector<1x16xf32> to vector<8x16xf32>
    %9 = arith.addf %6, %8 : vector<8x16xf32>
    %10 = arith.truncf %9 : vector<8x16xf32> to vector<8x16xbf16>
    %c0_8 = arith.constant 0 : index
    %c0_9 = arith.constant 0 : index
    %c0_10 = arith.constant 0 : index
    %11 = vector.load %arg4[%c0_8, %c0_9, %c0_10] : memref<1x8x16xbf16, #tpu.memory_space<vmem>>, vector<1x8x16xbf16>
    %12 = vector.shape_cast %11 : vector<1x8x16xbf16> to vector<8x16xbf16>
    %13 = vector.shape_cast %10 : vector<8x16xbf16> to vector<1x8x16xbf16>
    tpu.vector_store %arg4[%c0_8, %c0_9, %c0_10], %13 {strides = array<i32>} : memref<1x8x16xbf16, #tpu.memory_space<vmem>>, vector<1x8x16xbf16>,
    return
  }
  func.func @transform_0(%arg0: i32) -> (i32, i32, i32) {
    %c0_i32 = arith.constant 0 : i32
    %c0_i32_0 = arith.constant 0 : i32
    %c0_i32_1 = arith.constant 0 : i32
    return %arg0, %c0_i32, %c0_i32_0 : i32, i32, i32
  }
  func.func @transform_1(%arg0: i32) -> (i32, i32, i32) {
    %c0_i32 = arith.constant 0 : i32
    %c0_i32_0 = arith.constant 0 : i32
    %c0_i32_1 = arith.constant 0 : i32
    %c0_i32_2 = arith.constant 0 : i32
    return %c0_i32, %c0_i32_0, %c0_i32_1 : i32, i32, i32
  }
  func.func @transform_2(%arg0: i32) -> (i32, i32) {
    %c0_i32 = arith.constant 0 : i32
    %c0_i32_0 = arith.constant 0 : i32
    %c0_i32_1 = arith.constant 0 : i32
    return %c0_i32, %c0_i32_0 : i32, i32
  }
  func.func @transform_3(%arg0: i32) -> (i32, i32, i32) {
    %c0_i32 = arith.constant 0 : i32
    %c0_i32_0 = arith.constant 0 : i32
    %c0_i32_1 = arith.constant 0 : i32
    return %arg0, %c0_i32, %c0_i32_0 : i32, i32, i32
  }
}

module attributes {stable_mosaic.version = 11 : i64} {
  func.func @_conv_kernel(%arg0: i32, %arg1: memref<1x10x16xbf16, #tpu.memory_space<vmem>>, %arg2: memref<3x16x8xbf16, #tpu.memory_space<vmem>>, %arg3: memref<1x8xf32, #tpu.memory_space<vmem>>, %arg4: memref<1x8x8xbf16, #tpu.memory_space<vmem>>) attributes {dimension_semantics = [#tpu.dimension_semantics<parallel>], iteration_bounds = array<i64: 2>, scalar_prefetch = 0 : i64, scratch_operands = 0 : i64, tpu.core_type = #tpu.core_type<tc>, window_params = [{transform_indices = @transform_0, window_bounds = array<i64: 1, 10, 16>}, {pipeline_mode = #tpu.pipeline_mode<synchronous>, transform_indices = @transform_1, window_bounds = array<i64: 3, 16, 8>}, {pipeline_mode = #tpu.pipeline_mode<synchronous>, transform_indices = @transform_2, window_bounds = array<i64: 1, 8>}, {transform_indices = @transform_3, window_bounds = array<i64: 1, 8, 8>}]} {
    %c0 = arith.constant 0 : index
    %c0_0 = arith.constant 0 : index
    %c0_1 = arith.constant 0 : index
    %0 = vector.load %arg1[%c0, %c0_0, %c0_1] : memref<1x10x16xbf16, #tpu.memory_space<vmem>>, vector<1x10x16xbf16>
    %1 = vector.shape_cast %0 : vector<1x10x16xbf16> to vector<10x16xbf16>
    %cst = arith.constant 0.000000e+00 : f32
    %2 = vector.broadcast %cst : f32 to vector<8x8xf32>
    %3 = vector.extract_strided_slice %1 {offsets = [0, 0], sizes = [8, 16], strides = [1, 1]} : vector<10x16xbf16> to vector<8x16xbf16>
    %c0_2 = arith.constant 0 : index
    %c0_3 = arith.constant 0 : index
    %c0_4 = arith.constant 0 : index
    %4 = vector.load %arg2[%c0_2, %c0_3, %c0_4] : memref<3x16x8xbf16, #tpu.memory_space<vmem>>, vector<1x16x8xbf16>
    %5 = vector.shape_cast %4 : vector<1x16x8xbf16> to vector<16x8xbf16>
    %cst_5 = arith.constant dense<0.000000e+00> : vector<8x8xf32>
    %6 = tpu.matmul %3, %5, %cst_5 {dimension_numbers = #tpu.dot_dimension_numbers<[1], [0], [0], [1], [0, 0, 1, 1], [], []>} : vector<8x16xbf16>, vector<16x8xbf16>, vector<8x8xf32> -> vector<8x8xf32>
    %7 = arith.addf %2, %6 : vector<8x8xf32>
    %8 = vector.extract_strided_slice %1 {offsets = [1, 0], sizes = [8, 16], strides = [1, 1]} : vector<10x16xbf16> to vector<8x16xbf16>
    %c1 = arith.constant 1 : index
    %c0_6 = arith.constant 0 : index
    %c0_7 = arith.constant 0 : index
    %9 = vector.load %arg2[%c1, %c0_6, %c0_7] : memref<3x16x8xbf16, #tpu.memory_space<vmem>>, vector<1x16x8xbf16>
    %10 = vector.shape_cast %9 : vector<1x16x8xbf16> to vector<16x8xbf16>
    %cst_8 = arith.constant dense<0.000000e+00> : vector<8x8xf32>
    %11 = tpu.matmul %8, %10, %cst_8 {dimension_numbers = #tpu.dot_dimension_numbers<[1], [0], [0], [1], [0, 0, 1, 1], [], []>} : vector<8x16xbf16>, vector<16x8xbf16>, vector<8x8xf32> -> vector<8x8xf32>
    %12 = arith.addf %7, %11 : vector<8x8xf32>
    %13 = vector.extract_strided_slice %1 {offsets = [2, 0], sizes = [8, 16], strides = [1, 1]} : vector<10x16xbf16> to vector<8x16xbf16>
    %c2 = arith.constant 2 : index
    %c0_9 = arith.constant 0 : index
    %c0_10 = arith.constant 0 : index
    %14 = vector.load %arg2[%c2, %c0_9, %c0_10] : memref<3x16x8xbf16, #tpu.memory_space<vmem>>, vector<1x16x8xbf16>
    %15 = vector.shape_cast %14 : vector<1x16x8xbf16> to vector<16x8xbf16>
    %cst_11 = arith.constant dense<0.000000e+00> : vector<8x8xf32>
    %16 = tpu.matmul %13, %15, %cst_11 {dimension_numbers = #tpu.dot_dimension_numbers<[1], [0], [0], [1], [0, 0, 1, 1], [], []>} : vector<8x16xbf16>, vector<16x8xbf16>, vector<8x8xf32> -> vector<8x8xf32>
    %17 = arith.addf %12, %16 : vector<8x8xf32>
    %c0_12 = arith.constant 0 : index
    %c0_13 = arith.constant 0 : index
    %18 = vector.load %arg3[%c0_12, %c0_13] : memref<1x8xf32, #tpu.memory_space<vmem>>, vector<1x8xf32>
    %19 = vector.broadcast %18 : vector<1x8xf32> to vector<8x8xf32>
    %20 = arith.addf %17, %19 : vector<8x8xf32>
    %cst_14 = arith.constant 0.000000e+00 : f32
    %21 = vector.broadcast %cst_14 : f32 to vector<8x8xf32>
    %22 = arith.maximumf %20, %21 : vector<8x8xf32>
    %23 = arith.truncf %22 : vector<8x8xf32> to vector<8x8xbf16>
    %c0_15 = arith.constant 0 : index
    %c0_16 = arith.constant 0 : index
    %c0_17 = arith.constant 0 : index
    %24 = vector.load %arg4[%c0_15, %c0_16, %c0_17] : memref<1x8x8xbf16, #tpu.memory_space<vmem>>, vector<1x8x8xbf16>
    %25 = vector.shape_cast %24 : vector<1x8x8xbf16> to vector<8x8xbf16>
    %26 = vector.shape_cast %23 : vector<8x8xbf16> to vector<1x8x8xbf16>
    tpu.vector_store %arg4[%c0_15, %c0_16, %c0_17], %26 {strides = array<i32>} : memref<1x8x8xbf16, #tpu.memory_space<vmem>>, vector<1x8x8xbf16>,
    return
  }
  func.func @transform_0(%arg0: i32) -> (i32, i32, i32) {
    %c0_i32 = arith.constant 0 : i32
    %c0_i32_0 = arith.constant 0 : i32
    %c0_i32_1 = arith.constant 0 : i32
    return %arg0, %c0_i32, %c0_i32_0 : i32, i32, i32
  }
  func.func @transform_1(%arg0: i32) -> (i32, i32, i32) {
    %c0_i32 = arith.constant 0 : i32
    %c0_i32_0 = arith.constant 0 : i32
    %c0_i32_1 = arith.constant 0 : i32
    %c0_i32_2 = arith.constant 0 : i32
    return %c0_i32, %c0_i32_0, %c0_i32_1 : i32, i32, i32
  }
  func.func @transform_2(%arg0: i32) -> (i32, i32) {
    %c0_i32 = arith.constant 0 : i32
    %c0_i32_0 = arith.constant 0 : i32
    %c0_i32_1 = arith.constant 0 : i32
    return %c0_i32, %c0_i32_0 : i32, i32
  }
  func.func @transform_3(%arg0: i32) -> (i32, i32, i32) {
    %c0_i32 = arith.constant 0 : i32
    %c0_i32_0 = arith.constant 0 : i32
    %c0_i32_1 = arith.constant 0 : i32
    return %arg0, %c0_i32, %c0_i32_0 : i32, i32, i32
  }
}

module attributes {stable_mosaic.version = 11 : i64} {
  func.func @_conv_kernel(%arg0: i32, %arg1: memref<1x9x8xbf16, #tpu.memory_space<vmem>>, %arg2: memref<2x8x8xbf16, #tpu.memory_space<vmem>>, %arg3: memref<1x8xf32, #tpu.memory_space<vmem>>, %arg4: memref<1x8x8xbf16, #tpu.memory_space<vmem>>) attributes {dimension_semantics = [#tpu.dimension_semantics<parallel>], iteration_bounds = array<i64: 2>, scalar_prefetch = 0 : i64, scratch_operands = 0 : i64, tpu.core_type = #tpu.core_type<tc>, window_params = [{transform_indices = @transform_0, window_bounds = array<i64: 1, 9, 8>}, {pipeline_mode = #tpu.pipeline_mode<synchronous>, transform_indices = @transform_1, window_bounds = array<i64: 2, 8, 8>}, {pipeline_mode = #tpu.pipeline_mode<synchronous>, transform_indices = @transform_2, window_bounds = array<i64: 1, 8>}, {transform_indices = @transform_3, window_bounds = array<i64: 1, 8, 8>}]} {
    %c0 = arith.constant 0 : index
    %c0_0 = arith.constant 0 : index
    %c0_1 = arith.constant 0 : index
    %0 = vector.load %arg1[%c0, %c0_0, %c0_1] : memref<1x9x8xbf16, #tpu.memory_space<vmem>>, vector<1x9x8xbf16>
    %1 = vector.shape_cast %0 : vector<1x9x8xbf16> to vector<9x8xbf16>
    %cst = arith.constant 0.000000e+00 : f32
    %2 = vector.broadcast %cst : f32 to vector<8x8xf32>
    %3 = vector.extract_strided_slice %1 {offsets = [0, 0], sizes = [8, 8], strides = [1, 1]} : vector<9x8xbf16> to vector<8x8xbf16>
    %c0_2 = arith.constant 0 : index
    %c0_3 = arith.constant 0 : index
    %c0_4 = arith.constant 0 : index
    %4 = vector.load %arg2[%c0_2, %c0_3, %c0_4] : memref<2x8x8xbf16, #tpu.memory_space<vmem>>, vector<1x8x8xbf16>
    %5 = vector.shape_cast %4 : vector<1x8x8xbf16> to vector<8x8xbf16>
    %cst_5 = arith.constant dense<0.000000e+00> : vector<8x8xf32>
    %6 = tpu.matmul %3, %5, %cst_5 {dimension_numbers = #tpu.dot_dimension_numbers<[1], [0], [0], [1], [0, 0, 1, 1], [], []>} : vector<8x8xbf16>, vector<8x8xbf16>, vector<8x8xf32> -> vector<8x8xf32>
    %7 = arith.addf %2, %6 : vector<8x8xf32>
    %8 = vector.extract_strided_slice %1 {offsets = [1, 0], sizes = [8, 8], strides = [1, 1]} : vector<9x8xbf16> to vector<8x8xbf16>
    %c1 = arith.constant 1 : index
    %c0_6 = arith.constant 0 : index
    %c0_7 = arith.constant 0 : index
    %9 = vector.load %arg2[%c1, %c0_6, %c0_7] : memref<2x8x8xbf16, #tpu.memory_space<vmem>>, vector<1x8x8xbf16>
    %10 = vector.shape_cast %9 : vector<1x8x8xbf16> to vector<8x8xbf16>
    %cst_8 = arith.constant dense<0.000000e+00> : vector<8x8xf32>
    %11 = tpu.matmul %8, %10, %cst_8 {dimension_numbers = #tpu.dot_dimension_numbers<[1], [0], [0], [1], [0, 0, 1, 1], [], []>} : vector<8x8xbf16>, vector<8x8xbf16>, vector<8x8xf32> -> vector<8x8xf32>
    %12 = arith.addf %7, %11 : vector<8x8xf32>
    %c0_9 = arith.constant 0 : index
    %c0_10 = arith.constant 0 : index
    %13 = vector.load %arg3[%c0_9, %c0_10] : memref<1x8xf32, #tpu.memory_space<vmem>>, vector<1x8xf32>
    %14 = vector.broadcast %13 : vector<1x8xf32> to vector<8x8xf32>
    %15 = arith.addf %12, %14 : vector<8x8xf32>
    %16 = arith.truncf %15 : vector<8x8xf32> to vector<8x8xbf16>
    %c0_11 = arith.constant 0 : index
    %c0_12 = arith.constant 0 : index
    %c0_13 = arith.constant 0 : index
    %17 = vector.load %arg4[%c0_11, %c0_12, %c0_13] : memref<1x8x8xbf16, #tpu.memory_space<vmem>>, vector<1x8x8xbf16>
    %18 = vector.shape_cast %17 : vector<1x8x8xbf16> to vector<8x8xbf16>
    %19 = vector.shape_cast %16 : vector<8x8xbf16> to vector<1x8x8xbf16>
    tpu.vector_store %arg4[%c0_11, %c0_12, %c0_13], %19 {strides = array<i32>} : memref<1x8x8xbf16, #tpu.memory_space<vmem>>, vector<1x8x8xbf16>,
    return
  }
  func.func @transform_0(%arg0: i32) -> (i32, i32, i32) {
    %c0_i32 = arith.constant 0 : i32
    %c0_i32_0 = arith.constant 0 : i32
    %c0_i32_1 = arith.constant 0 : i32
    return %arg0, %c0_i32, %c0_i32_0 : i32, i32, i32
  }
  func.func @transform_1(%arg0: i32) -> (i32, i32, i32) {
    %c0_i32 = arith.constant 0 : i32
    %c0_i32_0 = arith.constant 0 : i32
    %c0_i32_1 = arith.constant 0 : i32
    %c0_i32_2 = arith.constant 0 : i32
    return %c0_i32, %c0_i32_0, %c0_i32_1 : i32, i32, i32
  }
  func.func @transform_2(%arg0: i32) -> (i32, i32) {
    %c0_i32 = arith.constant 0 : i32
    %c0_i32_0 = arith.constant 0 : i32
    %c0_i32_1 = arith.constant 0 : i32
    return %c0_i32, %c0_i32_0 : i32, i32
  }
  func.func @transform_3(%arg0: i32) -> (i32, i32, i32) {
    %c0_i32 = arith.constant 0 : i32
    %c0_i32_0 = arith.constant 0 : i32
    %c0_i32_1 = arith.constant 0 : i32
    return %arg0, %c0_i32, %c0_i32_0 : i32, i32, i32
  }
}

module attributes {stable_mosaic.version = 11 : i64} {
  func.func @_conv_kernel(%arg0: i32, %arg1: memref<1x8x8xbf16, #tpu.memory_space<vmem>>, %arg2: memref<1x8x8xbf16, #tpu.memory_space<vmem>>, %arg3: memref<1x8xf32, #tpu.memory_space<vmem>>, %arg4: memref<1x8x8xbf16, #tpu.memory_space<vmem>>) attributes {dimension_semantics = [#tpu.dimension_semantics<parallel>], iteration_bounds = array<i64: 2>, scalar_prefetch = 0 : i64, scratch_operands = 0 : i64, tpu.core_type = #tpu.core_type<tc>, window_params = [{transform_indices = @transform_0, window_bounds = array<i64: 1, 8, 8>}, {pipeline_mode = #tpu.pipeline_mode<synchronous>, transform_indices = @transform_1, window_bounds = array<i64: 1, 8, 8>}, {pipeline_mode = #tpu.pipeline_mode<synchronous>, transform_indices = @transform_2, window_bounds = array<i64: 1, 8>}, {transform_indices = @transform_3, window_bounds = array<i64: 1, 8, 8>}]} {
    %c0 = arith.constant 0 : index
    %c0_0 = arith.constant 0 : index
    %c0_1 = arith.constant 0 : index
    %0 = vector.load %arg1[%c0, %c0_0, %c0_1] : memref<1x8x8xbf16, #tpu.memory_space<vmem>>, vector<1x8x8xbf16>
    %1 = vector.shape_cast %0 : vector<1x8x8xbf16> to vector<8x8xbf16>
    %cst = arith.constant 0.000000e+00 : f32
    %2 = vector.broadcast %cst : f32 to vector<8x8xf32>
    %c0_2 = arith.constant 0 : index
    %c0_3 = arith.constant 0 : index
    %c0_4 = arith.constant 0 : index
    %3 = vector.load %arg2[%c0_2, %c0_3, %c0_4] : memref<1x8x8xbf16, #tpu.memory_space<vmem>>, vector<1x8x8xbf16>
    %4 = vector.shape_cast %3 : vector<1x8x8xbf16> to vector<8x8xbf16>
    %cst_5 = arith.constant dense<0.000000e+00> : vector<8x8xf32>
    %5 = tpu.matmul %1, %4, %cst_5 {dimension_numbers = #tpu.dot_dimension_numbers<[1], [0], [0], [1], [0, 0, 1, 1], [], []>} : vector<8x8xbf16>, vector<8x8xbf16>, vector<8x8xf32> -> vector<8x8xf32>
    %6 = arith.addf %2, %5 : vector<8x8xf32>
    %c0_6 = arith.constant 0 : index
    %c0_7 = arith.constant 0 : index
    %7 = vector.load %arg3[%c0_6, %c0_7] : memref<1x8xf32, #tpu.memory_space<vmem>>, vector<1x8xf32>
    %8 = vector.broadcast %7 : vector<1x8xf32> to vector<8x8xf32>
    %9 = arith.addf %6, %8 : vector<8x8xf32>
    %10 = arith.truncf %9 : vector<8x8xf32> to vector<8x8xbf16>
    %c0_8 = arith.constant 0 : index
    %c0_9 = arith.constant 0 : index
    %c0_10 = arith.constant 0 : index
    %11 = vector.load %arg4[%c0_8, %c0_9, %c0_10] : memref<1x8x8xbf16, #tpu.memory_space<vmem>>, vector<1x8x8xbf16>
    %12 = vector.shape_cast %11 : vector<1x8x8xbf16> to vector<8x8xbf16>
    %13 = vector.shape_cast %10 : vector<8x8xbf16> to vector<1x8x8xbf16>
    tpu.vector_store %arg4[%c0_8, %c0_9, %c0_10], %13 {strides = array<i32>} : memref<1x8x8xbf16, #tpu.memory_space<vmem>>, vector<1x8x8xbf16>,
    return
  }
  func.func @transform_0(%arg0: i32) -> (i32, i32, i32) {
    %c0_i32 = arith.constant 0 : i32
    %c0_i32_0 = arith.constant 0 : i32
    %c0_i32_1 = arith.constant 0 : i32
    return %arg0, %c0_i32, %c0_i32_0 : i32, i32, i32
  }
  func.func @transform_1(%arg0: i32) -> (i32, i32, i32) {
    %c0_i32 = arith.constant 0 : i32
    %c0_i32_0 = arith.constant 0 : i32
    %c0_i32_1 = arith.constant 0 : i32
    %c0_i32_2 = arith.constant 0 : i32
    return %c0_i32, %c0_i32_0, %c0_i32_1 : i32, i32, i32
  }
  func.func @transform_2(%arg0: i32) -> (i32, i32) {
    %c0_i32 = arith.constant 0 : i32
    %c0_i32_0 = arith.constant 0 : i32
    %c0_i32_1 = arith.constant 0 : i32
    return %c0_i32, %c0_i32_0 : i32, i32
  }
  func.func @transform_3(%arg0: i32) -> (i32, i32, i32) {
    %c0_i32 = arith.constant 0 : i32
    %c0_i32_0 = arith.constant 0 : i32
    %c0_i32_1 = arith.constant 0 : i32
    return %arg0, %c0_i32, %c0_i32_0 : i32, i32, i32
  }
}

module attributes {stable_mosaic.version = 11 : i64} {
  func.func @_conv_kernel(%arg0: i32, %arg1: memref<1x16x8xbf16, #tpu.memory_space<vmem>>, %arg2: memref<1x8x4xbf16, #tpu.memory_space<vmem>>, %arg3: memref<1x4xf32, #tpu.memory_space<vmem>>, %arg4: memref<1x16x4xf32, #tpu.memory_space<vmem>>) attributes {dimension_semantics = [#tpu.dimension_semantics<parallel>], iteration_bounds = array<i64: 2>, scalar_prefetch = 0 : i64, scratch_operands = 0 : i64, tpu.core_type = #tpu.core_type<tc>, window_params = [{transform_indices = @transform_0, window_bounds = array<i64: 1, 16, 8>}, {pipeline_mode = #tpu.pipeline_mode<synchronous>, transform_indices = @transform_1, window_bounds = array<i64: 1, 8, 4>}, {pipeline_mode = #tpu.pipeline_mode<synchronous>, transform_indices = @transform_2, window_bounds = array<i64: 1, 4>}, {transform_indices = @transform_3, window_bounds = array<i64: 1, 16, 4>}]} {
    %c0 = arith.constant 0 : index
    %c0_0 = arith.constant 0 : index
    %c0_1 = arith.constant 0 : index
    %0 = vector.load %arg1[%c0, %c0_0, %c0_1] : memref<1x16x8xbf16, #tpu.memory_space<vmem>>, vector<1x16x8xbf16>
    %1 = vector.shape_cast %0 : vector<1x16x8xbf16> to vector<16x8xbf16>
    %cst = arith.constant 0.000000e+00 : f32
    %2 = vector.broadcast %cst : f32 to vector<16x4xf32>
    %c0_2 = arith.constant 0 : index
    %c0_3 = arith.constant 0 : index
    %c0_4 = arith.constant 0 : index
    %3 = vector.load %arg2[%c0_2, %c0_3, %c0_4] : memref<1x8x4xbf16, #tpu.memory_space<vmem>>, vector<1x8x4xbf16>
    %4 = vector.shape_cast %3 : vector<1x8x4xbf16> to vector<8x4xbf16>
    %cst_5 = arith.constant dense<0.000000e+00> : vector<16x4xf32>
    %5 = tpu.matmul %1, %4, %cst_5 {dimension_numbers = #tpu.dot_dimension_numbers<[1], [0], [0], [1], [0, 0, 1, 1], [], []>} : vector<16x8xbf16>, vector<8x4xbf16>, vector<16x4xf32> -> vector<16x4xf32>
    %6 = arith.addf %2, %5 : vector<16x4xf32>
    %c0_6 = arith.constant 0 : index
    %c0_7 = arith.constant 0 : index
    %7 = vector.load %arg3[%c0_6, %c0_7] : memref<1x4xf32, #tpu.memory_space<vmem>>, vector<1x4xf32>
    %8 = vector.broadcast %7 : vector<1x4xf32> to vector<16x4xf32>
    %9 = arith.addf %6, %8 : vector<16x4xf32>
    %cst_8 = arith.constant 0.000000e+00 : f32
    %10 = vector.broadcast %cst_8 : f32 to vector<16x4xf32>
    %11 = arith.subf %10, %9 : vector<16x4xf32>
    %12 = math.exp %11 : vector<16x4xf32>
    %cst_9 = arith.constant 1.000000e+00 : f32
    %13 = vector.broadcast %cst_9 : f32 to vector<16x4xf32>
    %14 = arith.addf %13, %12 : vector<16x4xf32>
    %cst_10 = arith.constant 1.000000e+00 : f32
    %15 = vector.broadcast %cst_10 : f32 to vector<16x4xf32>
    %16 = arith.divf %15, %14 : vector<16x4xf32>
    %c0_11 = arith.constant 0 : index
    %c0_12 = arith.constant 0 : index
    %c0_13 = arith.constant 0 : index
    %17 = vector.load %arg4[%c0_11, %c0_12, %c0_13] : memref<1x16x4xf32, #tpu.memory_space<vmem>>, vector<1x16x4xf32>
    %18 = vector.shape_cast %17 : vector<1x16x4xf32> to vector<16x4xf32>
    %19 = vector.shape_cast %16 : vector<16x4xf32> to vector<1x16x4xf32>
    tpu.vector_store %arg4[%c0_11, %c0_12, %c0_13], %19 {strides = array<i32>} : memref<1x16x4xf32, #tpu.memory_space<vmem>>, vector<1x16x4xf32>,
    return
  }
  func.func @transform_0(%arg0: i32) -> (i32, i32, i32) {
    %c0_i32 = arith.constant 0 : i32
    %c0_i32_0 = arith.constant 0 : i32
    %c0_i32_1 = arith.constant 0 : i32
    return %arg0, %c0_i32, %c0_i32_0 : i32, i32, i32
  }
  func.func @transform_1(%arg0: i32) -> (i32, i32, i32) {
    %c0_i32 = arith.constant 0 : i32
    %c0_i32_0 = arith.constant 0 : i32
    %c0_i32_1 = arith.constant 0 : i32
    %c0_i32_2 = arith.constant 0 : i32
    return %c0_i32, %c0_i32_0, %c0_i32_1 : i32, i32, i32
  }
  func.func @transform_2(%arg0: i32) -> (i32, i32) {
    %c0_i32 = arith.constant 0 : i32
    %c0_i32_0 = arith.constant 0 : i32
    %c0_i32_1 = arith.constant 0 : i32
    return %c0_i32, %c0_i32_0 : i32, i32
  }
  func.func @transform_3(%arg0: i32) -> (i32, i32, i32) {
    %c0_i32 = arith.constant 0 : i32
    %c0_i32_0 = arith.constant 0 : i32
    %c0_i32_1 = arith.constant 0 : i32
    return %arg0, %c0_i32, %c0_i32_0 : i32, i32, i32
  }
}

</mosaic_0001>

<bundles_post_ra>
// kernel: audio_ae1d_forward.16
= control target key start
LH: loop header
LB: loop body
LE: loop exit
PB: predicated region body
PF: predicated region fallthrough
CT: control target
= control target key end

     0   :  { %8 = vsyncpa [#allocation3], 0  ;;  %s327_s0 = inlined_call_operand.hbm [shape: bf16[32,8], index: 0, kind: input, shape index: {}]   ;;  %s328_s1 = inlined_call_operand.hbm [shape: f32[1,8], index: 1, kind: input, shape index: {}]   ;;  %s329_s2 = inlined_call_operand.hbm [shape: f32[1,8], index: 2, kind: input, shape index: {}]   ;;  %s330_s3 = inlined_call_operand.hbm [shape: bf16[32,8], index: 3, kind: output, shape index: {}]  }
   0x1   :  { %9 = vsyncpa [#allocation6], 0 }
   0x2   :  { %10 = vsyncpa [#allocation4], 0  ;;  %s240_s12 = smov [#allocation5]   ;;  %s241_s14 = smov [#allocation2]  }
   0x3   :  { %s29_s13 = sshll.u32 %s240_s12, 4  ;;  %s16_s15 = sshll.u32 %s241_s14, 4  ;;  %s30_s13 = int_to_ptr.vmem [resolvable:$true] %s29_s13  ;;  %s266_s15 = int_to_ptr.vmem [resolvable:$true] %s16_s15 }
   0x4   :  { %s146_s18 = scalar_lea.hbm %s328_s1, 16 }
   0x5   :  { %p147_p0 = scmp.ne.s32.totalorder %s328_s1, %s146_s18  ;;  %p150_p1 = scmp.lt.u32.totalorder %s146_s18, %s328_s1 }
   0x7   :  { %p152_p2 = pnand %p150_p1, %p147_p0 }
   0x9   :  { %155 = shalt.err (!%p152_p2)
}
   0xa   :  { %s156_s23 = scalar_lea.vmem %s30_s13, 16  ;;  %s160_s24 = scalar_lea.vmem %s30_s13, 32 }
   0xb   :  { %p157_p3 = scmp.ne.s32.totalorder %s30_s13, %s156_s23  ;;  %p161_p4 = scmp.lt.s32.totalorder %s30_s13, %s30_s13 }
   0xc   :  { %p162_p5 = scmp.lt.s32.totalorder %s160_s24, %s156_s23 }
   0xe   :  { %p163_p6 = por %p162_p5, %p161_p4 }
  0x10   :  { %p164_p7 = pnand %p163_p6, %p157_p3 }
  0x12   :  { %167 = shalt.err (!%p164_p7)
}
  0x13   :  { %32 = dma.hbm_to_vmem [thread:$0]  %s328_s1, 16, %s30_s13, [#allocation6]  }
  0x14   :  { %s168_s29 = scalar_lea.hbm %s327_s0, 256 }
  0x15   :  { %p169_p8 = scmp.ne.s32.totalorder %s327_s0, %s168_s29  ;;  %p172_p9 = scmp.lt.u32.totalorder %s168_s29, %s327_s0 }
  0x17   :  { %p174_p10 = pnand %p172_p9, %p169_p8 }
  0x19   :  { %177 = shalt.err (!%p174_p10)
}
  0x1a   :  { %s178_s7 = scalar_lea.vmem %s266_s15, 256  ;;  %p183_p12 = scmp.lt.s32.totalorder %s266_s15, %s266_s15 }
  0x1b   :  { %p179_p11 = scmp.ne.s32.totalorder %s266_s15, %s178_s7  ;;  %p184_p13 = scmp.lt.s32.totalorder %s178_s7, %s178_s7 }
  0x1d   :  { %p185_p0 = por %p184_p13, %p183_p12 }
  0x1f   :  { %p186_p1 = pnand %p185_p0, %p179_p11 }
  0x21   :  { %189 = shalt.err (!%p186_p1)
}
  0x22   :  { %s242_s1 = smov 64   ;;  %s243_s8 = smov 4  }
  0x23   :  { %22 = dma.hbm_to_vmem [thread:$0]  %s327_s0, 256, %s266_s15, [#allocation3], %s242_s1, %s242_s1, %s243_s8  }
  0x24   :  { %s244_s11 = smov [#allocation7]   ;;  %s190_s16 = scalar_lea.hbm %s329_s2, 16 }
  0x25   :  { %s39_s12 = sshll.u32 %s244_s11, 4  ;;  %p191_p2 = scmp.ne.s32.totalorder %s329_s2, %s190_s16  ;;  %s40_s12 = int_to_ptr.vmem [resolvable:$true] %s39_s12 }
  0x26   :  { %p194_p3 = scmp.lt.u32.totalorder %s190_s16, %s329_s2 }
  0x28   :  { %p196_p4 = pnand %p194_p3, %p191_p2 }
  0x2a   :  { %199 = shalt.err (!%p196_p4)
}
  0x2b   :  { %s200_s21 = scalar_lea.vmem %s40_s12, 16  ;;  %s204_s0 = scalar_lea.vmem %s40_s12, 32 }
  0x2c   :  { %p201_p5 = scmp.ne.s32.totalorder %s40_s12, %s200_s21  ;;  %p205_p6 = scmp.lt.s32.totalorder %s40_s12, %s40_s12 }
  0x2d   :  { %p206_p7 = scmp.lt.s32.totalorder %s204_s0, %s200_s21 }
  0x2f   :  { %p207_p8 = por %p206_p7, %p205_p6 }
  0x31   :  { %p208_p9 = pnand %p207_p8, %p201_p5 }
  0x33   :  { %211 = shalt.err (!%p208_p9)
}
  0x34   :  { %42 = dma.hbm_to_vmem [thread:$0]  %s329_s2, 16, %s40_s12, [#allocation6]  }
  0x35   :  { %234 = dma.done.wait [#allocation3], 256  }
  0x36   :  { %235 = vsyncadd [#allocation3], 4294967040 }
  0x37   :  { %236 = dma.done.wait [#allocation6], 32  }
  0x38   :  { %237 = vsyncadd [#allocation6], 4294967264  ;;  %v132_v0 = vld [vmem:[#allocation2] sm:$0xff]   ;;  %v121_v1 = vld [vmem:[#allocation5] ss:$0 sm:$0xff]  ;;  %s245_s23 = smov [#allocation8]  }
  0x39   :  { %v133_v2 = vunpack.c.l.bf16 %v132_v0  ;;  %v134_v3 = vunpack.c.h.bf16 %v132_v0  ;;  %v139_v4 = vld [vmem:[#allocation2 + $0x8] sm:$0xff]   ;;  %v122_v5 = vld [vmem:[#allocation7] ss:$0 sm:$0xff]  ;;  %s108_s2 = sshll.u32 %s245_s23, 4  ;;  %vm98_vm0 = vcmask 60416   ;;  %s109_s2 = int_to_ptr.vmem [resolvable:$true] %s108_s2 }
  0x3a   :  { %v137_v6 = vunpack.c.l.bf16 %v139_v4  ;;  %v138_v7 = vunpack.c.h.bf16 %v139_v4  ;;  %s212_s24 = scalar_lea.vmem %s109_s2, 256  ;;  %p217_p11 = scmp.lt.s32.totalorder %s109_s2, %s109_s2 }
  0x3b   :  { %v67_v8 = vmul.f32 %v133_v2, %v121_v1  ;;  %v68_v9 = vmul.f32 %v134_v3, %v121_v1  ;;  %p213_p10 = scmp.ne.s32.totalorder %s109_s2, %s212_s24  ;;  %p218_p12 = scmp.lt.s32.totalorder %s212_s24, %s212_s24 }
  0x3c   :  { %v69_v10 = vmul.f32 %v137_v6, %v121_v1  ;;  %v70_v11 = vmul.f32 %v138_v7, %v121_v1 }
  0x3d   :  { %v78_v12 = vadd.f32 %v122_v5, %v67_v8  ;;  %v79_v13 = vadd.f32 %v122_v5, %v68_v9  ;;  %p219_p13 = por %p218_p12, %p217_p11 }
  0x3e   :  { %v80_v14 = vadd.f32 %v122_v5, %v69_v10  ;;  %v81_v15 = vadd.f32 %v122_v5, %v70_v11 }
  0x3f   :  { %v127_v16 = vpack.c.bf16 %v78_v12, %v78_v12  ;;  %v128_v17 = vpack.c.bf16 %v79_v13, %v79_v13  ;;  %p220_p0 = pnand %p219_p13, %p213_p10 }
  0x40   :  { %v129_v18 = vpack.c.bf16 %v80_v14, %v80_v14  ;;  %v130_v19 = vpack.c.bf16 %v81_v15, %v81_v15 }
  0x41   :  { %99 = vst.msk [vmem:[#allocation8] sm:$0xf] %vm98_vm0, %v127_v16  ;;  %100 = vst.msk [vmem:[#allocation8 + $0x4] sm:$0xf] %vm98_vm0, %v128_v17 }
  0x42   :  { %101 = vst.msk [vmem:[#allocation8 + $0x8] sm:$0xf] %vm98_vm0, %v129_v18  ;;  %102 = vst.msk [vmem:[#allocation8 + $0xc] sm:$0xf] %vm98_vm0, %v130_v19 }
  0x43   :  { %223 = shalt.err (!%p220_p0)
}
  0x44   :  { %s224_s27 = scalar_lea.hbm %s330_s3, 256 }
  0x45   :  { %p225_p1 = scmp.ne.s32.totalorder %s330_s3, %s224_s27  ;;  %p228_p2 = scmp.lt.u32.totalorder %s224_s27, %s330_s3 }
  0x47   :  { %p230_p3 = pnand %p228_p2, %p225_p1 }
  0x49   :  { %233 = shalt.err (!%p230_p3)
}
  0x4a   :  { %114 = dma.vmem_to_hbm [thread:$0]  %s109_s2, 256, %s330_s3, [#allocation4], %s242_s1, %s242_s1, %s243_s8  }
  0x4b   :  { %238 = dma.done.wait [#allocation4], 256  }
  0x4c   :  { %239 = vsyncadd [#allocation4], 4294967040 }
  0x4d   :  { %118 = vsyncpa [#allocation3], 1 }
  0x4e   :  { %119 = vsyncpa [#allocation6], 1 }
  0x4f   :  { %120 = vsyncpa [#allocation4], 1 }

// kernel: audio_ae1d_forward.18
= control target key start
LH: loop header
LB: loop body
LE: loop exit
PB: predicated region body
PF: predicated region fallthrough
CT: control target
= control target key end

     0   :  { %8 = vsyncpa [#allocation3], 0  ;;  %s637_s0 = inlined_call_operand.hbm [shape: bf16[16,2,8], index: 0, kind: input, shape index: {}]   ;;  %s638_s1 = inlined_call_operand.hbm [shape: f32[1,1,8], index: 1, kind: input, shape index: {}]   ;;  %s639_s2 = inlined_call_operand.hbm [shape: f32[1,1,8], index: 2, kind: input, shape index: {}]   ;;  %s640_s3 = inlined_call_operand.hbm [shape: bf16[16,8], index: 3, kind: output, shape index: {}]  }
   0x1   :  { %9 = vsyncpa [#allocation6], 0 }
   0x2   :  { %10 = vsyncpa [#allocation4], 0  ;;  %s502_s12 = smov [#allocation5]   ;;  %s503_s14 = smov [#allocation2]  }
   0x3   :  { %s29_s13 = sshll.u32 %s502_s12, 4  ;;  %s16_s15 = sshll.u32 %s503_s14, 4  ;;  %s30_s13 = int_to_ptr.vmem [resolvable:$true] %s29_s13  ;;  %s530_s15 = int_to_ptr.vmem [resolvable:$true] %s16_s15 }
   0x4   :  { %s408_s18 = scalar_lea.hbm %s638_s1, 16 }
   0x5   :  { %p409_p0 = scmp.ne.s32.totalorder %s638_s1, %s408_s18  ;;  %p412_p1 = scmp.lt.u32.totalorder %s408_s18, %s638_s1 }
   0x7   :  { %p414_p2 = pnand %p412_p1, %p409_p0 }
   0x9   :  { %417 = shalt.err (!%p414_p2)
}
   0xa   :  { %s418_s23 = scalar_lea.vmem %s30_s13, 16  ;;  %s422_s24 = scalar_lea.vmem %s30_s13, 32 }
   0xb   :  { %p419_p3 = scmp.ne.s32.totalorder %s30_s13, %s418_s23  ;;  %p423_p4 = scmp.lt.s32.totalorder %s30_s13, %s30_s13 }
   0xc   :  { %p424_p5 = scmp.lt.s32.totalorder %s422_s24, %s418_s23 }
   0xe   :  { %p425_p6 = por %p424_p5, %p423_p4 }
  0x10   :  { %p426_p7 = pnand %p425_p6, %p419_p3 }
  0x12   :  { %429 = shalt.err (!%p426_p7)
}
  0x13   :  { %32 = dma.hbm_to_vmem [thread:$0]  %s638_s1, 16, %s30_s13, [#allocation6]  }
  0x14   :  { %s430_s29 = scalar_lea.hbm %s637_s0, 256 }
  0x15   :  { %p431_p8 = scmp.ne.s32.totalorder %s637_s0, %s430_s29  ;;  %p434_p9 = scmp.lt.u32.totalorder %s430_s29, %s637_s0 }
  0x17   :  { %p436_p10 = pnand %p434_p9, %p431_p8 }
  0x19   :  { %439 = shalt.err (!%p436_p10)
}
  0x1a   :  { %s440_s7 = scalar_lea.vmem %s530_s15, 256  ;;  %p445_p12 = scmp.lt.s32.totalorder %s530_s15, %s530_s15 }
  0x1b   :  { %p441_p11 = scmp.ne.s32.totalorder %s530_s15, %s440_s7  ;;  %p446_p13 = scmp.lt.s32.totalorder %s440_s7, %s440_s7 }
  0x1d   :  { %p447_p0 = por %p446_p13, %p445_p12 }
  0x1f   :  { %p448_p1 = pnand %p447_p0, %p441_p11 }
  0x21   :  { %451 = shalt.err (!%p448_p1)
}
  0x22   :  { %s504_s1 = smov 16   ;;  %s505_s8 = smov 1  }
  0x23   :  { %22 = dma.hbm_to_vmem [thread:$0]  %s637_s0, 256, %s530_s15, [#allocation3], %s504_s1, %s504_s1, %s505_s8  }
  0x24   :  { %s506_s11 = smov [#allocation7]   ;;  %s452_s16 = scalar_lea.hbm %s639_s2, 16 }
  0x25   :  { %s39_s12 = sshll.u32 %s506_s11, 4  ;;  %p453_p2 = scmp.ne.s32.totalorder %s639_s2, %s452_s16  ;;  %s40_s12 = int_to_ptr.vmem [resolvable:$true] %s39_s12 }
  0x26   :  { %p456_p3 = scmp.lt.u32.totalorder %s452_s16, %s639_s2 }
  0x28   :  { %p458_p4 = pnand %p456_p3, %p453_p2 }
  0x2a   :  { %461 = shalt.err (!%p458_p4)
}
  0x2b   :  { %s462_s21 = scalar_lea.vmem %s40_s12, 16  ;;  %s466_s0 = scalar_lea.vmem %s40_s12, 32 }
  0x2c   :  { %p463_p5 = scmp.ne.s32.totalorder %s40_s12, %s462_s21  ;;  %p467_p6 = scmp.lt.s32.totalorder %s40_s12, %s40_s12 }
  0x2d   :  { %p468_p7 = scmp.lt.s32.totalorder %s466_s0, %s462_s21 }
  0x2f   :  { %p469_p8 = por %p468_p7, %p467_p6 }
  0x31   :  { %p470_p9 = pnand %p469_p8, %p463_p5 }
  0x33   :  { %473 = shalt.err (!%p470_p9)
}
  0x34   :  { %42 = dma.hbm_to_vmem [thread:$0]  %s639_s2, 16, %s40_s12, [#allocation6]  }
  0x35   :  { %496 = dma.done.wait [#allocation3], 256  }
  0x36   :  { %497 = vsyncadd [#allocation3], 4294967040 }
  0x37   :  { %498 = dma.done.wait [#allocation6], 32  }
  0x38   :  { %499 = vsyncadd [#allocation6], 4294967264  ;;  %v52_v0 = vld [vmem:[#allocation2] sm:$0x1]  ;;  %v53_v1 = vld [vmem:[#allocation2 + $0x1] sm:$0x1] }
  0x39   :  { %v54_v2 = vld [vmem:[#allocation2 + $0x2] sm:$0x1]  ;;  %v55_v3 = vld [vmem:[#allocation2 + $0x3] sm:$0x1]  ;;  %v56_v4 = vld [vmem:[#allocation2 + $0x4] sm:$0x1]  ;;  %v68_v6 = vunpack.c.l.bf16 %v52_v0  ;;  %v69_v7 = vunpack.c.l.bf16 %v53_v1 }
  0x3a   :  { %v57_v5 = vld [vmem:[#allocation2 + $0x5] sm:$0x1]  ;;  %v70_v8 = vunpack.c.l.bf16 %v54_v2  ;;  %v58_v9 = vld [vmem:[#allocation2 + $0x6] sm:$0x1]  ;;  %v59_v10 = vld [vmem:[#allocation2 + $0x7] sm:$0x1]  ;;  %v71_v11 = vunpack.c.l.bf16 %v55_v3  ;;  %v72_v12 = vunpack.c.l.bf16 %v56_v4 }
  0x3b   :  { %v73_v13 = vunpack.c.l.bf16 %v57_v5  ;;  %v573_v14 = vld [vmem:[#allocation5] ss:$0 sm:$0xff]  ;;  %v74_v15 = vunpack.c.l.bf16 %v58_v9  ;;  %v75_v16 = vunpack.c.l.bf16 %v59_v10  ;;  %v577_v19 = vld [vmem:[#allocation7] ss:$0 sm:$0xff]  ;;  %vm291_vm0 = vcmask 1041409   ;;  %s507_s2 = smov [#allocation8]  }
  0x3c   :  { %v91_v17 = vmul.f32 %v573_v14, %v68_v6  ;;  %v92_v18 = vmul.f32 %v573_v14, %v69_v7  ;;  %v93_v20 = vmul.f32 %v573_v14, %v70_v8  ;;  %v94_v21 = vmul.f32 %v573_v14, %v71_v11  ;;  %v60_v56 = vld [vmem:[#allocation2 + $0x8] sm:$0x1]  ;;  %v61_v61 = vld [vmem:[#allocation2 + $0x9] sm:$0x1]  ;;  %v62_v2 = vld [vmem:[#allocation2 + $0xa] sm:$0x1] }
  0x3d   :  { %v95_v22 = vmul.f32 %v573_v14, %v72_v12  ;;  %v96_v23 = vmul.f32 %v573_v14, %v73_v13  ;;  %v97_v24 = vmul.f32 %v573_v14, %v74_v15  ;;  %v98_v25 = vmul.f32 %v573_v14, %v75_v16  ;;  %v63_v3 = vld [vmem:[#allocation2 + $0xb] sm:$0x1]  ;;  %v64_v4 = vld [vmem:[#allocation2 + $0xc] sm:$0x1]  ;;  %v65_v8 = vld [vmem:[#allocation2 + $0xd] sm:$0x1] }
  0x3e   :  { %v114_v26 = vadd.f32 %v577_v19, %v91_v17  ;;  %v115_v27 = vadd.f32 %v577_v19, %v92_v18  ;;  %v116_v28 = vadd.f32 %v577_v19, %v93_v20  ;;  %v117_v29 = vadd.f32 %v577_v19, %v94_v21  ;;  %v66_v9 = vld [vmem:[#allocation2 + $0xe] sm:$0x1]  ;;  %v67_v16 = vld [vmem:[#allocation2 + $0xf] sm:$0x1]  ;;  %s337_s23 = sshll.u32 %s507_s2, 4  ;;  %s338_s23 = int_to_ptr.vmem [resolvable:$true] %s337_s23 }
  0x3f   :  { %v118_v30 = vadd.f32 %v577_v19, %v95_v22  ;;  %v119_v31 = vadd.f32 %v577_v19, %v96_v23  ;;  %v120_v32 = vadd.f32 %v577_v19, %v97_v24  ;;  %v121_v33 = vadd.f32 %v577_v19, %v98_v25  ;;  %s474_s24 = scalar_lea.vmem %s338_s23, 128  ;;  %p479_p11 = scmp.lt.s32.totalorder %s338_s23, %s338_s23 }
  0x40   :  { %v352_v34 = vrot.slane %v114_v26, 9  ;;  %v353_v35 = vrot.slane %v115_v27, 9  ;;  %vm294_vm1 = vcmask 1042434   ;;  %v354_v36 = vrot.slane %v116_v28, 9  ;;  %p475_p10 = scmp.ne.s32.totalorder %s338_s23, %s474_s24  ;;  %p480_p12 = scmp.lt.s32.totalorder %s474_s24, %s474_s24 }
  0x41   :  { %v355_v37 = vrot.slane %v117_v29, 9  ;;  %v356_v38 = vrot.slane %v118_v30, 9  ;;  %v357_v39 = vrot.slane %v119_v31, 9  ;;  %vm297_vm2 = vcmask 1043459  }
  0x42   :  { %v358_v40 = vrot.slane %v120_v32, 9  ;;  %v359_v41 = vrot.slane %v121_v33, 9  ;;  %v194_v42 = vmax.f32 %v114_v26, %v352_v34  ;;  %v195_v43 = vmax.f32 %v115_v27, %v353_v35  ;;  %p481_p13 = por %p480_p12, %p479_p11 }
  0x43   :  { %vm300_vm3 = vcmask 1044484   ;;  %v196_v44 = vmax.f32 %v116_v28, %v354_v36  ;;  %v197_v45 = vmax.f32 %v117_v29, %v355_v37  ;;  %v198_v46 = vmax.f32 %v118_v30, %v356_v38 }
  0x44   :  { %v199_v47 = vmax.f32 %v119_v31, %v357_v39  ;;  %vm303_vm4 = vcmask 1045509   ;;  %v200_v48 = vmax.f32 %v120_v32, %v358_v40  ;;  %v201_v49 = vmax.f32 %v121_v33, %v359_v41  ;;  %p482_p0 = pnand %p481_p13, %p475_p10 }
  0x45   :  { %v384_v50 = vpack.c.bf16 %v194_v42, %v194_v42  ;;  %v385_v51 = vpack.c.bf16 %v195_v43, %v195_v43  ;;  %vm306_vm5 = vcmask 1046534   ;;  %v386_v52 = vpack.c.bf16 %v196_v44, %v196_v44 }
  0x46   :  { %v387_v53 = vpack.c.bf16 %v197_v45, %v197_v45  ;;  %v388_v54 = vpack.c.bf16 %v198_v46, %v198_v46  ;;  %v389_v55 = vpack.c.bf16 %v199_v47, %v199_v47  ;;  %vm309_vm6 = vcmask 1047559  }
  0x47   :  { %v390_v57 = vpack.c.bf16 %v200_v48, %v200_v48  ;;  %v391_v58 = vpack.c.bf16 %v201_v49, %v201_v49  ;;  %v274_v59 = vunpack.c.l.b16 %v384_v50  ;;  %v275_v60 = vunpack.c.l.b16 %v385_v51 }
  0x48   :  { %v276_v62 = vunpack.c.l.b16 %v386_v52  ;;  %v277_v63 = vunpack.c.l.b16 %v387_v53  ;;  %v278_v0 = vunpack.c.l.b16 %v388_v54  ;;  %v279_v1 = vunpack.c.l.b16 %v389_v55 }
  0x49   :  { %v280_v5 = vunpack.c.l.b16 %v390_v57  ;;  %v281_v6 = vunpack.c.l.b16 %v391_v58  ;;  %v290_v7 = vrot.slane %v275_v60, 7  ;;  %vm329_vm7 = vcmask 60416  }
  0x4a   :  { %v76_v10 = vunpack.c.l.bf16 %v60_v56  ;;  %v293_v11 = vrot.slane %v276_v62, 6  ;;  %v296_v12 = vrot.slane %v277_v63, 5  ;;  %v299_v13 = vrot.slane %v278_v0, 4 }
  0x4b   :  { %v302_v15 = vrot.slane %v279_v1, 3  ;;  %v292_v17 = vsel %vm291_vm0, %v290_v7, %v274_v59  ;;  %v305_v18 = vrot.slane %v280_v5, 2  ;;  %v308_v20 = vrot.slane %v281_v6, 1 }
  0x4c   :  { %v77_v21 = vunpack.c.l.bf16 %v61_v61  ;;  %v295_v22 = vsel %vm294_vm1, %v293_v11, %v292_v17  ;;  %v78_v23 = vunpack.c.l.bf16 %v62_v2  ;;  %v79_v24 = vunpack.c.l.bf16 %v63_v3 }
  0x4d   :  { %v80_v25 = vunpack.c.l.bf16 %v64_v4  ;;  %v298_v26 = vsel %vm297_vm2, %v296_v12, %v295_v22  ;;  %v81_v27 = vunpack.c.l.bf16 %v65_v8  ;;  %v82_v28 = vunpack.c.l.bf16 %v66_v9 }
  0x4e   :  { %v83_v29 = vunpack.c.l.bf16 %v67_v16  ;;  %v301_v30 = vsel %vm300_vm3, %v299_v13, %v298_v26  ;;  %v99_v31 = vmul.f32 %v573_v14, %v76_v10  ;;  %v100_v32 = vmul.f32 %v573_v14, %v77_v21 }
  0x4f   :  { %v101_v33 = vmul.f32 %v573_v14, %v78_v23  ;;  %v304_v34 = vsel %vm303_vm4, %v302_v15, %v301_v30  ;;  %v102_v35 = vmul.f32 %v573_v14, %v79_v24  ;;  %v103_v36 = vmul.f32 %v573_v14, %v80_v25 }
  0x50   :  { %v104_v37 = vmul.f32 %v573_v14, %v81_v27  ;;  %v307_v38 = vsel %vm306_vm5, %v305_v18, %v304_v34  ;;  %v105_v39 = vmul.f32 %v573_v14, %v82_v28  ;;  %v106_v40 = vmul.f32 %v573_v14, %v83_v29 }
  0x51   :  { %v122_v41 = vadd.f32 %v577_v19, %v99_v31  ;;  %v310_v42 = vsel %vm309_vm6, %v308_v20, %v307_v38  ;;  %v123_v43 = vadd.f32 %v577_v19, %v100_v32  ;;  %v124_v44 = vadd.f32 %v577_v19, %v101_v33 }
  0x52   :  { %v125_v45 = vadd.f32 %v577_v19, %v102_v35  ;;  %v325_v46 = vpack.c.b16 %v310_v42, %v310_v42  ;;  %v126_v47 = vadd.f32 %v577_v19, %v103_v36  ;;  %v127_v48 = vadd.f32 %v577_v19, %v104_v37 }
  0x53   :  { %v128_v49 = vadd.f32 %v577_v19, %v105_v39  ;;  %v129_v50 = vadd.f32 %v577_v19, %v106_v40  ;;  %v360_v14 = vrot.slane %v122_v41, 9  ;;  %v361_v51 = vrot.slane %v123_v43, 9 }
  0x54   :  { %v362_v52 = vrot.slane %v124_v44, 9  ;;  %330 = vst.msk [vmem:[#allocation8] sm:$0xf] %vm329_vm7, %v325_v46  ;;  %v363_v53 = vrot.slane %v125_v45, 9  ;;  %v364_v54 = vrot.slane %v126_v47, 9  ;;  %v365_v55 = vrot.slane %v127_v48, 9 }
  0x55   :  { %v366_v56 = vrot.slane %v128_v49, 9  ;;  %v367_v57 = vrot.slane %v129_v50, 9  ;;  %v202_v58 = vmax.f32 %v122_v41, %v360_v14  ;;  %v203_v59 = vmax.f32 %v123_v43, %v361_v51 }
  0x56   :  { %v204_v60 = vmax.f32 %v124_v44, %v362_v52  ;;  %v205_v61 = vmax.f32 %v125_v45, %v363_v53  ;;  %v206_v62 = vmax.f32 %v126_v47, %v364_v54  ;;  %v207_v63 = vmax.f32 %v127_v48, %v365_v55 }
  0x57   :  { %v208_v0 = vmax.f32 %v128_v49, %v366_v56  ;;  %v209_v1 = vmax.f32 %v129_v50, %v367_v57  ;;  %v392_v2 = vpack.c.bf16 %v202_v58, %v202_v58  ;;  %v393_v19 = vpack.c.bf16 %v203_v59, %v203_v59 }
  0x58   :  { %v394_v3 = vpack.c.bf16 %v204_v60, %v204_v60  ;;  %v395_v4 = vpack.c.bf16 %v205_v61, %v205_v61  ;;  %v396_v5 = vpack.c.bf16 %v206_v62, %v206_v62  ;;  %v397_v6 = vpack.c.bf16 %v207_v63, %v207_v63 }
  0x59   :  { %v398_v7 = vpack.c.bf16 %v208_v0, %v208_v0  ;;  %v399_v8 = vpack.c.bf16 %v209_v1, %v209_v1  ;;  %v282_v9 = vunpack.c.l.b16 %v392_v2  ;;  %v283_v10 = vunpack.c.l.b16 %v393_v19 }
  0x5a   :  { %v284_v11 = vunpack.c.l.b16 %v394_v3  ;;  %v285_v12 = vunpack.c.l.b16 %v395_v4  ;;  %v286_v13 = vunpack.c.l.b16 %v396_v5  ;;  %v287_v15 = vunpack.c.l.b16 %v397_v6 }
  0x5b   :  { %v288_v16 = vunpack.c.l.b16 %v398_v7  ;;  %v289_v17 = vunpack.c.l.b16 %v399_v8  ;;  %v311_v18 = vrot.slane %v283_v10, 7 }
  0x5c   :  { %v313_v20 = vrot.slane %v284_v11, 6  ;;  %v315_v21 = vrot.slane %v285_v12, 5  ;;  %v317_v22 = vrot.slane %v286_v13, 4  ;;  %v319_v24 = vrot.slane %v287_v15, 3 }
  0x5d   :  { %v312_v23 = vsel %vm291_vm0, %v311_v18, %v282_v9  ;;  %v321_v26 = vrot.slane %v288_v16, 2  ;;  %v323_v28 = vrot.slane %v289_v17, 1 }
  0x5e   :  { %v314_v25 = vsel %vm294_vm1, %v313_v20, %v312_v23 }
  0x5f   :  { %v316_v27 = vsel %vm297_vm2, %v315_v21, %v314_v25 }
  0x60   :  { %v318_v29 = vsel %vm300_vm3, %v317_v22, %v316_v27 }
  0x61   :  { %v320_v30 = vsel %vm303_vm4, %v319_v24, %v318_v29 }
  0x62   :  { %v322_v31 = vsel %vm306_vm5, %v321_v26, %v320_v30 }
  0x63   :  { %v324_v32 = vsel %vm309_vm6, %v323_v28, %v322_v31 }
  0x64   :  { %v326_v33 = vpack.c.b16 %v324_v32, %v324_v32 }
  0x66   :  { %331 = vst.msk [vmem:[#allocation8 + $0x4] sm:$0xf] %vm329_vm7, %v326_v33 }
  0x67   :  { %485 = shalt.err (!%p482_p0)
}
  0x68   :  { %s486_s27 = scalar_lea.hbm %s640_s3, 128 }
  0x69   :  { %p487_p1 = scmp.ne.s32.totalorder %s640_s3, %s486_s27  ;;  %p490_p2 = scmp.lt.u32.totalorder %s486_s27, %s640_s3 }
  0x6b   :  { %p492_p3 = pnand %p490_p2, %p487_p1 }
  0x6d   :  { %495 = shalt.err (!%p492_p3)
}
  0x6e   :  { %s508_s5 = smov 64   ;;  %s509_s6 = smov 4  }
  0x6f   :  { %343 = dma.vmem_to_hbm [thread:$0]  %s338_s23, 128, %s640_s3, [#allocation4], %s508_s5, %s508_s5, %s509_s6  }
  0x70   :  { %500 = dma.done.wait [#allocation4], 128  }
  0x71   :  { %501 = vsyncadd [#allocation4], 4294967168 }
  0x72   :  { %347 = vsyncpa [#allocation3], 1 }
  0x73   :  { %348 = vsyncpa [#allocation6], 1 }
  0x74   :  { %349 = vsyncpa [#allocation4], 1 }

// kernel: audio_ae1d_forward.15
= control target key start
LH: loop header
LB: loop body
LE: loop exit
PB: predicated region body
PF: predicated region fallthrough
CT: control target
= control target key end

     0   :  { %11 = vsyncpa [#allocation3], 0  ;;  %s1673_s0 = inlined_call_operand.hbm [shape: bf16[2,22,4], index: 0, kind: input, shape index: {}]   ;;  %s1674_s1 = inlined_call_operand.hbm [shape: bf16[7,4,8], index: 1, kind: input, shape index: {}]   ;;  %s1675_s2 = inlined_call_operand.hbm [shape: f32[1,8], index: 2, kind: input, shape index: {}]   ;;  %s1676_s3 = inlined_call_operand.hbm [shape: bf16[2,16,8], index: 3, kind: output, shape index: {0}]   ;;  %s1677_s4 = inlined_call_operand.hbm [shape: f32[1,8], index: 4, kind: output, shape index: {1}]   ;;  %s1678_s5 = inlined_call_operand.hbm [shape: f32[1,8], index: 5, kind: output, shape index: {2}]  }
   0x1   :  { %13 = vsyncpa [#allocation3 + $0x1], 0 }
   0x2   :  { %14 = vsyncpa [#allocation6], 0 }
   0x3   :  { %15 = vsyncpa [#allocation4], 0 }
   0x4   :  { %17 = vsyncpa [#allocation4 + $0x1], 0 }
   0x5   :  { %18 = vsyncpa [#allocation10], 0  ;;  %s1336_s18 = smov 0   ;;  %s1338_s19 = smov 0  }
   0x6   :  { %s1340_s20 = smov 0   ;;  %s1342_s21 = smov 0  }
   0x7 LB: > { %s1357_s22 = sadd.s32 4294967295, %s1289_s21   ;;  %s891_s23 = sadd.s32 4294967294, %s1289_s21   ;;  %s1289_s21 = sphi %s1342_s21, %s1707_s21   ;;  %s1285_s20 = sphi %s1340_s20, %s1706_s20   ;;  %s1281_s19 = sphi %s1338_s19, %s1705_s19   ;;  %s1277_s18 = sphi %s1336_s18, %s1704_s18  }
   0x8   : > { %p44_p0 = scmp.ne.s32.totalorder %s1281_s19, %s1277_s18  ;;  %p1679_p1 = scmp.eq.s32.totalorder %s1357_s22, 0 }
   0x9   : > { %p116_p3 = scmp.eq.s32.totalorder %s891_s23, 1  ;;  %p892_p5 = scmp.ge.s32.totalorder %s1289_s21, 1 }
   0xa   : > { %p1366_p4 = por %p1679_p1, %p44_p0  ;;  %p165_p7 = scmp.lt.s32.totalorder %s1289_s21, 3 }
   0xb   : > { %p1371_p6 = por %p116_p3, %p44_p0  ;;  %s1291_s27 = smov [#allocation5]  }
   0xc   : > { %s1682_s24 = scalar_select %p1366_p4, 1, 0 }
   0xd   : > { %s1683_s25 = scalar_select %p1371_p6, 1, 0 }
   0xe   : > { %p1377_p9 = pnand %p892_p5, %p165_p7  ;;  %s177_s28 = sshll.u32 %s1291_s27, 4  ;;  %s1381_s28 = int_to_ptr.vmem [resolvable:$true] %s177_s28 }
   0xf   : > { %s1292_s30 = smov [#allocation7]   ;;  %s1077_s9 = scalar_lea.hbm %s1674_s1, 224 }
  0x10   : > { %p1005_p10 = pneg %p1377_p9  ;;  %s191_s6 = sshll.u32 %s1292_s30, 4  ;;  %s1392_s6 = int_to_ptr.vmem [resolvable:$true] %s191_s6 }
  0x11   : > { %p1078_p13 = scmp.ne.s32.totalorder %s1674_s1, %s1077_s9  ;;  %p1084_p7 = scmp.lt.u32.totalorder %s1077_s9, %s1674_s1 }
  0x12   : > { %p1388_p12 = pnand %p1005_p10, %p1679_p1 }
  0x14   : > { %p1079_p0 = pneg %p1388_p12 }
  0x16   : > { %p1080_p3 = pnand %p1079_p0, %p1078_p13 }
  0x18   : > { %p1081_p5 = pneg %p1080_p3 }
  0x1a   : > { %p1086_p10 = pnand %p1084_p7, %p1081_p5 }
  0x1c   : > { %1089 = shalt.err (!%p1086_p10)
}
  0x1d   : > { %s1090_s14 = scalar_lea.vmem %s1381_s28, 224  ;;  %p1098_p2 = scmp.lt.s32.totalorder %s1381_s28, %s1381_s28 }
  0x1e   : > { %p1091_p11 = scmp.ne.s32.totalorder %s1381_s28, %s1090_s14  ;;  %p1099_p13 = scmp.lt.s32.totalorder %s1090_s14, %s1090_s14 }
  0x20   : > { %p1093_p8 = pnand %p1091_p11, %p1079_p0  ;;  %p1100_p3 = por %p1099_p13, %p1098_p2 }
  0x22   : > { %p1094_p1 = pneg %p1093_p8 }
  0x24   : > { %p1101_p6 = pnand %p1100_p3, %p1094_p1 }
  0x26   : > { %1104 = shalt.err (!%p1101_p6)
}
  0x27   : > { %s1293_s15 = smov 32   ;;  %s1294_s16 = smov 2  }
  0x28   : > { %1008 = dma.hbm_to_vmem [thread:$0]  (!%p1388_p12), %s1674_s1, 224, %s1381_s28, [#allocation6], %s1293_s15, %s1293_s15, %s1294_s16  }
  0x29   : > { %s1105_s7 = scalar_lea.hbm %s1675_s2, 16 }
  0x2a   : > { %p1106_p2 = scmp.ne.s32.totalorder %s1675_s2, %s1105_s7  ;;  %p1112_p8 = scmp.lt.u32.totalorder %s1105_s7, %s1675_s2 }
  0x2c   : > { %p1108_p1 = pnand %p1106_p2, %p1079_p0 }
  0x2e   : > { %p1109_p6 = pneg %p1108_p1 }
  0x30   : > { %p1114_p11 = pnand %p1112_p8, %p1109_p6 }
  0x32   : > { %1117 = shalt.err (!%p1114_p11)
}
  0x33   : > { %s1118_s28 = scalar_lea.vmem %s1392_s6, 16  ;;  %s1125_s12 = scalar_lea.vmem %s1392_s6, 32 }
  0x34   : > { %p1119_p5 = scmp.ne.s32.totalorder %s1392_s6, %s1118_s28  ;;  %p1126_p13 = scmp.lt.s32.totalorder %s1392_s6, %s1392_s6 }
  0x35   : > { %p1127_p3 = scmp.lt.s32.totalorder %s1125_s12, %s1118_s28 }
  0x36   : > { %p1121_p7 = pnand %p1119_p5, %p1079_p0 }
  0x37   : > { %p1128_p2 = por %p1127_p3, %p1126_p13 }
  0x38   : > { %p1122_p10 = pneg %p1121_p7 }
  0x3a   : > { %p1129_p1 = pnand %p1128_p2, %p1122_p10 }
  0x3c   : > { %1132 = shalt.err (!%p1129_p1)
}
  0x3d   : > { %1011 = dma.hbm_to_vmem [thread:$0]  (!%p1388_p12), %s1675_s2, 16, %s1392_s6, [#allocation6]  }
  0x3e   : > { %s1448_s15 = sadd.s32 1, %s1289_s21   ;;  %s31_s29 = sadd.s32 1, %s1285_s20 }
  0x3f   : > { %s28_s16 = ssub.s32 %s1289_s21, %s1448_s15  ;;  %p38_p0 = scmp.ne.s32.totalorder %s1285_s20, %s1281_s19 }
  0x40   : > { %p29_p6 = scmp.eq.s32.totalorder %s28_s16, 0  ;;  %p39_p8 = scmp.eq.s32.totalorder %s1289_s21, 0 }
  0x41   : > { %p1686_p11 = scmp.eq.s32.totalorder %s1357_s22, 1  ;;  %p1022_p7 = scmp.lt.s32.totalorder %s1289_s21, 2 }
  0x42   : > { %s1464_s23 = scalar_select %p29_p6, %s1285_s20, %s31_s29  }
  0x43   : > { %p1458_p5 = por %p1686_p11, %p38_p0  ;;  %p40_p10 = por %p39_p8, %p38_p0 }
  0x44   : > { %s202_s27 = sand.u32 1, %s1285_s20   ;;  %s983_s6 = smul.u32 192, %s1289_s21 }
  0x45   : > { %s1687_s17 = scalar_select %p1458_p5, 1, 0 }
  0x46   : > { %s982_s30 = smul.u32 12, %s202_s27  ;;  %p1468_p12 = pnand %p1022_p7, %p40_p10 }
  0x47   : > { %s1475_s10 = scalar_lea.hbm %s1673_s0, %s983_s6  ;;  %s1479_s12 = scalar_lea.sflag [#allocation3], %s202_s27 }
  0x48   : > { %s206_s11 = scalar_lea.vmem [#allocation2], %s982_s30  ;;  %s1133_s13 = scalar_lea.hbm %s1475_s10, 192 }
  0x49   : > { %s213_s28 = sshll.u32 %s206_s11, 4  ;;  %p1134_p13 = scmp.ne.s32.totalorder %s1475_s10, %s1133_s13  ;;  %s1477_s28 = int_to_ptr.vmem [resolvable:$true] %s213_s28 }
  0x4a   : > { %p1135_p3 = pneg %p1468_p12  ;;  %s1138_s16 = scalar_lea.hbm %s1673_s0, 384 }
  0x4b   : > { %p1139_p0 = scmp.lt.u32.totalorder %s1475_s10, %s1673_s0  ;;  %p1140_p6 = scmp.lt.u32.totalorder %s1138_s16, %s1133_s13 }
  0x4c   : > { %p1136_p2 = pnand %p1135_p3, %p1134_p13  ;;  %p1142_p11 = scmp.lt.u32.totalorder %s1133_s13, %s1475_s10 }
  0x4d   : > { %p1141_p8 = por %p1140_p6, %p1139_p0 }
  0x4e   : > { %p1137_p1 = pneg %p1136_p2 }
  0x4f   : > { %p1143_p7 = por %p1142_p11, %p1141_p8 }
  0x51   : > { %p1144_p10 = pnand %p1143_p7, %p1137_p1 }
  0x53   : > { %1147 = shalt.err (!%p1144_p10)
}
  0x54   : > { %s1148_s27 = scalar_lea.vmem %s1477_s28, 192  ;;  %s1295_s30 = smov [#allocation2]  }
  0x55   : > { %p1149_p13 = scmp.ne.s32.totalorder %s1477_s28, %s1148_s27  ;;  %s1153_s9 = sshll.u32 %s1295_s30, 4  ;;  %s1154_s9 = int_to_ptr.vmem [resolvable:$false] %s1153_s9 }
  0x56   : > { %s1155_s11 = scalar_lea.vmem %s1154_s9, 384  ;;  %p1156_p4 = scmp.lt.s32.totalorder %s1477_s28, %s1154_s9 }
  0x57   : > { %p1151_p2 = pnand %p1149_p13, %p1135_p3  ;;  %p1157_p0 = scmp.lt.s32.totalorder %s1155_s11, %s1148_s27 }
  0x59   : > { %p1152_p5 = pneg %p1151_p2  ;;  %p1158_p6 = por %p1157_p0, %p1156_p4 }
  0x5b   : > { %p1159_p8 = pnand %p1158_p6, %p1152_p5 }
  0x5d   : > { %1162 = shalt.err (!%p1159_p8)
}
  0x5e   : > { %s1296_s13 = smov 64   ;;  %s1297_s14 = smov 4  }
  0x5f   : > { %1015 = dma.hbm_to_vmem [thread:$0]  (!%p1468_p12), %s1475_s10, 192, %s1477_s28, %s1479_s12, %s1296_s13, %s1296_s13, %s1297_s14  }
  0x60   : > { %225 = sbr.rel (%p1377_p9) target bundleno = 440 (0x1b8), region = 32  ;;  %s1510_s29 = sand.u32 (!%p1377_p9), 1, %s1281_s19  }
  0x61   : > { %s984_s16 = smul.u32 (!%p1377_p9), 12, %s1510_s29  ;;  %s228_s6 = scalar_lea.sflag (!%p1377_p9), [#allocation3], %s1510_s29 }
  0x62   : > { %p1689_p4 = scmp.ne.s32.totalorder (!%p1377_p9), %s1682_s24, 0 }
  0x63   : > { %s231_s8 = scalar_lea.vmem (!%p1377_p9), [#allocation2], %s984_s16 }
  0x67   : > { %1260 = dma.done.wait (%p1689_p4), %s228_s6, 192  }
  0x68   : > { %1262 = vsyncadd (%p1689_p4), %s228_s6, 4294967104  ;;  %p1690_p5 = scmp.eq.s32.totalorder %s1357_s22, 0 }
  0x6a   : > { %1264 = dma.done.wait (%p1690_p5), [#allocation6], 240   ;;  %p1691_p12 = pmov %p1690_p5 }
  0x6b   : > { %v1298_v0 = vmov 0.0   ;;  %vm1299_vm0 = vmmov 0   ;;  %vm298_vm1 = vcmask 1041408   ;;  %v272_v1 = vld [vmem:[#allocation5 + $0x2] sm:$0x3]  ;;  %v1530_v5 = vld [vmem:[%s231_s8] sm:$0xff]  }
  0x6c   : > { %1266 = vsyncadd (%p1691_p12), [#allocation6], 4294967056  ;;  %940 = vmatprep.subr.bf16.mxu0 %v1298_v0  ;;  %946 = vmatprep.subr.bf16.mxu1 %v1298_v0  ;;  %v270_v2 = vld [vmem:[#allocation5] sm:$0x3]  ;;  %v300_v3 = vsel %vm298_vm1, %v272_v1, 0  ;;  %vm294_vm2 = vcmask 31744  }
  0x6d   : > { %942 = vmatprep.mubr.msk.bf16.mxu0 %vm1299_vm0, %v1298_v0  ;;  %948 = vmatprep.mubr.msk.bf16.mxu1 %vm1299_vm0, %v1298_v0  ;;  %v346_v4 = vsel %vm298_vm1, %v270_v2, 0  ;;  %v1532_v6 = vld [vmem:[%s231_s8 + $0x8] ss:$0 sps:$4 sm:$0x77]   ;;  %v445_v7 = vld [vmem:[#allocation5 + $0x6] sm:$0x3] }
  0x6e   : > { %941 = vmatpush3.bf16.msra.mxu0 %v300_v3  ;;  %947 = vmatpush3.bf16.msra.mxu1 %v346_v4  ;;  %v283_v8 = vshrl.u32 %v1530_v5, 16  ;;  %v285_v9 = vshll.u32 %v1530_v5, 16  ;;  %v290_v10 = vshll.u32 %v1532_v6, 16  ;;  %v460_v11 = vsel %vm298_vm1, %v445_v7, 0  ;;  %v390_v15 = vld [vmem:[#allocation5 + $0x4] sm:$0x3] }
  0x6f   : > { %952 = vmatprep.subr.bf16.mxu0 %v1298_v0  ;;  %958 = vmatprep.subr.bf16.mxu1 %v1298_v0  ;;  %v450_v12 = vshrl.u32 %v1532_v6, 16  ;;  %vm281_vm3 = vsmask.f32 7424  ;;  %vm446_vm4 = vsmask.f32 6400  ;;  %v399_v23 = vsel %vm298_vm1, %v390_v15, 0 }
  0x70   : > { %v287_v13 = vrot.slane %v285_v9, 1  ;;  %v292_v14 = vrot.slane %v290_v10, 1  ;;  %v447_v16 = vrot.slane %v283_v8, 1  ;;  %v448_v17 = vrot.slane %v285_v9, 2  ;;  %v561_v22 = vld [vmem:[#allocation5 + $0xa] sm:$0x3] }
  0x71   : > { %949 = vmatmul.mubr.msk.bf16.vlgmr.msra.gmra.mrb[0].mxu1 %vm294_vm2, %v1530_v5  ;;  %v452_v18 = vrot.slane %v450_v12, 1  ;;  %v453_v19 = vrot.slane %v290_v10, 2  ;;  %v563_v25 = vrot.slane %v283_v8, 2  ;;  %v564_v27 = vrot.slane %v285_v9, 3  ;;  %v506_v34 = vld [vmem:[#allocation5 + $0x8] sm:$0x3] }
  0x72   : > { %959 = vmatpush3.bf16.msra.mxu1 %v460_v11  ;;  %960 = vmatprep.mubr.msk.bf16.mxu1 %vm1299_vm0, %v1298_v0  ;;  %v288_v20 = vor.u32 %v287_v13, %v283_v8  ;;  %v449_v21 = vor.u32 %v448_v17, %v447_v16  ;;  %v566_v28 = vrot.slane %v450_v12, 2  ;;  %v567_v29 = vrot.slane %v290_v10, 3  ;;  %v620_v42 = vld [vmem:[#allocation5 + $0xc] sm:$0x3]  ;;  %s900_s24 = sshll.u32 %s1510_s29, 3  ;;  %p1692_p9 = scmp.ne.s32.totalorder %s1357_s22, 0 }
  0x73   : > { %970 = vmatprep.subr.bf16.mxu1 %v1298_v0  ;;  %v454_v24 = vor.u32 %v453_v19, %v452_v18  ;;  %v574_v31 = vsel %vm298_vm1, %v561_v22, 0  ;;  %v392_v32 = vrot.slane %v1530_v5, 1  ;;  %v393_v33 = vrot.slane %v1532_v6, 1  ;;  %v910_v19 = vld [vmem:[#allocation7] ss:$0 sm:$0xff]  ;;  %s261_s26 = scalar_lea.vmem [#allocation8], %s900_s24 }
  0x74   : > { %v293_v26 = vsel %vm281_vm3, %v288_v20, %v292_v14  ;;  %vm391_vm5 = vcmask 1046528   ;;  %v565_v35 = vor.u32 %v564_v27, %v563_v25  ;;  %v568_v36 = vor.u32 %v567_v29, %v566_v28 }
  0x75   : > { %943 = vmatmul.mubr.msk.bf16.vlgmr.msra.gmra.mrb[0].mxu0 %vm294_vm2, %v293_v26  ;;  %v455_v30 = vsel %vm446_vm4, %v449_v21, %v454_v24  ;;  %vm562_vm6 = vsmask.f32 5376  ;;  %v394_v37 = vsel %vm391_vm5, %v392_v32, %v393_v33  ;;  %v515_v38 = vsel %vm298_vm1, %v506_v34, 0 }
  0x76   : > { %953 = vmatpush3.bf16.msra.mxu0 %v399_v23  ;;  %954 = vmatprep.mubr.msk.bf16.mxu0 %vm1299_vm0, %v1298_v0  ;;  %v569_v39 = vsel %vm562_vm6, %v565_v35, %v568_v36  ;;  %v508_v40 = vrot.slane %v1530_v5, 2  ;;  %v509_v41 = vrot.slane %v1532_v6, 2  ;;  %vm507_vm7 = vcmask 1045504  }
  0x77   : > { %964 = vmatprep.subr.bf16.mxu0 %v1298_v0  ;;  %v629_v44 = vsel %vm298_vm1, %v620_v42, 0  ;;  %v622_v45 = vrot.slane %v1530_v5, 3  ;;  %v623_v46 = vrot.slane %v1532_v6, 3  ;;  %vm621_vm8 = vcmask 1044480  }
  0x78   : > { %v510_v43 = vsel %vm507_vm7, %v508_v40, %v509_v41  ;;  %vm693_vm9 = vcmask 60416   ;;  %vm711_vm10 = vcmask (!%p1692_p9), 57344  }
  0x79   : > { %961 = vmatmul.mubr.msk.bf16.vlgmr.msra.gmra.mrb[4].mxu1 %vm294_vm2, %v455_v30  ;;  %v624_v47 = vsel %vm621_vm8, %v622_v45, %v623_v46 }
  0x7a   : > { %971 = vmatpush3.bf16.msra.mxu1 %v574_v31  ;;  %972 = vmatprep.mubr.msk.bf16.mxu1 %vm1299_vm0, %v1298_v0  ;;  %v1300_v31 = vmov (!%p1692_p9), 0.0  }
  0x7b   : > { %712 = vst.msk [vmem:[#allocation9] sm:$0x1] (!%p1692_p9), %vm711_vm10, %v1300_v31  ;;  %713 = vst.msk [vmem:[#allocation11] sm:$0x1] (!%p1692_p9), %vm711_vm10, %v1300_v31 }
  0x7d   : > { %955 = vmatmul.mubr.msk.bf16.vlgmr.msra.gmra.mrb[4].mxu0 %vm294_vm2, %v394_v37 }
  0x7e   : > { %965 = vmatpush3.bf16.msra.mxu0 %v515_v38  ;;  %966 = vmatprep.mubr.msk.bf16.mxu0 %vm1299_vm0, %v1298_v0 }
  0x7f   : > { %976 = vmatprep.subr.bf16.mxu0 %v1298_v0 }
  0x81   : > { %973 = vmatmul.mubr.msk.bf16.vlgmr.msra.gmra.mrb[8].mxu1 %vm294_vm2, %v569_v39 }
  0x85   : > { %967 = vmatmul.mubr.msk.bf16.vlgmr.msra.gmra.mrb[8].mxu0 %vm294_vm2, %v510_v43 }
  0x86   : > { %977 = vmatpush3.bf16.msra.mxu0 %v629_v44  ;;  %978 = vmatprep.mubr.msk.bf16.mxu0 %vm1299_vm0, %v1298_v0 }
  0x8d   : > { %979 = vmatmul.mubr.msk.bf16.vlgmr.msra.gmra.mrb[12].mxu0 %vm294_vm2, %v624_v47 }
 0x144   : > { %v382_v48 = vpop.f32.mrb[0].mxu1 }
 0x145   : > { %v950_v49 = vpop.f32.mrb[1].mxu1 }
 0x146   : > { %v385_v50 = vpop.f32.mrb[2].mxu1 }
 0x147   : > { %v951_v51 = vpop.f32.mrb[3].mxu1 }
 0x148   : > { %v336_v52 = vpop.f32.mrb[0].mxu0 }
 0x149   : > { %v383_v53 = vadd.f32 %v382_v48, %v336_v52  ;;  %v944_v54 = vpop.f32.mrb[1].mxu0 }
 0x14a   : > { %v339_v55 = vpop.f32.mrb[2].mxu0 }
 0x14b   : > { %v386_v57 = vadd.f32 %v385_v50, %v339_v55  ;;  %v945_v58 = vpop.f32.mrb[3].mxu0 }
 0x14c   : > { %v496_v56 = vpop.f32.mrb[4].mxu1 }
 0x14d   : > { %v962_v59 = vpop.f32.mrb[5].mxu1 }
 0x14e   : > { %v499_v60 = vpop.f32.mrb[6].mxu1 }
 0x14f   : > { %v963_v61 = vpop.f32.mrb[7].mxu1 }
 0x150   : > { %v435_v62 = vpop.f32.mrb[4].mxu0 }
 0x151   : > { %v442_v63 = vadd.f32 %v435_v62, %v383_v53  ;;  %v956_v0 = vpop.f32.mrb[5].mxu0 }
 0x152   : > { %v438_v1 = vpop.f32.mrb[6].mxu0 }
 0x153   : > { %v443_v3 = vadd.f32 %v438_v1, %v386_v57  ;;  %v503_v4 = vadd.f32 %v496_v56, %v442_v63  ;;  %v957_v5 = vpop.f32.mrb[7].mxu0 }
 0x154   : > { %v610_v2 = vpop.f32.mrb[8].mxu1 }
 0x155   : > { %v974_v6 = vpop.f32.mrb[9].mxu1  ;;  %v504_v8 = vadd.f32 %v499_v60, %v443_v3 }
 0x156   : > { %v613_v7 = vpop.f32.mrb[10].mxu1 }
 0x157   : > { %v975_v9 = vpop.f32.mrb[11].mxu1 }
 0x158   : > { %v551_v10 = vpop.f32.mrb[8].mxu0 }
 0x159   : > { %v558_v11 = vadd.f32 %v551_v10, %v503_v4  ;;  %v968_v12 = vpop.f32.mrb[9].mxu0 }
 0x15a   : > { %v554_v13 = vpop.f32.mrb[10].mxu0 }
 0x15b   : > { %v559_v14 = vadd.f32 %v554_v13, %v504_v8  ;;  %v617_v15 = vadd.f32 %v610_v2, %v558_v11  ;;  %v969_v16 = vpop.f32.mrb[11].mxu0 }
 0x15d   : > { %v618_v17 = vadd.f32 %v613_v7, %v559_v14 }
 0x160   : > { %v665_v18 = vpop.f32.mrb[12].mxu0 }
 0x161   : > { %v672_v20 = vadd.f32 %v665_v18, %v617_v15  ;;  %v980_v21 = vpop.f32.mrb[13].mxu0 }
 0x162   : > { %v668_v22 = vpop.f32.mrb[14].mxu0 }
 0x163   : > { %v681_v23 = vadd.f32 %v910_v19, %v672_v20  ;;  %v673_v24 = vadd.f32 %v668_v22, %v618_v17  ;;  %v981_v25 = vpop.f32.mrb[15].mxu0 }
 0x165   : > { %v683_v26 = vmax.f32 %v681_v23, 0.0  ;;  %v682_v27 = vadd.f32 %v910_v19, %v673_v24  ;;  %710 = sbr.rel (%p1692_p9) target bundleno = 364 (0x16c), region = 48 }
 0x167   : > { %v923_v28 = vpack.c.bf16 %v683_v26, %v683_v26  ;;  %v684_v29 = vmax.f32 %v682_v27, 0.0 }
 0x169   : > { %694 = vst.msk [vmem:[%s261_s26] sm:$0xf] %vm693_vm9, %v923_v28  ;;  %v924_v30 = vpack.c.bf16 %v684_v29, %v684_v29 }
 0x16b   : > { %695 = vst.msk [vmem:[%s261_s26 + $0x4] sm:$0xf] %vm693_vm9, %v924_v30 }
 0x16c PF: > { %vm715_vm11 = vcmask 64512   ;;  %v729_v32 = vmul.f32 %v683_v26, %v683_v26  ;;  %v730_v33 = vmul.f32 %v684_v29, %v684_v29  ;;  %s925_s7 = sshll.u32 %s1357_s22, 7  ;;  %s756_s27 = sshll.u32 %s261_s26, 4  ;;  %s1581_s27 = int_to_ptr.vmem [resolvable:$true] %s756_s27 }
 0x16d   : > { %v716_v34 = vsel %vm715_vm11, %v683_v26, 0.0  ;;  %v717_v35 = vsel %vm715_vm11, %v684_v29, 0.0  ;;  %s1579_s12 = scalar_lea.hbm %s1676_s3, %s925_s7  ;;  %s743_s30 = scalar_lea.sflag [#allocation4], %s1510_s29 }
 0x16e   : > { %v718_v36 = vadd.f32 %v717_v35, %v716_v34  ;;  %v731_v37 = vsel %vm715_vm11, %v729_v32, 0.0  ;;  %v732_v38 = vsel %vm715_vm11, %v730_v33, 0.0  ;;  %s1163_s9 = scalar_lea.vmem %s1581_s27, 128  ;;  %p1693_p1 = scmp.ne.s32.totalorder %s1687_s17, 0 }
 0x16f   : > { %v733_v39 = vadd.f32 %v732_v38, %v731_v37  ;;  %p1164_p3 = scmp.ne.s32.totalorder %s1581_s27, %s1163_s9  ;;  %s1301_s11 = smov [#allocation8]  }
 0x170   : > { %v719_v40 = vrot.slane %v718_v36, 4  ;;  %s1167_s13 = sshll.u32 %s1301_s11, 4  ;;  %s1168_s13 = int_to_ptr.vmem [resolvable:$false] %s1167_s13 }
 0x171   : > { %v734_v41 = vrot.slane %v733_v39, 4  ;;  %p1165_p11 = pnand %p1164_p3, %p1693_p1  ;;  %s1169_s14 = scalar_lea.vmem %s1168_s13, 256 }
 0x172   : > { %v720_v42 = vadd.f32 %v719_v40, %v718_v36  ;;  %p1170_p10 = scmp.lt.s32.totalorder %s1581_s27, %s1168_s13  ;;  %p1171_p13 = scmp.lt.s32.totalorder %s1169_s14, %s1163_s9 }
 0x173   : > { %v735_v43 = vadd.f32 %v734_v41, %v733_v39  ;;  %p1166_p7 = pneg %p1165_p11 }
 0x174   : > { %p1172_p2 = por %p1171_p13, %p1170_p10 }
 0x176   : > { %p1173_p0 = pnand %p1172_p2, %p1166_p7 }
 0x178   : > { %1176 = shalt.err (!%p1173_p0)
}
 0x179   : > { %s1177_s16 = scalar_lea.hbm %s1579_s12, 128  ;;  %s1181_s24 = scalar_lea.hbm %s1676_s3, 256 }
 0x17a   : > { %p1178_p6 = scmp.ne.s32.totalorder %s1579_s12, %s1177_s16  ;;  %p1182_p5 = scmp.lt.u32.totalorder %s1579_s12, %s1676_s3 }
 0x17b   : > { %p1183_p12 = scmp.lt.u32.totalorder %s1181_s24, %s1177_s16  ;;  %p1185_p3 = scmp.lt.u32.totalorder %s1177_s16, %s1579_s12 }
 0x17c   : > { %p1179_p8 = pnand %p1178_p6, %p1693_p1 }
 0x17d   : > { %p1184_p9 = por %p1183_p12, %p1182_p5 }
 0x17e   : > { %p1180_p4 = pneg %p1179_p8 }
 0x17f   : > { %p1186_p11 = por %p1185_p3, %p1184_p9 }
 0x181   : > { %p1187_p7 = pnand %p1186_p11, %p1180_p4 }
 0x183   : > { %1190 = shalt.err (!%p1187_p7)
}
 0x184   : > { %s1302_s10 = smov 64   ;;  %s1303_s28 = smov 4   ;;  %v721_v44 = vrot.slane %v720_v42, 2  ;;  %v736_v45 = vrot.slane %v735_v43, 2  ;;  %v714_v49 = vld [vmem:[#allocation9] sm:$0x1] }
 0x185   : > { %995 = dma.vmem_to_hbm [thread:$0]  (%p1693_p1), %s1581_s27, 128, %s1579_s12, %s743_s30, %s1302_s10, %s1302_s10, %s1303_s28   ;;  %v728_v52 = vld [vmem:[#allocation11] sm:$0x1]  ;;  %vm726_vm12 = vcmask 57344  }
 0x186   : > { %v722_v46 = vadd.f32 %v721_v44, %v720_v42  ;;  %v737_v47 = vadd.f32 %v736_v45, %v735_v43  ;;  %s1304_s9 = smov [#allocation9]   ;;  %s1305_s13 = smov [#allocation11]  }
 0x187   : > { %s770_s11 = sshll.u32 %s1304_s9, 4  ;;  %s781_s14 = sshll.u32 %s1305_s13, 4  ;;  %s771_s11 = int_to_ptr.vmem [resolvable:$true] %s770_s11  ;;  %s1607_s14 = int_to_ptr.vmem [resolvable:$true] %s781_s14 }
 0x188   : > { %v723_v48 = vrot.slane %v722_v46, 1  ;;  %v738_v50 = vrot.slane %v737_v47, 1  ;;  %s1191_s17 = scalar_lea.vmem %s771_s11, 16  ;;  %p1694_p10 = scmp.eq.s32.totalorder %s1357_s22, 1 }
 0x189   : > { %p1192_p1 = scmp.ne.s32.totalorder %s771_s11, %s1191_s17  ;;  %s1197_s29 = scalar_lea.vmem %s771_s11, 32 }
 0x18a   : > { %v724_v51 = vadd.f32 %v723_v48, %v722_v46  ;;  %v739_v53 = vadd.f32 %v738_v50, %v737_v47  ;;  %p1198_p0 = scmp.lt.s32.totalorder %s771_s11, %s771_s11  ;;  %p1199_p6 = scmp.lt.s32.totalorder %s1197_s29, %s1191_s17 }
 0x18b   : > { %p1193_p13 = pnand %p1192_p1, %p1694_p10 }
 0x18c   : > { %v725_v54 = vadd.f32 %v724_v51, %v714_v49  ;;  %v740_v55 = vadd.f32 %v739_v53, %v728_v52  ;;  %p1200_p8 = por %p1199_p6, %p1198_p0 }
 0x18d   : > { %p1194_p2 = pneg %p1193_p13 }
 0x18e   : > { %727 = vst.msk [vmem:[#allocation9] sm:$0x1] %vm726_vm12, %v725_v54  ;;  %741 = vst.msk [vmem:[#allocation11] sm:$0x1] %vm726_vm12, %v740_v55 }
 0x18f   : > { %p1201_p4 = pnand %p1200_p8, %p1194_p2 }
 0x191   : > { %1204 = shalt.err (!%p1201_p4)
}
 0x192   : > { %s1205_s30 = scalar_lea.hbm %s1677_s4, 16  ;;  %p1695_p12 = pmov %p1694_p10 }
 0x193   : > { %p1206_p5 = scmp.ne.s32.totalorder %s1677_s4, %s1205_s30  ;;  %p1211_p11 = scmp.lt.u32.totalorder %s1205_s30, %s1677_s4 }
 0x195   : > { %p1207_p9 = pnand %p1206_p5, %p1695_p12 }
 0x197   : > { %p1208_p3 = pneg %p1207_p9 }
 0x199   : > { %p1213_p7 = pnand %p1211_p11, %p1208_p3 }
 0x19b   : > { %1216 = shalt.err (!%p1213_p7)
}
 0x19c   : > { %p1696_p1 = pmov %p1694_p10  ;;  %s1217_s10 = scalar_lea.vmem %s1607_s14, 16 }
 0x19d   : > { %p1218_p10 = scmp.ne.s32.totalorder %s1607_s14, %s1217_s10  ;;  %s1223_s28 = scalar_lea.vmem %s1607_s14, 32 }
 0x19e   : > { %997 = dma.vmem_to_hbm [thread:$0]  (%p1696_p1), %s771_s11, 16, %s1677_s4, [#allocation10]  }
 0x19f   : > { %p1697_p13 = pmov %p1696_p1  ;;  %p1224_p6 = scmp.lt.s32.totalorder %s1607_s14, %s1607_s14 }
 0x1a0   : > { %p1225_p8 = scmp.lt.s32.totalorder %s1223_s28, %s1217_s10 }
 0x1a1   : > { %p1219_p2 = pnand %p1218_p10, %p1697_p13 }
 0x1a2   : > { %p1226_p4 = por %p1225_p8, %p1224_p6 }
 0x1a3   : > { %p1220_p0 = pneg %p1219_p2 }
 0x1a5   : > { %p1227_p5 = pnand %p1226_p4, %p1220_p0 }
 0x1a7   : > { %1230 = shalt.err (!%p1227_p5)
}
 0x1a8   : > { %s1231_s17 = scalar_lea.hbm %s1678_s5, 16  ;;  %p1698_p9 = pmov %p1696_p1 }
 0x1a9   : > { %p1232_p12 = scmp.ne.s32.totalorder %s1678_s5, %s1231_s17  ;;  %p1237_p7 = scmp.lt.u32.totalorder %s1231_s17, %s1678_s5 }
 0x1ab   : > { %p1233_p3 = pnand %p1232_p12, %p1698_p9 }
 0x1ad   : > { %p1234_p11 = pneg %p1233_p3 }
 0x1af   : > { %p1239_p1 = pnand %p1237_p7, %p1234_p11 }
 0x1b1   : > { %1242 = shalt.err (!%p1239_p1)
}
 0x1b2   : > { %p1699_p10 = pmov %p1698_p9  ;;  %p1700_p13 = pmov %p1698_p9 }
 0x1b4   : > { %999 = dma.vmem_to_hbm [thread:$0]  (%p1699_p10), %s1607_s14, 16, %s1678_s5, [#allocation10]  }
 0x1b5   : > { %1268 = dma.done.wait (%p1700_p13), [#allocation10], 32   ;;  %p1701_p2 = pmov %p1698_p9 }
 0x1b7   : > { %1270 = vsyncadd (%p1701_p2), [#allocation10], 4294967264 }
 0x1b8 PF: > { %s801_s6 = sand.u32 1, %s1277_s18   ;;  %p1702_p0 = scmp.ne.s32.totalorder %s1683_s25, 0 }
 0x1b9   : > { %p1703_p6 = scmp.ge.s32.totalorder %s1289_s21, 2  ;;  %s802_s8 = scalar_lea.sflag [#allocation4], %s801_s6 }
 0x1bb   : > { %p1017_p8 = pnand %p1703_p6, %p1702_p0 }
 0x1bd   : > { %1272 = dma.done.wait (!%p1017_p8), %s802_s8, 128  }
 0x1be   : > { %1274 = vsyncadd (!%p1017_p8), %s802_s8, 4294967168  ;;  %p21_p4 = scmp.ge.s32.totalorder %s1448_s15, 4   ;;  %s1704_s18 = smov %s1281_s19 }
 0x1bf   : > { %s1705_s19 = smov %s1285_s20  ;;  %s1706_s20 = smov %s1464_s23 }
 0x1c0   : > { %s1707_s21 = smov %s1448_s15  ;;  %23 = sbr.rel (!%p21_p4) target bundleno = 7 (0x7), region = 111 }
 0x1c7   :  { %807 = vsyncpa [#allocation3], 1 }
 0x1c8   :  { %809 = vsyncpa [#allocation3 + $0x1], 1 }
 0x1c9   :  { %810 = vsyncpa [#allocation6], 1 }
 0x1ca   :  { %811 = vsyncpa [#allocation4], 1 }
 0x1cb   :  { %813 = vsyncpa [#allocation4 + $0x1], 1 }
 0x1cc   :  { %814 = vsyncpa [#allocation10], 1 }

// kernel: audio_ae1d_forward.17
= control target key start
LH: loop header
LB: loop body
LE: loop exit
PB: predicated region body
PF: predicated region fallthrough
CT: control target
= control target key end

     0   :  { %11 = vsyncpa [#allocation3], 0  ;;  %s1373_s0 = inlined_call_operand.hbm [shape: bf16[2,18,8], index: 0, kind: input, shape index: {}]   ;;  %s1374_s1 = inlined_call_operand.hbm [shape: bf16[3,8,8], index: 1, kind: input, shape index: {}]   ;;  %s1375_s2 = inlined_call_operand.hbm [shape: f32[1,8], index: 2, kind: input, shape index: {}]   ;;  %s1376_s3 = inlined_call_operand.hbm [shape: bf16[2,16,8], index: 3, kind: output, shape index: {0}]   ;;  %s1377_s4 = inlined_call_operand.hbm [shape: f32[1,8], index: 4, kind: output, shape index: {1}]   ;;  %s1378_s5 = inlined_call_operand.hbm [shape: f32[1,8], index: 5, kind: output, shape index: {2}]  }
   0x1   :  { %13 = vsyncpa [#allocation3 + $0x1], 0 }
   0x2   :  { %14 = vsyncpa [#allocation6], 0 }
   0x3   :  { %15 = vsyncpa [#allocation4], 0 }
   0x4   :  { %17 = vsyncpa [#allocation4 + $0x1], 0 }
   0x5   :  { %18 = vsyncpa [#allocation10], 0  ;;  %s1065_s18 = smov 0   ;;  %s1067_s19 = smov 0  }
   0x6   :  { %s1069_s20 = smov 0   ;;  %s1071_s21 = smov 0  }
   0x7 LB: > { %s1086_s22 = sadd.s32 4294967295, %s1020_s21   ;;  %s660_s23 = sadd.s32 4294967294, %s1020_s21   ;;  %s1020_s21 = sphi %s1071_s21, %s1409_s21   ;;  %s1016_s20 = sphi %s1069_s20, %s1408_s20   ;;  %s1012_s19 = sphi %s1067_s19, %s1407_s19   ;;  %s1008_s18 = sphi %s1065_s18, %s1406_s18  }
   0x8   : > { %p44_p0 = scmp.ne.s32.totalorder %s1012_s19, %s1008_s18  ;;  %p1379_p1 = scmp.eq.s32.totalorder %s1086_s22, 0 }
   0x9   : > { %p116_p3 = scmp.eq.s32.totalorder %s660_s23, 1  ;;  %p661_p5 = scmp.ge.s32.totalorder %s1020_s21, 1 }
   0xa   : > { %p1095_p4 = por %p1379_p1, %p44_p0  ;;  %p165_p7 = scmp.lt.s32.totalorder %s1020_s21, 3 }
   0xb   : > { %p1100_p6 = por %p116_p3, %p44_p0  ;;  %s1022_s27 = smov [#allocation5]  }
   0xc   : > { %s1383_s24 = scalar_select %p1095_p4, 1, 0 }
   0xd   : > { %s1384_s25 = scalar_select %p1100_p6, 1, 0 }
   0xe   : > { %p1106_p9 = pnand %p661_p5, %p165_p7  ;;  %s177_s28 = sshll.u32 %s1022_s27, 4  ;;  %s1110_s28 = int_to_ptr.vmem [resolvable:$true] %s177_s28 }
   0xf   : > { %s1023_s30 = smov [#allocation7]   ;;  %s808_s9 = scalar_lea.hbm %s1374_s1, 192 }
  0x10   : > { %p738_p10 = pneg %p1106_p9  ;;  %s191_s6 = sshll.u32 %s1023_s30, 4  ;;  %s1121_s6 = int_to_ptr.vmem [resolvable:$true] %s191_s6 }
  0x11   : > { %p809_p13 = scmp.ne.s32.totalorder %s1374_s1, %s808_s9  ;;  %p815_p7 = scmp.lt.u32.totalorder %s808_s9, %s1374_s1 }
  0x12   : > { %p1117_p12 = pnand %p738_p10, %p1379_p1 }
  0x14   : > { %p810_p0 = pneg %p1117_p12 }
  0x16   : > { %p811_p3 = pnand %p810_p0, %p809_p13 }
  0x18   : > { %p812_p5 = pneg %p811_p3 }
  0x1a   : > { %p817_p10 = pnand %p815_p7, %p812_p5 }
  0x1c   : > { %820 = shalt.err (!%p817_p10)
}
  0x1d   : > { %s821_s14 = scalar_lea.vmem %s1110_s28, 192  ;;  %p829_p2 = scmp.lt.s32.totalorder %s1110_s28, %s1110_s28 }
  0x1e   : > { %p822_p11 = scmp.ne.s32.totalorder %s1110_s28, %s821_s14  ;;  %p830_p13 = scmp.lt.s32.totalorder %s821_s14, %s821_s14 }
  0x20   : > { %p824_p8 = pnand %p822_p11, %p810_p0  ;;  %p831_p3 = por %p830_p13, %p829_p2 }
  0x22   : > { %p825_p1 = pneg %p824_p8 }
  0x24   : > { %p832_p6 = pnand %p831_p3, %p825_p1 }
  0x26   : > { %835 = shalt.err (!%p832_p6)
}
  0x27   : > { %s1380_s15 = smov 64   ;;  %s1025_s16 = smov 4  }
  0x28   : > { %741 = dma.hbm_to_vmem [thread:$0]  (!%p1117_p12), %s1374_s1, 192, %s1110_s28, [#allocation6], %s1380_s15, %s1380_s15, %s1025_s16  }
  0x29   : > { %s836_s7 = scalar_lea.hbm %s1375_s2, 16 }
  0x2a   : > { %p837_p1 = scmp.ne.s32.totalorder %s1375_s2, %s836_s7  ;;  %p843_p8 = scmp.lt.u32.totalorder %s836_s7, %s1375_s2 }
  0x2c   : > { %p839_p2 = pnand %p837_p1, %p810_p0 }
  0x2e   : > { %p840_p6 = pneg %p839_p2 }
  0x30   : > { %p845_p11 = pnand %p843_p8, %p840_p6 }
  0x32   : > { %848 = shalt.err (!%p845_p11)
}
  0x33   : > { %s849_s28 = scalar_lea.vmem %s1121_s6, 16  ;;  %s856_s12 = scalar_lea.vmem %s1121_s6, 32 }
  0x34   : > { %p850_p5 = scmp.ne.s32.totalorder %s1121_s6, %s849_s28  ;;  %p857_p13 = scmp.lt.s32.totalorder %s1121_s6, %s1121_s6 }
  0x35   : > { %p858_p3 = scmp.lt.s32.totalorder %s856_s12, %s849_s28 }
  0x36   : > { %p852_p7 = pnand %p850_p5, %p810_p0 }
  0x37   : > { %p859_p1 = por %p858_p3, %p857_p13 }
  0x38   : > { %p853_p10 = pneg %p852_p7 }
  0x3a   : > { %p860_p2 = pnand %p859_p1, %p853_p10 }
  0x3c   : > { %863 = shalt.err (!%p860_p2)
}
  0x3d   : > { %744 = dma.hbm_to_vmem [thread:$0]  (!%p1117_p12), %s1375_s2, 16, %s1121_s6, [#allocation6]  }
  0x3e   : > { %s1180_s17 = sadd.s32 1, %s1020_s21   ;;  %s31_s29 = sadd.s32 1, %s1016_s20 }
  0x3f   : > { %s28_s23 = ssub.s32 %s1020_s21, %s1180_s17  ;;  %p38_p0 = scmp.ne.s32.totalorder %s1016_s20, %s1012_s19 }
  0x40   : > { %p29_p6 = scmp.eq.s32.totalorder %s28_s23, 0  ;;  %p39_p8 = scmp.eq.s32.totalorder %s1020_s21, 0 }
  0x41   : > { %p1387_p11 = scmp.eq.s32.totalorder %s1086_s22, 1  ;;  %p755_p7 = scmp.lt.s32.totalorder %s1020_s21, 2 }
  0x42   : > { %s1196_s30 = scalar_select %p29_p6, %s1016_s20, %s31_s29  }
  0x43   : > { %p1190_p5 = por %p1387_p11, %p38_p0  ;;  %p40_p10 = por %p39_p8, %p38_p0 }
  0x44   : > { %s202_s7 = sand.u32 1, %s1016_s20   ;;  %s716_s6 = smul.u32 192, %s1020_s21 }
  0x45   : > { %s1388_s27 = scalar_select %p1190_p5, 1, 0 }
  0x46   : > { %s715_s8 = smul.u32 12, %s202_s7  ;;  %p1200_p12 = pnand %p755_p7, %p40_p10 }
  0x47   : > { %s1207_s28 = scalar_lea.hbm %s1373_s0, %s716_s6  ;;  %s1211_s14 = scalar_lea.sflag [#allocation3], %s202_s7 }
  0x48   : > { %s206_s12 = scalar_lea.vmem [#allocation2], %s715_s8  ;;  %s864_s29 = scalar_lea.hbm %s1207_s28, 192 }
  0x49   : > { %s213_s13 = sshll.u32 %s206_s12, 4  ;;  %p865_p13 = scmp.ne.s32.totalorder %s1207_s28, %s864_s29  ;;  %s1209_s13 = int_to_ptr.vmem [resolvable:$true] %s213_s13 }
  0x4a   : > { %p866_p3 = pneg %p1200_p12  ;;  %s869_s10 = scalar_lea.hbm %s1373_s0, 384 }
  0x4b   : > { %p870_p0 = scmp.lt.u32.totalorder %s1207_s28, %s1373_s0  ;;  %p871_p6 = scmp.lt.u32.totalorder %s869_s10, %s864_s29 }
  0x4c   : > { %p867_p1 = pnand %p866_p3, %p865_p13  ;;  %p873_p11 = scmp.lt.u32.totalorder %s864_s29, %s1207_s28 }
  0x4d   : > { %p872_p8 = por %p871_p6, %p870_p0 }
  0x4e   : > { %p868_p2 = pneg %p867_p1 }
  0x4f   : > { %p874_p7 = por %p873_p11, %p872_p8 }
  0x51   : > { %p875_p10 = pnand %p874_p7, %p868_p2 }
  0x53   : > { %878 = shalt.err (!%p875_p10)
}
  0x54   : > { %s879_s7 = scalar_lea.vmem %s1209_s13, 192  ;;  %s1026_s8 = smov [#allocation2]  }
  0x55   : > { %p880_p13 = scmp.ne.s32.totalorder %s1209_s13, %s879_s7  ;;  %s884_s12 = sshll.u32 %s1026_s8, 4  ;;  %s885_s12 = int_to_ptr.vmem [resolvable:$false] %s884_s12 }
  0x56   : > { %s886_s15 = scalar_lea.vmem %s885_s12, 384  ;;  %p887_p4 = scmp.lt.s32.totalorder %s1209_s13, %s885_s12 }
  0x57   : > { %p882_p1 = pnand %p880_p13, %p866_p3  ;;  %p888_p0 = scmp.lt.s32.totalorder %s886_s15, %s879_s7 }
  0x59   : > { %p883_p5 = pneg %p882_p1  ;;  %p889_p6 = por %p888_p0, %p887_p4 }
  0x5b   : > { %p890_p8 = pnand %p889_p6, %p883_p5 }
  0x5d   : > { %893 = shalt.err (!%p890_p8)
}
  0x5e   : > { %s1390_s29 = smov 64   ;;  %225 = sbr.rel (%p1106_p9) target bundleno = 421 (0x1a5), region = 32 }
  0x5f   : > { %748 = dma.hbm_to_vmem [thread:$0]  (!%p1200_p12), %s1207_s28, 192, %s1209_s13, %s1211_s14, %s1390_s29, %s1390_s29, %s1025_s16  }
  0x60   : > { %s1245_s23 = sand.u32 (!%p1106_p9), 1, %s1012_s19   ;;  %p1391_p4 = scmp.ne.s32.totalorder (!%p1106_p9), %s1383_s24, 0 }
  0x61   : > { %s717_s6 = smul.u32 (!%p1106_p9), 12, %s1245_s23  ;;  %s228_s10 = scalar_lea.sflag (!%p1106_p9), [#allocation3], %s1245_s23 }
  0x63   : > { %s231_s11 = scalar_lea.vmem (!%p1106_p9), [#allocation2], %s717_s6 }
  0x65   : > { %991 = dma.done.wait (%p1391_p4), %s228_s10, 192  }
  0x66   : > { %993 = vsyncadd (%p1391_p4), %s228_s10, 4294967104  ;;  %p1392_p5 = scmp.eq.s32.totalorder %s1086_s22, 0 }
  0x68   : > { %995 = dma.done.wait (%p1392_p5), [#allocation6], 208   ;;  %p1393_p12 = pmov %p1392_p5 }
  0x69   : > { %v1027_v0 = vmov 0.0   ;;  %vm1028_vm0 = vmmov 0   ;;  %vm298_vm1 = vcmask 1043456   ;;  %v272_v1 = vld [vmem:[#allocation5 + $0x4] sm:$0xf]  ;;  %v806_v5 = vld [vmem:[%s231_s11] sm:$0xff]  }
  0x6a   : > { %997 = vsyncadd (%p1393_p12), [#allocation6], 4294967088  ;;  %697 = vmatprep.subr.bf16.mxu0 %v1027_v0  ;;  %703 = vmatprep.subr.bf16.mxu1 %v1027_v0  ;;  %v270_v2 = vld [vmem:[#allocation5] sm:$0xf]  ;;  %v300_v3 = vsel %vm298_vm1, %v272_v1, 0  ;;  %vm294_vm2 = vcmask 64512  }
  0x6b   : > { %699 = vmatprep.mubr.msk.bf16.mxu0 %vm1028_vm0, %v1027_v0  ;;  %705 = vmatprep.mubr.msk.bf16.mxu1 %vm1028_vm0, %v1027_v0  ;;  %v346_v4 = vsel %vm298_vm1, %v270_v2, 0  ;;  %v807_v6 = vld [vmem:[%s231_s11 + $0x8] ss:$0 sps:$4 sm:$0x11]   ;;  %v283_v7 = vshrl.u32 %v806_v5, 16  ;;  %v285_v8 = vshll.u32 %v806_v5, 16 }
  0x6c   : > { %698 = vmatpush3.bf16.msra.mxu0 %v300_v3  ;;  %704 = vmatpush3.bf16.msra.mxu1 %v346_v4  ;;  %v290_v9 = vshll.u32 %v807_v6, 16  ;;  %v390_v12 = vld [vmem:[#allocation5 + $0x8] sm:$0xf]  ;;  %vm281_vm3 = vsmask.f32 7424  ;;  %v392_v16 = vrot.slane %v806_v5, 1 }
  0x6d   : > { %709 = vmatprep.subr.bf16.mxu0 %v1027_v0  ;;  %v287_v10 = vrot.slane %v285_v8, 1  ;;  %v399_v14 = vsel %vm298_vm1, %v390_v12, 0  ;;  %v393_v17 = vrot.slane %v807_v6, 1  ;;  %vm391_vm4 = vcmask 1046528   ;;  %v675_v30 = vld [vmem:[#allocation7] ss:$0 sm:$0xff] }
  0x6e   : > { %v292_v11 = vrot.slane %v290_v9, 1  ;;  %s669_s24 = sshll.u32 %s1245_s23, 3  ;;  %vm463_vm5 = vcmask 60416   ;;  %p1394_p9 = scmp.ne.s32.totalorder %s1086_s22, 0 }
  0x6f   : > { %706 = vmatmul.mubr.msk.bf16.vlgmr.msra.gmra.mrb[0].mxu1 %vm294_vm2, %v806_v5  ;;  %v288_v13 = vor.u32 %v287_v10, %v283_v7  ;;  %v394_v18 = vsel %vm391_vm4, %v392_v16, %v393_v17  ;;  %s261_s26 = scalar_lea.vmem [#allocation8], %s669_s24  ;;  %vm481_vm6 = vcmask (!%p1394_p9), 57344   ;;  %v1029_v42 = vmov (!%p1394_p9), 0.0  }
  0x70   : > { %482 = vst.msk [vmem:[#allocation9] sm:$0x1] (!%p1394_p9), %vm481_vm6, %v1029_v42  ;;  %483 = vst.msk [vmem:[#allocation11] sm:$0x1] (!%p1394_p9), %vm481_vm6, %v1029_v42 }
  0x71   : > { %v293_v15 = vsel %vm281_vm3, %v288_v13, %v292_v11 }
  0x72   : > { %700 = vmatmul.mubr.msk.bf16.vlgmr.msra.gmra.mrb[0].mxu0 %vm294_vm2, %v293_v15 }
  0x73   : > { %710 = vmatpush3.bf16.msra.mxu0 %v399_v14  ;;  %711 = vmatprep.mubr.msk.bf16.mxu0 %vm1028_vm0, %v1027_v0 }
  0x7a   : > { %712 = vmatmul.mubr.msk.bf16.vlgmr.msra.gmra.mrb[4].mxu0 %vm294_vm2, %v394_v18 }
 0x142   : > { %v382_v19 = vpop.f32.mrb[0].mxu1 }
 0x143   : > { %v707_v20 = vpop.f32.mrb[1].mxu1 }
 0x144   : > { %v385_v21 = vpop.f32.mrb[2].mxu1 }
 0x145   : > { %v708_v22 = vpop.f32.mrb[3].mxu1  ;;  %v336_v23 = vpop.f32.mrb[0].mxu0 }
 0x146   : > { %v383_v24 = vadd.f32 %v382_v19, %v336_v23  ;;  %v701_v25 = vpop.f32.mrb[1].mxu0 }
 0x147   : > { %v339_v26 = vpop.f32.mrb[2].mxu0 }
 0x148   : > { %v386_v27 = vadd.f32 %v385_v21, %v339_v26  ;;  %v702_v28 = vpop.f32.mrb[3].mxu0 }
 0x14d   : > { %v435_v29 = vpop.f32.mrb[4].mxu0 }
 0x14e   : > { %v442_v31 = vadd.f32 %v435_v29, %v383_v24  ;;  %v713_v32 = vpop.f32.mrb[5].mxu0 }
 0x14f   : > { %v438_v33 = vpop.f32.mrb[6].mxu0 }
 0x150   : > { %v451_v34 = vadd.f32 %v675_v30, %v442_v31  ;;  %v443_v35 = vadd.f32 %v438_v33, %v386_v27  ;;  %v714_v36 = vpop.f32.mrb[7].mxu0 }
 0x152   : > { %v453_v37 = vmax.f32 %v451_v34, 0.0  ;;  %v452_v38 = vadd.f32 %v675_v30, %v443_v35  ;;  %480 = sbr.rel (%p1394_p9) target bundleno = 345 (0x159), region = 48 }
 0x154   : > { %v688_v39 = vpack.c.bf16 %v453_v37, %v453_v37  ;;  %v454_v40 = vmax.f32 %v452_v38, 0.0 }
 0x156   : > { %464 = vst.msk [vmem:[%s261_s26] sm:$0xf] %vm463_vm5, %v688_v39  ;;  %v689_v41 = vpack.c.bf16 %v454_v40, %v454_v40 }
 0x158   : > { %465 = vst.msk [vmem:[%s261_s26 + $0x4] sm:$0xf] %vm463_vm5, %v689_v41 }
 0x159 PF: > { %v485_v43 = vsel %vm294_vm2, %v453_v37, 0.0  ;;  %v486_v44 = vsel %vm294_vm2, %v454_v40, 0.0  ;;  %v498_v45 = vmul.f32 %v453_v37, %v453_v37  ;;  %v499_v47 = vmul.f32 %v454_v40, %v454_v40  ;;  %s690_s16 = sshll.u32 %s1086_s22, 7  ;;  %s525_s14 = sshll.u32 %s261_s26, 4  ;;  %s1279_s14 = int_to_ptr.vmem [resolvable:$true] %s525_s14 }
 0x15a   : > { %v487_v46 = vadd.f32 %v486_v44, %v485_v43  ;;  %s1277_s13 = scalar_lea.hbm %s1376_s3, %s690_s16  ;;  %s512_s7 = scalar_lea.sflag [#allocation4], %s1245_s23 }
 0x15b   : > { %v500_v48 = vsel %vm294_vm2, %v498_v45, 0.0  ;;  %v501_v50 = vsel %vm294_vm2, %v499_v47, 0.0  ;;  %s894_s8 = scalar_lea.vmem %s1279_s14, 128  ;;  %p1395_p2 = scmp.ne.s32.totalorder %s1388_s27, 0 }
 0x15c   : > { %v488_v49 = vrot.slane %v487_v46, 4  ;;  %v502_v51 = vadd.f32 %v501_v50, %v500_v48  ;;  %p895_p3 = scmp.ne.s32.totalorder %s1279_s14, %s894_s8  ;;  %s1030_s12 = smov [#allocation8]  }
 0x15d   : > { %s898_s15 = sshll.u32 %s1030_s12, 4  ;;  %s899_s15 = int_to_ptr.vmem [resolvable:$false] %s898_s15 }
 0x15e   : > { %v489_v52 = vadd.f32 %v488_v49, %v487_v46  ;;  %v503_v53 = vrot.slane %v502_v51, 4  ;;  %p896_p11 = pnand %p895_p3, %p1395_p2  ;;  %s900_s29 = scalar_lea.vmem %s899_s15, 256 }
 0x15f   : > { %p901_p10 = scmp.lt.s32.totalorder %s1279_s14, %s899_s15  ;;  %p902_p13 = scmp.lt.s32.totalorder %s900_s29, %s894_s8 }
 0x160   : > { %p897_p7 = pneg %p896_p11 }
 0x161   : > { %p903_p1 = por %p902_p13, %p901_p10 }
 0x163   : > { %p904_p0 = pnand %p903_p1, %p897_p7 }
 0x165   : > { %907 = shalt.err (!%p904_p0)
}
 0x166   : > { %s908_s6 = scalar_lea.hbm %s1277_s13, 128  ;;  %s912_s24 = scalar_lea.hbm %s1376_s3, 256 }
 0x167   : > { %p909_p6 = scmp.ne.s32.totalorder %s1277_s13, %s908_s6  ;;  %p913_p5 = scmp.lt.u32.totalorder %s1277_s13, %s1376_s3 }
 0x168   : > { %p914_p12 = scmp.lt.u32.totalorder %s912_s24, %s908_s6  ;;  %p916_p3 = scmp.lt.u32.totalorder %s908_s6, %s1277_s13 }
 0x169   : > { %p910_p8 = pnand %p909_p6, %p1395_p2 }
 0x16a   : > { %p915_p9 = por %p914_p12, %p913_p5 }
 0x16b   : > { %p911_p4 = pneg %p910_p8 }
 0x16c   : > { %p917_p11 = por %p916_p3, %p915_p9 }
 0x16e   : > { %p918_p7 = pnand %p917_p11, %p911_p4 }
 0x170   : > { %921 = shalt.err (!%p918_p7)
}
 0x171   : > { %s1031_s9 = smov 64   ;;  %s1032_s28 = smov 4   ;;  %v490_v54 = vrot.slane %v489_v52, 2  ;;  %v504_v55 = vadd.f32 %v503_v53, %v502_v51  ;;  %v484_v59 = vld [vmem:[#allocation9] sm:$0x1]  ;;  %vm495_vm7 = vcmask 57344  }
 0x172   : > { %728 = dma.vmem_to_hbm [thread:$0]  (%p1395_p2), %s1279_s14, 128, %s1277_s13, %s512_s7, %s1031_s9, %s1031_s9, %s1032_s28   ;;  %v497_v0 = vld [vmem:[#allocation11] sm:$0x1] }
 0x173   : > { %v491_v56 = vadd.f32 %v490_v54, %v489_v52  ;;  %v505_v57 = vrot.slane %v504_v55, 2  ;;  %s1033_s8 = smov [#allocation9]   ;;  %s1034_s15 = smov [#allocation11]  }
 0x174   : > { %s539_s12 = sshll.u32 %s1033_s8, 4  ;;  %s550_s29 = sshll.u32 %s1034_s15, 4  ;;  %s540_s12 = int_to_ptr.vmem [resolvable:$true] %s539_s12  ;;  %s1306_s29 = int_to_ptr.vmem [resolvable:$true] %s550_s29 }
 0x175   : > { %v492_v58 = vrot.slane %v491_v56, 1  ;;  %v506_v60 = vadd.f32 %v505_v57, %v504_v55  ;;  %s922_s27 = scalar_lea.vmem %s540_s12, 16  ;;  %p1396_p10 = scmp.eq.s32.totalorder %s1086_s22, 1 }
 0x176   : > { %p923_p2 = scmp.ne.s32.totalorder %s540_s12, %s922_s27  ;;  %s928_s23 = scalar_lea.vmem %s540_s12, 32 }
 0x177   : > { %v493_v61 = vadd.f32 %v492_v58, %v491_v56  ;;  %v507_v62 = vrot.slane %v506_v60, 1  ;;  %p929_p0 = scmp.lt.s32.totalorder %s540_s12, %s540_s12  ;;  %p930_p6 = scmp.lt.s32.totalorder %s928_s23, %s922_s27 }
 0x178   : > { %p924_p13 = pnand %p923_p2, %p1396_p10 }
 0x179   : > { %v494_v63 = vadd.f32 %v493_v61, %v484_v59  ;;  %v508_v1 = vadd.f32 %v507_v62, %v506_v60  ;;  %p931_p8 = por %p930_p6, %p929_p0 }
 0x17a   : > { %p925_p1 = pneg %p924_p13 }
 0x17b   : > { %496 = vst.msk [vmem:[#allocation9] sm:$0x1] %vm495_vm7, %v494_v63  ;;  %v509_v2 = vadd.f32 %v508_v1, %v497_v0 }
 0x17c   : > { %p932_p4 = pnand %p931_p8, %p925_p1 }
 0x17e   : > { %935 = shalt.err (!%p932_p4)
}
 0x17f   : > { %s936_s7 = scalar_lea.hbm %s1377_s4, 16  ;;  %p1397_p12 = pmov %p1396_p10 }
 0x180   : > { %p937_p5 = scmp.ne.s32.totalorder %s1377_s4, %s936_s7  ;;  %p942_p11 = scmp.lt.u32.totalorder %s936_s7, %s1377_s4 }
 0x182   : > { %p938_p9 = pnand %p937_p5, %p1397_p12 }
 0x184   : > { %p939_p3 = pneg %p938_p9 }
 0x186   : > { %p944_p7 = pnand %p942_p11, %p939_p3 }
 0x188   : > { %947 = shalt.err (!%p944_p7)
}
 0x189   : > { %p1398_p2 = pmov %p1396_p10  ;;  %510 = vst.msk [vmem:[#allocation11] sm:$0x1] %vm495_vm7, %v509_v2  ;;  %s948_s9 = scalar_lea.vmem %s1306_s29, 16 }
 0x18a   : > { %p949_p10 = scmp.ne.s32.totalorder %s1306_s29, %s948_s9  ;;  %s954_s28 = scalar_lea.vmem %s1306_s29, 32 }
 0x18b   : > { %730 = dma.vmem_to_hbm [thread:$0]  (%p1398_p2), %s540_s12, 16, %s1377_s4, [#allocation10]  }
 0x18c   : > { %p1399_p13 = pmov %p1398_p2  ;;  %p955_p6 = scmp.lt.s32.totalorder %s1306_s29, %s1306_s29 }
 0x18d   : > { %p956_p8 = scmp.lt.s32.totalorder %s954_s28, %s948_s9 }
 0x18e   : > { %p950_p1 = pnand %p949_p10, %p1399_p13 }
 0x18f   : > { %p957_p4 = por %p956_p8, %p955_p6 }
 0x190   : > { %p951_p0 = pneg %p950_p1 }
 0x192   : > { %p958_p5 = pnand %p957_p4, %p951_p0 }
 0x194   : > { %961 = shalt.err (!%p958_p5)
}
 0x195   : > { %s962_s27 = scalar_lea.hbm %s1378_s5, 16  ;;  %p1400_p9 = pmov %p1398_p2 }
 0x196   : > { %p963_p12 = scmp.ne.s32.totalorder %s1378_s5, %s962_s27  ;;  %p968_p7 = scmp.lt.u32.totalorder %s962_s27, %s1378_s5 }
 0x198   : > { %p964_p3 = pnand %p963_p12, %p1400_p9 }
 0x19a   : > { %p965_p11 = pneg %p964_p3 }
 0x19c   : > { %p970_p2 = pnand %p968_p7, %p965_p11 }
 0x19e   : > { %973 = shalt.err (!%p970_p2)
}
 0x19f   : > { %p1401_p10 = pmov %p1400_p9  ;;  %p1402_p13 = pmov %p1400_p9 }
 0x1a1   : > { %732 = dma.vmem_to_hbm [thread:$0]  (%p1401_p10), %s1306_s29, 16, %s1378_s5, [#allocation10]  }
 0x1a2   : > { %999 = dma.done.wait (%p1402_p13), [#allocation10], 32   ;;  %p1403_p1 = pmov %p1400_p9 }
 0x1a4   : > { %1001 = vsyncadd (%p1403_p1), [#allocation10], 4294967264 }
 0x1a5 PF: > { %s570_s10 = sand.u32 1, %s1008_s18   ;;  %p1404_p0 = scmp.ne.s32.totalorder %s1384_s25, 0 }
 0x1a6   : > { %p1405_p6 = scmp.ge.s32.totalorder %s1020_s21, 2  ;;  %s571_s11 = scalar_lea.sflag [#allocation4], %s570_s10 }
 0x1a8   : > { %p750_p8 = pnand %p1405_p6, %p1404_p0 }
 0x1aa   : > { %1003 = dma.done.wait (!%p750_p8), %s571_s11, 128  }
 0x1ab   : > { %1005 = vsyncadd (!%p750_p8), %s571_s11, 4294967168  ;;  %p21_p4 = scmp.ge.s32.totalorder %s1180_s17, 4   ;;  %s1406_s18 = smov %s1012_s19 }
 0x1ac   : > { %s1407_s19 = smov %s1016_s20  ;;  %s1408_s20 = smov %s1196_s30 }
 0x1ad   : > { %s1409_s21 = smov %s1180_s17  ;;  %23 = sbr.rel (!%p21_p4) target bundleno = 7 (0x7), region = 107 }
 0x1b4   :  { %576 = vsyncpa [#allocation3], 1 }
 0x1b5   :  { %578 = vsyncpa [#allocation3 + $0x1], 1 }
 0x1b6   :  { %579 = vsyncpa [#allocation6], 1 }
 0x1b7   :  { %580 = vsyncpa [#allocation4], 1 }
 0x1b8   :  { %582 = vsyncpa [#allocation4 + $0x1], 1 }
 0x1b9   :  { %583 = vsyncpa [#allocation10], 1 }

// kernel: audio_ae1d_forward.19
= control target key start
LH: loop header
LB: loop body
LE: loop exit
PB: predicated region body
PF: predicated region fallthrough
CT: control target
= control target key end

     0   :  { %11 = vsyncpa [#allocation3], 0  ;;  %s1313_s0 = inlined_call_operand.hbm [shape: bf16[2,10,8], index: 0, kind: input, shape index: {}]   ;;  %s1314_s1 = inlined_call_operand.hbm [shape: bf16[3,8,16], index: 1, kind: input, shape index: {}]   ;;  %s1315_s2 = inlined_call_operand.hbm [shape: f32[1,16], index: 2, kind: input, shape index: {}]   ;;  %s1316_s3 = inlined_call_operand.hbm [shape: bf16[2,8,16], index: 3, kind: output, shape index: {0}]   ;;  %s1317_s4 = inlined_call_operand.hbm [shape: f32[1,16], index: 4, kind: output, shape index: {1}]   ;;  %s1318_s5 = inlined_call_operand.hbm [shape: f32[1,16], index: 5, kind: output, shape index: {2}]  }
   0x1   :  { %13 = vsyncpa [#allocation3 + $0x1], 0 }
   0x2   :  { %14 = vsyncpa [#allocation6], 0 }
   0x3   :  { %15 = vsyncpa [#allocation4], 0 }
   0x4   :  { %17 = vsyncpa [#allocation4 + $0x1], 0 }
   0x5   :  { %18 = vsyncpa [#allocation10], 0  ;;  %s1016_s18 = smov 0   ;;  %s1018_s19 = smov 0  }
   0x6   :  { %s1020_s20 = smov 0   ;;  %s1022_s21 = smov 0  }
   0x7 LB: > { %s1037_s22 = sadd.s32 4294967295, %s973_s21   ;;  %s622_s23 = sadd.s32 4294967294, %s973_s21   ;;  %s973_s21 = sphi %s1022_s21, %s1347_s21   ;;  %s969_s20 = sphi %s1020_s20, %s1346_s20   ;;  %s965_s19 = sphi %s1018_s19, %s1345_s19   ;;  %s961_s18 = sphi %s1016_s18, %s1344_s18  }
   0x8   : > { %p44_p0 = scmp.ne.s32.totalorder %s965_s19, %s961_s18  ;;  %p1319_p1 = scmp.eq.s32.totalorder %s1037_s22, 0 }
   0x9   : > { %p116_p3 = scmp.eq.s32.totalorder %s622_s23, 1  ;;  %p623_p5 = scmp.ge.s32.totalorder %s973_s21, 1 }
   0xa   : > { %p1046_p4 = por %p1319_p1, %p44_p0  ;;  %p165_p7 = scmp.lt.s32.totalorder %s973_s21, 3 }
   0xb   : > { %p1051_p6 = por %p116_p3, %p44_p0  ;;  %s975_s27 = smov [#allocation5]  }
   0xc   : > { %s1322_s24 = scalar_select %p1046_p4, 1, 0 }
   0xd   : > { %s1323_s25 = scalar_select %p1051_p6, 1, 0 }
   0xe   : > { %p1057_p9 = pnand %p623_p5, %p165_p7  ;;  %s177_s28 = sshll.u32 %s975_s27, 4  ;;  %s1061_s28 = int_to_ptr.vmem [resolvable:$true] %s177_s28 }
   0xf   : > { %s976_s30 = smov [#allocation7]   ;;  %s761_s9 = scalar_lea.hbm %s1314_s1, 192 }
  0x10   : > { %p694_p10 = pneg %p1057_p9  ;;  %s191_s6 = sshll.u32 %s976_s30, 4  ;;  %s1072_s6 = int_to_ptr.vmem [resolvable:$true] %s191_s6 }
  0x11   : > { %p762_p13 = scmp.ne.s32.totalorder %s1314_s1, %s761_s9  ;;  %p768_p7 = scmp.lt.u32.totalorder %s761_s9, %s1314_s1 }
  0x12   : > { %p1068_p12 = pnand %p694_p10, %p1319_p1 }
  0x14   : > { %p763_p0 = pneg %p1068_p12 }
  0x16   : > { %p764_p3 = pnand %p763_p0, %p762_p13 }
  0x18   : > { %p765_p5 = pneg %p764_p3 }
  0x1a   : > { %p770_p10 = pnand %p768_p7, %p765_p5 }
  0x1c   : > { %773 = shalt.err (!%p770_p10)
}
  0x1d   : > { %s774_s14 = scalar_lea.vmem %s1061_s28, 192  ;;  %p782_p2 = scmp.lt.s32.totalorder %s1061_s28, %s1061_s28 }
  0x1e   : > { %p775_p11 = scmp.ne.s32.totalorder %s1061_s28, %s774_s14  ;;  %p783_p13 = scmp.lt.s32.totalorder %s774_s14, %s774_s14 }
  0x20   : > { %p777_p8 = pnand %p775_p11, %p763_p0  ;;  %p784_p3 = por %p783_p13, %p782_p2 }
  0x22   : > { %p778_p1 = pneg %p777_p8 }
  0x24   : > { %p785_p6 = pnand %p784_p3, %p778_p1 }
  0x26   : > { %788 = shalt.err (!%p785_p6)
}
  0x27   : > { %s977_s15 = smov 64   ;;  %s978_s16 = smov 4  }
  0x28   : > { %697 = dma.hbm_to_vmem [thread:$0]  (!%p1068_p12), %s1314_s1, 192, %s1061_s28, [#allocation6], %s977_s15, %s977_s15, %s978_s16  }
  0x29   : > { %s789_s7 = scalar_lea.hbm %s1315_s2, 16 }
  0x2a   : > { %p790_p1 = scmp.ne.s32.totalorder %s1315_s2, %s789_s7  ;;  %p796_p8 = scmp.lt.u32.totalorder %s789_s7, %s1315_s2 }
  0x2c   : > { %p792_p2 = pnand %p790_p1, %p763_p0 }
  0x2e   : > { %p793_p6 = pneg %p792_p2 }
  0x30   : > { %p798_p11 = pnand %p796_p8, %p793_p6 }
  0x32   : > { %801 = shalt.err (!%p798_p11)
}
  0x33   : > { %s802_s28 = scalar_lea.vmem %s1072_s6, 16  ;;  %s809_s12 = scalar_lea.vmem %s1072_s6, 32 }
  0x34   : > { %p803_p5 = scmp.ne.s32.totalorder %s1072_s6, %s802_s28  ;;  %p810_p13 = scmp.lt.s32.totalorder %s1072_s6, %s1072_s6 }
  0x35   : > { %p811_p3 = scmp.lt.s32.totalorder %s809_s12, %s802_s28 }
  0x36   : > { %p805_p7 = pnand %p803_p5, %p763_p0 }
  0x37   : > { %p812_p1 = por %p811_p3, %p810_p13 }
  0x38   : > { %p806_p10 = pneg %p805_p7 }
  0x3a   : > { %p813_p2 = pnand %p812_p1, %p806_p10 }
  0x3c   : > { %816 = shalt.err (!%p813_p2)
}
  0x3d   : > { %700 = dma.hbm_to_vmem [thread:$0]  (!%p1068_p12), %s1315_s2, 16, %s1072_s6, [#allocation6]  }
  0x3e   : > { %s1131_s17 = sadd.s32 1, %s973_s21   ;;  %s31_s29 = sadd.s32 1, %s969_s20 }
  0x3f   : > { %s28_s23 = ssub.s32 %s973_s21, %s1131_s17  ;;  %p38_p0 = scmp.ne.s32.totalorder %s969_s20, %s965_s19 }
  0x40   : > { %p29_p6 = scmp.eq.s32.totalorder %s28_s23, 0  ;;  %p39_p8 = scmp.eq.s32.totalorder %s973_s21, 0 }
  0x41   : > { %p1326_p11 = scmp.eq.s32.totalorder %s1037_s22, 1  ;;  %p711_p7 = scmp.lt.s32.totalorder %s973_s21, 2 }
  0x42   : > { %s1147_s30 = scalar_select %p29_p6, %s969_s20, %s31_s29  }
  0x43   : > { %p1141_p5 = por %p1326_p11, %p38_p0  ;;  %p40_p10 = por %p39_p8, %p38_p0 }
  0x44   : > { %s202_s7 = sand.u32 1, %s969_s20   ;;  %s649_s6 = sshll.u32 %s973_s21, 7 }
  0x45   : > { %s1327_s27 = scalar_select %p1141_p5, 1, 0 }
  0x46   : > { %s627_s8 = sshll.u32 %s202_s7, 3  ;;  %s1154_s11 = scalar_lea.hbm %s1313_s0, %s649_s6 }
  0x47   : > { %s206_s28 = scalar_lea.vmem [#allocation2], %s627_s8  ;;  %p1158_p12 = pnand %p711_p7, %p40_p10 }
  0x48   : > { %s213_s12 = sshll.u32 %s206_s28, 4  ;;  %s1162_s14 = scalar_lea.sflag [#allocation3], %s202_s7  ;;  %s1156_s12 = int_to_ptr.vmem [resolvable:$true] %s213_s12 }
  0x49   : > { %s817_s29 = scalar_lea.hbm %s1154_s11, 128  ;;  %p819_p3 = pneg %p1158_p12 }
  0x4a   : > { %p818_p13 = scmp.ne.s32.totalorder %s1154_s11, %s817_s29  ;;  %s822_s6 = scalar_lea.hbm %s1313_s0, 256 }
  0x4b   : > { %p823_p0 = scmp.lt.u32.totalorder %s1154_s11, %s1313_s0  ;;  %p824_p6 = scmp.lt.u32.totalorder %s822_s6, %s817_s29 }
  0x4c   : > { %p820_p1 = pnand %p819_p3, %p818_p13  ;;  %p826_p11 = scmp.lt.u32.totalorder %s817_s29, %s1154_s11 }
  0x4d   : > { %p825_p8 = por %p824_p6, %p823_p0 }
  0x4e   : > { %p821_p2 = pneg %p820_p1 }
  0x4f   : > { %p827_p7 = por %p826_p11, %p825_p8 }
  0x51   : > { %p828_p10 = pnand %p827_p7, %p821_p2 }
  0x53   : > { %831 = shalt.err (!%p828_p10)
}
  0x54   : > { %s832_s7 = scalar_lea.vmem %s1156_s12, 128  ;;  %s979_s28 = smov [#allocation2]  }
  0x55   : > { %p833_p13 = scmp.ne.s32.totalorder %s1156_s12, %s832_s7  ;;  %s837_s23 = sshll.u32 %s979_s28, 4  ;;  %s838_s23 = int_to_ptr.vmem [resolvable:$false] %s837_s23 }
  0x56   : > { %s839_s8 = scalar_lea.vmem %s838_s23, 256  ;;  %p840_p4 = scmp.lt.s32.totalorder %s1156_s12, %s838_s23 }
  0x57   : > { %p835_p1 = pnand %p833_p13, %p819_p3  ;;  %p841_p0 = scmp.lt.s32.totalorder %s839_s8, %s832_s7 }
  0x59   : > { %p836_p5 = pneg %p835_p1  ;;  %p842_p6 = por %p841_p0, %p840_p4 }
  0x5b   : > { %p843_p8 = pnand %p842_p6, %p836_p5 }
  0x5d   : > { %846 = shalt.err (!%p843_p8)
}
  0x5e   : > { %704 = dma.hbm_to_vmem [thread:$0]  (!%p1158_p12), %s1154_s11, 128, %s1156_s12, %s1162_s14, %s977_s15, %s977_s15, %s978_s16  }
  0x5f   : > { %225 = sbr.rel (%p1057_p9) target bundleno = 421 (0x1a5), region = 32  ;;  %s1196_s29 = sand.u32 (!%p1057_p9), 1, %s965_s19  }
  0x60   : > { %s631_s6 = sshll.u32 (!%p1057_p9), %s1196_s29, 3  ;;  %s228_s9 = scalar_lea.sflag (!%p1057_p9), [#allocation3], %s1196_s29 }
  0x61   : > { %s231_s10 = scalar_lea.vmem (!%p1057_p9), [#allocation2], %s631_s6  ;;  %p1329_p4 = scmp.ne.s32.totalorder (!%p1057_p9), %s1322_s24, 0 }
  0x66   : > { %944 = dma.done.wait (%p1329_p4), %s228_s9, 128  }
  0x67   : > { %946 = vsyncadd (%p1329_p4), %s228_s9, 4294967168  ;;  %p1330_p5 = scmp.eq.s32.totalorder %s1037_s22, 0 }
  0x69   : > { %948 = dma.done.wait (%p1330_p5), [#allocation6], 208   ;;  %p1331_p12 = pmov %p1330_p5 }
  0x6a   : > { %v980_v0 = vmov 0.0   ;;  %vm981_vm0 = vmmov 0   ;;  %vm288_vm1 = vcmask 1043456   ;;  %v271_v1 = vld [vmem:[#allocation5 + $0x4] sm:$0xf]  ;;  %vm284_vm2 = vcmask 64512  }
  0x6b   : > { %950 = vsyncadd (%p1331_p12), [#allocation6], 4294967088  ;;  %656 = vmatprep.subr.bf16.mxu0 %v980_v0  ;;  %662 = vmatprep.subr.bf16.mxu1 %v980_v0  ;;  %v269_v2 = vld [vmem:[#allocation5] sm:$0xf]  ;;  %v267_v3 = vld [vmem:[%s231_s10] sm:$0xf] }
  0x6c   : > { %658 = vmatprep.mubr.msk.bf16.mxu0 %vm981_vm0, %v980_v0  ;;  %664 = vmatprep.mubr.msk.bf16.mxu1 %vm981_vm0, %v980_v0  ;;  %v290_v4 = vsel %vm288_vm1, %v271_v1, 0  ;;  %v336_v5 = vsel %vm288_vm1, %v269_v2, 0  ;;  %v268_v6 = vld [vmem:[%s231_s10 + $0x4] sm:$0x1]  ;;  %v379_v10 = vld [vmem:[#allocation5 + $0x8] sm:$0xf] }
  0x6d   : > { %657 = vmatpush3.bf16.msra.mxu0 %v290_v4  ;;  %663 = vmatpush3.bf16.msra.mxu1 %v336_v5  ;;  %v635_v7 = vcombine.low %v267_v3, %v268_v6  ;;  %v385_v13 = vsel %vm288_vm1, %v379_v10, 0  ;;  %v639_v25 = vld [vmem:[#allocation7] ss:$0 sm:$0xff]  ;;  %s634_s24 = sshll.u32 %s1196_s29, 2  ;;  %vm438_vm3 = vcmask 125952   ;;  %p1332_p9 = scmp.ne.s32.totalorder %s1037_s22, 0 }
  0x6e   : > { %668 = vmatprep.subr.bf16.mxu0 %v980_v0  ;;  %s261_s26 = scalar_lea.vmem [#allocation8], %s634_s24  ;;  %vm450_vm4 = vcmask (!%p1332_p9), 122880   ;;  %v982_v33 = vmov (!%p1332_p9), 0.0  }
  0x6f   : > { %v278_v8 = vshrl.u32 %v635_v7, 16  ;;  %v280_v9 = vshll.u32 %v635_v7, 16  ;;  %v380_v14 = vrot.slane %v635_v7, 1  ;;  %451 = vst.msk [vmem:[#allocation9] sm:$0x1] (!%p1332_p9), %vm450_vm4, %v982_v33 }
  0x70   : > { %665 = vmatmul.mubr.msk.bf16.vlgmr.msra.gmra.mrb[0].mxu1 %vm284_vm2, %v267_v3  ;;  %452 = vst.msk [vmem:[#allocation11] sm:$0x1] (!%p1332_p9), %vm450_vm4, %v982_v33 }
  0x71   : > { %v282_v11 = vrot.slane %v280_v9, 1 }
  0x73   : > { %v283_v12 = vor.u32 %v282_v11, %v278_v8 }
  0x75   : > { %659 = vmatmul.mubr.msk.bf16.vlgmr.msra.gmra.mrb[0].mxu0 %vm284_vm2, %v283_v12 }
  0x76   : > { %669 = vmatpush3.bf16.msra.mxu0 %v385_v13  ;;  %670 = vmatprep.mubr.msk.bf16.mxu0 %vm981_vm0, %v980_v0 }
  0x7d   : > { %671 = vmatmul.mubr.msk.bf16.vlgmr.msra.gmra.mrb[4].mxu0 %vm284_vm2, %v380_v14 }
 0x143   : > { %v372_v15 = vpop.f32.mrb[0].mxu1 }
 0x144   : > { %v666_v16 = vpop.f32.mrb[1].mxu1 }
 0x145   : > { %v375_v17 = vpop.f32.mrb[2].mxu1 }
 0x146   : > { %v667_v18 = vpop.f32.mrb[3].mxu1 }
 0x148   : > { %v326_v19 = vpop.f32.mrb[0].mxu0 }
 0x149   : > { %v373_v20 = vadd.f32 %v372_v15, %v326_v19  ;;  %v660_v21 = vpop.f32.mrb[1].mxu0 }
 0x14a   : > { %v329_v22 = vpop.f32.mrb[2].mxu0 }
 0x14b   : > { %v661_v23 = vpop.f32.mrb[3].mxu0 }
 0x150   : > { %v421_v24 = vpop.f32.mrb[4].mxu0 }
 0x151   : > { %v427_v26 = vadd.f32 %v421_v24, %v373_v20  ;;  %v672_v27 = vpop.f32.mrb[5].mxu0 }
 0x152   : > { %v424_v28 = vpop.f32.mrb[6].mxu0 }
 0x153   : > { %v435_v29 = vadd.f32 %v639_v25, %v427_v26  ;;  %v673_v30 = vpop.f32.mrb[7].mxu0  ;;  %449 = sbr.rel (%p1332_p9) target bundleno = 346 (0x15a), region = 48 }
 0x155   : > { %v436_v31 = vmax.f32 %v435_v29, 0.0 }
 0x157   : > { %v437_v32 = vpack.c.bf16 %v436_v31, %v436_v31 }
 0x159   : > { %439 = vst.msk [vmem:[%s261_s26] sm:$0xf] %vm438_vm3, %v437_v32 }
 0x15a PF: > { %vm454_vm5 = vcmask 130048   ;;  %v466_v34 = vmul.f32 %v436_v31, %v436_v31  ;;  %s642_s15 = sshll.u32 %s1037_s22, 6  ;;  %s490_s13 = sshll.u32 %s261_s26, 4  ;;  %s1223_s13 = int_to_ptr.vmem [resolvable:$true] %s490_s13 }
 0x15b   : > { %v455_v35 = vsel %vm454_vm5, %v436_v31, 0.0  ;;  %s1221_s12 = scalar_lea.hbm %s1316_s3, %s642_s15  ;;  %s477_s14 = scalar_lea.sflag [#allocation4], %s1196_s29 }
 0x15c   : > { %v456_v36 = vrot.slane %v455_v35, 4  ;;  %v467_v37 = vsel %vm454_vm5, %v466_v34, 0.0  ;;  %s847_s7 = scalar_lea.vmem %s1223_s13, 64  ;;  %p1333_p2 = scmp.ne.s32.totalorder %s1327_s27, 0 }
 0x15d   : > { %v468_v38 = vrot.slane %v467_v37, 4  ;;  %p848_p3 = scmp.ne.s32.totalorder %s1223_s13, %s847_s7  ;;  %s983_s28 = smov [#allocation8]  }
 0x15e   : > { %v457_v39 = vadd.f32 %v456_v36, %v455_v35  ;;  %s851_s23 = sshll.u32 %s983_s28, 4  ;;  %s852_s23 = int_to_ptr.vmem [resolvable:$false] %s851_s23 }
 0x15f   : > { %v469_v40 = vadd.f32 %v468_v38, %v467_v37  ;;  %p849_p11 = pnand %p848_p3, %p1333_p2  ;;  %s853_s8 = scalar_lea.vmem %s852_s23, 128 }
 0x160   : > { %v458_v41 = vrot.slane %v457_v39, 2  ;;  %p854_p10 = scmp.lt.s32.totalorder %s1223_s13, %s852_s23  ;;  %p855_p13 = scmp.lt.s32.totalorder %s853_s8, %s847_s7 }
 0x161   : > { %p850_p7 = pneg %p849_p11 }
 0x162   : > { %p856_p1 = por %p855_p13, %p854_p10 }
 0x164   : > { %p857_p0 = pnand %p856_p1, %p850_p7 }
 0x166   : > { %860 = shalt.err (!%p857_p0)
}
 0x167   : > { %s861_s29 = scalar_lea.hbm %s1221_s12, 64  ;;  %s865_s10 = scalar_lea.hbm %s1316_s3, 128 }
 0x168   : > { %p862_p6 = scmp.ne.s32.totalorder %s1221_s12, %s861_s29  ;;  %p866_p5 = scmp.lt.u32.totalorder %s1221_s12, %s1316_s3 }
 0x169   : > { %p867_p12 = scmp.lt.u32.totalorder %s865_s10, %s861_s29  ;;  %p869_p3 = scmp.lt.u32.totalorder %s861_s29, %s1221_s12 }
 0x16a   : > { %p863_p8 = pnand %p862_p6, %p1333_p2 }
 0x16b   : > { %p868_p9 = por %p867_p12, %p866_p5 }
 0x16c   : > { %p864_p4 = pneg %p863_p8 }
 0x16d   : > { %p870_p11 = por %p869_p3, %p868_p9 }
 0x16f   : > { %p871_p7 = pnand %p870_p11, %p864_p4 }
 0x171   : > { %874 = shalt.err (!%p871_p7)
}
 0x172   : > { %684 = dma.vmem_to_hbm [thread:$0]  (%p1333_p2), %s1223_s13, 64, %s1221_s12, %s477_s14   ;;  %v470_v42 = vrot.slane %v469_v40, 2  ;;  %v459_v43 = vadd.f32 %v458_v41, %v457_v39  ;;  %v453_v46 = vld [vmem:[#allocation9] sm:$0x1]  ;;  %v465_v49 = vld [vmem:[#allocation11] sm:$0x1] }
 0x173   : > { %s984_s15 = smov [#allocation9]   ;;  %s985_s11 = smov [#allocation11]   ;;  %vm463_vm6 = vcmask 122880  }
 0x174   : > { %v471_v44 = vadd.f32 %v470_v42, %v469_v40  ;;  %v460_v45 = vrot.slane %v459_v43, 1  ;;  %s501_s16 = sshll.u32 %s984_s15, 4  ;;  %s512_s7 = sshll.u32 %s985_s11, 4  ;;  %s502_s16 = int_to_ptr.vmem [resolvable:$true] %s501_s16  ;;  %s1247_s7 = int_to_ptr.vmem [resolvable:$true] %s512_s7 }
 0x175   : > { %s875_s27 = scalar_lea.vmem %s502_s16, 16  ;;  %p1334_p10 = scmp.eq.s32.totalorder %s1037_s22, 1 }
 0x176   : > { %v472_v47 = vrot.slane %v471_v44, 1  ;;  %v461_v48 = vadd.f32 %v460_v45, %v459_v43  ;;  %p876_p2 = scmp.ne.s32.totalorder %s502_s16, %s875_s27  ;;  %s881_s12 = scalar_lea.vmem %s502_s16, 32 }
 0x177   : > { %p882_p0 = scmp.lt.s32.totalorder %s502_s16, %s502_s16  ;;  %p883_p6 = scmp.lt.s32.totalorder %s881_s12, %s875_s27 }
 0x178   : > { %v473_v50 = vadd.f32 %v472_v47, %v471_v44  ;;  %v462_v51 = vadd.f32 %v461_v48, %v453_v46  ;;  %p877_p13 = pnand %p876_p2, %p1334_p10 }
 0x179   : > { %p884_p8 = por %p883_p6, %p882_p0 }
 0x17a   : > { %v474_v52 = vadd.f32 %v473_v50, %v465_v49  ;;  %464 = vst.msk [vmem:[#allocation9] sm:$0x1] %vm463_vm6, %v462_v51  ;;  %p878_p1 = pneg %p877_p13 }
 0x17c   : > { %475 = vst.msk [vmem:[#allocation11] sm:$0x1] %vm463_vm6, %v474_v52  ;;  %p885_p4 = pnand %p884_p8, %p878_p1 }
 0x17e   : > { %888 = shalt.err (!%p885_p4)
}
 0x17f   : > { %s889_s28 = scalar_lea.hbm %s1317_s4, 16  ;;  %p1335_p12 = pmov %p1334_p10 }
 0x180   : > { %p890_p5 = scmp.ne.s32.totalorder %s1317_s4, %s889_s28  ;;  %p895_p11 = scmp.lt.u32.totalorder %s889_s28, %s1317_s4 }
 0x182   : > { %p891_p9 = pnand %p890_p5, %p1335_p12 }
 0x184   : > { %p892_p3 = pneg %p891_p9 }
 0x186   : > { %p897_p7 = pnand %p895_p11, %p892_p3 }
 0x188   : > { %900 = shalt.err (!%p897_p7)
}
 0x189   : > { %p1336_p2 = pmov %p1334_p10  ;;  %s901_s24 = scalar_lea.vmem %s1247_s7, 16 }
 0x18a   : > { %p902_p10 = scmp.ne.s32.totalorder %s1247_s7, %s901_s24  ;;  %s907_s26 = scalar_lea.vmem %s1247_s7, 32 }
 0x18b   : > { %686 = dma.vmem_to_hbm [thread:$0]  (%p1336_p2), %s502_s16, 16, %s1317_s4, [#allocation10]  }
 0x18c   : > { %p1337_p13 = pmov %p1336_p2  ;;  %p908_p6 = scmp.lt.s32.totalorder %s1247_s7, %s1247_s7 }
 0x18d   : > { %p909_p8 = scmp.lt.s32.totalorder %s907_s26, %s901_s24 }
 0x18e   : > { %p903_p1 = pnand %p902_p10, %p1337_p13 }
 0x18f   : > { %p910_p4 = por %p909_p8, %p908_p6 }
 0x190   : > { %p904_p0 = pneg %p903_p1 }
 0x192   : > { %p911_p5 = pnand %p910_p4, %p904_p0 }
 0x194   : > { %914 = shalt.err (!%p911_p5)
}
 0x195   : > { %s915_s27 = scalar_lea.hbm %s1318_s5, 16  ;;  %p1338_p9 = pmov %p1336_p2 }
 0x196   : > { %p916_p12 = scmp.ne.s32.totalorder %s1318_s5, %s915_s27  ;;  %p921_p7 = scmp.lt.u32.totalorder %s915_s27, %s1318_s5 }
 0x198   : > { %p917_p3 = pnand %p916_p12, %p1338_p9 }
 0x19a   : > { %p918_p11 = pneg %p917_p3 }
 0x19c   : > { %p923_p2 = pnand %p921_p7, %p918_p11 }
 0x19e   : > { %926 = shalt.err (!%p923_p2)
}
 0x19f   : > { %p1339_p10 = pmov %p1338_p9  ;;  %p1340_p13 = pmov %p1338_p9 }
 0x1a1   : > { %688 = dma.vmem_to_hbm [thread:$0]  (%p1339_p10), %s1247_s7, 16, %s1318_s5, [#allocation10]  }
 0x1a2   : > { %952 = dma.done.wait (%p1340_p13), [#allocation10], 32   ;;  %p1341_p1 = pmov %p1338_p9 }
 0x1a4   : > { %954 = vsyncadd (%p1341_p1), [#allocation10], 4294967264 }
 0x1a5 PF: > { %s532_s8 = sand.u32 1, %s961_s18   ;;  %p1342_p0 = scmp.ne.s32.totalorder %s1323_s25, 0 }
 0x1a6   : > { %p1343_p6 = scmp.ge.s32.totalorder %s973_s21, 2  ;;  %s533_s29 = scalar_lea.sflag [#allocation4], %s532_s8 }
 0x1a8   : > { %p706_p8 = pnand %p1343_p6, %p1342_p0 }
 0x1aa   : > { %956 = dma.done.wait (!%p706_p8), %s533_s29, 64  }
 0x1ab   : > { %958 = vsyncadd (!%p706_p8), %s533_s29, 4294967232  ;;  %p21_p4 = scmp.ge.s32.totalorder %s1131_s17, 4   ;;  %s1344_s18 = smov %s965_s19 }
 0x1ac   : > { %s1345_s19 = smov %s969_s20  ;;  %s1346_s20 = smov %s1147_s30 }
 0x1ad   : > { %s1347_s21 = smov %s1131_s17  ;;  %23 = sbr.rel (!%p21_p4) target bundleno = 7 (0x7), region = 107 }
 0x1b4   :  { %538 = vsyncpa [#allocation3], 1 }
 0x1b5   :  { %540 = vsyncpa [#allocation3 + $0x1], 1 }
 0x1b6   :  { %541 = vsyncpa [#allocation6], 1 }
 0x1b7   :  { %542 = vsyncpa [#allocation4], 1 }
 0x1b8   :  { %544 = vsyncpa [#allocation4 + $0x1], 1 }
 0x1b9   :  { %545 = vsyncpa [#allocation10], 1 }

// kernel: audio_ae1d_forward.20
= control target key start
LH: loop header
LB: loop body
LE: loop exit
PB: predicated region body
PF: predicated region fallthrough
CT: control target
= control target key end

     0   :  { %8 = vsyncpa [#allocation3], 0  ;;  %s427_s0 = inlined_call_operand.hbm [shape: bf16[8,2,16], index: 0, kind: input, shape index: {}]   ;;  %s428_s1 = inlined_call_operand.hbm [shape: f32[1,1,16], index: 1, kind: input, shape index: {}]   ;;  %s429_s2 = inlined_call_operand.hbm [shape: f32[1,1,16], index: 2, kind: input, shape index: {}]   ;;  %s430_s3 = inlined_call_operand.hbm [shape: bf16[8,16], index: 3, kind: output, shape index: {}]  }
   0x1   :  { %9 = vsyncpa [#allocation6], 0 }
   0x2   :  { %10 = vsyncpa [#allocation4], 0  ;;  %s345_s12 = smov [#allocation5]   ;;  %s346_s14 = smov [#allocation2]  }
   0x3   :  { %s29_s13 = sshll.u32 %s345_s12, 4  ;;  %s16_s15 = sshll.u32 %s346_s14, 4  ;;  %s30_s13 = int_to_ptr.vmem [resolvable:$true] %s29_s13  ;;  %s371_s15 = int_to_ptr.vmem [resolvable:$true] %s16_s15 }
   0x4   :  { %s251_s18 = scalar_lea.hbm %s428_s1, 16 }
   0x5   :  { %p252_p0 = scmp.ne.s32.totalorder %s428_s1, %s251_s18  ;;  %p255_p1 = scmp.lt.u32.totalorder %s251_s18, %s428_s1 }
   0x7   :  { %p257_p2 = pnand %p255_p1, %p252_p0 }
   0x9   :  { %260 = shalt.err (!%p257_p2)
}
   0xa   :  { %s261_s23 = scalar_lea.vmem %s30_s13, 16  ;;  %s265_s24 = scalar_lea.vmem %s30_s13, 32 }
   0xb   :  { %p262_p3 = scmp.ne.s32.totalorder %s30_s13, %s261_s23  ;;  %p266_p4 = scmp.lt.s32.totalorder %s30_s13, %s30_s13 }
   0xc   :  { %p267_p5 = scmp.lt.s32.totalorder %s265_s24, %s261_s23 }
   0xe   :  { %p268_p6 = por %p267_p5, %p266_p4 }
  0x10   :  { %p269_p7 = pnand %p268_p6, %p262_p3 }
  0x12   :  { %272 = shalt.err (!%p269_p7)
}
  0x13   :  { %32 = dma.hbm_to_vmem [thread:$0]  %s428_s1, 16, %s30_s13, [#allocation6]  }
  0x14   :  { %s273_s29 = scalar_lea.hbm %s427_s0, 128 }
  0x15   :  { %p274_p8 = scmp.ne.s32.totalorder %s427_s0, %s273_s29  ;;  %p277_p9 = scmp.lt.u32.totalorder %s273_s29, %s427_s0 }
  0x17   :  { %p279_p10 = pnand %p277_p9, %p274_p8 }
  0x19   :  { %282 = shalt.err (!%p279_p10)
}
  0x1a   :  { %s283_s7 = scalar_lea.vmem %s371_s15, 128  ;;  %p288_p12 = scmp.lt.s32.totalorder %s371_s15, %s371_s15 }
  0x1b   :  { %p284_p11 = scmp.ne.s32.totalorder %s371_s15, %s283_s7  ;;  %p289_p13 = scmp.lt.s32.totalorder %s283_s7, %s283_s7 }
  0x1d   :  { %p290_p0 = por %p289_p13, %p288_p12 }
  0x1f   :  { %p291_p1 = pnand %p290_p0, %p284_p11 }
  0x21   :  { %294 = shalt.err (!%p291_p1)
}
  0x22   :  { %s347_s1 = smov 16   ;;  %s348_s8 = smov 1  }
  0x23   :  { %22 = dma.hbm_to_vmem [thread:$0]  %s427_s0, 128, %s371_s15, [#allocation3], %s347_s1, %s347_s1, %s348_s8  }
  0x24   :  { %s349_s11 = smov [#allocation7]   ;;  %s295_s16 = scalar_lea.hbm %s429_s2, 16 }
  0x25   :  { %s39_s12 = sshll.u32 %s349_s11, 4  ;;  %p296_p2 = scmp.ne.s32.totalorder %s429_s2, %s295_s16  ;;  %s40_s12 = int_to_ptr.vmem [resolvable:$true] %s39_s12 }
  0x26   :  { %p299_p3 = scmp.lt.u32.totalorder %s295_s16, %s429_s2 }
  0x28   :  { %p301_p4 = pnand %p299_p3, %p296_p2 }
  0x2a   :  { %304 = shalt.err (!%p301_p4)
}
  0x2b   :  { %s305_s21 = scalar_lea.vmem %s40_s12, 16  ;;  %s309_s0 = scalar_lea.vmem %s40_s12, 32 }
  0x2c   :  { %p306_p5 = scmp.ne.s32.totalorder %s40_s12, %s305_s21  ;;  %p310_p6 = scmp.lt.s32.totalorder %s40_s12, %s40_s12 }
  0x2d   :  { %p311_p7 = scmp.lt.s32.totalorder %s309_s0, %s305_s21 }
  0x2f   :  { %p312_p8 = por %p311_p7, %p310_p6 }
  0x31   :  { %p313_p9 = pnand %p312_p8, %p306_p5 }
  0x33   :  { %316 = shalt.err (!%p313_p9)
}
  0x34   :  { %42 = dma.hbm_to_vmem [thread:$0]  %s429_s2, 16, %s40_s12, [#allocation6]  }
  0x35   :  { %339 = dma.done.wait [#allocation3], 128  }
  0x36   :  { %340 = vsyncadd [#allocation3], 4294967168 }
  0x37   :  { %341 = dma.done.wait [#allocation6], 32  }
  0x38   :  { %342 = vsyncadd [#allocation6], 4294967264  ;;  %v52_v0 = vld [vmem:[#allocation2] sm:$0x1]  ;;  %v53_v1 = vld [vmem:[#allocation2 + $0x1] sm:$0x1] }
  0x39   :  { %v54_v2 = vld [vmem:[#allocation2 + $0x2] sm:$0x1]  ;;  %v55_v3 = vld [vmem:[#allocation2 + $0x3] sm:$0x1]  ;;  %v56_v4 = vld [vmem:[#allocation2 + $0x4] sm:$0x1]  ;;  %v60_v6 = vunpack.c.l.bf16 %v52_v0  ;;  %v61_v7 = vunpack.c.l.bf16 %v53_v1 }
  0x3a   :  { %v57_v5 = vld [vmem:[#allocation2 + $0x5] sm:$0x1]  ;;  %v62_v8 = vunpack.c.l.bf16 %v54_v2  ;;  %v58_v9 = vld [vmem:[#allocation2 + $0x6] sm:$0x1]  ;;  %v59_v10 = vld [vmem:[#allocation2 + $0x7] sm:$0x1]  ;;  %v63_v11 = vunpack.c.l.bf16 %v55_v3  ;;  %v64_v12 = vunpack.c.l.bf16 %v56_v4 }
  0x3b   :  { %v65_v13 = vunpack.c.l.bf16 %v57_v5  ;;  %v219_v14 = vld [vmem:[#allocation5] ss:$0 sm:$0xff]  ;;  %v66_v15 = vunpack.c.l.bf16 %v58_v9  ;;  %v67_v16 = vunpack.c.l.bf16 %v59_v10  ;;  %v220_v19 = vld [vmem:[#allocation7] ss:$0 sm:$0xff]  ;;  %vm179_vm0 = vcmask 1041409   ;;  %s350_s2 = smov [#allocation8]  }
  0x3c   :  { %v75_v17 = vmul.f32 %v219_v14, %v60_v6  ;;  %v76_v18 = vmul.f32 %v219_v14, %v61_v7  ;;  %v77_v20 = vmul.f32 %v219_v14, %v62_v8  ;;  %v78_v21 = vmul.f32 %v219_v14, %v63_v11  ;;  %s209_s23 = sshll.u32 %s350_s2, 4  ;;  %s210_s23 = int_to_ptr.vmem [resolvable:$true] %s209_s23 }
  0x3d   :  { %v79_v22 = vmul.f32 %v219_v14, %v64_v12  ;;  %v80_v23 = vmul.f32 %v219_v14, %v65_v13  ;;  %v81_v24 = vmul.f32 %v219_v14, %v66_v15  ;;  %v82_v25 = vmul.f32 %v219_v14, %v67_v16  ;;  %s317_s24 = scalar_lea.vmem %s210_s23, 64  ;;  %p322_p11 = scmp.lt.s32.totalorder %s210_s23, %s210_s23 }
  0x3e   :  { %v90_v26 = vadd.f32 %v220_v19, %v75_v17  ;;  %v91_v27 = vadd.f32 %v220_v19, %v76_v18  ;;  %v92_v28 = vadd.f32 %v220_v19, %v77_v20  ;;  %v93_v29 = vadd.f32 %v220_v19, %v78_v21  ;;  %p318_p10 = scmp.ne.s32.totalorder %s210_s23, %s317_s24  ;;  %p323_p12 = scmp.lt.s32.totalorder %s317_s24, %s317_s24 }
  0x3f   :  { %v94_v30 = vadd.f32 %v220_v19, %v79_v22  ;;  %v95_v31 = vadd.f32 %v220_v19, %v80_v23  ;;  %v96_v32 = vadd.f32 %v220_v19, %v81_v24  ;;  %v97_v33 = vadd.f32 %v220_v19, %v82_v25 }
  0x40   :  { %v221_v34 = vrot.slane %v90_v26, 9  ;;  %v222_v35 = vrot.slane %v91_v27, 9  ;;  %v223_v36 = vrot.slane %v92_v28, 9  ;;  %v224_v37 = vrot.slane %v93_v29, 9  ;;  %p324_p13 = por %p323_p12, %p322_p11 }
  0x41   :  { %v225_v38 = vrot.slane %v94_v30, 9  ;;  %v226_v39 = vrot.slane %v95_v31, 9  ;;  %v227_v40 = vrot.slane %v96_v32, 9  ;;  %v228_v41 = vrot.slane %v97_v33, 9 }
  0x42   :  { %v130_v42 = vmax.f32 %v90_v26, %v221_v34  ;;  %v131_v43 = vmax.f32 %v91_v27, %v222_v35  ;;  %v132_v44 = vmax.f32 %v92_v28, %v223_v36  ;;  %v133_v45 = vmax.f32 %v93_v29, %v224_v37  ;;  %p325_p0 = pnand %p324_p13, %p318_p10 }
  0x43   :  { %v134_v46 = vmax.f32 %v94_v30, %v225_v38  ;;  %v135_v47 = vmax.f32 %v95_v31, %v226_v39  ;;  %v136_v48 = vmax.f32 %v96_v32, %v227_v40  ;;  %v137_v49 = vmax.f32 %v97_v33, %v228_v41 }
  0x44   :  { %v237_v50 = vpack.c.bf16 %v130_v42, %v130_v42  ;;  %v238_v51 = vpack.c.bf16 %v131_v43, %v131_v43  ;;  %v239_v52 = vpack.c.bf16 %v132_v44, %v132_v44  ;;  %v240_v53 = vpack.c.bf16 %v133_v45, %v133_v45 }
  0x45   :  { %v241_v54 = vpack.c.bf16 %v134_v46, %v134_v46  ;;  %v242_v55 = vpack.c.bf16 %v135_v47, %v135_v47  ;;  %v243_v56 = vpack.c.bf16 %v136_v48, %v136_v48  ;;  %v244_v57 = vpack.c.bf16 %v137_v49, %v137_v49 }
  0x46   :  { %v170_v58 = vunpack.c.l.b16 %v237_v50  ;;  %v171_v59 = vunpack.c.l.b16 %v238_v51  ;;  %v172_v60 = vunpack.c.l.b16 %v239_v52  ;;  %v173_v61 = vunpack.c.l.b16 %v240_v53 }
  0x47   :  { %v174_v62 = vunpack.c.l.b16 %v241_v54  ;;  %v175_v63 = vunpack.c.l.b16 %v242_v55  ;;  %v176_v0 = vunpack.c.l.b16 %v243_v56  ;;  %v177_v1 = vunpack.c.l.b16 %v244_v57 }
  0x48   :  { %v178_v2 = vrot.slane %v171_v59, 7  ;;  %vm182_vm1 = vcmask 1042434   ;;  %v181_v3 = vrot.slane %v172_v60, 6  ;;  %v184_v4 = vrot.slane %v173_v61, 5 }
  0x49   :  { %vm185_vm2 = vcmask 1043459   ;;  %v187_v5 = vrot.slane %v174_v62, 4  ;;  %vm188_vm3 = vcmask 1044484   ;;  %v190_v7 = vrot.slane %v175_v63, 3 }
  0x4a   :  { %v180_v6 = vsel %vm179_vm0, %v178_v2, %v170_v58  ;;  %vm191_vm4 = vcmask 1045509   ;;  %v193_v9 = vrot.slane %v176_v0, 2  ;;  %vm194_vm5 = vcmask 1046534  }
  0x4b   :  { %v183_v8 = vsel %vm182_vm1, %v181_v3, %v180_v6  ;;  %v196_v11 = vrot.slane %v177_v1, 1  ;;  %vm197_vm6 = vcmask 1047559   ;;  %vm201_vm7 = vcmask 125952  }
  0x4c   :  { %v186_v10 = vsel %vm185_vm2, %v184_v4, %v183_v8 }
  0x4d   :  { %v189_v12 = vsel %vm188_vm3, %v187_v5, %v186_v10 }
  0x4e   :  { %v192_v13 = vsel %vm191_vm4, %v190_v7, %v189_v12 }
  0x4f   :  { %v195_v14 = vsel %vm194_vm5, %v193_v9, %v192_v13 }
  0x50   :  { %v198_v15 = vsel %vm197_vm6, %v196_v11, %v195_v14 }
  0x51   :  { %v199_v16 = vpack.c.b16 %v198_v15, %v198_v15 }
  0x53   :  { %202 = vst.msk [vmem:[#allocation8] sm:$0xf] %vm201_vm7, %v199_v16 }
  0x54   :  { %328 = shalt.err (!%p325_p0)
}
  0x55   :  { %s329_s27 = scalar_lea.hbm %s430_s3, 64 }
  0x56   :  { %p330_p1 = scmp.ne.s32.totalorder %s430_s3, %s329_s27  ;;  %p333_p2 = scmp.lt.u32.totalorder %s329_s27, %s430_s3 }
  0x58   :  { %p335_p3 = pnand %p333_p2, %p330_p1 }
  0x5a   :  { %338 = shalt.err (!%p335_p3)
}
  0x5b   :  { %212 = dma.vmem_to_hbm [thread:$0]  %s210_s23, 64, %s430_s3, [#allocation4]  }
  0x5c   :  { %343 = dma.done.wait [#allocation4], 64  }
  0x5d   :  { %344 = vsyncadd [#allocation4], 4294967232 }
  0x5e   :  { %216 = vsyncpa [#allocation3], 1 }
  0x5f   :  { %217 = vsyncpa [#allocation6], 1 }
  0x60   :  { %218 = vsyncpa [#allocation4], 1 }

// kernel: audio_ae1d_forward.21
= control target key start
LH: loop header
LB: loop body
LE: loop exit
PB: predicated region body
PF: predicated region fallthrough
CT: control target
= control target key end

     0   :  { %8 = vsyncpa [#allocation4], 0  ;;  %s420_s0 = inlined_call_operand.hbm [shape: bf16[8,128], index: 0, kind: input, shape index: {}]   ;;  %s421_s1 = inlined_call_operand.hbm [shape: bf16[128,128], index: 1, kind: input, shape index: {}]   ;;  %s422_s2 = inlined_call_operand.hbm [shape: f32[1,128], index: 2, kind: input, shape index: {}]   ;;  %s423_s3 = inlined_call_operand.hbm [shape: f32[8,128], index: 3, kind: output, shape index: {}]  }
   0x1   :  { %9 = vsyncpa [#allocation7], 0 }
   0x2   :  { %10 = vsyncpa [#allocation5], 0  ;;  %s344_s12 = smov [#allocation6]   ;;  %s250_s16 = scalar_lea.hbm %s421_s1, 1024 }
   0x3   :  { %s26_s13 = sshll.u32 %s344_s12, 4  ;;  %p251_p0 = scmp.ne.s32.totalorder %s421_s1, %s250_s16  ;;  %s27_s13 = int_to_ptr.vmem [resolvable:$true] %s26_s13 }
   0x4   :  { %p254_p1 = scmp.lt.u32.totalorder %s250_s16, %s421_s1 }
   0x6   :  { %p256_p2 = pnand %p254_p1, %p251_p0 }
   0x8   :  { %259 = shalt.err (!%p256_p2)
}
   0x9   :  { %s260_s21 = scalar_lea.vmem %s27_s13, 1024  ;;  %p265_p4 = scmp.lt.s32.totalorder %s27_s13, %s27_s13 }
   0xa   :  { %p261_p3 = scmp.ne.s32.totalorder %s27_s13, %s260_s21  ;;  %p266_p5 = scmp.lt.s32.totalorder %s260_s21, %s260_s21 }
   0xc   :  { %p267_p6 = por %p266_p5, %p265_p4 }
   0xe   :  { %p268_p7 = pnand %p267_p6, %p261_p3 }
  0x10   :  { %271 = shalt.err (!%p268_p7)
}
  0x11   :  { %s345_s22 = smov 64   ;;  %s346_s23 = smov 4  }
  0x12   :  { %32 = dma.hbm_to_vmem [thread:$0]  %s421_s1, 1024, %s27_s13, [#allocation7], %s345_s22, %s345_s22, %s346_s23  }
  0x13   :  { %s347_s26 = smov [#allocation3]   ;;  %s348_s28 = smov [#allocation8]  }
  0x14   :  { %s17_s27 = sshll.u32 %s347_s26, 4  ;;  %s39_s29 = sshll.u32 %s348_s28, 4  ;;  %s18_s27 = int_to_ptr.vmem [resolvable:$true] %s17_s27  ;;  %s40_s29 = int_to_ptr.vmem [resolvable:$true] %s39_s29 }
  0x15   :  { %s272_s5 = scalar_lea.hbm %s420_s0, 64 }
  0x16   :  { %p273_p8 = scmp.ne.s32.totalorder %s420_s0, %s272_s5  ;;  %p276_p9 = scmp.lt.u32.totalorder %s272_s5, %s420_s0 }
  0x18   :  { %p278_p10 = pnand %p276_p9, %p273_p8 }
  0x1a   :  { %281 = shalt.err (!%p278_p10)
}
  0x1b   :  { %s282_s1 = scalar_lea.vmem %s18_s27, 64  ;;  %p287_p12 = scmp.lt.s32.totalorder %s18_s27, %s18_s27 }
  0x1c   :  { %p283_p11 = scmp.ne.s32.totalorder %s18_s27, %s282_s1  ;;  %p288_p13 = scmp.lt.s32.totalorder %s282_s1, %s282_s1 }
  0x1e   :  { %p289_p0 = por %p288_p13, %p287_p12 }
  0x20   :  { %p290_p1 = pnand %p289_p0, %p283_p11 }
  0x22   :  { %293 = shalt.err (!%p290_p1)
}
  0x23   :  { %20 = dma.hbm_to_vmem [thread:$0]  %s420_s0, 64, %s18_s27, [#allocation4]  }
  0x24   :  { %s294_s14 = scalar_lea.hbm %s422_s2, 16 }
  0x25   :  { %p295_p2 = scmp.ne.s32.totalorder %s422_s2, %s294_s14  ;;  %p298_p3 = scmp.lt.u32.totalorder %s294_s14, %s422_s2 }
  0x27   :  { %p300_p4 = pnand %p298_p3, %p295_p2 }
  0x29   :  { %303 = shalt.err (!%p300_p4)
}
  0x2a   :  { %s304_s19 = scalar_lea.vmem %s40_s29, 16  ;;  %s308_s20 = scalar_lea.vmem %s40_s29, 32 }
  0x2b   :  { %p305_p5 = scmp.ne.s32.totalorder %s40_s29, %s304_s19  ;;  %p309_p6 = scmp.lt.s32.totalorder %s40_s29, %s40_s29 }
  0x2c   :  { %p310_p7 = scmp.lt.s32.totalorder %s308_s20, %s304_s19 }
  0x2e   :  { %p311_p8 = por %p310_p7, %p309_p6 }
  0x30   :  { %p312_p9 = pnand %p311_p8, %p305_p5 }
  0x32   :  { %315 = shalt.err (!%p312_p9)
}
  0x33   :  { %42 = dma.hbm_to_vmem [thread:$0]  %s422_s2, 16, %s40_s29, [#allocation7]  }
  0x34   :  { %338 = dma.done.wait [#allocation4], 64  }
  0x35   :  { %339 = vsyncadd [#allocation4], 4294967232 }
  0x36   :  { %340 = dma.done.wait [#allocation7], 1040  }
  0x37   :  { %341 = vsyncadd [#allocation7], 4294966256  ;;  %v349_v0 = vmov 0.0   ;;  %vm350_vm0 = vmmov 0   ;;  %v242_v1 = vld [vmem:[#allocation6] sm:$0xff]   ;;  %v243_v2 = vld [vmem:[#allocation6 + $0x8] sm:$0xff]  }
  0x38   :  { %214 = vmatprep.subr.bf16.mxu0 %v349_v0  ;;  %230 = vmatprep.mubr.msk.bf16.mxu0 %vm350_vm0, %v349_v0  ;;  %v244_v3 = vld [vmem:[#allocation6 + $0x10] sm:$0xff]   ;;  %v245_v4 = vld [vmem:[#allocation6 + $0x18] sm:$0xff]   ;;  %v246_v5 = vld [vmem:[#allocation6 + $0x20] sm:$0xff]   ;;  %s351_s2 = smov [#allocation9]  }
  0x39   :  { %215 = vmatpush3.bf16.msra.mxu0 %v242_v1  ;;  %v247_v6 = vld [vmem:[#allocation6 + $0x28] sm:$0xff]   ;;  %v248_v7 = vld [vmem:[#allocation6 + $0x30] sm:$0xff]   ;;  %v249_v8 = vld [vmem:[#allocation6 + $0x38] sm:$0xff]   ;;  %s186_s22 = sshll.u32 %s351_s2, 4  ;;  %s187_s22 = int_to_ptr.vmem [resolvable:$true] %s186_s22 }
  0x3a   :  { %216 = vmatprep.subr.bf16.mxu0 %v349_v0  ;;  %v59_v9 = vld [vmem:[#allocation3] sm:$0xf]  ;;  %v204_v10 = vld [vmem:[#allocation8] ss:$0 sm:$0xff]  ;;  %s316_s23 = scalar_lea.vmem %s187_s22, 128  ;;  %p321_p11 = scmp.lt.s32.totalorder %s187_s22, %s187_s22 }
  0x3b   :  { %p317_p10 = scmp.ne.s32.totalorder %s187_s22, %s316_s23  ;;  %p322_p12 = scmp.lt.s32.totalorder %s316_s23, %s316_s23 }
  0x3d   :  { %217 = vmatpush3.bf16.msra.mxu0 %v243_v2  ;;  %p323_p13 = por %p322_p12, %p321_p11 }
  0x3e   :  { %218 = vmatprep.subr.bf16.mxu0 %v349_v0 }
  0x3f   :  { %p324_p0 = pnand %p323_p13, %p317_p10 }
  0x41   :  { %219 = vmatpush3.bf16.msra.mxu0 %v244_v3 }
  0x42   :  { %220 = vmatprep.subr.bf16.mxu0 %v349_v0 }
  0x45   :  { %221 = vmatpush3.bf16.msra.mxu0 %v245_v4 }
  0x46   :  { %222 = vmatprep.subr.bf16.mxu0 %v349_v0 }
  0x49   :  { %223 = vmatpush3.bf16.msra.mxu0 %v246_v5 }
  0x4a   :  { %224 = vmatprep.subr.bf16.mxu0 %v349_v0 }
  0x4d   :  { %225 = vmatpush3.bf16.msra.mxu0 %v247_v6 }
  0x4e   :  { %226 = vmatprep.subr.bf16.mxu0 %v349_v0 }
  0x51   :  { %227 = vmatpush3.bf16.msra.mxu0 %v248_v7 }
  0x52   :  { %228 = vmatprep.subr.bf16.mxu0 %v349_v0 }
  0x55   :  { %229 = vmatpush3.bf16.msra.mxu0 %v249_v8 }
  0x58   :  { %231 = vmatmul.mubr.bf16.vlgmr.msra.gmra.mrb[0].mxu0 %v59_v9 }
 0x12b   :  { %v158_v11 = vpop.f32.mrb[0].mxu0 }
 0x12c   :  { %v177_v12 = vadd.f32 %v204_v10, %v158_v11  ;;  %v232_v13 = vpop.f32.mrb[1].mxu0 }
 0x12d   :  { %v161_v14 = vpop.f32.mrb[2].mxu0 }
 0x12e   :  { %v178_v15 = vmax.f32 %v177_v12, 0.0  ;;  %v233_v16 = vpop.f32.mrb[3].mxu0 }
 0x130   :  { %179 = vst [vmem:[#allocation9] sm:$0xff] %v178_v15 }
 0x131   :  { %327 = shalt.err (!%p324_p0)
}
 0x132   :  { %s328_s26 = scalar_lea.hbm %s423_s3, 128 }
 0x133   :  { %p329_p1 = scmp.ne.s32.totalorder %s423_s3, %s328_s26  ;;  %p332_p2 = scmp.lt.u32.totalorder %s328_s26, %s423_s3 }
 0x135   :  { %p334_p3 = pnand %p332_p2, %p329_p1 }
 0x137   :  { %337 = shalt.err (!%p334_p3)
}
 0x138   :  { %189 = dma.vmem_to_hbm [thread:$0]  %s187_s22, 128, %s423_s3, [#allocation5]  }
 0x139   :  { %342 = dma.done.wait [#allocation5], 128  }
 0x13a   :  { %343 = vsyncadd [#allocation5], 4294967168 }
 0x13b   :  { %193 = vsyncpa [#allocation4], 1 }
 0x13c   :  { %194 = vsyncpa [#allocation7], 1 }
 0x13d   :  { %195 = vsyncpa [#allocation5], 1 }

// kernel: audio_ae1d_forward.23
= control target key start
LH: loop header
LB: loop body
LE: loop exit
PB: predicated region body
PF: predicated region fallthrough
CT: control target
= control target key end

     0   :  { %8 = vsyncpa [#allocation3], 0  ;;  %s1058_s0 = inlined_call_operand.hbm [shape: bf16[2,10,16], index: 0, kind: input, shape index: {}]   ;;  %s1059_s1 = inlined_call_operand.hbm [shape: bf16[3,16,16], index: 1, kind: input, shape index: {}]   ;;  %s1060_s2 = inlined_call_operand.hbm [shape: f32[1,16], index: 2, kind: input, shape index: {}]   ;;  %s1061_s3 = inlined_call_operand.hbm [shape: bf16[2,8,16], index: 3, kind: output, shape index: {}]  }
   0x1   :  { %10 = vsyncpa [#allocation3 + $0x1], 0 }
   0x2   :  { %11 = vsyncpa [#allocation6], 0 }
   0x3   :  { %12 = vsyncpa [#allocation4], 0 }
   0x4   :  { %14 = vsyncpa [#allocation4 + $0x1], 0  ;;  %s815_s12 = smov 0   ;;  %s817_s13 = smov 0  }
   0x5   :  { %s819_s14 = smov 0   ;;  %s821_s15 = smov 0  }
   0x6 LB: > { %s836_s16 = sadd.s32 4294967295, %s785_s15   ;;  %s504_s17 = sadd.s32 4294967294, %s785_s15   ;;  %s785_s15 = sphi %s821_s15, %s1081_s15   ;;  %s781_s14 = sphi %s819_s14, %s1080_s14   ;;  %s777_s13 = sphi %s817_s13, %s1079_s13   ;;  %s773_s12 = sphi %s815_s12, %s1078_s12  }
   0x7   : > { %p40_p0 = scmp.ne.s32.totalorder %s777_s13, %s773_s12  ;;  %p1062_p1 = scmp.eq.s32.totalorder %s836_s16, 0 }
   0x8   : > { %p112_p3 = scmp.eq.s32.totalorder %s504_s17, 1  ;;  %p505_p5 = scmp.ge.s32.totalorder %s785_s15, 1 }
   0x9   : > { %p845_p4 = por %p1062_p1, %p40_p0  ;;  %p119_p7 = scmp.lt.s32.totalorder %s785_s15, 3 }
   0xa   : > { %p850_p6 = por %p112_p3, %p40_p0  ;;  %s787_s21 = smov [#allocation5]  }
   0xb   : > { %s1065_s18 = scalar_select %p845_p4, 1, 0 }
   0xc   : > { %s1066_s19 = scalar_select %p850_p6, 1, 0 }
   0xd   : > { %p855_p8 = pnand %p505_p5, %p119_p7  ;;  %s131_s22 = sshll.u32 %s787_s21, 4  ;;  %s859_s22 = int_to_ptr.vmem [resolvable:$true] %s131_s22 }
   0xe   : > { %s788_s24 = smov [#allocation7]   ;;  %s629_s28 = scalar_lea.hbm %s1059_s1, 384 }
   0xf   : > { %p566_p9 = pneg %p855_p8  ;;  %s145_s25 = sshll.u32 %s788_s24, 4  ;;  %s870_s25 = int_to_ptr.vmem [resolvable:$true] %s145_s25 }
  0x10   : > { %p630_p12 = scmp.ne.s32.totalorder %s1059_s1, %s629_s28  ;;  %p636_p5 = scmp.lt.u32.totalorder %s629_s28, %s1059_s1 }
  0x11   : > { %p866_p11 = pnand %p566_p9, %p1062_p1 }
  0x13   : > { %p631_p13 = pneg %p866_p11 }
  0x15   : > { %p632_p0 = pnand %p631_p13, %p630_p12 }
  0x17   : > { %p633_p3 = pneg %p632_p0 }
  0x19   : > { %p638_p7 = pnand %p636_p5, %p633_p3 }
  0x1b   : > { %641 = shalt.err (!%p638_p7)
}
  0x1c   : > { %s642_s6 = scalar_lea.vmem %s859_s22, 384  ;;  %p650_p2 = scmp.lt.s32.totalorder %s859_s22, %s859_s22 }
  0x1d   : > { %p643_p9 = scmp.ne.s32.totalorder %s859_s22, %s642_s6  ;;  %p651_p12 = scmp.lt.s32.totalorder %s642_s6, %s642_s6 }
  0x1f   : > { %p645_p10 = pnand %p643_p9, %p631_p13  ;;  %p652_p0 = por %p651_p12, %p650_p2 }
  0x21   : > { %p646_p1 = pneg %p645_p10 }
  0x23   : > { %p653_p6 = pnand %p652_p0, %p646_p1 }
  0x25   : > { %656 = shalt.err (!%p653_p6)
}
  0x26   : > { %s789_s7 = smov 64   ;;  %s790_s8 = smov 4  }
  0x27   : > { %569 = dma.hbm_to_vmem [thread:$0]  (!%p866_p11), %s1059_s1, 384, %s859_s22, [#allocation6], %s789_s7, %s789_s7, %s790_s8  }
  0x28   : > { %s657_s21 = scalar_lea.hbm %s1060_s2, 16 }
  0x29   : > { %p658_p1 = scmp.ne.s32.totalorder %s1060_s2, %s657_s21  ;;  %p664_p10 = scmp.lt.u32.totalorder %s657_s21, %s1060_s2 }
  0x2b   : > { %p660_p2 = pnand %p658_p1, %p631_p13 }
  0x2d   : > { %p661_p6 = pneg %p660_p2 }
  0x2f   : > { %p666_p3 = pnand %p664_p10, %p661_p6 }
  0x31   : > { %669 = shalt.err (!%p666_p3)
}
  0x32   : > { %s670_s22 = scalar_lea.vmem %s870_s25, 16  ;;  %s677_s29 = scalar_lea.vmem %s870_s25, 32 }
  0x33   : > { %p671_p5 = scmp.ne.s32.totalorder %s870_s25, %s670_s22  ;;  %p678_p12 = scmp.lt.s32.totalorder %s870_s25, %s870_s25 }
  0x34   : > { %p679_p0 = scmp.lt.s32.totalorder %s677_s29, %s670_s22 }
  0x35   : > { %p673_p7 = pnand %p671_p5, %p631_p13 }
  0x36   : > { %p680_p1 = por %p679_p0, %p678_p12 }
  0x37   : > { %p674_p9 = pneg %p673_p7 }
  0x39   : > { %p681_p2 = pnand %p680_p1, %p674_p9 }
  0x3b   : > { %684 = shalt.err (!%p681_p2)
}
  0x3c   : > { %572 = dma.hbm_to_vmem [thread:$0]  (!%p866_p11), %s1060_s2, 16, %s870_s25, [#allocation6]  }
  0x3d   : > { %s929_s5 = sadd.s32 1, %s785_s15   ;;  %s27_s23 = sadd.s32 1, %s781_s14 }
  0x3e   : > { %s24_s6 = ssub.s32 %s785_s15, %s929_s5  ;;  %p34_p13 = scmp.ne.s32.totalorder %s781_s14, %s777_s13 }
  0x3f   : > { %p25_p6 = scmp.eq.s32.totalorder %s24_s6, 0  ;;  %p35_p10 = scmp.eq.s32.totalorder %s785_s15, 0 }
  0x40   : > { %p1069_p3 = scmp.eq.s32.totalorder %s836_s16, 1  ;;  %p583_p7 = scmp.lt.s32.totalorder %s785_s15, 2 }
  0x41   : > { %s945_s10 = scalar_select %p25_p6, %s781_s14, %s27_s23  }
  0x42   : > { %p939_p5 = por %p1069_p3, %p34_p13  ;;  %p36_p9 = por %p35_p10, %p34_p13 }
  0x43   : > { %s156_s11 = sand.u32 1, %s781_s14   ;;  %s529_s25 = sshll.u32 %s785_s15, 7 }
  0x44   : > { %s1070_s9 = scalar_select %p939_p5, 1, 0 }
  0x45   : > { %s509_s17 = sshll.u32 %s156_s11, 3  ;;  %s952_s26 = scalar_lea.hbm %s1058_s0, %s529_s25 }
  0x46   : > { %s160_s27 = scalar_lea.vmem [#allocation2], %s509_s17  ;;  %p956_p11 = pnand %p583_p7, %p36_p9 }
  0x47   : > { %s167_s28 = sshll.u32 %s160_s27, 4  ;;  %s960_s29 = scalar_lea.sflag [#allocation3], %s156_s11  ;;  %s954_s28 = int_to_ptr.vmem [resolvable:$true] %s167_s28 }
  0x48   : > { %s685_s30 = scalar_lea.hbm %s952_s26, 128  ;;  %p687_p0 = pneg %p956_p11 }
  0x49   : > { %p686_p12 = scmp.ne.s32.totalorder %s952_s26, %s685_s30  ;;  %s690_s6 = scalar_lea.hbm %s1058_s0, 256 }
  0x4a   : > { %p691_p13 = scmp.lt.u32.totalorder %s952_s26, %s1058_s0  ;;  %p692_p6 = scmp.lt.u32.totalorder %s690_s6, %s685_s30 }
  0x4b   : > { %p688_p1 = pnand %p687_p0, %p686_p12  ;;  %p694_p3 = scmp.lt.u32.totalorder %s685_s30, %s952_s26 }
  0x4c   : > { %p693_p10 = por %p692_p6, %p691_p13 }
  0x4d   : > { %p689_p2 = pneg %p688_p1 }
  0x4e   : > { %p695_p7 = por %p694_p3, %p693_p10 }
  0x50   : > { %p696_p9 = pnand %p695_p7, %p689_p2 }
  0x52   : > { %699 = shalt.err (!%p696_p9)
}
  0x53   : > { %s700_s11 = scalar_lea.vmem %s954_s28, 128  ;;  %s791_s21 = smov [#allocation2]  }
  0x54   : > { %p701_p12 = scmp.ne.s32.totalorder %s954_s28, %s700_s11  ;;  %s705_s24 = sshll.u32 %s791_s21, 4  ;;  %s706_s24 = int_to_ptr.vmem [resolvable:$false] %s705_s24 }
  0x55   : > { %s707_s27 = scalar_lea.vmem %s706_s24, 256  ;;  %p708_p4 = scmp.lt.s32.totalorder %s954_s28, %s706_s24 }
  0x56   : > { %p703_p1 = pnand %p701_p12, %p687_p0  ;;  %p709_p13 = scmp.lt.s32.totalorder %s707_s27, %s700_s11 }
  0x58   : > { %p704_p5 = pneg %p703_p1  ;;  %p710_p6 = por %p709_p13, %p708_p4 }
  0x5a   : > { %p711_p10 = pnand %p710_p6, %p704_p5 }
  0x5c   : > { %714 = shalt.err (!%p711_p10)
}
  0x5d   : > { %576 = dma.hbm_to_vmem [thread:$0]  (!%p956_p11), %s952_s26, 128, %s954_s28, %s960_s29, %s789_s7, %s789_s7, %s790_s8  }
  0x5e   : > { %179 = sbr.rel (%p855_p8) target bundleno = 357 (0x165), region = 32  ;;  %s994_s30 = sand.u32 (!%p855_p8), 1, %s777_s13  }
  0x5f   : > { %s513_s4 = sshll.u32 (!%p855_p8), %s994_s30, 3  ;;  %s182_s23 = scalar_lea.sflag (!%p855_p8), [#allocation3], %s994_s30 }
  0x60   : > { %s185_s6 = scalar_lea.vmem (!%p855_p8), [#allocation2], %s513_s4  ;;  %p1072_p4 = scmp.ne.s32.totalorder (!%p855_p8), %s1065_s18, 0 }
  0x65   : > { %760 = dma.done.wait (%p1072_p4), %s182_s23, 128  }
  0x66   : > { %762 = vsyncadd (%p1072_p4), %s182_s23, 4294967168  ;;  %p1073_p5 = scmp.eq.s32.totalorder %s836_s16, 0 }
  0x68   : > { %764 = dma.done.wait (%p1073_p5), [#allocation6], 400   ;;  %p1074_p11 = pmov %p1073_p5 }
  0x69   : > { %v792_v0 = vmov 0.0   ;;  %vm793_vm0 = vmmov 0   ;;  %v625_v1 = vld [vmem:[#allocation5 + $0x8] sm:$0xff]   ;;  %v626_v2 = vld [vmem:[#allocation5] sm:$0xff]   ;;  %v217_v3 = vld [vmem:[%s185_s6] sm:$0xf] }
  0x6a   : > { %766 = vsyncadd (%p1074_p11), [#allocation6], 4294966896  ;;  %536 = vmatprep.subr.bf16.mxu0 %v792_v0  ;;  %542 = vmatprep.subr.bf16.mxu1 %v792_v0  ;;  %v218_v4 = vld [vmem:[%s185_s6 + $0x4] sm:$0x1]  ;;  %vm242_vm1 = vcmask 130048   ;;  %s516_s18 = sshll.u32 %s994_s30, 2 }
  0x6b   : > { %538 = vmatprep.mubr.msk.bf16.mxu0 %vm793_vm0, %v792_v0  ;;  %544 = vmatprep.mubr.msk.bf16.mxu1 %vm793_vm0, %v792_v0  ;;  %v517_v5 = vcombine.low %v217_v3, %v218_v4  ;;  %v628_v9 = vld [vmem:[#allocation5 + $0x10] sm:$0xff]   ;;  %v524_v22 = vld [vmem:[#allocation7] ss:$0 sm:$0xff]  ;;  %s526_s20 = sshll.u32 %s836_s16, 6  ;;  %s215_s7 = scalar_lea.vmem [#allocation8], %s516_s18  ;;  %vm399_vm2 = vcmask 125952  }
  0x6c   : > { %537 = vmatpush3.bf16.msra.mxu0 %v625_v1  ;;  %543 = vmatpush3.bf16.msra.mxu1 %v626_v2  ;;  %s415_s8 = sshll.u32 %s215_s7, 4  ;;  %s1014_s22 = scalar_lea.hbm %s1061_s3, %s526_s20  ;;  %s1016_s8 = int_to_ptr.vmem [resolvable:$true] %s415_s8 }
  0x6d   : > { %548 = vmatprep.subr.bf16.mxu0 %v792_v0  ;;  %v230_v6 = vshrl.u32 %v517_v5, 16  ;;  %v232_v7 = vshll.u32 %v517_v5, 16  ;;  %v338_v11 = vrot.slane %v517_v5, 1  ;;  %s402_s29 = scalar_lea.sflag [#allocation4], %s994_s30  ;;  %s715_s17 = scalar_lea.vmem %s1016_s8, 64 }
  0x6e   : > { %p716_p8 = scmp.ne.s32.totalorder %s1016_s8, %s715_s17  ;;  %p1075_p0 = scmp.ne.s32.totalorder %s1070_s9, 0 }
  0x6f   : > { %545 = vmatmul.mubr.msk.bf16.vlgmr.msra.gmra.mrb[0].mxu1 %vm242_vm1, %v217_v3  ;;  %v234_v8 = vrot.slane %v232_v7, 1  ;;  %s794_s16 = smov [#allocation8]  }
  0x70   : > { %p717_p2 = pnand %p716_p8, %p1075_p0  ;;  %s719_s25 = sshll.u32 %s794_s16, 4  ;;  %s720_s25 = int_to_ptr.vmem [resolvable:$false] %s719_s25 }
  0x71   : > { %v235_v10 = vor.u32 %v234_v8, %v230_v6  ;;  %s721_s11 = scalar_lea.vmem %s720_s25, 128  ;;  %p722_p7 = scmp.lt.s32.totalorder %s1016_s8, %s720_s25 }
  0x72   : > { %p718_p3 = pneg %p717_p2  ;;  %p723_p9 = scmp.lt.s32.totalorder %s721_s11, %s715_s17 }
  0x73   : > { %539 = vmatmul.mubr.msk.bf16.vlgmr.msra.gmra.mrb[0].mxu0 %vm242_vm1, %v235_v10 }
  0x74   : > { %549 = vmatpush3.bf16.msra.mxu0 %v628_v9  ;;  %550 = vmatprep.mubr.msk.bf16.mxu0 %vm793_vm0, %v792_v0  ;;  %p724_p12 = por %p723_p9, %p722_p7 }
  0x76   : > { %p725_p1 = pnand %p724_p12, %p718_p3 }
  0x7b   : > { %551 = vmatmul.mubr.msk.bf16.vlgmr.msra.gmra.mrb[4].mxu0 %vm242_vm1, %v338_v11 }
 0x142   : > { %v329_v12 = vpop.f32.mrb[0].mxu1 }
 0x143   : > { %v546_v13 = vpop.f32.mrb[1].mxu1 }
 0x144   : > { %v332_v14 = vpop.f32.mrb[2].mxu1 }
 0x145   : > { %v547_v15 = vpop.f32.mrb[3].mxu1 }
 0x146   : > { %v280_v16 = vpop.f32.mrb[0].mxu0 }
 0x147   : > { %v330_v17 = vadd.f32 %v329_v12, %v280_v16  ;;  %v540_v18 = vpop.f32.mrb[1].mxu0 }
 0x148   : > { %v283_v19 = vpop.f32.mrb[2].mxu0 }
 0x149   : > { %v541_v20 = vpop.f32.mrb[3].mxu0 }
 0x14e   : > { %v382_v21 = vpop.f32.mrb[4].mxu0 }
 0x14f   : > { %v388_v23 = vadd.f32 %v382_v21, %v330_v17  ;;  %v552_v24 = vpop.f32.mrb[5].mxu0 }
 0x150   : > { %v385_v25 = vpop.f32.mrb[6].mxu0 }
 0x151   : > { %v396_v26 = vadd.f32 %v524_v22, %v388_v23  ;;  %v553_v27 = vpop.f32.mrb[7].mxu0 }
 0x153   : > { %v397_v28 = vmax.f32 %v396_v26, 0.0 }
 0x155   : > { %v398_v29 = vpack.c.bf16 %v397_v28, %v397_v28 }
 0x157   : > { %400 = vst.msk [vmem:[%s215_s7] sm:$0xf] %vm399_vm2, %v398_v29 }
 0x158   : > { %728 = shalt.err (!%p725_p1)
}
 0x159   : > { %s729_s21 = scalar_lea.hbm %s1014_s22, 64  ;;  %s733_s30 = scalar_lea.hbm %s1061_s3, 128 }
 0x15a   : > { %p730_p13 = scmp.ne.s32.totalorder %s1014_s22, %s729_s21  ;;  %p734_p4 = scmp.lt.u32.totalorder %s1014_s22, %s1061_s3 }
 0x15b   : > { %p735_p5 = scmp.lt.u32.totalorder %s733_s30, %s729_s21  ;;  %p737_p8 = scmp.lt.u32.totalorder %s729_s21, %s1014_s22 }
 0x15c   : > { %p731_p6 = pnand %p730_p13, %p1075_p0 }
 0x15d   : > { %p736_p11 = por %p735_p5, %p734_p4 }
 0x15e   : > { %p732_p10 = pneg %p731_p6 }
 0x15f   : > { %p738_p2 = por %p737_p8, %p736_p11 }
 0x161   : > { %p739_p3 = pnand %p738_p2, %p732_p10 }
 0x163   : > { %742 = shalt.err (!%p739_p3)
}
 0x164   : > { %564 = dma.vmem_to_hbm [thread:$0]  (%p1075_p0), %s1016_s8, 64, %s1014_s22, %s402_s29  }
 0x165 PF: > { %s427_s6 = sand.u32 1, %s773_s12   ;;  %p1076_p7 = scmp.ne.s32.totalorder %s1066_s19, 0 }
 0x166   : > { %p1077_p9 = scmp.ge.s32.totalorder %s785_s15, 2  ;;  %s428_s18 = scalar_lea.sflag [#allocation4], %s427_s6 }
 0x168   : > { %p578_p12 = pnand %p1077_p9, %p1076_p7 }
 0x16a   : > { %768 = dma.done.wait (!%p578_p12), %s428_s18, 64  }
 0x16b   : > { %770 = vsyncadd (!%p578_p12), %s428_s18, 4294967232  ;;  %p17_p1 = scmp.ge.s32.totalorder %s929_s5, 4   ;;  %s1078_s12 = smov %s777_s13 }
 0x16c   : > { %s1079_s13 = smov %s781_s14  ;;  %s1080_s14 = smov %s945_s10 }
 0x16d   : > { %s1081_s15 = smov %s929_s5  ;;  %19 = sbr.rel (!%p17_p1) target bundleno = 6 (0x6), region = 87 }
 0x174   :  { %433 = vsyncpa [#allocation3], 1 }
 0x175   :  { %435 = vsyncpa [#allocation3 + $0x1], 1 }
 0x176   :  { %436 = vsyncpa [#allocation6], 1 }
 0x177   :  { %437 = vsyncpa [#allocation4], 1 }
 0x178   :  { %439 = vsyncpa [#allocation4 + $0x1], 1 }

// kernel: audio_ae1d_forward.25
= control target key start
LH: loop header
LB: loop body
LE: loop exit
PB: predicated region body
PF: predicated region fallthrough
CT: control target
= control target key end

     0   :  { %8 = vsyncpa [#allocation3], 0  ;;  %s989_s0 = inlined_call_operand.hbm [shape: bf16[2,9,16], index: 0, kind: input, shape index: {}]   ;;  %s990_s1 = inlined_call_operand.hbm [shape: bf16[2,16,16], index: 1, kind: input, shape index: {}]   ;;  %s991_s2 = inlined_call_operand.hbm [shape: f32[1,16], index: 2, kind: input, shape index: {}]   ;;  %s992_s3 = inlined_call_operand.hbm [shape: bf16[2,8,16], index: 3, kind: output, shape index: {}]  }
   0x1   :  { %10 = vsyncpa [#allocation3 + $0x1], 0 }
   0x2   :  { %11 = vsyncpa [#allocation6], 0 }
   0x3   :  { %12 = vsyncpa [#allocation4], 0 }
   0x4   :  { %14 = vsyncpa [#allocation4 + $0x1], 0  ;;  %s749_s12 = smov 0   ;;  %s751_s13 = smov 0  }
   0x5   :  { %s753_s14 = smov 0   ;;  %s755_s15 = smov 0  }
   0x6 LB: > { %s770_s16 = sadd.s32 4294967295, %s719_s15   ;;  %s449_s17 = sadd.s32 4294967294, %s719_s15   ;;  %s719_s15 = sphi %s755_s15, %s1012_s15   ;;  %s715_s14 = sphi %s753_s14, %s1011_s14   ;;  %s711_s13 = sphi %s751_s13, %s1010_s13   ;;  %s707_s12 = sphi %s749_s12, %s1009_s12  }
   0x7   : > { %p40_p0 = scmp.ne.s32.totalorder %s711_s13, %s707_s12  ;;  %p993_p1 = scmp.eq.s32.totalorder %s770_s16, 0 }
   0x8   : > { %p112_p3 = scmp.eq.s32.totalorder %s449_s17, 1  ;;  %p450_p5 = scmp.ge.s32.totalorder %s719_s15, 1 }
   0x9   : > { %p779_p4 = por %p993_p1, %p40_p0  ;;  %p119_p7 = scmp.lt.s32.totalorder %s719_s15, 3 }
   0xa   : > { %p784_p6 = por %p112_p3, %p40_p0  ;;  %s721_s21 = smov [#allocation5]  }
   0xb   : > { %s996_s18 = scalar_select %p779_p4, 1, 0 }
   0xc   : > { %s997_s19 = scalar_select %p784_p6, 1, 0 }
   0xd   : > { %p789_p8 = pnand %p450_p5, %p119_p7  ;;  %s131_s22 = sshll.u32 %s721_s21, 4  ;;  %s793_s22 = int_to_ptr.vmem [resolvable:$true] %s131_s22 }
   0xe   : > { %s722_s24 = smov [#allocation7]   ;;  %s563_s28 = scalar_lea.hbm %s990_s1, 256 }
   0xf   : > { %p501_p9 = pneg %p789_p8  ;;  %s145_s25 = sshll.u32 %s722_s24, 4  ;;  %s804_s25 = int_to_ptr.vmem [resolvable:$true] %s145_s25 }
  0x10   : > { %p564_p12 = scmp.ne.s32.totalorder %s990_s1, %s563_s28  ;;  %p570_p5 = scmp.lt.u32.totalorder %s563_s28, %s990_s1 }
  0x11   : > { %p800_p11 = pnand %p501_p9, %p993_p1 }
  0x13   : > { %p565_p13 = pneg %p800_p11 }
  0x15   : > { %p566_p0 = pnand %p565_p13, %p564_p12 }
  0x17   : > { %p567_p3 = pneg %p566_p0 }
  0x19   : > { %p572_p7 = pnand %p570_p5, %p567_p3 }
  0x1b   : > { %575 = shalt.err (!%p572_p7)
}
  0x1c   : > { %s576_s6 = scalar_lea.vmem %s793_s22, 256  ;;  %p584_p2 = scmp.lt.s32.totalorder %s793_s22, %s793_s22 }
  0x1d   : > { %p577_p9 = scmp.ne.s32.totalorder %s793_s22, %s576_s6  ;;  %p585_p12 = scmp.lt.s32.totalorder %s576_s6, %s576_s6 }
  0x1f   : > { %p579_p10 = pnand %p577_p9, %p565_p13  ;;  %p586_p0 = por %p585_p12, %p584_p2 }
  0x21   : > { %p580_p1 = pneg %p579_p10 }
  0x23   : > { %p587_p6 = pnand %p586_p0, %p580_p1 }
  0x25   : > { %590 = shalt.err (!%p587_p6)
}
  0x26   : > { %s723_s7 = smov 64   ;;  %s724_s8 = smov 4  }
  0x27   : > { %504 = dma.hbm_to_vmem [thread:$0]  (!%p800_p11), %s990_s1, 256, %s793_s22, [#allocation6], %s723_s7, %s723_s7, %s724_s8  }
  0x28   : > { %s591_s21 = scalar_lea.hbm %s991_s2, 16 }
  0x29   : > { %p592_p1 = scmp.ne.s32.totalorder %s991_s2, %s591_s21  ;;  %p598_p10 = scmp.lt.u32.totalorder %s591_s21, %s991_s2 }
  0x2b   : > { %p594_p2 = pnand %p592_p1, %p565_p13 }
  0x2d   : > { %p595_p6 = pneg %p594_p2 }
  0x2f   : > { %p600_p3 = pnand %p598_p10, %p595_p6 }
  0x31   : > { %603 = shalt.err (!%p600_p3)
}
  0x32   : > { %s604_s22 = scalar_lea.vmem %s804_s25, 16  ;;  %s611_s29 = scalar_lea.vmem %s804_s25, 32 }
  0x33   : > { %p605_p5 = scmp.ne.s32.totalorder %s804_s25, %s604_s22  ;;  %p612_p12 = scmp.lt.s32.totalorder %s804_s25, %s804_s25 }
  0x34   : > { %p613_p0 = scmp.lt.s32.totalorder %s611_s29, %s604_s22 }
  0x35   : > { %p607_p7 = pnand %p605_p5, %p565_p13 }
  0x36   : > { %p614_p1 = por %p613_p0, %p612_p12 }
  0x37   : > { %p608_p9 = pneg %p607_p7 }
  0x39   : > { %p615_p2 = pnand %p614_p1, %p608_p9 }
  0x3b   : > { %618 = shalt.err (!%p615_p2)
}
  0x3c   : > { %507 = dma.hbm_to_vmem [thread:$0]  (!%p800_p11), %s991_s2, 16, %s804_s25, [#allocation6]  }
  0x3d   : > { %s863_s5 = sadd.s32 1, %s719_s15   ;;  %s27_s23 = sadd.s32 1, %s715_s14 }
  0x3e   : > { %s24_s6 = ssub.s32 %s719_s15, %s863_s5  ;;  %p34_p13 = scmp.ne.s32.totalorder %s715_s14, %s711_s13 }
  0x3f   : > { %p25_p6 = scmp.eq.s32.totalorder %s24_s6, 0  ;;  %p35_p10 = scmp.eq.s32.totalorder %s719_s15, 0 }
  0x40   : > { %p1000_p3 = scmp.eq.s32.totalorder %s770_s16, 1  ;;  %p518_p7 = scmp.lt.s32.totalorder %s719_s15, 2 }
  0x41   : > { %s879_s10 = scalar_select %p25_p6, %s715_s14, %s27_s23  }
  0x42   : > { %p873_p5 = por %p1000_p3, %p34_p13  ;;  %p36_p9 = por %p35_p10, %p34_p13 }
  0x43   : > { %s156_s11 = sand.u32 1, %s715_s14   ;;  %s472_s25 = sshll.u32 %s719_s15, 7 }
  0x44   : > { %s1001_s9 = scalar_select %p873_p5, 1, 0 }
  0x45   : > { %s454_s17 = sshll.u32 %s156_s11, 3  ;;  %s886_s26 = scalar_lea.hbm %s989_s0, %s472_s25 }
  0x46   : > { %s160_s27 = scalar_lea.vmem [#allocation2], %s454_s17  ;;  %p890_p11 = pnand %p518_p7, %p36_p9 }
  0x47   : > { %s167_s28 = sshll.u32 %s160_s27, 4  ;;  %s894_s29 = scalar_lea.sflag [#allocation3], %s156_s11  ;;  %s888_s28 = int_to_ptr.vmem [resolvable:$true] %s167_s28 }
  0x48   : > { %s619_s30 = scalar_lea.hbm %s886_s26, 128  ;;  %p621_p0 = pneg %p890_p11 }
  0x49   : > { %p620_p12 = scmp.ne.s32.totalorder %s886_s26, %s619_s30  ;;  %s624_s6 = scalar_lea.hbm %s989_s0, 256 }
  0x4a   : > { %p625_p13 = scmp.lt.u32.totalorder %s886_s26, %s989_s0  ;;  %p626_p6 = scmp.lt.u32.totalorder %s624_s6, %s619_s30 }
  0x4b   : > { %p622_p1 = pnand %p621_p0, %p620_p12  ;;  %p628_p3 = scmp.lt.u32.totalorder %s619_s30, %s886_s26 }
  0x4c   : > { %p627_p10 = por %p626_p6, %p625_p13 }
  0x4d   : > { %p623_p2 = pneg %p622_p1 }
  0x4e   : > { %p629_p7 = por %p628_p3, %p627_p10 }
  0x50   : > { %p630_p9 = pnand %p629_p7, %p623_p2 }
  0x52   : > { %633 = shalt.err (!%p630_p9)
}
  0x53   : > { %s634_s11 = scalar_lea.vmem %s888_s28, 128  ;;  %s725_s21 = smov [#allocation2]  }
  0x54   : > { %p635_p12 = scmp.ne.s32.totalorder %s888_s28, %s634_s11  ;;  %s639_s24 = sshll.u32 %s725_s21, 4  ;;  %s640_s24 = int_to_ptr.vmem [resolvable:$false] %s639_s24 }
  0x55   : > { %s641_s27 = scalar_lea.vmem %s640_s24, 256  ;;  %p642_p4 = scmp.lt.s32.totalorder %s888_s28, %s640_s24 }
  0x56   : > { %p637_p1 = pnand %p635_p12, %p621_p0  ;;  %p643_p13 = scmp.lt.s32.totalorder %s641_s27, %s634_s11 }
  0x58   : > { %p638_p5 = pneg %p637_p1  ;;  %p644_p6 = por %p643_p13, %p642_p4 }
  0x5a   : > { %p645_p10 = pnand %p644_p6, %p638_p5 }
  0x5c   : > { %648 = shalt.err (!%p645_p10)
}
  0x5d   : > { %511 = dma.hbm_to_vmem [thread:$0]  (!%p890_p11), %s886_s26, 128, %s888_s28, %s894_s29, %s723_s7, %s723_s7, %s724_s8  }
  0x5e   : > { %179 = sbr.rel (%p789_p8) target bundleno = 347 (0x15b), region = 32  ;;  %s928_s30 = sand.u32 (!%p789_p8), 1, %s711_s13  }
  0x5f   : > { %s458_s4 = sshll.u32 (!%p789_p8), %s928_s30, 3  ;;  %s182_s23 = scalar_lea.sflag (!%p789_p8), [#allocation3], %s928_s30 }
  0x60   : > { %s185_s6 = scalar_lea.vmem (!%p789_p8), [#allocation2], %s458_s4  ;;  %p1003_p4 = scmp.ne.s32.totalorder (!%p789_p8), %s996_s18, 0 }
  0x65   : > { %694 = dma.done.wait (%p1003_p4), %s182_s23, 128  }
  0x66   : > { %696 = vsyncadd (%p1003_p4), %s182_s23, 4294967168  ;;  %p1004_p5 = scmp.eq.s32.totalorder %s770_s16, 0 }
  0x68   : > { %698 = dma.done.wait (%p1004_p5), [#allocation6], 272   ;;  %p1005_p11 = pmov %p1004_p5 }
  0x69   : > { %v726_v0 = vmov 0.0   ;;  %vm727_vm0 = vmmov 0   ;;  %v560_v1 = vld [vmem:[#allocation5] sm:$0xff]   ;;  %v561_v2 = vld [vmem:[#allocation5 + $0x8] sm:$0xff]   ;;  %v217_v3 = vld [vmem:[%s185_s6] sm:$0xf] }
  0x6a   : > { %700 = vsyncadd (%p1005_p11), [#allocation6], 4294967024  ;;  %483 = vmatprep.subr.bf16.mxu1 %v726_v0  ;;  %477 = vmatprep.subr.bf16.mxu0 %v726_v0  ;;  %v218_v4 = vld [vmem:[%s185_s6 + $0x4] sm:$0x1]  ;;  %vm242_vm1 = vcmask 130048   ;;  %s461_s18 = sshll.u32 %s928_s30, 2 }
  0x6b   : > { %485 = vmatprep.mubr.msk.bf16.mxu1 %vm727_vm0, %v726_v0  ;;  %479 = vmatprep.mubr.msk.bf16.mxu0 %vm727_vm0, %v726_v0  ;;  %v462_v5 = vcombine.low %v217_v3, %v218_v4  ;;  %v467_v15 = vld [vmem:[#allocation7] ss:$0 sm:$0xff]  ;;  %s469_s20 = sshll.u32 %s770_s16, 6  ;;  %s215_s7 = scalar_lea.vmem [#allocation8], %s461_s18  ;;  %vm344_vm2 = vcmask 125952  }
  0x6c   : > { %484 = vmatpush3.bf16.msra.mxu1 %v560_v1  ;;  %478 = vmatpush3.bf16.msra.mxu0 %v561_v2  ;;  %s360_s8 = sshll.u32 %s215_s7, 4  ;;  %s945_s22 = scalar_lea.hbm %s992_s3, %s469_s20  ;;  %s947_s8 = int_to_ptr.vmem [resolvable:$true] %s360_s8 }
  0x6d   : > { %v230_v6 = vshrl.u32 %v462_v5, 16  ;;  %v232_v7 = vshll.u32 %v462_v5, 16  ;;  %s347_s29 = scalar_lea.sflag [#allocation4], %s928_s30  ;;  %s649_s17 = scalar_lea.vmem %s947_s8, 64 }
  0x6e   : > { %p650_p8 = scmp.ne.s32.totalorder %s947_s8, %s649_s17  ;;  %p1006_p0 = scmp.ne.s32.totalorder %s1001_s9, 0 }
  0x6f   : > { %486 = vmatmul.mubr.msk.bf16.vlgmr.msra.gmra.mrb[0].mxu1 %vm242_vm1, %v217_v3  ;;  %v234_v8 = vrot.slane %v232_v7, 1  ;;  %s728_s16 = smov [#allocation8]  }
  0x70   : > { %p651_p2 = pnand %p650_p8, %p1006_p0  ;;  %s653_s25 = sshll.u32 %s728_s16, 4  ;;  %s654_s25 = int_to_ptr.vmem [resolvable:$false] %s653_s25 }
  0x71   : > { %v235_v9 = vor.u32 %v234_v8, %v230_v6  ;;  %s655_s11 = scalar_lea.vmem %s654_s25, 128  ;;  %p656_p7 = scmp.lt.s32.totalorder %s947_s8, %s654_s25 }
  0x72   : > { %p652_p3 = pneg %p651_p2  ;;  %p657_p9 = scmp.lt.s32.totalorder %s655_s11, %s649_s17 }
  0x73   : > { %480 = vmatmul.mubr.msk.bf16.vlgmr.msra.gmra.mrb[0].mxu0 %vm242_vm1, %v235_v9 }
  0x74   : > { %p658_p12 = por %p657_p9, %p656_p7 }
  0x76   : > { %p659_p1 = pnand %p658_p12, %p652_p3 }
 0x142   : > { %v329_v10 = vpop.f32.mrb[0].mxu1 }
 0x143   : > { %v487_v11 = vpop.f32.mrb[1].mxu1 }
 0x144   : > { %v332_v12 = vpop.f32.mrb[2].mxu1 }
 0x145   : > { %v488_v13 = vpop.f32.mrb[3].mxu1 }
 0x146   : > { %v280_v14 = vpop.f32.mrb[0].mxu0 }
 0x147   : > { %v330_v16 = vadd.f32 %v329_v10, %v280_v14  ;;  %v481_v17 = vpop.f32.mrb[1].mxu0 }
 0x148   : > { %v283_v18 = vpop.f32.mrb[2].mxu0 }
 0x149   : > { %v342_v19 = vadd.f32 %v467_v15, %v330_v16  ;;  %v482_v20 = vpop.f32.mrb[3].mxu0 }
 0x14b   : > { %v343_v21 = vpack.c.bf16 %v342_v19, %v342_v19 }
 0x14d   : > { %345 = vst.msk [vmem:[%s215_s7] sm:$0xf] %vm344_vm2, %v343_v21 }
 0x14e   : > { %662 = shalt.err (!%p659_p1)
}
 0x14f   : > { %s663_s21 = scalar_lea.hbm %s945_s22, 64  ;;  %s667_s30 = scalar_lea.hbm %s992_s3, 128 }
 0x150   : > { %p664_p13 = scmp.ne.s32.totalorder %s945_s22, %s663_s21  ;;  %p668_p4 = scmp.lt.u32.totalorder %s945_s22, %s992_s3 }
 0x151   : > { %p669_p5 = scmp.lt.u32.totalorder %s667_s30, %s663_s21  ;;  %p671_p8 = scmp.lt.u32.totalorder %s663_s21, %s945_s22 }
 0x152   : > { %p665_p6 = pnand %p664_p13, %p1006_p0 }
 0x153   : > { %p670_p11 = por %p669_p5, %p668_p4 }
 0x154   : > { %p666_p10 = pneg %p665_p6 }
 0x155   : > { %p672_p2 = por %p671_p8, %p670_p11 }
 0x157   : > { %p673_p3 = pnand %p672_p2, %p666_p10 }
 0x159   : > { %676 = shalt.err (!%p673_p3)
}
 0x15a   : > { %499 = dma.vmem_to_hbm [thread:$0]  (%p1006_p0), %s947_s8, 64, %s945_s22, %s347_s29  }
 0x15b PF: > { %s372_s6 = sand.u32 1, %s707_s12   ;;  %p1007_p7 = scmp.ne.s32.totalorder %s997_s19, 0 }
 0x15c   : > { %p1008_p9 = scmp.ge.s32.totalorder %s719_s15, 2  ;;  %s373_s18 = scalar_lea.sflag [#allocation4], %s372_s6 }
 0x15e   : > { %p513_p12 = pnand %p1008_p9, %p1007_p7 }
 0x160   : > { %702 = dma.done.wait (!%p513_p12), %s373_s18, 64  }
 0x161   : > { %704 = vsyncadd (!%p513_p12), %s373_s18, 4294967232  ;;  %p17_p1 = scmp.ge.s32.totalorder %s863_s5, 4   ;;  %s1009_s12 = smov %s711_s13 }
 0x162   : > { %s1010_s13 = smov %s715_s14  ;;  %s1011_s14 = smov %s879_s10 }
 0x163   : > { %s1012_s15 = smov %s863_s5  ;;  %19 = sbr.rel (!%p17_p1) target bundleno = 6 (0x6), region = 86 }
 0x16a   :  { %378 = vsyncpa [#allocation3], 1 }
 0x16b   :  { %380 = vsyncpa [#allocation3 + $0x1], 1 }
 0x16c   :  { %381 = vsyncpa [#allocation6], 1 }
 0x16d   :  { %382 = vsyncpa [#allocation4], 1 }
 0x16e   :  { %384 = vsyncpa [#allocation4 + $0x1], 1 }

// kernel: audio_ae1d_forward.24
= control target key start
LH: loop header
LB: loop body
LE: loop exit
PB: predicated region body
PF: predicated region fallthrough
CT: control target
= control target key end

     0   :  { %8 = vsyncpa [#allocation3], 0  ;;  %s895_s0 = inlined_call_operand.hbm [shape: bf16[2,8,16], index: 0, kind: input, shape index: {}]   ;;  %s896_s1 = inlined_call_operand.hbm [shape: bf16[1,16,16], index: 1, kind: input, shape index: {}]   ;;  %s897_s2 = inlined_call_operand.hbm [shape: f32[1,16], index: 2, kind: input, shape index: {}]   ;;  %s898_s3 = inlined_call_operand.hbm [shape: bf16[2,8,16], index: 3, kind: output, shape index: {}]  }
   0x1   :  { %10 = vsyncpa [#allocation3 + $0x1], 0 }
   0x2   :  { %11 = vsyncpa [#allocation6], 0 }
   0x3   :  { %12 = vsyncpa [#allocation4], 0 }
   0x4   :  { %14 = vsyncpa [#allocation4 + $0x1], 0  ;;  %s665_s12 = smov 0   ;;  %s667_s13 = smov 0  }
   0x5   :  { %s669_s14 = smov 0   ;;  %s671_s15 = smov 0  }
   0x6 LB: > { %s686_s16 = sadd.s32 4294967295, %s635_s15   ;;  %s380_s17 = sadd.s32 4294967294, %s635_s15   ;;  %s635_s15 = sphi %s671_s15, %s918_s15   ;;  %s631_s14 = sphi %s669_s14, %s917_s14   ;;  %s627_s13 = sphi %s667_s13, %s916_s13   ;;  %s623_s12 = sphi %s665_s12, %s915_s12  }
   0x7   : > { %p40_p0 = scmp.ne.s32.totalorder %s627_s13, %s623_s12  ;;  %p899_p1 = scmp.eq.s32.totalorder %s686_s16, 0 }
   0x8   : > { %p112_p3 = scmp.eq.s32.totalorder %s380_s17, 1  ;;  %p381_p5 = scmp.ge.s32.totalorder %s635_s15, 1 }
   0x9   : > { %p695_p4 = por %p899_p1, %p40_p0  ;;  %p119_p7 = scmp.lt.s32.totalorder %s635_s15, 3 }
   0xa   : > { %p700_p6 = por %p112_p3, %p40_p0  ;;  %s637_s21 = smov [#allocation5]  }
   0xb   : > { %s902_s18 = scalar_select %p695_p4, 1, 0 }
   0xc   : > { %s903_s19 = scalar_select %p700_p6, 1, 0 }
   0xd   : > { %p705_p8 = pnand %p381_p5, %p119_p7  ;;  %s131_s22 = sshll.u32 %s637_s21, 4  ;;  %s709_s22 = int_to_ptr.vmem [resolvable:$true] %s131_s22 }
   0xe   : > { %s638_s24 = smov [#allocation7]   ;;  %s479_s28 = scalar_lea.hbm %s896_s1, 128 }
   0xf   : > { %p419_p9 = pneg %p705_p8  ;;  %s145_s25 = sshll.u32 %s638_s24, 4  ;;  %s720_s25 = int_to_ptr.vmem [resolvable:$true] %s145_s25 }
  0x10   : > { %p480_p12 = scmp.ne.s32.totalorder %s896_s1, %s479_s28  ;;  %p486_p5 = scmp.lt.u32.totalorder %s479_s28, %s896_s1 }
  0x11   : > { %p716_p11 = pnand %p419_p9, %p899_p1 }
  0x13   : > { %p481_p13 = pneg %p716_p11 }
  0x15   : > { %p482_p0 = pnand %p481_p13, %p480_p12 }
  0x17   : > { %p483_p3 = pneg %p482_p0 }
  0x19   : > { %p488_p7 = pnand %p486_p5, %p483_p3 }
  0x1b   : > { %491 = shalt.err (!%p488_p7)
}
  0x1c   : > { %s492_s6 = scalar_lea.vmem %s709_s22, 128  ;;  %p500_p2 = scmp.lt.s32.totalorder %s709_s22, %s709_s22 }
  0x1d   : > { %p493_p9 = scmp.ne.s32.totalorder %s709_s22, %s492_s6  ;;  %p501_p12 = scmp.lt.s32.totalorder %s492_s6, %s492_s6 }
  0x1f   : > { %p495_p10 = pnand %p493_p9, %p481_p13  ;;  %p502_p0 = por %p501_p12, %p500_p2 }
  0x21   : > { %p496_p1 = pneg %p495_p10 }
  0x23   : > { %p503_p6 = pnand %p502_p0, %p496_p1 }
  0x25   : > { %506 = shalt.err (!%p503_p6)
}
  0x26   : > { %s639_s7 = smov 64   ;;  %s640_s8 = smov 4  }
  0x27   : > { %422 = dma.hbm_to_vmem [thread:$0]  (!%p716_p11), %s896_s1, 128, %s709_s22, [#allocation6], %s639_s7, %s639_s7, %s640_s8  }
  0x28   : > { %s507_s21 = scalar_lea.hbm %s897_s2, 16 }
  0x29   : > { %p508_p2 = scmp.ne.s32.totalorder %s897_s2, %s507_s21  ;;  %p514_p10 = scmp.lt.u32.totalorder %s507_s21, %s897_s2 }
  0x2b   : > { %p510_p1 = pnand %p508_p2, %p481_p13 }
  0x2d   : > { %p511_p6 = pneg %p510_p1 }
  0x2f   : > { %p516_p3 = pnand %p514_p10, %p511_p6 }
  0x31   : > { %519 = shalt.err (!%p516_p3)
}
  0x32   : > { %s520_s22 = scalar_lea.vmem %s720_s25, 16  ;;  %s527_s29 = scalar_lea.vmem %s720_s25, 32 }
  0x33   : > { %p521_p5 = scmp.ne.s32.totalorder %s720_s25, %s520_s22  ;;  %p528_p12 = scmp.lt.s32.totalorder %s720_s25, %s720_s25 }
  0x34   : > { %p529_p0 = scmp.lt.s32.totalorder %s527_s29, %s520_s22 }
  0x35   : > { %p523_p7 = pnand %p521_p5, %p481_p13 }
  0x36   : > { %p530_p2 = por %p529_p0, %p528_p12 }
  0x37   : > { %p524_p9 = pneg %p523_p7 }
  0x39   : > { %p531_p1 = pnand %p530_p2, %p524_p9 }
  0x3b   : > { %534 = shalt.err (!%p531_p1)
}
  0x3c   : > { %425 = dma.hbm_to_vmem [thread:$0]  (!%p716_p11), %s897_s2, 16, %s720_s25, [#allocation6]  }
  0x3d   : > { %s776_s5 = sadd.s32 1, %s635_s15   ;;  %s27_s23 = sadd.s32 1, %s631_s14 }
  0x3e   : > { %s24_s6 = ssub.s32 %s635_s15, %s776_s5  ;;  %p34_p13 = scmp.ne.s32.totalorder %s631_s14, %s627_s13 }
  0x3f   : > { %p25_p6 = scmp.eq.s32.totalorder %s24_s6, 0  ;;  %p35_p10 = scmp.eq.s32.totalorder %s635_s15, 0 }
  0x40   : > { %p906_p3 = scmp.eq.s32.totalorder %s686_s16, 1  ;;  %p436_p7 = scmp.lt.s32.totalorder %s635_s15, 2 }
  0x41   : > { %s792_s8 = scalar_select %p25_p6, %s631_s14, %s27_s23  }
  0x42   : > { %p786_p5 = por %p906_p3, %p34_p13  ;;  %p36_p9 = por %p35_p10, %p34_p13 }
  0x43   : > { %s156_s9 = sand.u32 1, %s631_s14   ;;  %s386_s25 = sshll.u32 %s635_s15, 6 }
  0x44   : > { %s907_s7 = scalar_select %p786_p5, 1, 0 }
  0x45   : > { %s385_s10 = sshll.u32 %s156_s9, 2  ;;  %s799_s21 = scalar_lea.hbm %s895_s0, %s386_s25 }
  0x46   : > { %s160_s24 = scalar_lea.vmem [#allocation2], %s385_s10  ;;  %p803_p11 = pnand %p436_p7, %p36_p9 }
  0x47   : > { %s167_s26 = sshll.u32 %s160_s24, 4  ;;  %s157_s28 = scalar_lea.sflag [#allocation3], %s156_s9  ;;  %s801_s26 = int_to_ptr.vmem [resolvable:$true] %s167_s26 }
  0x48   : > { %s535_s22 = scalar_lea.hbm %s799_s21, 64  ;;  %p537_p0 = pneg %p803_p11 }
  0x49   : > { %p536_p12 = scmp.ne.s32.totalorder %s799_s21, %s535_s22  ;;  %s540_s4 = scalar_lea.hbm %s895_s0, 128 }
  0x4a   : > { %p541_p13 = scmp.lt.u32.totalorder %s799_s21, %s895_s0  ;;  %p542_p6 = scmp.lt.u32.totalorder %s540_s4, %s535_s22 }
  0x4b   : > { %p538_p2 = pnand %p537_p0, %p536_p12  ;;  %p544_p3 = scmp.lt.u32.totalorder %s535_s22, %s799_s21 }
  0x4c   : > { %p543_p10 = por %p542_p6, %p541_p13 }
  0x4d   : > { %p539_p1 = pneg %p538_p2 }
  0x4e   : > { %p545_p7 = por %p544_p3, %p543_p10 }
  0x50   : > { %p546_p9 = pnand %p545_p7, %p539_p1 }
  0x52   : > { %549 = shalt.err (!%p546_p9)
}
  0x53   : > { %s550_s9 = scalar_lea.vmem %s801_s26, 64  ;;  %s641_s10 = smov [#allocation2]  }
  0x54   : > { %p551_p12 = scmp.ne.s32.totalorder %s801_s26, %s550_s9  ;;  %s555_s25 = sshll.u32 %s641_s10, 4  ;;  %s556_s25 = int_to_ptr.vmem [resolvable:$false] %s555_s25 }
  0x55   : > { %s557_s11 = scalar_lea.vmem %s556_s25, 128  ;;  %p558_p4 = scmp.lt.s32.totalorder %s801_s26, %s556_s25 }
  0x56   : > { %p553_p2 = pnand %p551_p12, %p537_p0  ;;  %p559_p13 = scmp.lt.s32.totalorder %s557_s11, %s550_s9 }
  0x58   : > { %p554_p5 = pneg %p553_p2  ;;  %p560_p6 = por %p559_p13, %p558_p4 }
  0x5a   : > { %p561_p10 = pnand %p560_p6, %p554_p5 }
  0x5c   : > { %564 = shalt.err (!%p561_p10)
}
  0x5d   : > { %429 = dma.hbm_to_vmem [thread:$0]  (!%p803_p11), %s799_s21, 64, %s801_s26, %s157_s28  }
  0x5e   : > { %176 = sbr.rel (%p705_p8) target bundleno = 340 (0x154), region = 32  ;;  %s835_s17 = sand.u32 (!%p705_p8), 1, %s627_s13  }
  0x5f   : > { %s388_s24 = sshll.u32 (!%p705_p8), %s835_s17, 2  ;;  %s179_s22 = scalar_lea.sflag (!%p705_p8), [#allocation3], %s835_s17 }
  0x60   : > { %s182_s29 = scalar_lea.vmem (!%p705_p8), [#allocation2], %s388_s24  ;;  %p909_p4 = scmp.ne.s32.totalorder (!%p705_p8), %s902_s18, 0 }
  0x65   : > { %610 = dma.done.wait (%p909_p4), %s179_s22, 64  }
  0x66   : > { %612 = vsyncadd (%p909_p4), %s179_s22, 4294967232  ;;  %p910_p5 = scmp.eq.s32.totalorder %s686_s16, 0 }
  0x68   : > { %614 = dma.done.wait (%p910_p5), [#allocation6], 144   ;;  %p911_p11 = pmov %p910_p5 }
  0x69   : > { %v642_v0 = vmov 0.0   ;;  %vm643_vm0 = vmmov 0   ;;  %v478_v1 = vld [vmem:[#allocation5] sm:$0xff]   ;;  %v214_v2 = vld [vmem:[%s182_s29] sm:$0xf]  ;;  %vm230_vm1 = vcmask 130048  }
  0x6a   : > { %616 = vsyncadd (%p911_p11), [#allocation6], 4294967152  ;;  %401 = vmatprep.subr.bf16.mxu0 %v642_v0  ;;  %403 = vmatprep.mubr.msk.bf16.mxu0 %vm643_vm0, %v642_v0  ;;  %v392_v3 = vld [vmem:[#allocation7] ss:$0 sm:$0xff]  ;;  %s396_s18 = sshll.u32 %s686_s16, 6  ;;  %s212_s20 = scalar_lea.vmem [#allocation8], %s388_s24 }
  0x6b   : > { %402 = vmatpush3.bf16.msra.mxu0 %v478_v1  ;;  %s291_s21 = sshll.u32 %s212_s20, 4  ;;  %vm275_vm2 = vcmask 125952   ;;  %s851_s28 = scalar_lea.hbm %s898_s3, %s396_s18  ;;  %s853_s21 = int_to_ptr.vmem [resolvable:$true] %s291_s21 }
  0x6c   : > { %s278_s16 = scalar_lea.sflag [#allocation4], %s835_s17  ;;  %s565_s30 = scalar_lea.vmem %s853_s21, 64 }
  0x6d   : > { %p566_p8 = scmp.ne.s32.totalorder %s853_s21, %s565_s30  ;;  %p912_p0 = scmp.ne.s32.totalorder %s907_s7, 0 }
  0x6e   : > { %404 = vmatmul.mubr.msk.bf16.vlgmr.msra.gmra.mrb[0].mxu0 %vm230_vm1, %v214_v2  ;;  %s644_s4 = smov [#allocation8]  }
  0x6f   : > { %p567_p1 = pnand %p566_p8, %p912_p0  ;;  %s569_s23 = sshll.u32 %s644_s4, 4  ;;  %s570_s23 = int_to_ptr.vmem [resolvable:$false] %s569_s23 }
  0x70   : > { %s571_s6 = scalar_lea.vmem %s570_s23, 128  ;;  %p572_p7 = scmp.lt.s32.totalorder %s853_s21, %s570_s23 }
  0x71   : > { %p568_p3 = pneg %p567_p1  ;;  %p573_p9 = scmp.lt.s32.totalorder %s571_s6, %s565_s30 }
  0x73   : > { %p574_p12 = por %p573_p9, %p572_p7 }
  0x75   : > { %p575_p2 = pnand %p574_p12, %p568_p3 }
 0x141   : > { %v268_v4 = vpop.f32.mrb[0].mxu0 }
 0x142   : > { %v269_v5 = vadd.f32 %v392_v3, %v268_v4  ;;  %v405_v6 = vpop.f32.mrb[1].mxu0 }
 0x143   : > { %v271_v7 = vpop.f32.mrb[2].mxu0 }
 0x144   : > { %v274_v8 = vpack.c.bf16 %v269_v5, %v269_v5  ;;  %v406_v9 = vpop.f32.mrb[3].mxu0 }
 0x146   : > { %276 = vst.msk [vmem:[%s212_s20] sm:$0xf] %vm275_vm2, %v274_v8 }
 0x147   : > { %578 = shalt.err (!%p575_p2)
}
 0x148   : > { %s579_s9 = scalar_lea.hbm %s851_s28, 64  ;;  %s583_s11 = scalar_lea.hbm %s898_s3, 128 }
 0x149   : > { %p580_p13 = scmp.ne.s32.totalorder %s851_s28, %s579_s9  ;;  %p584_p4 = scmp.lt.u32.totalorder %s851_s28, %s898_s3 }
 0x14a   : > { %p585_p5 = scmp.lt.u32.totalorder %s583_s11, %s579_s9  ;;  %p587_p8 = scmp.lt.u32.totalorder %s579_s9, %s851_s28 }
 0x14b   : > { %p581_p6 = pnand %p580_p13, %p912_p0 }
 0x14c   : > { %p586_p11 = por %p585_p5, %p584_p4 }
 0x14d   : > { %p582_p10 = pneg %p581_p6 }
 0x14e   : > { %p588_p1 = por %p587_p8, %p586_p11 }
 0x150   : > { %p589_p3 = pnand %p588_p1, %p582_p10 }
 0x152   : > { %592 = shalt.err (!%p589_p3)
}
 0x153   : > { %417 = dma.vmem_to_hbm [thread:$0]  (%p912_p0), %s853_s21, 64, %s851_s28, %s278_s16  }
 0x154 PF: > { %s303_s22 = sand.u32 1, %s623_s12   ;;  %p913_p7 = scmp.ne.s32.totalorder %s903_s19, 0 }
 0x155   : > { %p914_p9 = scmp.ge.s32.totalorder %s635_s15, 2  ;;  %s304_s29 = scalar_lea.sflag [#allocation4], %s303_s22 }
 0x157   : > { %p431_p12 = pnand %p914_p9, %p913_p7 }
 0x159   : > { %618 = dma.done.wait (!%p431_p12), %s304_s29, 64  }
 0x15a   : > { %620 = vsyncadd (!%p431_p12), %s304_s29, 4294967232  ;;  %p17_p2 = scmp.ge.s32.totalorder %s776_s5, 4   ;;  %s915_s12 = smov %s627_s13 }
 0x15b   : > { %s916_s13 = smov %s631_s14  ;;  %s917_s14 = smov %s792_s8 }
 0x15c   : > { %s918_s15 = smov %s776_s5  ;;  %19 = sbr.rel (!%p17_p2) target bundleno = 6 (0x6), region = 85 }
 0x163   :  { %309 = vsyncpa [#allocation3], 1 }
 0x164   :  { %311 = vsyncpa [#allocation3 + $0x1], 1 }
 0x165   :  { %312 = vsyncpa [#allocation6], 1 }
 0x166   :  { %313 = vsyncpa [#allocation4], 1 }
 0x167   :  { %315 = vsyncpa [#allocation4 + $0x1], 1 }

// kernel: audio_ae1d_forward.26
= control target key start
LH: loop header
LB: loop body
LE: loop exit
PB: predicated region body
PF: predicated region fallthrough
CT: control target
= control target key end

     0   :  { %8 = vsyncpa [#allocation3], 0  ;;  %s1058_s0 = inlined_call_operand.hbm [shape: bf16[2,10,16], index: 0, kind: input, shape index: {}]   ;;  %s1059_s1 = inlined_call_operand.hbm [shape: bf16[3,16,8], index: 1, kind: input, shape index: {}]   ;;  %s1060_s2 = inlined_call_operand.hbm [shape: f32[1,8], index: 2, kind: input, shape index: {}]   ;;  %s1061_s3 = inlined_call_operand.hbm [shape: bf16[2,8,8], index: 3, kind: output, shape index: {}]  }
   0x1   :  { %10 = vsyncpa [#allocation3 + $0x1], 0 }
   0x2   :  { %11 = vsyncpa [#allocation6], 0 }
   0x3   :  { %12 = vsyncpa [#allocation4], 0 }
   0x4   :  { %14 = vsyncpa [#allocation4 + $0x1], 0  ;;  %s815_s12 = smov 0   ;;  %s817_s13 = smov 0  }
   0x5   :  { %s819_s14 = smov 0   ;;  %s821_s15 = smov 0  }
   0x6 LB: > { %s836_s16 = sadd.s32 4294967295, %s785_s15   ;;  %s504_s17 = sadd.s32 4294967294, %s785_s15   ;;  %s785_s15 = sphi %s821_s15, %s1081_s15   ;;  %s781_s14 = sphi %s819_s14, %s1080_s14   ;;  %s777_s13 = sphi %s817_s13, %s1079_s13   ;;  %s773_s12 = sphi %s815_s12, %s1078_s12  }
   0x7   : > { %p40_p0 = scmp.ne.s32.totalorder %s777_s13, %s773_s12  ;;  %p1062_p1 = scmp.eq.s32.totalorder %s836_s16, 0 }
   0x8   : > { %p112_p3 = scmp.eq.s32.totalorder %s504_s17, 1  ;;  %p505_p5 = scmp.ge.s32.totalorder %s785_s15, 1 }
   0x9   : > { %p845_p4 = por %p1062_p1, %p40_p0  ;;  %p119_p7 = scmp.lt.s32.totalorder %s785_s15, 3 }
   0xa   : > { %p850_p6 = por %p112_p3, %p40_p0  ;;  %s787_s21 = smov [#allocation5]  }
   0xb   : > { %s1065_s18 = scalar_select %p845_p4, 1, 0 }
   0xc   : > { %s1066_s19 = scalar_select %p850_p6, 1, 0 }
   0xd   : > { %p855_p8 = pnand %p505_p5, %p119_p7  ;;  %s131_s22 = sshll.u32 %s787_s21, 4  ;;  %s859_s22 = int_to_ptr.vmem [resolvable:$true] %s131_s22 }
   0xe   : > { %s788_s24 = smov [#allocation7]   ;;  %s629_s28 = scalar_lea.hbm %s1059_s1, 384 }
   0xf   : > { %p566_p9 = pneg %p855_p8  ;;  %s145_s25 = sshll.u32 %s788_s24, 4  ;;  %s870_s25 = int_to_ptr.vmem [resolvable:$true] %s145_s25 }
  0x10   : > { %p630_p12 = scmp.ne.s32.totalorder %s1059_s1, %s629_s28  ;;  %p636_p5 = scmp.lt.u32.totalorder %s629_s28, %s1059_s1 }
  0x11   : > { %p866_p11 = pnand %p566_p9, %p1062_p1 }
  0x13   : > { %p631_p13 = pneg %p866_p11 }
  0x15   : > { %p632_p0 = pnand %p631_p13, %p630_p12 }
  0x17   : > { %p633_p3 = pneg %p632_p0 }
  0x19   : > { %p638_p7 = pnand %p636_p5, %p633_p3 }
  0x1b   : > { %641 = shalt.err (!%p638_p7)
}
  0x1c   : > { %s642_s6 = scalar_lea.vmem %s859_s22, 384  ;;  %p650_p2 = scmp.lt.s32.totalorder %s859_s22, %s859_s22 }
  0x1d   : > { %p643_p9 = scmp.ne.s32.totalorder %s859_s22, %s642_s6  ;;  %p651_p12 = scmp.lt.s32.totalorder %s642_s6, %s642_s6 }
  0x1f   : > { %p645_p10 = pnand %p643_p9, %p631_p13  ;;  %p652_p0 = por %p651_p12, %p650_p2 }
  0x21   : > { %p646_p1 = pneg %p645_p10 }
  0x23   : > { %p653_p6 = pnand %p652_p0, %p646_p1 }
  0x25   : > { %656 = shalt.err (!%p653_p6)
}
  0x26   : > { %s789_s7 = smov 64   ;;  %s790_s8 = smov 4  }
  0x27   : > { %569 = dma.hbm_to_vmem [thread:$0]  (!%p866_p11), %s1059_s1, 384, %s859_s22, [#allocation6], %s789_s7, %s789_s7, %s790_s8  }
  0x28   : > { %s657_s21 = scalar_lea.hbm %s1060_s2, 16 }
  0x29   : > { %p658_p1 = scmp.ne.s32.totalorder %s1060_s2, %s657_s21  ;;  %p664_p10 = scmp.lt.u32.totalorder %s657_s21, %s1060_s2 }
  0x2b   : > { %p660_p2 = pnand %p658_p1, %p631_p13 }
  0x2d   : > { %p661_p6 = pneg %p660_p2 }
  0x2f   : > { %p666_p3 = pnand %p664_p10, %p661_p6 }
  0x31   : > { %669 = shalt.err (!%p666_p3)
}
  0x32   : > { %s670_s22 = scalar_lea.vmem %s870_s25, 16  ;;  %s677_s29 = scalar_lea.vmem %s870_s25, 32 }
  0x33   : > { %p671_p5 = scmp.ne.s32.totalorder %s870_s25, %s670_s22  ;;  %p678_p12 = scmp.lt.s32.totalorder %s870_s25, %s870_s25 }
  0x34   : > { %p679_p0 = scmp.lt.s32.totalorder %s677_s29, %s670_s22 }
  0x35   : > { %p673_p7 = pnand %p671_p5, %p631_p13 }
  0x36   : > { %p680_p1 = por %p679_p0, %p678_p12 }
  0x37   : > { %p674_p9 = pneg %p673_p7 }
  0x39   : > { %p681_p2 = pnand %p680_p1, %p674_p9 }
  0x3b   : > { %684 = shalt.err (!%p681_p2)
}
  0x3c   : > { %572 = dma.hbm_to_vmem [thread:$0]  (!%p866_p11), %s1060_s2, 16, %s870_s25, [#allocation6]  }
  0x3d   : > { %s929_s5 = sadd.s32 1, %s785_s15   ;;  %s27_s23 = sadd.s32 1, %s781_s14 }
  0x3e   : > { %s24_s6 = ssub.s32 %s785_s15, %s929_s5  ;;  %p34_p13 = scmp.ne.s32.totalorder %s781_s14, %s777_s13 }
  0x3f   : > { %p25_p6 = scmp.eq.s32.totalorder %s24_s6, 0  ;;  %p35_p10 = scmp.eq.s32.totalorder %s785_s15, 0 }
  0x40   : > { %p1069_p3 = scmp.eq.s32.totalorder %s836_s16, 1  ;;  %p583_p7 = scmp.lt.s32.totalorder %s785_s15, 2 }
  0x41   : > { %s945_s10 = scalar_select %p25_p6, %s781_s14, %s27_s23  }
  0x42   : > { %p939_p5 = por %p1069_p3, %p34_p13  ;;  %p36_p9 = por %p35_p10, %p34_p13 }
  0x43   : > { %s156_s11 = sand.u32 1, %s781_s14   ;;  %s529_s25 = sshll.u32 %s785_s15, 7 }
  0x44   : > { %s1070_s9 = scalar_select %p939_p5, 1, 0 }
  0x45   : > { %s509_s17 = sshll.u32 %s156_s11, 3  ;;  %s952_s26 = scalar_lea.hbm %s1058_s0, %s529_s25 }
  0x46   : > { %s160_s27 = scalar_lea.vmem [#allocation2], %s509_s17  ;;  %p956_p11 = pnand %p583_p7, %p36_p9 }
  0x47   : > { %s167_s28 = sshll.u32 %s160_s27, 4  ;;  %s960_s29 = scalar_lea.sflag [#allocation3], %s156_s11  ;;  %s954_s28 = int_to_ptr.vmem [resolvable:$true] %s167_s28 }
  0x48   : > { %s685_s30 = scalar_lea.hbm %s952_s26, 128  ;;  %p687_p0 = pneg %p956_p11 }
  0x49   : > { %p686_p12 = scmp.ne.s32.totalorder %s952_s26, %s685_s30  ;;  %s690_s6 = scalar_lea.hbm %s1058_s0, 256 }
  0x4a   : > { %p691_p13 = scmp.lt.u32.totalorder %s952_s26, %s1058_s0  ;;  %p692_p6 = scmp.lt.u32.totalorder %s690_s6, %s685_s30 }
  0x4b   : > { %p688_p1 = pnand %p687_p0, %p686_p12  ;;  %p694_p3 = scmp.lt.u32.totalorder %s685_s30, %s952_s26 }
  0x4c   : > { %p693_p10 = por %p692_p6, %p691_p13 }
  0x4d   : > { %p689_p2 = pneg %p688_p1 }
  0x4e   : > { %p695_p7 = por %p694_p3, %p693_p10 }
  0x50   : > { %p696_p9 = pnand %p695_p7, %p689_p2 }
  0x52   : > { %699 = shalt.err (!%p696_p9)
}
  0x53   : > { %s700_s11 = scalar_lea.vmem %s954_s28, 128  ;;  %s791_s21 = smov [#allocation2]  }
  0x54   : > { %p701_p12 = scmp.ne.s32.totalorder %s954_s28, %s700_s11  ;;  %s705_s24 = sshll.u32 %s791_s21, 4  ;;  %s706_s24 = int_to_ptr.vmem [resolvable:$false] %s705_s24 }
  0x55   : > { %s707_s27 = scalar_lea.vmem %s706_s24, 256  ;;  %p708_p4 = scmp.lt.s32.totalorder %s954_s28, %s706_s24 }
  0x56   : > { %p703_p1 = pnand %p701_p12, %p687_p0  ;;  %p709_p13 = scmp.lt.s32.totalorder %s707_s27, %s700_s11 }
  0x58   : > { %p704_p5 = pneg %p703_p1  ;;  %p710_p6 = por %p709_p13, %p708_p4 }
  0x5a   : > { %p711_p10 = pnand %p710_p6, %p704_p5 }
  0x5c   : > { %714 = shalt.err (!%p711_p10)
}
  0x5d   : > { %576 = dma.hbm_to_vmem [thread:$0]  (!%p956_p11), %s952_s26, 128, %s954_s28, %s960_s29, %s789_s7, %s789_s7, %s790_s8  }
  0x5e   : > { %179 = sbr.rel (%p855_p8) target bundleno = 357 (0x165), region = 32  ;;  %s994_s30 = sand.u32 (!%p855_p8), 1, %s777_s13  }
  0x5f   : > { %s513_s4 = sshll.u32 (!%p855_p8), %s994_s30, 3  ;;  %s182_s23 = scalar_lea.sflag (!%p855_p8), [#allocation3], %s994_s30 }
  0x60   : > { %s185_s6 = scalar_lea.vmem (!%p855_p8), [#allocation2], %s513_s4  ;;  %p1072_p4 = scmp.ne.s32.totalorder (!%p855_p8), %s1065_s18, 0 }
  0x65   : > { %760 = dma.done.wait (%p1072_p4), %s182_s23, 128  }
  0x66   : > { %762 = vsyncadd (%p1072_p4), %s182_s23, 4294967168  ;;  %p1073_p5 = scmp.eq.s32.totalorder %s836_s16, 0 }
  0x68   : > { %764 = dma.done.wait (%p1073_p5), [#allocation6], 400   ;;  %p1074_p11 = pmov %p1073_p5 }
  0x69   : > { %v792_v0 = vmov 0.0   ;;  %vm793_vm0 = vmmov 0   ;;  %v625_v1 = vld [vmem:[#allocation5 + $0x8] sm:$0xff]   ;;  %v626_v2 = vld [vmem:[#allocation5] sm:$0xff]   ;;  %v217_v3 = vld [vmem:[%s185_s6] sm:$0xf] }
  0x6a   : > { %766 = vsyncadd (%p1074_p11), [#allocation6], 4294966896  ;;  %536 = vmatprep.subr.bf16.mxu0 %v792_v0  ;;  %542 = vmatprep.subr.bf16.mxu1 %v792_v0  ;;  %v218_v4 = vld [vmem:[%s185_s6 + $0x4] sm:$0x1]  ;;  %vm242_vm1 = vcmask 130048   ;;  %s516_s18 = sshll.u32 %s994_s30, 2 }
  0x6b   : > { %538 = vmatprep.mubr.msk.bf16.mxu0 %vm793_vm0, %v792_v0  ;;  %544 = vmatprep.mubr.msk.bf16.mxu1 %vm793_vm0, %v792_v0  ;;  %v517_v5 = vcombine.low %v217_v3, %v218_v4  ;;  %v628_v9 = vld [vmem:[#allocation5 + $0x10] sm:$0xff]   ;;  %v524_v22 = vld [vmem:[#allocation7] ss:$0 sm:$0xff]  ;;  %s526_s20 = sshll.u32 %s836_s16, 6  ;;  %s215_s7 = scalar_lea.vmem [#allocation8], %s516_s18  ;;  %vm399_vm2 = vcmask 60416  }
  0x6c   : > { %537 = vmatpush3.bf16.msra.mxu0 %v625_v1  ;;  %543 = vmatpush3.bf16.msra.mxu1 %v626_v2  ;;  %s415_s8 = sshll.u32 %s215_s7, 4  ;;  %s1014_s22 = scalar_lea.hbm %s1061_s3, %s526_s20  ;;  %s1016_s8 = int_to_ptr.vmem [resolvable:$true] %s415_s8 }
  0x6d   : > { %548 = vmatprep.subr.bf16.mxu0 %v792_v0  ;;  %v230_v6 = vshrl.u32 %v517_v5, 16  ;;  %v232_v7 = vshll.u32 %v517_v5, 16  ;;  %v338_v11 = vrot.slane %v517_v5, 1  ;;  %s402_s29 = scalar_lea.sflag [#allocation4], %s994_s30  ;;  %s715_s17 = scalar_lea.vmem %s1016_s8, 64 }
  0x6e   : > { %p716_p8 = scmp.ne.s32.totalorder %s1016_s8, %s715_s17  ;;  %p1075_p0 = scmp.ne.s32.totalorder %s1070_s9, 0 }
  0x6f   : > { %545 = vmatmul.mubr.msk.bf16.vlgmr.msra.gmra.mrb[0].mxu1 %vm242_vm1, %v217_v3  ;;  %v234_v8 = vrot.slane %v232_v7, 1  ;;  %s794_s16 = smov [#allocation8]  }
  0x70   : > { %p717_p2 = pnand %p716_p8, %p1075_p0  ;;  %s719_s25 = sshll.u32 %s794_s16, 4  ;;  %s720_s25 = int_to_ptr.vmem [resolvable:$false] %s719_s25 }
  0x71   : > { %v235_v10 = vor.u32 %v234_v8, %v230_v6  ;;  %s721_s11 = scalar_lea.vmem %s720_s25, 128  ;;  %p722_p7 = scmp.lt.s32.totalorder %s1016_s8, %s720_s25 }
  0x72   : > { %p718_p3 = pneg %p717_p2  ;;  %p723_p9 = scmp.lt.s32.totalorder %s721_s11, %s715_s17 }
  0x73   : > { %539 = vmatmul.mubr.msk.bf16.vlgmr.msra.gmra.mrb[0].mxu0 %vm242_vm1, %v235_v10 }
  0x74   : > { %549 = vmatpush3.bf16.msra.mxu0 %v628_v9  ;;  %550 = vmatprep.mubr.msk.bf16.mxu0 %vm793_vm0, %v792_v0  ;;  %p724_p12 = por %p723_p9, %p722_p7 }
  0x76   : > { %p725_p1 = pnand %p724_p12, %p718_p3 }
  0x7b   : > { %551 = vmatmul.mubr.msk.bf16.vlgmr.msra.gmra.mrb[4].mxu0 %vm242_vm1, %v338_v11 }
 0x142   : > { %v329_v12 = vpop.f32.mrb[0].mxu1 }
 0x143   : > { %v546_v13 = vpop.f32.mrb[1].mxu1 }
 0x144   : > { %v332_v14 = vpop.f32.mrb[2].mxu1 }
 0x145   : > { %v547_v15 = vpop.f32.mrb[3].mxu1 }
 0x146   : > { %v280_v16 = vpop.f32.mrb[0].mxu0 }
 0x147   : > { %v330_v17 = vadd.f32 %v329_v12, %v280_v16  ;;  %v540_v18 = vpop.f32.mrb[1].mxu0 }
 0x148   : > { %v283_v19 = vpop.f32.mrb[2].mxu0 }
 0x149   : > { %v541_v20 = vpop.f32.mrb[3].mxu0 }
 0x14e   : > { %v382_v21 = vpop.f32.mrb[4].mxu0 }
 0x14f   : > { %v388_v23 = vadd.f32 %v382_v21, %v330_v17  ;;  %v552_v24 = vpop.f32.mrb[5].mxu0 }
 0x150   : > { %v385_v25 = vpop.f32.mrb[6].mxu0 }
 0x151   : > { %v396_v26 = vadd.f32 %v524_v22, %v388_v23  ;;  %v553_v27 = vpop.f32.mrb[7].mxu0 }
 0x153   : > { %v397_v28 = vmax.f32 %v396_v26, 0.0 }
 0x155   : > { %v398_v29 = vpack.c.bf16 %v397_v28, %v397_v28 }
 0x157   : > { %400 = vst.msk [vmem:[%s215_s7] sm:$0xf] %vm399_vm2, %v398_v29 }
 0x158   : > { %728 = shalt.err (!%p725_p1)
}
 0x159   : > { %s729_s21 = scalar_lea.hbm %s1014_s22, 64  ;;  %s733_s30 = scalar_lea.hbm %s1061_s3, 128 }
 0x15a   : > { %p730_p13 = scmp.ne.s32.totalorder %s1014_s22, %s729_s21  ;;  %p734_p4 = scmp.lt.u32.totalorder %s1014_s22, %s1061_s3 }
 0x15b   : > { %p735_p5 = scmp.lt.u32.totalorder %s733_s30, %s729_s21  ;;  %p737_p8 = scmp.lt.u32.totalorder %s729_s21, %s1014_s22 }
 0x15c   : > { %p731_p6 = pnand %p730_p13, %p1075_p0 }
 0x15d   : > { %p736_p11 = por %p735_p5, %p734_p4 }
 0x15e   : > { %p732_p10 = pneg %p731_p6 }
 0x15f   : > { %p738_p2 = por %p737_p8, %p736_p11 }
 0x161   : > { %p739_p3 = pnand %p738_p2, %p732_p10 }
 0x163   : > { %742 = shalt.err (!%p739_p3)
}
 0x164   : > { %564 = dma.vmem_to_hbm [thread:$0]  (%p1075_p0), %s1016_s8, 64, %s1014_s22, %s402_s29  }
 0x165 PF: > { %s427_s6 = sand.u32 1, %s773_s12   ;;  %p1076_p7 = scmp.ne.s32.totalorder %s1066_s19, 0 }
 0x166   : > { %p1077_p9 = scmp.ge.s32.totalorder %s785_s15, 2  ;;  %s428_s18 = scalar_lea.sflag [#allocation4], %s427_s6 }
 0x168   : > { %p578_p12 = pnand %p1077_p9, %p1076_p7 }
 0x16a   : > { %768 = dma.done.wait (!%p578_p12), %s428_s18, 64  }
 0x16b   : > { %770 = vsyncadd (!%p578_p12), %s428_s18, 4294967232  ;;  %p17_p1 = scmp.ge.s32.totalorder %s929_s5, 4   ;;  %s1078_s12 = smov %s777_s13 }
 0x16c   : > { %s1079_s13 = smov %s781_s14  ;;  %s1080_s14 = smov %s945_s10 }
 0x16d   : > { %s1081_s15 = smov %s929_s5  ;;  %19 = sbr.rel (!%p17_p1) target bundleno = 6 (0x6), region = 87 }
 0x174   :  { %433 = vsyncpa [#allocation3], 1 }
 0x175   :  { %435 = vsyncpa [#allocation3 + $0x1], 1 }
 0x176   :  { %436 = vsyncpa [#allocation6], 1 }
 0x177   :  { %437 = vsyncpa [#allocation4], 1 }
 0x178   :  { %439 = vsyncpa [#allocation4 + $0x1], 1 }

// kernel: audio_ae1d_forward.28
= control target key start
LH: loop header
LB: loop body
LE: loop exit
PB: predicated region body
PF: predicated region fallthrough
CT: control target
= control target key end

     0   :  { %8 = vsyncpa [#allocation3], 0  ;;  %s978_s0 = inlined_call_operand.hbm [shape: bf16[2,9,8], index: 0, kind: input, shape index: {}]   ;;  %s979_s1 = inlined_call_operand.hbm [shape: bf16[2,8,8], index: 1, kind: input, shape index: {}]   ;;  %s980_s2 = inlined_call_operand.hbm [shape: f32[1,8], index: 2, kind: input, shape index: {}]   ;;  %s981_s3 = inlined_call_operand.hbm [shape: bf16[2,8,8], index: 3, kind: output, shape index: {}]  }
   0x1   :  { %10 = vsyncpa [#allocation3 + $0x1], 0 }
   0x2   :  { %11 = vsyncpa [#allocation6], 0 }
   0x3   :  { %12 = vsyncpa [#allocation4], 0 }
   0x4   :  { %14 = vsyncpa [#allocation4 + $0x1], 0  ;;  %s738_s12 = smov 0   ;;  %s740_s13 = smov 0  }
   0x5   :  { %s742_s14 = smov 0   ;;  %s744_s15 = smov 0  }
   0x6 LB: > { %s759_s16 = sadd.s32 4294967295, %s708_s15   ;;  %s442_s17 = sadd.s32 4294967294, %s708_s15   ;;  %s708_s15 = sphi %s744_s15, %s1001_s15   ;;  %s704_s14 = sphi %s742_s14, %s1000_s14   ;;  %s700_s13 = sphi %s740_s13, %s999_s13   ;;  %s696_s12 = sphi %s738_s12, %s998_s12  }
   0x7   : > { %p40_p0 = scmp.ne.s32.totalorder %s700_s13, %s696_s12  ;;  %p982_p1 = scmp.eq.s32.totalorder %s759_s16, 0 }
   0x8   : > { %p112_p3 = scmp.eq.s32.totalorder %s442_s17, 1  ;;  %p443_p5 = scmp.ge.s32.totalorder %s708_s15, 1 }
   0x9   : > { %p768_p4 = por %p982_p1, %p40_p0  ;;  %p119_p7 = scmp.lt.s32.totalorder %s708_s15, 3 }
   0xa   : > { %p773_p6 = por %p112_p3, %p40_p0  ;;  %s710_s21 = smov [#allocation5]  }
   0xb   : > { %s985_s18 = scalar_select %p768_p4, 1, 0 }
   0xc   : > { %s986_s19 = scalar_select %p773_p6, 1, 0 }
   0xd   : > { %p778_p8 = pnand %p443_p5, %p119_p7  ;;  %s131_s22 = sshll.u32 %s710_s21, 4  ;;  %s782_s22 = int_to_ptr.vmem [resolvable:$true] %s131_s22 }
   0xe   : > { %s711_s24 = smov [#allocation7]   ;;  %s552_s28 = scalar_lea.hbm %s979_s1, 128 }
   0xf   : > { %p492_p9 = pneg %p778_p8  ;;  %s145_s25 = sshll.u32 %s711_s24, 4  ;;  %s793_s25 = int_to_ptr.vmem [resolvable:$true] %s145_s25 }
  0x10   : > { %p553_p12 = scmp.ne.s32.totalorder %s979_s1, %s552_s28  ;;  %p559_p5 = scmp.lt.u32.totalorder %s552_s28, %s979_s1 }
  0x11   : > { %p789_p11 = pnand %p492_p9, %p982_p1 }
  0x13   : > { %p554_p13 = pneg %p789_p11 }
  0x15   : > { %p555_p0 = pnand %p554_p13, %p553_p12 }
  0x17   : > { %p556_p3 = pneg %p555_p0 }
  0x19   : > { %p561_p7 = pnand %p559_p5, %p556_p3 }
  0x1b   : > { %564 = shalt.err (!%p561_p7)
}
  0x1c   : > { %s565_s6 = scalar_lea.vmem %s782_s22, 128  ;;  %p573_p2 = scmp.lt.s32.totalorder %s782_s22, %s782_s22 }
  0x1d   : > { %p566_p9 = scmp.ne.s32.totalorder %s782_s22, %s565_s6  ;;  %p574_p12 = scmp.lt.s32.totalorder %s565_s6, %s565_s6 }
  0x1f   : > { %p568_p10 = pnand %p566_p9, %p554_p13  ;;  %p575_p0 = por %p574_p12, %p573_p2 }
  0x21   : > { %p569_p1 = pneg %p568_p10 }
  0x23   : > { %p576_p6 = pnand %p575_p0, %p569_p1 }
  0x25   : > { %579 = shalt.err (!%p576_p6)
}
  0x26   : > { %s712_s7 = smov 64   ;;  %s713_s8 = smov 4  }
  0x27   : > { %495 = dma.hbm_to_vmem [thread:$0]  (!%p789_p11), %s979_s1, 128, %s782_s22, [#allocation6], %s712_s7, %s712_s7, %s713_s8  }
  0x28   : > { %s580_s21 = scalar_lea.hbm %s980_s2, 16 }
  0x29   : > { %p581_p1 = scmp.ne.s32.totalorder %s980_s2, %s580_s21  ;;  %p587_p10 = scmp.lt.u32.totalorder %s580_s21, %s980_s2 }
  0x2b   : > { %p583_p2 = pnand %p581_p1, %p554_p13 }
  0x2d   : > { %p584_p6 = pneg %p583_p2 }
  0x2f   : > { %p589_p3 = pnand %p587_p10, %p584_p6 }
  0x31   : > { %592 = shalt.err (!%p589_p3)
}
  0x32   : > { %s593_s22 = scalar_lea.vmem %s793_s25, 16  ;;  %s600_s29 = scalar_lea.vmem %s793_s25, 32 }
  0x33   : > { %p594_p5 = scmp.ne.s32.totalorder %s793_s25, %s593_s22  ;;  %p601_p12 = scmp.lt.s32.totalorder %s793_s25, %s793_s25 }
  0x34   : > { %p602_p0 = scmp.lt.s32.totalorder %s600_s29, %s593_s22 }
  0x35   : > { %p596_p7 = pnand %p594_p5, %p554_p13 }
  0x36   : > { %p603_p1 = por %p602_p0, %p601_p12 }
  0x37   : > { %p597_p9 = pneg %p596_p7 }
  0x39   : > { %p604_p2 = pnand %p603_p1, %p597_p9 }
  0x3b   : > { %607 = shalt.err (!%p604_p2)
}
  0x3c   : > { %498 = dma.hbm_to_vmem [thread:$0]  (!%p789_p11), %s980_s2, 16, %s793_s25, [#allocation6]  }
  0x3d   : > { %s852_s5 = sadd.s32 1, %s708_s15   ;;  %s27_s23 = sadd.s32 1, %s704_s14 }
  0x3e   : > { %s24_s6 = ssub.s32 %s708_s15, %s852_s5  ;;  %p34_p13 = scmp.ne.s32.totalorder %s704_s14, %s700_s13 }
  0x3f   : > { %p25_p6 = scmp.eq.s32.totalorder %s24_s6, 0  ;;  %p35_p10 = scmp.eq.s32.totalorder %s708_s15, 0 }
  0x40   : > { %p989_p3 = scmp.eq.s32.totalorder %s759_s16, 1  ;;  %p509_p7 = scmp.lt.s32.totalorder %s708_s15, 2 }
  0x41   : > { %s868_s10 = scalar_select %p25_p6, %s704_s14, %s27_s23  }
  0x42   : > { %p862_p5 = por %p989_p3, %p34_p13  ;;  %p36_p9 = por %p35_p10, %p34_p13 }
  0x43   : > { %s156_s11 = sand.u32 1, %s704_s14   ;;  %s463_s25 = sshll.u32 %s708_s15, 7 }
  0x44   : > { %s990_s9 = scalar_select %p862_p5, 1, 0 }
  0x45   : > { %s447_s17 = sshll.u32 %s156_s11, 3  ;;  %s875_s26 = scalar_lea.hbm %s978_s0, %s463_s25 }
  0x46   : > { %s160_s27 = scalar_lea.vmem [#allocation2], %s447_s17  ;;  %p879_p11 = pnand %p509_p7, %p36_p9 }
  0x47   : > { %s167_s28 = sshll.u32 %s160_s27, 4  ;;  %s883_s29 = scalar_lea.sflag [#allocation3], %s156_s11  ;;  %s877_s28 = int_to_ptr.vmem [resolvable:$true] %s167_s28 }
  0x48   : > { %s608_s30 = scalar_lea.hbm %s875_s26, 128  ;;  %p610_p0 = pneg %p879_p11 }
  0x49   : > { %p609_p12 = scmp.ne.s32.totalorder %s875_s26, %s608_s30  ;;  %s613_s6 = scalar_lea.hbm %s978_s0, 256 }
  0x4a   : > { %p614_p13 = scmp.lt.u32.totalorder %s875_s26, %s978_s0  ;;  %p615_p6 = scmp.lt.u32.totalorder %s613_s6, %s608_s30 }
  0x4b   : > { %p611_p1 = pnand %p610_p0, %p609_p12  ;;  %p617_p3 = scmp.lt.u32.totalorder %s608_s30, %s875_s26 }
  0x4c   : > { %p616_p10 = por %p615_p6, %p614_p13 }
  0x4d   : > { %p612_p2 = pneg %p611_p1 }
  0x4e   : > { %p618_p7 = por %p617_p3, %p616_p10 }
  0x50   : > { %p619_p9 = pnand %p618_p7, %p612_p2 }
  0x52   : > { %622 = shalt.err (!%p619_p9)
}
  0x53   : > { %s623_s11 = scalar_lea.vmem %s877_s28, 128  ;;  %s714_s21 = smov [#allocation2]  }
  0x54   : > { %p624_p12 = scmp.ne.s32.totalorder %s877_s28, %s623_s11  ;;  %s628_s24 = sshll.u32 %s714_s21, 4  ;;  %s629_s24 = int_to_ptr.vmem [resolvable:$false] %s628_s24 }
  0x55   : > { %s630_s27 = scalar_lea.vmem %s629_s24, 256  ;;  %p631_p4 = scmp.lt.s32.totalorder %s877_s28, %s629_s24 }
  0x56   : > { %p626_p1 = pnand %p624_p12, %p610_p0  ;;  %p632_p13 = scmp.lt.s32.totalorder %s630_s27, %s623_s11 }
  0x58   : > { %p627_p5 = pneg %p626_p1  ;;  %p633_p6 = por %p632_p13, %p631_p4 }
  0x5a   : > { %p634_p10 = pnand %p633_p6, %p627_p5 }
  0x5c   : > { %637 = shalt.err (!%p634_p10)
}
  0x5d   : > { %502 = dma.hbm_to_vmem [thread:$0]  (!%p879_p11), %s875_s26, 128, %s877_s28, %s883_s29, %s712_s7, %s712_s7, %s713_s8  }
  0x5e   : > { %179 = sbr.rel (%p778_p8) target bundleno = 348 (0x15c), region = 32  ;;  %s917_s30 = sand.u32 (!%p778_p8), 1, %s700_s13  }
  0x5f   : > { %s451_s4 = sshll.u32 (!%p778_p8), %s917_s30, 3  ;;  %s182_s23 = scalar_lea.sflag (!%p778_p8), [#allocation3], %s917_s30 }
  0x60   : > { %s185_s6 = scalar_lea.vmem (!%p778_p8), [#allocation2], %s451_s4  ;;  %p992_p4 = scmp.ne.s32.totalorder (!%p778_p8), %s985_s18, 0 }
  0x65   : > { %683 = dma.done.wait (%p992_p4), %s182_s23, 128  }
  0x66   : > { %685 = vsyncadd (%p992_p4), %s182_s23, 4294967168  ;;  %p993_p5 = scmp.eq.s32.totalorder %s759_s16, 0 }
  0x68   : > { %687 = dma.done.wait (%p993_p5), [#allocation6], 144   ;;  %p994_p11 = pmov %p993_p5 }
  0x69   : > { %v715_v0 = vmov 0.0   ;;  %vm716_vm0 = vmmov 0   ;;  %vm238_vm1 = vcmask 1043456   ;;  %v219_v1 = vld [vmem:[#allocation5] sm:$0xf]  ;;  %vm234_vm2 = vcmask 64512  }
  0x6a   : > { %689 = vsyncadd (%p994_p11), [#allocation6], 4294967152  ;;  %474 = vmatprep.subr.bf16.mxu1 %v715_v0  ;;  %468 = vmatprep.subr.bf16.mxu0 %v715_v0  ;;  %v221_v2 = vld [vmem:[#allocation5 + $0x4] sm:$0xf]  ;;  %v217_v3 = vld [vmem:[%s185_s6] sm:$0xf] }
  0x6b   : > { %476 = vmatprep.mubr.msk.bf16.mxu1 %vm716_vm0, %v715_v0  ;;  %470 = vmatprep.mubr.msk.bf16.mxu0 %vm716_vm0, %v715_v0  ;;  %v286_v4 = vsel %vm238_vm1, %v219_v1, 0  ;;  %v240_v5 = vsel %vm238_vm1, %v221_v2, 0  ;;  %v218_v6 = vld [vmem:[%s185_s6 + $0x4] sm:$0x1]  ;;  %s454_s18 = sshll.u32 %s917_s30, 2  ;;  %s460_s20 = sshll.u32 %s759_s16, 6 }
  0x6c   : > { %475 = vmatpush3.bf16.msra.mxu1 %v286_v4  ;;  %469 = vmatpush3.bf16.msra.mxu0 %v240_v5  ;;  %v455_v7 = vcombine.low %v217_v3, %v218_v6  ;;  %v458_v17 = vld [vmem:[#allocation7] ss:$0 sm:$0xff]  ;;  %s215_s7 = scalar_lea.vmem [#allocation8], %s454_s18  ;;  %vm337_vm3 = vcmask 60416   ;;  %s934_s22 = scalar_lea.hbm %s981_s3, %s460_s20 }
  0x6d   : > { %s353_s8 = sshll.u32 %s215_s7, 4  ;;  %s340_s29 = scalar_lea.sflag [#allocation4], %s917_s30  ;;  %s936_s8 = int_to_ptr.vmem [resolvable:$true] %s353_s8 }
  0x6e   : > { %v228_v8 = vshrl.u32 %v455_v7, 16  ;;  %v230_v9 = vshll.u32 %v455_v7, 16  ;;  %s638_s17 = scalar_lea.vmem %s936_s8, 64  ;;  %p995_p0 = scmp.ne.s32.totalorder %s990_s9, 0 }
  0x6f   : > { %477 = vmatmul.mubr.msk.bf16.vlgmr.msra.gmra.mrb[0].mxu1 %vm234_vm2, %v217_v3  ;;  %p639_p8 = scmp.ne.s32.totalorder %s936_s8, %s638_s17  ;;  %s717_s16 = smov [#allocation8]  }
  0x70   : > { %v232_v10 = vrot.slane %v230_v9, 1  ;;  %s642_s25 = sshll.u32 %s717_s16, 4  ;;  %s643_s25 = int_to_ptr.vmem [resolvable:$false] %s642_s25 }
  0x71   : > { %p640_p2 = pnand %p639_p8, %p995_p0  ;;  %s644_s11 = scalar_lea.vmem %s643_s25, 128 }
  0x72   : > { %v233_v11 = vor.u32 %v232_v10, %v228_v8  ;;  %p645_p7 = scmp.lt.s32.totalorder %s936_s8, %s643_s25  ;;  %p646_p9 = scmp.lt.s32.totalorder %s644_s11, %s638_s17 }
  0x73   : > { %p641_p3 = pneg %p640_p2 }
  0x74   : > { %471 = vmatmul.mubr.msk.bf16.vlgmr.msra.gmra.mrb[0].mxu0 %vm234_vm2, %v233_v11  ;;  %p647_p12 = por %p646_p9, %p645_p7 }
  0x76   : > { %p648_p1 = pnand %p647_p12, %p641_p3 }
 0x142   : > { %v322_v12 = vpop.f32.mrb[0].mxu1 }
 0x143   : > { %v478_v13 = vpop.f32.mrb[1].mxu1 }
 0x144   : > { %v325_v14 = vpop.f32.mrb[2].mxu1 }
 0x145   : > { %v479_v15 = vpop.f32.mrb[3].mxu1 }
 0x147   : > { %v276_v16 = vpop.f32.mrb[0].mxu0 }
 0x148   : > { %v323_v18 = vadd.f32 %v322_v12, %v276_v16  ;;  %v472_v19 = vpop.f32.mrb[1].mxu0 }
 0x149   : > { %v279_v20 = vpop.f32.mrb[2].mxu0 }
 0x14a   : > { %v335_v21 = vadd.f32 %v458_v17, %v323_v18  ;;  %v473_v22 = vpop.f32.mrb[3].mxu0 }
 0x14c   : > { %v336_v23 = vpack.c.bf16 %v335_v21, %v335_v21 }
 0x14e   : > { %338 = vst.msk [vmem:[%s215_s7] sm:$0xf] %vm337_vm3, %v336_v23 }
 0x14f   : > { %651 = shalt.err (!%p648_p1)
}
 0x150   : > { %s652_s21 = scalar_lea.hbm %s934_s22, 64  ;;  %s656_s30 = scalar_lea.hbm %s981_s3, 128 }
 0x151   : > { %p653_p13 = scmp.ne.s32.totalorder %s934_s22, %s652_s21  ;;  %p657_p4 = scmp.lt.u32.totalorder %s934_s22, %s981_s3 }
 0x152   : > { %p658_p5 = scmp.lt.u32.totalorder %s656_s30, %s652_s21  ;;  %p660_p8 = scmp.lt.u32.totalorder %s652_s21, %s934_s22 }
 0x153   : > { %p654_p6 = pnand %p653_p13, %p995_p0 }
 0x154   : > { %p659_p11 = por %p658_p5, %p657_p4 }
 0x155   : > { %p655_p10 = pneg %p654_p6 }
 0x156   : > { %p661_p2 = por %p660_p8, %p659_p11 }
 0x158   : > { %p662_p3 = pnand %p661_p2, %p655_p10 }
 0x15a   : > { %665 = shalt.err (!%p662_p3)
}
 0x15b   : > { %490 = dma.vmem_to_hbm [thread:$0]  (%p995_p0), %s936_s8, 64, %s934_s22, %s340_s29  }
 0x15c PF: > { %s365_s6 = sand.u32 1, %s696_s12   ;;  %p996_p7 = scmp.ne.s32.totalorder %s986_s19, 0 }
 0x15d   : > { %p997_p9 = scmp.ge.s32.totalorder %s708_s15, 2  ;;  %s366_s18 = scalar_lea.sflag [#allocation4], %s365_s6 }
 0x15f   : > { %p504_p12 = pnand %p997_p9, %p996_p7 }
 0x161   : > { %691 = dma.done.wait (!%p504_p12), %s366_s18, 64  }
 0x162   : > { %693 = vsyncadd (!%p504_p12), %s366_s18, 4294967232  ;;  %p17_p1 = scmp.ge.s32.totalorder %s852_s5, 4   ;;  %s998_s12 = smov %s700_s13 }
 0x163   : > { %s999_s13 = smov %s704_s14  ;;  %s1000_s14 = smov %s868_s10 }
 0x164   : > { %s1001_s15 = smov %s852_s5  ;;  %19 = sbr.rel (!%p17_p1) target bundleno = 6 (0x6), region = 86 }
 0x16b   :  { %371 = vsyncpa [#allocation3], 1 }
 0x16c   :  { %373 = vsyncpa [#allocation3 + $0x1], 1 }
 0x16d   :  { %374 = vsyncpa [#allocation6], 1 }
 0x16e   :  { %375 = vsyncpa [#allocation4], 1 }
 0x16f   :  { %377 = vsyncpa [#allocation4 + $0x1], 1 }

// kernel: audio_ae1d_forward.27
= control target key start
LH: loop header
LB: loop body
LE: loop exit
PB: predicated region body
PF: predicated region fallthrough
CT: control target
= control target key end

     0   :  { %8 = vsyncpa [#allocation3], 0  ;;  %s880_s0 = inlined_call_operand.hbm [shape: bf16[2,8,8], index: 0, kind: input, shape index: {}]   ;;  %s881_s1 = inlined_call_operand.hbm [shape: bf16[1,8,8], index: 1, kind: input, shape index: {}]   ;;  %s882_s2 = inlined_call_operand.hbm [shape: f32[1,8], index: 2, kind: input, shape index: {}]   ;;  %s883_s3 = inlined_call_operand.hbm [shape: bf16[2,8,8], index: 3, kind: output, shape index: {}]  }
   0x1   :  { %10 = vsyncpa [#allocation3 + $0x1], 0 }
   0x2   :  { %11 = vsyncpa [#allocation6], 0 }
   0x3   :  { %12 = vsyncpa [#allocation4], 0 }
   0x4   :  { %14 = vsyncpa [#allocation4 + $0x1], 0  ;;  %s654_s12 = smov 0   ;;  %s656_s13 = smov 0  }
   0x5   :  { %s658_s14 = smov 0   ;;  %s660_s15 = smov 0  }
   0x6 LB: > { %s675_s16 = sadd.s32 4294967295, %s626_s15   ;;  %s375_s17 = sadd.s32 4294967294, %s626_s15   ;;  %s626_s15 = sphi %s660_s15, %s903_s15   ;;  %s622_s14 = sphi %s658_s14, %s902_s14   ;;  %s618_s13 = sphi %s656_s13, %s901_s13   ;;  %s614_s12 = sphi %s654_s12, %s900_s12  }
   0x7   : > { %p40_p0 = scmp.ne.s32.totalorder %s618_s13, %s614_s12  ;;  %p884_p1 = scmp.eq.s32.totalorder %s675_s16, 0 }
   0x8   : > { %p112_p3 = scmp.eq.s32.totalorder %s375_s17, 1  ;;  %p376_p5 = scmp.ge.s32.totalorder %s626_s15, 1 }
   0x9   : > { %p684_p4 = por %p884_p1, %p40_p0  ;;  %p119_p7 = scmp.lt.s32.totalorder %s626_s15, 3 }
   0xa   : > { %p689_p6 = por %p112_p3, %p40_p0  ;;  %s628_s21 = smov [#allocation5]  }
   0xb   : > { %s887_s18 = scalar_select %p684_p4, 1, 0 }
   0xc   : > { %s888_s19 = scalar_select %p689_p6, 1, 0 }
   0xd   : > { %p694_p8 = pnand %p376_p5, %p119_p7  ;;  %s132_s22 = sshll.u32 %s628_s21, 4  ;;  %s133_s22 = int_to_ptr.vmem [resolvable:$true] %s132_s22 }
   0xe   : > { %s629_s23 = smov [#allocation7]   ;;  %s710_s26 = sadd.s32 1, %s626_s15  }
   0xf   : > { %s889_s20 = scalar_select %p694_p8, 1, 0 }
  0x10   : > { %p413_p10 = pneg %p694_p8  ;;  %s143_s24 = sshll.u32 %s629_s23, 4  ;;  %s707_s24 = int_to_ptr.vmem [resolvable:$true] %s143_s24 }
  0x11   : > { %s24_s27 = ssub.s32 %s626_s15, %s710_s26  ;;  %s470_s30 = scalar_lea.hbm %s881_s1, 64 }
  0x12   : > { %p703_p11 = pnand %p413_p10, %p884_p1  ;;  %p471_p12 = scmp.ne.s32.totalorder %s881_s1, %s470_s30 }
  0x13   : > { %p477_p5 = scmp.lt.u32.totalorder %s470_s30, %s881_s1 }
  0x14   : > { %p472_p13 = pneg %p703_p11 }
  0x16   : > { %p473_p0 = pnand %p472_p13, %p471_p12 }
  0x18   : > { %p474_p3 = pneg %p473_p0 }
  0x1a   : > { %p479_p7 = pnand %p477_p5, %p474_p3 }
  0x1c   : > { %482 = shalt.err (!%p479_p7)
}
  0x1d   : > { %s483_s8 = scalar_lea.vmem %s133_s22, 64  ;;  %p491_p2 = scmp.lt.s32.totalorder %s133_s22, %s133_s22 }
  0x1e   : > { %p484_p10 = scmp.ne.s32.totalorder %s133_s22, %s483_s8  ;;  %p492_p6 = scmp.lt.s32.totalorder %s483_s8, %s483_s8 }
  0x20   : > { %p486_p9 = pnand %p484_p10, %p472_p13  ;;  %p493_p4 = por %p492_p6, %p491_p2 }
  0x22   : > { %p487_p1 = pneg %p486_p9 }
  0x24   : > { %p494_p8 = pnand %p493_p4, %p487_p1 }
  0x26   : > { %497 = shalt.err (!%p494_p8)
}
  0x27   : > { %416 = dma.hbm_to_vmem [thread:$0]  (!%p703_p11), %s881_s1, 64, %s133_s22, [#allocation6]  }
  0x28   : > { %s498_s21 = scalar_lea.hbm %s882_s2, 16 }
  0x29   : > { %p499_p9 = scmp.ne.s32.totalorder %s882_s2, %s498_s21  ;;  %p505_p4 = scmp.lt.u32.totalorder %s498_s21, %s882_s2 }
  0x2b   : > { %p501_p2 = pnand %p499_p9, %p472_p13 }
  0x2d   : > { %p502_p1 = pneg %p501_p2 }
  0x2f   : > { %p507_p6 = pnand %p505_p4, %p502_p1 }
  0x31   : > { %510 = shalt.err (!%p507_p6)
}
  0x32   : > { %s511_s22 = scalar_lea.vmem %s707_s24, 16  ;;  %s518_s4 = scalar_lea.vmem %s707_s24, 32 }
  0x33   : > { %p512_p8 = scmp.ne.s32.totalorder %s707_s24, %s511_s22  ;;  %p519_p3 = scmp.lt.s32.totalorder %s707_s24, %s707_s24 }
  0x34   : > { %p520_p5 = scmp.lt.s32.totalorder %s518_s4, %s511_s22 }
  0x35   : > { %p514_p12 = pnand %p512_p8, %p472_p13 }
  0x36   : > { %p521_p7 = por %p520_p5, %p519_p3 }
  0x37   : > { %p515_p0 = pneg %p514_p12 }
  0x39   : > { %p522_p10 = pnand %p521_p7, %p515_p0 }
  0x3b   : > { %525 = shalt.err (!%p522_p10)
}
  0x3c   : > { %419 = dma.hbm_to_vmem [thread:$0]  (!%p703_p11), %s882_s2, 16, %s707_s24, [#allocation6]  }
  0x3d   : > { %p25_p13 = scmp.eq.s32.totalorder %s24_s27, 0  ;;  %s27_s7 = sadd.s32 1, %s622_s14 }
  0x3e   : > { %p34_p9 = scmp.ne.s32.totalorder %s622_s14, %s618_s13  ;;  %p35_p2 = scmp.eq.s32.totalorder %s626_s15, 0 }
  0x3f   : > { %s770_s25 = scalar_select %p25_p13, %s622_s14, %s27_s7  }
  0x40   : > { %p36_p1 = por %p35_p2, %p34_p9  ;;  %p891_p4 = scmp.eq.s32.totalorder %s675_s16, 1 }
  0x41   : > { %p430_p8 = scmp.lt.s32.totalorder %s626_s15, 2  ;;  %s154_s9 = sand.u32 1, %s622_s14  }
  0x42   : > { %p774_p6 = por %p891_p4, %p34_p9  ;;  %s380_s10 = sshll.u32 %s154_s9, 2 }
  0x43   : > { %s381_s11 = sshll.u32 %s626_s15, 6  ;;  %s158_s27 = scalar_lea.vmem [#allocation2], %s380_s10 }
  0x44   : > { %s784_s24 = scalar_lea.hbm %s880_s0, %s381_s11  ;;  %s165_s23 = sshll.u32 %s158_s27, 4  ;;  %s786_s23 = int_to_ptr.vmem [resolvable:$true] %s165_s23 }
  0x45   : > { %p788_p11 = pnand %p430_p8, %p36_p1  ;;  %s155_s29 = scalar_lea.sflag [#allocation3], %s154_s9 }
  0x46   : > { %s526_s30 = scalar_lea.hbm %s784_s24, 64  ;;  %s531_s5 = scalar_lea.hbm %s880_s0, 128 }
  0x47   : > { %p527_p12 = scmp.ne.s32.totalorder %s784_s24, %s526_s30  ;;  %p528_p0 = pneg %p788_p11 }
  0x48   : > { %p532_p7 = scmp.lt.u32.totalorder %s784_s24, %s880_s0  ;;  %p533_p10 = scmp.lt.u32.totalorder %s531_s5, %s526_s30 }
  0x49   : > { %p529_p3 = pnand %p528_p0, %p527_p12  ;;  %p535_p9 = scmp.lt.u32.totalorder %s526_s30, %s784_s24 }
  0x4a   : > { %p534_p13 = por %p533_p10, %p532_p7 }
  0x4b   : > { %p530_p5 = pneg %p529_p3 }
  0x4c   : > { %p536_p2 = por %p535_p9, %p534_p13 }
  0x4e   : > { %p537_p1 = pnand %p536_p2, %p530_p5 }
  0x50   : > { %540 = shalt.err (!%p537_p1)
}
  0x51   : > { %s541_s9 = scalar_lea.vmem %s786_s23, 64  ;;  %s630_s10 = smov [#allocation2]  }
  0x52   : > { %p542_p4 = scmp.ne.s32.totalorder %s786_s23, %s541_s9  ;;  %s546_s11 = sshll.u32 %s630_s10, 4  ;;  %s547_s11 = int_to_ptr.vmem [resolvable:$false] %s546_s11 }
  0x53   : > { %s548_s17 = scalar_lea.vmem %s547_s11, 128  ;;  %p549_p3 = scmp.lt.s32.totalorder %s786_s23, %s547_s11 }
  0x54   : > { %p544_p8 = pnand %p542_p4, %p528_p0  ;;  %p550_p7 = scmp.lt.s32.totalorder %s548_s17, %s541_s9 }
  0x56   : > { %p545_p12 = pneg %p544_p8  ;;  %p551_p10 = por %p550_p7, %p549_p3 }
  0x58   : > { %p552_p13 = pnand %p551_p10, %p545_p12 }
  0x5a   : > { %555 = shalt.err (!%p552_p13)
}
  0x5b   : > { %423 = dma.hbm_to_vmem [thread:$0]  (!%p788_p11), %s784_s24, 64, %s786_s23, %s155_s29  }
  0x5c   : > { %p894_p5 = scmp.ne.s32.totalorder %s889_s20, 0 }
  0x5d   : > { %s820_s21 = sand.u32 (!%p894_p5), 1, %s618_s13   ;;  %p895_p0 = scmp.ne.s32.totalorder (!%p894_p5), %s887_s18, 0 }
  0x5e   : > { %174 = sbr.rel (%p894_p5) target bundleno = 340 (0x154), region = 32  ;;  %s383_s27 = sshll.u32 (!%p894_p5), %s820_s21, 2 }
  0x5f   : > { %s177_s30 = scalar_lea.sflag (!%p894_p5), [#allocation3], %s820_s21  ;;  %s180_s22 = scalar_lea.vmem (!%p894_p5), [#allocation2], %s383_s27 }
  0x65   : > { %601 = dma.done.wait (%p895_p0), %s177_s30, 64  }
  0x66   : > { %603 = vsyncadd (%p895_p0), %s177_s30, 4294967232  ;;  %p896_p9 = scmp.eq.s32.totalorder %s675_s16, 0 }
  0x68   : > { %605 = dma.done.wait (%p896_p9), [#allocation6], 80   ;;  %p897_p11 = pmov %p896_p9 }
  0x69   : > { %v631_v0 = vmov 0.0   ;;  %vm632_vm0 = vmmov 0   ;;  %vm225_vm1 = vcmask 1043456   ;;  %v213_v1 = vld [vmem:[#allocation5] sm:$0xf]  ;;  %vm221_vm2 = vcmask 64512  }
  0x6a   : > { %607 = vsyncadd (%p897_p11), [#allocation6], 4294967216  ;;  %395 = vmatprep.subr.bf16.mxu0 %v631_v0  ;;  %397 = vmatprep.mubr.msk.bf16.mxu0 %vm632_vm0, %v631_v0  ;;  %v227_v2 = vsel %vm225_vm1, %v213_v1, 0  ;;  %v212_v3 = vld [vmem:[%s180_s22] sm:$0xf]  ;;  %s390_s18 = sshll.u32 %s675_s16, 6 }
  0x6b   : > { %396 = vmatpush3.bf16.msra.mxu0 %v227_v2  ;;  %v387_v4 = vld [vmem:[#allocation7] ss:$0 sm:$0xff]  ;;  %s210_s20 = scalar_lea.vmem [#allocation8], %s383_s27  ;;  %vm270_vm3 = vcmask 60416   ;;  %s836_s29 = scalar_lea.hbm %s883_s3, %s390_s18 }
  0x6c   : > { %s286_s24 = sshll.u32 %s210_s20, 4  ;;  %s273_s16 = scalar_lea.sflag [#allocation4], %s820_s21  ;;  %s838_s24 = int_to_ptr.vmem [resolvable:$true] %s286_s24 }
  0x6d   : > { %s556_s4 = scalar_lea.vmem %s838_s24, 64  ;;  %s633_s5 = smov [#allocation8]  }
  0x6e   : > { %398 = vmatmul.mubr.msk.bf16.vlgmr.msra.gmra.mrb[0].mxu0 %vm221_vm2, %v212_v3  ;;  %p557_p2 = scmp.ne.s32.totalorder %s838_s24, %s556_s4  ;;  %s560_s6 = sshll.u32 %s633_s5, 4  ;;  %s561_s6 = int_to_ptr.vmem [resolvable:$false] %s560_s6 }
  0x6f   : > { %s562_s7 = scalar_lea.vmem %s561_s6, 128  ;;  %p563_p8 = scmp.lt.s32.totalorder %s838_s24, %s561_s6 }
  0x70   : > { %p558_p1 = pnand %p557_p2, %p774_p6  ;;  %p564_p12 = scmp.lt.s32.totalorder %s562_s7, %s556_s4 }
  0x72   : > { %p559_p4 = pneg %p558_p1  ;;  %p565_p3 = por %p564_p12, %p563_p8 }
  0x74   : > { %p566_p7 = pnand %p565_p3, %p559_p4 }
 0x141   : > { %v263_v5 = vpop.f32.mrb[0].mxu0 }
 0x142   : > { %v264_v6 = vadd.f32 %v387_v4, %v263_v5  ;;  %v399_v7 = vpop.f32.mrb[1].mxu0 }
 0x143   : > { %v266_v8 = vpop.f32.mrb[2].mxu0 }
 0x144   : > { %v269_v9 = vpack.c.bf16 %v264_v6, %v264_v6  ;;  %v400_v10 = vpop.f32.mrb[3].mxu0 }
 0x146   : > { %271 = vst.msk [vmem:[%s210_s20] sm:$0xf] %vm270_vm3, %v269_v9 }
 0x147   : > { %569 = shalt.err (!%p566_p7)
}
 0x148   : > { %s570_s9 = scalar_lea.hbm %s836_s29, 64  ;;  %s574_s17 = scalar_lea.hbm %s883_s3, 128 }
 0x149   : > { %p571_p10 = scmp.ne.s32.totalorder %s836_s29, %s570_s9  ;;  %p575_p0 = scmp.lt.u32.totalorder %s836_s29, %s883_s3 }
 0x14a   : > { %p576_p9 = scmp.lt.u32.totalorder %s574_s17, %s570_s9  ;;  %p578_p2 = scmp.lt.u32.totalorder %s570_s9, %s836_s29 }
 0x14b   : > { %p572_p13 = pnand %p571_p10, %p774_p6 }
 0x14c   : > { %p577_p11 = por %p576_p9, %p575_p0 }
 0x14d   : > { %p573_p5 = pneg %p572_p13 }
 0x14e   : > { %p579_p1 = por %p578_p2, %p577_p11 }
 0x150   : > { %p580_p4 = pnand %p579_p1, %p573_p5 }
 0x152   : > { %583 = shalt.err (!%p580_p4)
}
 0x153   : > { %411 = dma.vmem_to_hbm [thread:$0]  (%p774_p6), %s838_s24, 64, %s836_s29, %s273_s16  }
 0x154 PF: > { %s298_s30 = sand.u32 1, %s614_s12   ;;  %p898_p8 = scmp.ne.s32.totalorder %s888_s19, 0 }
 0x155   : > { %p899_p12 = scmp.ge.s32.totalorder %s626_s15, 2  ;;  %s299_s22 = scalar_lea.sflag [#allocation4], %s298_s30 }
 0x157   : > { %p425_p3 = pnand %p899_p12, %p898_p8 }
 0x159   : > { %609 = dma.done.wait (!%p425_p3), %s299_s22, 64  }
 0x15a   : > { %611 = vsyncadd (!%p425_p3), %s299_s22, 4294967232  ;;  %p17_p7 = scmp.ge.s32.totalorder %s710_s26, 4   ;;  %s900_s12 = smov %s618_s13 }
 0x15b   : > { %s901_s13 = smov %s622_s14  ;;  %s902_s14 = smov %s770_s25 }
 0x15c   : > { %s903_s15 = smov %s710_s26  ;;  %19 = sbr.rel (!%p17_p7) target bundleno = 6 (0x6), region = 85 }
 0x163   :  { %304 = vsyncpa [#allocation3], 1 }
 0x164   :  { %306 = vsyncpa [#allocation3 + $0x1], 1 }
 0x165   :  { %307 = vsyncpa [#allocation6], 1 }
 0x166   :  { %308 = vsyncpa [#allocation4], 1 }
 0x167   :  { %310 = vsyncpa [#allocation4 + $0x1], 1 }

// kernel: audio_ae1d_forward.29
= control target key start
LH: loop header
LB: loop body
LE: loop exit
PB: predicated region body
PF: predicated region fallthrough
CT: control target
= control target key end

     0   :  { %8 = vsyncpa [#allocation3], 0  ;;  %s934_s0 = inlined_call_operand.hbm [shape: bf16[2,16,8], index: 0, kind: input, shape index: {}]   ;;  %s935_s1 = inlined_call_operand.hbm [shape: bf16[1,8,4], index: 1, kind: input, shape index: {}]   ;;  %s936_s2 = inlined_call_operand.hbm [shape: f32[1,4], index: 2, kind: input, shape index: {}]   ;;  %s937_s3 = inlined_call_operand.hbm [shape: f32[2,16,4], index: 3, kind: output, shape index: {}]  }
   0x1   :  { %10 = vsyncpa [#allocation3 + $0x1], 0 }
   0x2   :  { %11 = vsyncpa [#allocation6], 0 }
   0x3   :  { %12 = vsyncpa [#allocation4], 0 }
   0x4   :  { %14 = vsyncpa [#allocation4 + $0x1], 0  ;;  %s701_s12 = smov 0   ;;  %s703_s13 = smov 0  }
   0x5   :  { %s705_s14 = smov 0   ;;  %s707_s15 = smov 0  }
   0x6 LB: > { %s722_s16 = sadd.s32 4294967295, %s669_s15   ;;  %s400_s17 = sadd.s32 4294967294, %s669_s15   ;;  %s669_s15 = sphi %s707_s15, %s962_s15   ;;  %s665_s14 = sphi %s705_s14, %s961_s14   ;;  %s661_s13 = sphi %s703_s13, %s960_s13   ;;  %s657_s12 = sphi %s701_s12, %s959_s12  }
   0x7   : > { %s726_s18 = sadd.s32 1, %s669_s15   ;;  %s27_s19 = sadd.s32 1, %s665_s14 }
   0x8   : > { %s24_s20 = ssub.s32 %s669_s15, %s726_s18  ;;  %p34_p0 = scmp.ne.s32.totalorder %s665_s14, %s661_s13 }
   0x9   : > { %p25_p1 = scmp.eq.s32.totalorder %s24_s20, 0  ;;  %p35_p2 = scmp.eq.s32.totalorder %s669_s15, 0 }
   0xa   : > { %p40_p3 = scmp.ne.s32.totalorder %s661_s13, %s657_s12  ;;  %p938_p4 = scmp.eq.s32.totalorder %s722_s16, 0 }
   0xb   : > { %s738_s21 = scalar_select %p25_p1, %s665_s14, %s27_s19  }
   0xc   : > { %p740_p5 = por %p35_p2, %p34_p0  ;;  %p746_p6 = por %p938_p4, %p40_p3 }
   0xd   : > { %p106_p7 = scmp.eq.s32.totalorder %s722_s16, 1  ;;  %p112_p8 = scmp.eq.s32.totalorder %s400_s17, 1 }
   0xe   : > { %s944_s23 = scalar_select %p746_p6, 1, 0 }
   0xf   : > { %p401_p9 = scmp.ge.s32.totalorder %s669_s15, 1  ;;  %p119_p10 = scmp.lt.s32.totalorder %s669_s15, 3 }
  0x10   : > { %p753_p11 = por %p106_p7, %p34_p0  ;;  %p757_p12 = por %p112_p8, %p40_p3 }
  0x11   : > { %p761_p13 = pnand %p401_p9, %p119_p10  ;;  %s671_s27 = smov [#allocation5]  }
  0x12   : > { %s945_s24 = scalar_select %p753_p11, 1, 0 }
  0x13   : > { %s946_s25 = scalar_select %p757_p12, 1, 0 }
  0x14   : > { %s947_s26 = scalar_select %p761_p13, 1, 0 }
  0x15   : > { %p443_p2 = pneg %p761_p13  ;;  %s132_s28 = sshll.u32 %s671_s27, 4  ;;  %s133_s28 = int_to_ptr.vmem [resolvable:$true] %s132_s28 }
  0x16   : > { %p460_p4 = scmp.lt.s32.totalorder %s669_s15, 2  ;;  %p948_p0 = scmp.eq.s32.totalorder %s722_s16, 0 }
  0x17   : > { %s672_s4 = smov [#allocation7]   ;;  %s513_s8 = scalar_lea.hbm %s935_s1, 64 }
  0x18   : > { %p771_p7 = pnand %p443_p2, %p948_p0  ;;  %p777_p3 = pnand %p460_p4, %p740_p5 }
  0x19   : > { %s143_s5 = sshll.u32 %s672_s4, 4  ;;  %p514_p8 = scmp.ne.s32.totalorder %s935_s1, %s513_s8  ;;  %s781_s5 = int_to_ptr.vmem [resolvable:$true] %s143_s5 }
  0x1a   : > { %s950_s30 = scalar_select %p777_p3, 1, 0 }
  0x1b   : > { %p515_p9 = pneg %p771_p7  ;;  %p520_p10 = scmp.lt.u32.totalorder %s513_s8, %s935_s1 }
  0x1d   : > { %p516_p4 = pnand %p515_p9, %p514_p8 }
  0x1f   : > { %p517_p5 = pneg %p516_p4 }
  0x21   : > { %p522_p2 = pnand %p520_p10, %p517_p5 }
  0x23   : > { %525 = shalt.err (!%p522_p2)
}
  0x24   : > { %s526_s19 = scalar_lea.vmem %s133_s28, 64  ;;  %p534_p11 = scmp.lt.s32.totalorder %s133_s28, %s133_s28 }
  0x25   : > { %p527_p0 = scmp.ne.s32.totalorder %s133_s28, %s526_s19  ;;  %p535_p6 = scmp.lt.s32.totalorder %s526_s19, %s526_s19 }
  0x27   : > { %p529_p1 = pnand %p527_p0, %p515_p9  ;;  %p536_p13 = por %p535_p6, %p534_p11 }
  0x29   : > { %p530_p12 = pneg %p529_p1 }
  0x2b   : > { %p537_p3 = pnand %p536_p13, %p530_p12 }
  0x2d   : > { %540 = shalt.err (!%p537_p3)
}
  0x2e   : > { %446 = dma.hbm_to_vmem [thread:$0]  (!%p771_p7), %s935_s1, 64, %s133_s28, [#allocation6]  }
  0x2f   : > { %s154_s27 = sand.u32 1, %s665_s14   ;;  %s541_s7 = scalar_lea.hbm %s936_s2, 16 }
  0x30   : > { %p542_p1 = scmp.ne.s32.totalorder %s936_s2, %s541_s7  ;;  %p548_p12 = scmp.lt.u32.totalorder %s541_s7, %s936_s2 }
  0x32   : > { %p544_p6 = pnand %p542_p1, %p515_p9 }
  0x34   : > { %p545_p11 = pneg %p544_p6 }
  0x36   : > { %p550_p13 = pnand %p548_p12, %p545_p11 }
  0x38   : > { %553 = shalt.err (!%p550_p13)
}
  0x39   : > { %s554_s28 = scalar_lea.vmem %s781_s5, 16  ;;  %s561_s17 = scalar_lea.vmem %s781_s5, 32 }
  0x3a   : > { %p555_p3 = scmp.ne.s32.totalorder %s781_s5, %s554_s28  ;;  %p562_p5 = scmp.lt.s32.totalorder %s781_s5, %s781_s5 }
  0x3b   : > { %p563_p10 = scmp.lt.s32.totalorder %s561_s17, %s554_s28 }
  0x3c   : > { %p557_p8 = pnand %p555_p3, %p515_p9 }
  0x3d   : > { %p564_p2 = por %p563_p10, %p562_p5 }
  0x3e   : > { %p558_p4 = pneg %p557_p8 }
  0x40   : > { %p565_p0 = pnand %p564_p2, %p558_p4 }
  0x42   : > { %568 = shalt.err (!%p565_p0)
}
  0x43   : > { %449 = dma.hbm_to_vmem [thread:$0]  (!%p771_p7), %s936_s2, 16, %s781_s5, [#allocation6]  }
  0x44   : > { %s405_s22 = sshll.u32 %s154_s27, 3  ;;  %s421_s4 = sshll.u32 %s669_s15, 7 }
  0x45   : > { %s836_s8 = scalar_lea.hbm %s934_s0, %s421_s4  ;;  %s158_s29 = scalar_lea.vmem [#allocation2], %s405_s22 }
  0x46   : > { %s165_s9 = sshll.u32 %s158_s29, 4  ;;  %s840_s10 = scalar_lea.sflag [#allocation3], %s154_s27  ;;  %s838_s9 = int_to_ptr.vmem [resolvable:$true] %s165_s9 }
  0x47   : > { %s569_s11 = scalar_lea.hbm %s836_s8, 128  ;;  %p951_p7 = scmp.ne.s32.totalorder %s950_s30, 0 }
  0x48   : > { %p570_p9 = scmp.ne.s32.totalorder %s836_s8, %s569_s11  ;;  %s574_s17 = scalar_lea.hbm %s934_s0, 256 }
  0x49   : > { %p571_p1 = pneg %p951_p7  ;;  %p575_p12 = scmp.lt.u32.totalorder %s836_s8, %s934_s0 }
  0x4a   : > { %p576_p13 = scmp.lt.u32.totalorder %s574_s17, %s569_s11  ;;  %p578_p8 = scmp.lt.u32.totalorder %s569_s11, %s836_s8 }
  0x4b   : > { %p572_p6 = pnand %p571_p1, %p570_p9 }
  0x4c   : > { %p577_p3 = por %p576_p13, %p575_p12 }
  0x4d   : > { %p573_p11 = pneg %p572_p6 }
  0x4e   : > { %p579_p4 = por %p578_p8, %p577_p3 }
  0x50   : > { %p580_p5 = pnand %p579_p4, %p573_p11 }
  0x52   : > { %583 = shalt.err (!%p580_p5)
}
  0x53   : > { %s584_s27 = scalar_lea.vmem %s838_s9, 128  ;;  %s673_s22 = smov [#allocation2]  }
  0x54   : > { %p585_p10 = scmp.ne.s32.totalorder %s838_s9, %s584_s27  ;;  %s589_s4 = sshll.u32 %s673_s22, 4  ;;  %s590_s4 = int_to_ptr.vmem [resolvable:$false] %s589_s4 }
  0x55   : > { %s591_s6 = scalar_lea.vmem %s590_s4, 256  ;;  %p592_p9 = scmp.lt.s32.totalorder %s838_s9, %s590_s4 }
  0x56   : > { %p587_p2 = pnand %p585_p10, %p571_p1  ;;  %p593_p6 = scmp.lt.s32.totalorder %s591_s6, %s584_s27 }
  0x58   : > { %p588_p0 = pneg %p587_p2  ;;  %p594_p12 = por %p593_p6, %p592_p9 }
  0x5a   : > { %p595_p13 = pnand %p594_p12, %p588_p0 }
  0x5c   : > { %598 = shalt.err (!%p595_p13)
}
  0x5d   : > { %s674_s7 = smov 64   ;;  %s675_s29 = smov 4  }
  0x5e   : > { %453 = dma.hbm_to_vmem [thread:$0]  (!%p951_p7), %s836_s8, 128, %s838_s9, %s840_s10, %s674_s7, %s674_s7, %s675_s29  }
  0x5f   : > { %p952_p1 = scmp.ne.s32.totalorder %s947_s26, 0 }
  0x60   : > { %s871_s11 = sand.u32 (!%p952_p1), 1, %s661_s13   ;;  %p953_p11 = scmp.ne.s32.totalorder (!%p952_p1), %s944_s23, 0 }
  0x61   : > { %177 = sbr.rel (%p952_p1) target bundleno = 372 (0x174), region = 32  ;;  %s409_s5 = sshll.u32 (!%p952_p1), %s871_s11, 3 }
  0x62   : > { %s180_s28 = scalar_lea.sflag (!%p952_p1), [#allocation3], %s871_s11  ;;  %s183_s17 = scalar_lea.vmem (!%p952_p1), [#allocation2], %s409_s5 }
  0x68   : > { %644 = dma.done.wait (%p953_p11), %s180_s28, 128  }
  0x69   : > { %646 = vsyncadd (%p953_p11), %s180_s28, 4294967168  ;;  %p954_p3 = scmp.eq.s32.totalorder %s722_s16, 0 }
  0x6b   : > { %648 = dma.done.wait (%p954_p3), [#allocation6], 80   ;;  %p955_p7 = pmov %p954_p3 }
  0x6c   : > { %v676_v0 = vmov 0.0   ;;  %vm677_vm0 = vmmov 0   ;;  %vm234_vm1 = vcmask 1043456   ;;  %v217_v1 = vld [vmem:[#allocation5] sm:$0xf]  ;;  %v504_v3 = vld [vmem:[%s183_s17] sm:$0xff]  }
  0x6d   : > { %650 = vsyncadd (%p955_p7), [#allocation6], 4294967216  ;;  %425 = vmatprep.subr.bf16.mxu0 %v676_v0  ;;  %427 = vmatprep.mubr.msk.bf16.mxu0 %vm677_vm0, %v676_v0  ;;  %v236_v2 = vsel %vm234_vm1, %v217_v1, 0  ;;  %vm230_vm2 = vcmask 64512   ;;  %v413_v4 = vld [vmem:[#allocation7] ss:$0 sm:$0xff] }
  0x6e   : > { %426 = vmatpush3.bf16.msra.mxu0 %v236_v2  ;;  %s412_s23 = sshll.u32 %s871_s11, 4  ;;  %s422_s26 = sshll.u32 %s722_s16, 8  ;;  %vm291_vm3 = vcmask 31744  }
  0x6f   : > { %s213_s30 = scalar_lea.vmem [#allocation8], %s412_s23  ;;  %s888_s19 = scalar_lea.hbm %s937_s3, %s422_s26 }
  0x70   : > { %s308_s8 = sshll.u32 %s213_s30, 4  ;;  %s295_s20 = scalar_lea.sflag [#allocation4], %s871_s11  ;;  %s890_s8 = int_to_ptr.vmem [resolvable:$true] %s308_s8 }
  0x71   : > { %428 = vmatmul.mubr.msk.bf16.vlgmr.msra.gmra.mrb[0].mxu0 %vm230_vm2, %v504_v3  ;;  %s599_s27 = scalar_lea.vmem %s890_s8, 256  ;;  %p956_p4 = scmp.ne.s32.totalorder %s945_s24, 0 }
  0x72   : > { %p600_p8 = scmp.ne.s32.totalorder %s890_s8, %s599_s27  ;;  %s678_s16 = smov [#allocation8]  }
  0x73   : > { %s603_s22 = sshll.u32 %s678_s16, 4  ;;  %s604_s22 = int_to_ptr.vmem [resolvable:$false] %s603_s22 }
  0x74   : > { %p601_p5 = pnand %p600_p8, %p956_p4  ;;  %s605_s4 = scalar_lea.vmem %s604_s22, 512 }
  0x75   : > { %p606_p2 = scmp.lt.s32.totalorder %s890_s8, %s604_s22  ;;  %p607_p0 = scmp.lt.s32.totalorder %s605_s4, %s599_s27 }
  0x76   : > { %p602_p10 = pneg %p601_p5 }
  0x77   : > { %p608_p9 = por %p607_p0, %p606_p2 }
  0x79   : > { %p609_p6 = pnand %p608_p9, %p602_p10 }
 0x144   : > { %v272_v5 = vpop.f32.mrb[0].mxu0 }
 0x145   : > { %v273_v6 = vadd.f32 %v413_v4, %v272_v5  ;;  %v429_v7 = vpop.f32.mrb[1].mxu0 }
 0x146   : > { %v275_v8 = vpop.f32.mrb[2].mxu0 }
 0x147   : > { %v279_v9 = vsub.f32 0.0, %v273_v6  ;;  %v276_v10 = vadd.f32 %v413_v4, %v275_v8  ;;  %v430_v11 = vpop.f32.mrb[3].mxu0 }
 0x149   : > { %v281_v12 = vmul.f32 1.442695, %v279_v9  ;;  %v280_v13 = vsub.f32 0.0, %v276_v10 }
 0x14b   : > { %505 = vpow2.f32 %v281_v12  ;;  %v283_v14 = vmul.f32 1.442695, %v280_v13 }
 0x14d   : > { %507 = vpow2.f32 %v283_v14 }
 0x155   : > { %v506_v15 = vpop.eup %505 }
 0x156   : > { %v285_v16 = vadd.f32 1.0, %v506_v15 }
 0x157   : > { %v508_v17 = vpop.eup %507 }
 0x158   : > { %509 = vrcp.f32 %v285_v16  ;;  %v286_v18 = vadd.f32 1.0, %v508_v17 }
 0x15a   : > { %511 = vrcp.f32 %v286_v18 }
 0x162   : > { %v510_v19 = vpop.eup %509 }
 0x163   : > { %292 = vst.msk [vmem:[%s213_s30] sm:$0xff] %vm291_vm3, %v510_v19 }
 0x164   : > { %v512_v20 = vpop.eup %511 }
 0x165   : > { %293 = vst.msk [vmem:[%s213_s30 + $0x8] sm:$0xff] %vm291_vm3, %v512_v20 }
 0x166   : > { %612 = shalt.err (!%p609_p6)
}
 0x167   : > { %s613_s6 = scalar_lea.hbm %s888_s19, 256  ;;  %s617_s5 = scalar_lea.hbm %s937_s3, 512 }
 0x168   : > { %p614_p12 = scmp.ne.s32.totalorder %s888_s19, %s613_s6  ;;  %p618_p11 = scmp.lt.u32.totalorder %s888_s19, %s937_s3 }
 0x169   : > { %p619_p3 = scmp.lt.u32.totalorder %s617_s5, %s613_s6  ;;  %p621_p8 = scmp.lt.u32.totalorder %s613_s6, %s888_s19 }
 0x16a   : > { %p615_p13 = pnand %p614_p12, %p956_p4 }
 0x16b   : > { %p620_p7 = por %p619_p3, %p618_p11 }
 0x16c   : > { %p616_p1 = pneg %p615_p13 }
 0x16d   : > { %p622_p5 = por %p621_p8, %p620_p7 }
 0x16f   : > { %p623_p10 = pnand %p622_p5, %p616_p1 }
 0x171   : > { %626 = shalt.err (!%p623_p10)
}
 0x172   : > { %s679_s23 = smov 128   ;;  %s680_s26 = smov 8  }
 0x173   : > { %441 = dma.vmem_to_hbm [thread:$0]  (%p956_p4), %s890_s8, 256, %s888_s19, %s295_s20, %s679_s23, %s679_s23, %s680_s26  }
 0x174 PF: > { %s323_s30 = sand.u32 1, %s657_s12   ;;  %p957_p2 = scmp.ne.s32.totalorder %s946_s25, 0 }
 0x175   : > { %p958_p0 = scmp.ge.s32.totalorder %s669_s15, 2  ;;  %s324_s9 = scalar_lea.sflag [#allocation4], %s323_s30 }
 0x177   : > { %p455_p9 = pnand %p958_p0, %p957_p2 }
 0x179   : > { %652 = dma.done.wait (!%p455_p9), %s324_s9, 256  }
 0x17a   : > { %654 = vsyncadd (!%p455_p9), %s324_s9, 4294967040  ;;  %p17_p6 = scmp.ge.s32.totalorder %s726_s18, 4   ;;  %s959_s12 = smov %s661_s13 }
 0x17b   : > { %s960_s13 = smov %s665_s14  ;;  %s961_s14 = smov %s738_s21 }
 0x17c   : > { %s962_s15 = smov %s726_s18  ;;  %19 = sbr.rel (!%p17_p6) target bundleno = 6 (0x6), region = 85 }
 0x183   :  { %329 = vsyncpa [#allocation3], 1 }
 0x184   :  { %331 = vsyncpa [#allocation3 + $0x1], 1 }
 0x185   :  { %332 = vsyncpa [#allocation6], 1 }
 0x186   :  { %333 = vsyncpa [#allocation4], 1 }
 0x187   :  { %335 = vsyncpa [#allocation4 + $0x1], 1 }

</bundles_post_ra>
